<compile_context>
chip_gen: v7x
topology: tpu7x:2x2x1
jax: 0.10.0
libtpu: 0.0.40
codegen_flags: <defaults>
</compile_context>

<pallas_src>
import jax
import jax.numpy as jnp
from jax import lax
from jax.experimental import pallas as pl
from jax.experimental.pallas import tpu as pltpu

C = 256          # fixed by the module (Conv2d(256, 256, 3, stride=2))
KH = KW = 3
STRIDE = 2
EPS = 1e-5

M_CHUNK = 256                       # rows per in-kernel matmul chunk (v5e could use 128)
BATCH_TILES = (16, 64, 64)          # images per grid step, per layer (v7x-safe VMEM)
VMEM_LIMIT_BYTES = 48 * 1024 * 1024  # <= ~48 MiB/TC (v7x has 64 MiB; v5e/v6e have 128 MiB)


def _round_up(x, m):
    return ((x + m - 1) // m) * m


# ----------------------------- Pallas kernels -------------------------------

def _make_conv_kernel(nc, mc, cs, rs, tb, fuse_pool):
    """Fused conv(3x3, stride 2) + folded BN + ReLU (+ optional global avg pool).

    Ref shapes (per grid step):
      x00..x11 : (br_in, C)  bf16  flattened (row,col)-parity planes, per-image stride rs
      w        : (9, C, C)   bf16  per-tap weights, tap t = 3*i + j  (resident)
      scale    : (1, C)      f32   folded BN scale
      shift    : (1, C)      f32   folded BN shift (+ conv bias)
      mask     : (br_out, 1) f32   (pool layer only) 1/(oh*ow) on valid rows
      out      : (br_out, C) bf16  or (tb, C) f32 when fuse_pool
      psum     : (br_out, C) f32   VMEM scratch (pool layer only)
    """
    # Tap t = 3*i + j reads parity plane (i%2, j%2) at flat row offset (i//2)*cs + (j//2).
    # Planes are ordered [(0,0),(0,1),(1,0),(1,1)] -> plane index 2*(i%2) + (j%2).
    groups = (
        (0,      ((0, 0), (1, 1), (2, 3), (3, 4))),   # (plane_idx, tap_idx)
        (1,      ((0, 2), (2, 5))),
        (cs,     ((0, 6), (1, 7))),
        (cs + 1, ((0, 8),)),
    )

    def kernel(*refs):
        if fuse_pool:
            (x00, x01, x10, x11, w_ref, s_ref, b_ref, m_ref, o_ref, psum_ref) = refs
        else:
            (x00, x01, x10, x11, w_ref, s_ref, b_ref, o_ref) = refs
            m_ref = psum_ref = None
        planes = (x00, x01, x10, x11)

        @pl.loop(0, nc)
        def _(chunk):
            m0 = pl.multiple_of(chunk * mc, mc)
            acc = None
            for off, members in groups:
                grp = None
                for pi, t in members:
                    # aligned bf16 load; the +off overhang is covered by the block guard.
                    lhs = planes[pi][pl.ds(m0, mc + off), :]
                    d = jnp.dot(lhs, w_ref[t], preferred_element_type=jnp.float32)
                    grp = d if grp is None else grp + d
                if off:
                    grp = grp[off:off + mc, :]          # 32-bit sublane shift on f32 acc
                acc = grp if acc is None else acc + grp
            # folded inference BatchNorm (+ conv bias) and ReLU, in f32
            y = jnp.maximum(acc * s_ref[...] + b_ref[...], 0.0)
            if fuse_pool:
                psum_ref[pl.ds(m0, mc), :] = y * m_ref[pl.ds(m0, mc), :]
            else:
                o_ref[pl.ds(m0, mc), :] = y.astype(o_ref.dtype)

        if fuse_pool:
            # per-image global average pool: masked row sums (mask already carries 1/n)
            for b in range(tb):
                o_ref[b:b + 1, :] = jnp.sum(psum_ref[b * rs:(b + 1) * rs, :],
                                            axis=0, keepdims=True)

    return kernel


# ------------------------------- wrappers ---------------------------------

def _extract_planes(x_store, oh, cs):
    """x_store: (N, HS, WS, C) -> 4 arrays (N, (oh+1)*cs, C) bf16 with
    plane(p,q)[n, r*cs + s, :] = x_store[n, 2r+p, 2s+q, :] (zero where out of range).
    Garbage rows/cols of x_store only ever land in plane positions that feed garbage
    outputs (valid outputs read rows <= 2*oh-2+i <= h-1, cols <= 2*ow-2+j <= w-1)."""
    n = x_store.shape[0]
    planes = []
    for p in (0, 1):
        for q in (0, 1):
            xp = x_store[:, p::2, q::2, :][:, :oh + 1, :cs, :]
            pad_r = (oh + 1) - xp.shape[1]
            pad_c = cs - xp.shape[2]
            if pad_r or pad_c:
                xp = jnp.pad(xp, ((0, 0), (0, pad_r), (0, pad_c), (0, 0)))
            planes.append(xp.reshape(n, (oh + 1) * cs, -1).astype(jnp.bfloat16))
    return planes


def _pack_plane(plane, n_pad, rs, nb, tb, br_in):
    """(N, PR, C) -> (NB*BR_IN, C): per-image stride rs, per-block guard rows to br_in."""
    n, pr, c = plane.shape
    plane = jnp.pad(plane, ((0, n_pad - n), (0, rs - pr), (0, 0)))
    plane = plane.reshape(nb, tb * rs, c)
    plane = jnp.pad(plane, ((0, 0), (0, br_in - tb * rs), (0, 0)))
    return plane.reshape(nb * br_in, c)


def conv_bn_relu_layer(x_store, h, w, w_taps, scale, shift, *, fuse_pool,
                       batch_tile, m_chunk=M_CHUNK):
    """x_store: (N, HS, WS, C) bf16 with the true activation in the [:h, :w] corner.
    Returns ((N, oh+1, ow+1, C) bf16, oh, ow), or (N, C) f32 when fuse_pool."""
    n = x_store.shape[0]
    oh = (h - KH) // STRIDE + 1
    ow = (w - KW) // STRIDE + 1
    assert oh >= 1 and ow >= 1, "spatial size too small for this conv stack"
    cs = ow + 1                          # stored (padded) output-row width
    pr = (oh + 1) * cs                   # plane / stored-output rows per image
    rs = _round_up(pr, 8)                # per-image row stride

    # per-layer batch tile (perf review opt 2); keep pool-output block 8-aligned
    tb = n if n <= batch_tile else max(8, (batch_tile // 8) * 8)
    n_pad = _round_up(n, tb)
    nb = n_pad // tb

    mc = min(m_chunk, tb * rs)           # both multiples of 8
    nc = pl.cdiv(tb * rs, mc)
    br_out = nc * mc                     # rows computed / written per grid step
    br_in = br_out + _round_up(cs + 1, 8)    # + guard for the +cs+1 shifted reads

    planes = _extract_planes(x_store, oh, cs)
    packed = [_pack_plane(p, n_pad, rs, nb, tb, br_in) for p in planes]

    kernel = _make_conv_kernel(nc, mc, cs, rs, tb, fuse_pool)

    in_specs = [pl.BlockSpec((br_in, C), lambda i: (i, 0)) for _ in range(4)]
    in_specs += [
        pl.BlockSpec((KH * KW, C, C), lambda i: (0, 0, 0)),   # weights, resident
        pl.BlockSpec((1, C), lambda i: (0, 0)),               # BN scale
        pl.BlockSpec((1, C), lambda i: (0, 0)),               # BN shift
    ]
    inputs = packed + [w_taps, scale, shift]
    scratch = []
    if fuse_pool:
        mrow = jnp.arange(br_out, dtype=jnp.int32)
        local = mrow % rs
        valid = (local < oh * cs) & ((local % cs) < ow)
        pool_mask = (valid.astype(jnp.float32) / float(oh * ow)).reshape(br_out, 1)
        in_specs.append(pl.BlockSpec((br_out, 1), lambda i: (0, 0)))
        inputs.append(pool_mask)
        out_shape = jax.ShapeDtypeStruct((n_pad, C), jnp.float32)
        out_spec = pl.BlockSpec((tb, C), lambda i: (i, 0))
        scratch = [pltpu.VMEM((br_out, C), jnp.float32)]
    else:
        out_shape = jax.ShapeDtypeStruct((nb * br_out, C), jnp.bfloat16)
        out_spec = pl.BlockSpec((br_out, C), lambda i: (i, 0))

    y = pl.pallas_call(
        kernel,
        out_shape=out_shape,
        grid_spec=pltpu.PrefetchScalarGridSpec(
            num_scalar_prefetch=0,
            grid=(nb,),
            in_specs=in_specs,
            out_specs=out_spec,
            scratch_shapes=scratch,
        ),
        compiler_params=pltpu.CompilerParams(
            dimension_semantics=("parallel",),
            vmem_limit_bytes=VMEM_LIMIT_BYTES,
        ),
    )(*inputs)

    if fuse_pool:
        return y[:n]
    # (NB*BR_OUT, C) -> (n, oh+1, cs, C): the stored layout consumed directly by the next
    # layer's parity-plane extraction (the true activation is the [:oh, :ow] corner).
    y = y.reshape(nb, br_out, C)[:, :tb * rs, :].reshape(n_pad, rs, C)
    y = y[:n, :pr, :].reshape(n, oh + 1, cs, C)
    return y, oh, ow


def cnn_module_forward(x_nchw, prepped_params):
    """Pallas implementation of CnnModule.forward: (N, 256, H, W) -> (N, 256)."""
    x = jnp.transpose(x_nchw, (0, 2, 3, 1)).astype(jnp.bfloat16)   # NCHW -> NHWC
    _, h, w, _ = x.shape
    last = len(prepped_params) - 1
    out = None
    for idx, (w_taps, scale, shift) in enumerate(prepped_params):
        tile = BATCH_TILES[min(idx, len(BATCH_TILES) - 1)]
        if idx == last:
            out = conv_bn_relu_layer(x, h, w, w_taps, scale, shift,
                                     fuse_pool=True, batch_tile=tile)
        else:
            x, h, w = conv_bn_relu_layer(x, h, w, w_taps, scale, shift,
                                         fuse_pool=False, batch_tile=tile)
    return out    # (N, 256) float32


# --------------------------- params & reference ----------------------------

def init_params(key):
    params = []
    for _ in range(3):
        key, k1, k2, k3, k4, k5, k6 = jax.random.split(key, 7)
        w = jax.random.normal(k1, (C, C, KH, KW), jnp.float32) * 0.02   # (Cout,Cin,KH,KW)
        b = jax.random.normal(k2, (C,), jnp.float32) * 0.02
        gamma = 1.0 + 0.1 * jax.random.normal(k3, (C,), jnp.float32)
        beta = 0.1 * jax.random.normal(k4, (C,), jnp.float32)
        r_mean = 0.1 * jax.random.normal(k5, (C,), jnp.float32)
        r_var = jax.random.uniform(k6, (C,), jnp.float32, minval=0.5, maxval=1.5)
        params.append((w, b, gamma, beta, r_mean, r_var))
    return params


def prepare_params(params):
    """Fold conv weights into per-tap bf16 (Cin,Cout) matrices and BN into scale/shift."""
    prepped = []
    for (w, b, gamma, beta, r_mean, r_var) in params:
        w_taps = jnp.transpose(w, (2, 3, 1, 0)).reshape(KH * KW, C, C)   # tap t = 3*i + j
        w_taps = w_taps.astype(jnp.bfloat16)
        inv_std = 1.0 / jnp.sqrt(r_var + EPS)
        scale = (gamma * inv_std).reshape(1, C).astype(jnp.float32)
        shift = (beta + (b - r_mean) * gamma * inv_std).reshape(1, C).astype(jnp.float32)
        prepped.append((w_taps, scale, shift))
    return prepped


def reference_forward(x_nchw, params):
    """Pure-JAX (XLA) reference mirroring the PyTorch forward (inference BN)."""
    x = x_nchw.astype(jnp.float32)
    for (w, b, gamma, beta, r_mean, r_var) in params:
        y = lax.conv_general_dilated(
            x, w, window_strides=(STRIDE, STRIDE), padding='VALID',
            dimension_numbers=('NCHW', 'OIHW', 'NCHW'),
            precision=lax.Precision.HIGHEST)
        y = y + b.reshape(1, C, 1, 1)
        y = (y - r_mean.reshape(1, C, 1, 1)) / jnp.sqrt(r_var.reshape(1, C, 1, 1) + EPS)
        y = y * gamma.reshape(1, C, 1, 1) + beta.reshape(1, C, 1, 1)
        x = jnp.maximum(y, 0.0)
    return jnp.mean(x, axis=(2, 3))


# --------------------------------- main ------------------------------------

if __name__ == "__main__":
    key = jax.random.PRNGKey(0)
    key, kx = jax.random.split(key)
    # Module docstring says torch.Size([1600, 256, 30, 40]); small analogue (NCHW):
    x = jax.random.normal(kx, (2, C, 20, 24), jnp.float32)
    params = init_params(key)
    prepped = prepare_params(params)        # weight repack + BN folding done once

    fwd = jax.jit(cnn_module_forward)
    out = jax.block_until_ready(fwd(x, prepped))
    assert out.shape == (2, C), out.shape

    ref = reference_forward(x, params)
    max_diff = float(jnp.max(jnp.abs(out - ref)))
    # bf16 MXU operands / bf16 inter-layer activations (f32 accumulation) -> loose tol.
    if not jnp.allclose(out, ref, rtol=5e-2, atol=5e-2):
        raise AssertionError(f"mismatch vs reference, max abs diff = {max_diff}")
    print("KERNEL_OK")
</pallas_src>

<mosaic_0001>
module attributes {stable_mosaic.version = 11 : i64} {
  func.func @kernel(%arg0: i32, %arg1: memref<256x256xbf16, #tpu.memory_space<vmem>>, %arg2: memref<256x256xbf16, #tpu.memory_space<vmem>>, %arg3: memref<256x256xbf16, #tpu.memory_space<vmem>>, %arg4: memref<256x256xbf16, #tpu.memory_space<vmem>>, %arg5: memref<9x256x256xbf16, #tpu.memory_space<vmem>>, %arg6: memref<1x256xf32, #tpu.memory_space<vmem>>, %arg7: memref<1x256xf32, #tpu.memory_space<vmem>>, %arg8: memref<240x256xbf16, #tpu.memory_space<vmem>>) attributes {dimension_semantics = [#tpu.dimension_semantics<parallel>], iteration_bounds = array<i64: 1>, scalar_prefetch = 0 : i64, scratch_operands = 0 : i64, tpu.core_type = #tpu.core_type<tc>, window_params = [{transform_indices = @transform_0, window_bounds = array<i64: 256, 256>}, {transform_indices = @transform_1, window_bounds = array<i64: 256, 256>}, {transform_indices = @transform_2, window_bounds = array<i64: 256, 256>}, {transform_indices = @transform_3, window_bounds = array<i64: 256, 256>}, {pipeline_mode = #tpu.pipeline_mode<synchronous>, transform_indices = @transform_4, window_bounds = array<i64: 9, 256, 256>}, {pipeline_mode = #tpu.pipeline_mode<synchronous>, transform_indices = @transform_5, window_bounds = array<i64: 1, 256>}, {pipeline_mode = #tpu.pipeline_mode<synchronous>, transform_indices = @transform_6, window_bounds = array<i64: 1, 256>}, {transform_indices = @transform_7, window_bounds = array<i64: 240, 256>}]} {
    %c0_i32 = arith.constant 0 : i32
    %c1_i32 = arith.constant 1 : i32
    %0 = arith.muli %c0_i32, %c1_i32 : i32
    %c0_i32_0 = arith.constant 0 : i32
    %1 = arith.addi %c0_i32_0, %0 : i32
    %c240_i32 = arith.constant 240 : i32
    %2 = arith.muli %1, %c240_i32 : i32
    %3 = tpu.assume_multiple %2, 240 : i32
    %4 = arith.index_cast %3 : i32 to index
    %c0 = arith.constant 0 : index
    %5 = vector.load %arg1[%4, %c0] : memref<256x256xbf16, #tpu.memory_space<vmem>>, vector<240x256xbf16>
    %c0_1 = arith.constant 0 : index
    %c0_2 = arith.constant 0 : index
    %c0_3 = arith.constant 0 : index
    %6 = vector.load %arg5[%c0_1, %c0_2, %c0_3] : memref<9x256x256xbf16, #tpu.memory_space<vmem>>, vector<1x256x256xbf16>
    %7 = vector.shape_cast %6 : vector<1x256x256xbf16> to vector<256x256xbf16>
    %cst = arith.constant dense<0.000000e+00> : vector<240x256xf32>
    %8 = tpu.matmul %5, %7, %cst {dimension_numbers = #tpu.dot_dimension_numbers<[1], [0], [0], [1], [0, 0, 1, 1], [], []>} : vector<240x256xbf16>, vector<256x256xbf16>, vector<240x256xf32> -> vector<240x256xf32>
    %9 = arith.index_cast %3 : i32 to index
    %c0_4 = arith.constant 0 : index
    %10 = vector.load %arg2[%9, %c0_4] : memref<256x256xbf16, #tpu.memory_space<vmem>>, vector<240x256xbf16>
    %c1 = arith.constant 1 : index
    %c0_5 = arith.constant 0 : index
    %c0_6 = arith.constant 0 : index
    %11 = vector.load %arg5[%c1, %c0_5, %c0_6] : memref<9x256x256xbf16, #tpu.memory_space<vmem>>, vector<1x256x256xbf16>
    %12 = vector.shape_cast %11 : vector<1x256x256xbf16> to vector<256x256xbf16>
    %cst_7 = arith.constant dense<0.000000e+00> : vector<240x256xf32>
    %13 = tpu.matmul %10, %12, %cst_7 {dimension_numbers = #tpu.dot_dimension_numbers<[1], [0], [0], [1], [0, 0, 1, 1], [], []>} : vector<240x256xbf16>, vector<256x256xbf16>, vector<240x256xf32> -> vector<240x256xf32>
    %14 = arith.addf %8, %13 : vector<240x256xf32>
    %15 = arith.index_cast %3 : i32 to index
    %c0_8 = arith.constant 0 : index
    %16 = vector.load %arg3[%15, %c0_8] : memref<256x256xbf16, #tpu.memory_space<vmem>>, vector<240x256xbf16>
    %c3 = arith.constant 3 : index
    %c0_9 = arith.constant 0 : index
    %c0_10 = arith.constant 0 : index
    %17 = vector.load %arg5[%c3, %c0_9, %c0_10] : memref<9x256x256xbf16, #tpu.memory_space<vmem>>, vector<1x256x256xbf16>
    %18 = vector.shape_cast %17 : vector<1x256x256xbf16> to vector<256x256xbf16>
    %cst_11 = arith.constant dense<0.000000e+00> : vector<240x256xf32>
    %19 = tpu.matmul %16, %18, %cst_11 {dimension_numbers = #tpu.dot_dimension_numbers<[1], [0], [0], [1], [0, 0, 1, 1], [], []>} : vector<240x256xbf16>, vector<256x256xbf16>, vector<240x256xf32> -> vector<240x256xf32>
    %20 = arith.addf %14, %19 : vector<240x256xf32>
    %21 = arith.index_cast %3 : i32 to index
    %c0_12 = arith.constant 0 : index
    %22 = vector.load %arg4[%21, %c0_12] : memref<256x256xbf16, #tpu.memory_space<vmem>>, vector<240x256xbf16>
    %c4 = arith.constant 4 : index
    %c0_13 = arith.constant 0 : index
    %c0_14 = arith.constant 0 : index
    %23 = vector.load %arg5[%c4, %c0_13, %c0_14] : memref<9x256x256xbf16, #tpu.memory_space<vmem>>, vector<1x256x256xbf16>
    %24 = vector.shape_cast %23 : vector<1x256x256xbf16> to vector<256x256xbf16>
    %cst_15 = arith.constant dense<0.000000e+00> : vector<240x256xf32>
    %25 = tpu.matmul %22, %24, %cst_15 {dimension_numbers = #tpu.dot_dimension_numbers<[1], [0], [0], [1], [0, 0, 1, 1], [], []>} : vector<240x256xbf16>, vector<256x256xbf16>, vector<240x256xf32> -> vector<240x256xf32>
    %26 = arith.addf %20, %25 : vector<240x256xf32>
    %27 = arith.index_cast %3 : i32 to index
    %c0_16 = arith.constant 0 : index
    %28 = vector.load %arg1[%27, %c0_16] : memref<256x256xbf16, #tpu.memory_space<vmem>>, vector<241x256xbf16>
    %c2 = arith.constant 2 : index
    %c0_17 = arith.constant 0 : index
    %c0_18 = arith.constant 0 : index
    %29 = vector.load %arg5[%c2, %c0_17, %c0_18] : memref<9x256x256xbf16, #tpu.memory_space<vmem>>, vector<1x256x256xbf16>
    %30 = vector.shape_cast %29 : vector<1x256x256xbf16> to vector<256x256xbf16>
    %cst_19 = arith.constant dense<0.000000e+00> : vector<241x256xf32>
    %31 = tpu.matmul %28, %30, %cst_19 {dimension_numbers = #tpu.dot_dimension_numbers<[1], [0], [0], [1], [0, 0, 1, 1], [], []>} : vector<241x256xbf16>, vector<256x256xbf16>, vector<241x256xf32> -> vector<241x256xf32>
    %32 = arith.index_cast %3 : i32 to index
    %c0_20 = arith.constant 0 : index
    %33 = vector.load %arg3[%32, %c0_20] : memref<256x256xbf16, #tpu.memory_space<vmem>>, vector<241x256xbf16>
    %c5 = arith.constant 5 : index
    %c0_21 = arith.constant 0 : index
    %c0_22 = arith.constant 0 : index
    %34 = vector.load %arg5[%c5, %c0_21, %c0_22] : memref<9x256x256xbf16, #tpu.memory_space<vmem>>, vector<1x256x256xbf16>
    %35 = vector.shape_cast %34 : vector<1x256x256xbf16> to vector<256x256xbf16>
    %cst_23 = arith.constant dense<0.000000e+00> : vector<241x256xf32>
    %36 = tpu.matmul %33, %35, %cst_23 {dimension_numbers = #tpu.dot_dimension_numbers<[1], [0], [0], [1], [0, 0, 1, 1], [], []>} : vector<241x256xbf16>, vector<256x256xbf16>, vector<241x256xf32> -> vector<241x256xf32>
    %37 = arith.addf %31, %36 : vector<241x256xf32>
    %38 = vector.extract_strided_slice %37 {offsets = [1, 0], sizes = [240, 256], strides = [1, 1]} : vector<241x256xf32> to vector<240x256xf32>
    %39 = arith.addf %26, %38 : vector<240x256xf32>
    %40 = arith.index_cast %3 : i32 to index
    %c0_24 = arith.constant 0 : index
    %41 = vector.load %arg1[%40, %c0_24] : memref<256x256xbf16, #tpu.memory_space<vmem>>, vector<252x256xbf16>
    %c6 = arith.constant 6 : index
    %c0_25 = arith.constant 0 : index
    %c0_26 = arith.constant 0 : index
    %42 = vector.load %arg5[%c6, %c0_25, %c0_26] : memref<9x256x256xbf16, #tpu.memory_space<vmem>>, vector<1x256x256xbf16>
    %43 = vector.shape_cast %42 : vector<1x256x256xbf16> to vector<256x256xbf16>
    %cst_27 = arith.constant dense<0.000000e+00> : vector<252x256xf32>
    %44 = tpu.matmul %41, %43, %cst_27 {dimension_numbers = #tpu.dot_dimension_numbers<[1], [0], [0], [1], [0, 0, 1, 1], [], []>} : vector<252x256xbf16>, vector<256x256xbf16>, vector<252x256xf32> -> vector<252x256xf32>
    %45 = arith.index_cast %3 : i32 to index
    %c0_28 = arith.constant 0 : index
    %46 = vector.load %arg2[%45, %c0_28] : memref<256x256xbf16, #tpu.memory_space<vmem>>, vector<252x256xbf16>
    %c7 = arith.constant 7 : index
    %c0_29 = arith.constant 0 : index
    %c0_30 = arith.constant 0 : index
    %47 = vector.load %arg5[%c7, %c0_29, %c0_30] : memref<9x256x256xbf16, #tpu.memory_space<vmem>>, vector<1x256x256xbf16>
    %48 = vector.shape_cast %47 : vector<1x256x256xbf16> to vector<256x256xbf16>
    %cst_31 = arith.constant dense<0.000000e+00> : vector<252x256xf32>
    %49 = tpu.matmul %46, %48, %cst_31 {dimension_numbers = #tpu.dot_dimension_numbers<[1], [0], [0], [1], [0, 0, 1, 1], [], []>} : vector<252x256xbf16>, vector<256x256xbf16>, vector<252x256xf32> -> vector<252x256xf32>
    %50 = arith.addf %44, %49 : vector<252x256xf32>
    %51 = vector.extract_strided_slice %50 {offsets = [12, 0], sizes = [240, 256], strides = [1, 1]} : vector<252x256xf32> to vector<240x256xf32>
    %52 = arith.addf %39, %51 : vector<240x256xf32>
    %53 = arith.index_cast %3 : i32 to index
    %c0_32 = arith.constant 0 : index
    %54 = vector.load %arg1[%53, %c0_32] : memref<256x256xbf16, #tpu.memory_space<vmem>>, vector<253x256xbf16>
    %c8 = arith.constant 8 : index
    %c0_33 = arith.constant 0 : index
    %c0_34 = arith.constant 0 : index
    %55 = vector.load %arg5[%c8, %c0_33, %c0_34] : memref<9x256x256xbf16, #tpu.memory_space<vmem>>, vector<1x256x256xbf16>
    %56 = vector.shape_cast %55 : vector<1x256x256xbf16> to vector<256x256xbf16>
    %cst_35 = arith.constant dense<0.000000e+00> : vector<253x256xf32>
    %57 = tpu.matmul %54, %56, %cst_35 {dimension_numbers = #tpu.dot_dimension_numbers<[1], [0], [0], [1], [0, 0, 1, 1], [], []>} : vector<253x256xbf16>, vector<256x256xbf16>, vector<253x256xf32> -> vector<253x256xf32>
    %58 = vector.extract_strided_slice %57 {offsets = [13, 0], sizes = [240, 256], strides = [1, 1]} : vector<253x256xf32> to vector<240x256xf32>
    %59 = arith.addf %52, %58 : vector<240x256xf32>
    %c0_36 = arith.constant 0 : index
    %c0_37 = arith.constant 0 : index
    %60 = vector.load %arg6[%c0_36, %c0_37] : memref<1x256xf32, #tpu.memory_space<vmem>>, vector<1x256xf32>
    %61 = vector.broadcast %60 : vector<1x256xf32> to vector<240x256xf32>
    %62 = arith.mulf %59, %61 : vector<240x256xf32>
    %c0_38 = arith.constant 0 : index
    %c0_39 = arith.constant 0 : index
    %63 = vector.load %arg7[%c0_38, %c0_39] : memref<1x256xf32, #tpu.memory_space<vmem>>, vector<1x256xf32>
    %64 = vector.broadcast %63 : vector<1x256xf32> to vector<240x256xf32>
    %65 = arith.addf %62, %64 : vector<240x256xf32>
    %cst_40 = arith.constant 0.000000e+00 : f32
    %66 = vector.broadcast %cst_40 : f32 to vector<240x256xf32>
    %67 = arith.maximumf %65, %66 : vector<240x256xf32>
    %68 = arith.truncf %67 : vector<240x256xf32> to vector<240x256xbf16>
    %69 = arith.index_cast %3 : i32 to index
    %c0_41 = arith.constant 0 : index
    %70 = vector.load %arg8[%69, %c0_41] : memref<240x256xbf16, #tpu.memory_space<vmem>>, vector<240x256xbf16>
    tpu.vector_store %arg8[%69, %c0_41], %68 {strides = array<i32>} : memref<240x256xbf16, #tpu.memory_space<vmem>>, vector<240x256xbf16>,
    %c1_i32_42 = arith.constant 1 : i32
    return
  }
  func.func @transform_0(%arg0: i32) -> (i32, i32) {
    %c0_i32 = arith.constant 0 : i32
    %c0_i32_0 = arith.constant 0 : i32
    return %arg0, %c0_i32 : i32, i32
  }
  func.func @transform_1(%arg0: i32) -> (i32, i32) {
    %c0_i32 = arith.constant 0 : i32
    %c0_i32_0 = arith.constant 0 : i32
    return %arg0, %c0_i32 : i32, i32
  }
  func.func @transform_2(%arg0: i32) -> (i32, i32) {
    %c0_i32 = arith.constant 0 : i32
    %c0_i32_0 = arith.constant 0 : i32
    return %arg0, %c0_i32 : i32, i32
  }
  func.func @transform_3(%arg0: i32) -> (i32, i32) {
    %c0_i32 = arith.constant 0 : i32
    %c0_i32_0 = arith.constant 0 : i32
    return %arg0, %c0_i32 : i32, i32
  }
  func.func @transform_4(%arg0: i32) -> (i32, i32, i32) {
    %c0_i32 = arith.constant 0 : i32
    %c0_i32_0 = arith.constant 0 : i32
    %c0_i32_1 = arith.constant 0 : i32
    %c0_i32_2 = arith.constant 0 : i32
    return %c0_i32, %c0_i32_0, %c0_i32_1 : i32, i32, i32
  }
  func.func @transform_5(%arg0: i32) -> (i32, i32) {
    %c0_i32 = arith.constant 0 : i32
    %c0_i32_0 = arith.constant 0 : i32
    %c0_i32_1 = arith.constant 0 : i32
    return %c0_i32, %c0_i32_0 : i32, i32
  }
  func.func @transform_6(%arg0: i32) -> (i32, i32) {
    %c0_i32 = arith.constant 0 : i32
    %c0_i32_0 = arith.constant 0 : i32
    %c0_i32_1 = arith.constant 0 : i32
    return %c0_i32, %c0_i32_0 : i32, i32
  }
  func.func @transform_7(%arg0: i32) -> (i32, i32) {
    %c0_i32 = arith.constant 0 : i32
    %c0_i32_0 = arith.constant 0 : i32
    return %arg0, %c0_i32 : i32, i32
  }
}

module attributes {stable_mosaic.version = 11 : i64} {
  func.func @kernel(%arg0: i32, %arg1: memref<72x256xbf16, #tpu.memory_space<vmem>>, %arg2: memref<72x256xbf16, #tpu.memory_space<vmem>>, %arg3: memref<72x256xbf16, #tpu.memory_space<vmem>>, %arg4: memref<72x256xbf16, #tpu.memory_space<vmem>>, %arg5: memref<9x256x256xbf16, #tpu.memory_space<vmem>>, %arg6: memref<1x256xf32, #tpu.memory_space<vmem>>, %arg7: memref<1x256xf32, #tpu.memory_space<vmem>>, %arg8: memref<64x256xbf16, #tpu.memory_space<vmem>>) attributes {dimension_semantics = [#tpu.dimension_semantics<parallel>], iteration_bounds = array<i64: 1>, scalar_prefetch = 0 : i64, scratch_operands = 0 : i64, tpu.core_type = #tpu.core_type<tc>, window_params = [{transform_indices = @transform_0, window_bounds = array<i64: 72, 256>}, {transform_indices = @transform_1, window_bounds = array<i64: 72, 256>}, {transform_indices = @transform_2, window_bounds = array<i64: 72, 256>}, {transform_indices = @transform_3, window_bounds = array<i64: 72, 256>}, {pipeline_mode = #tpu.pipeline_mode<synchronous>, transform_indices = @transform_4, window_bounds = array<i64: 9, 256, 256>}, {pipeline_mode = #tpu.pipeline_mode<synchronous>, transform_indices = @transform_5, window_bounds = array<i64: 1, 256>}, {pipeline_mode = #tpu.pipeline_mode<synchronous>, transform_indices = @transform_6, window_bounds = array<i64: 1, 256>}, {transform_indices = @transform_7, window_bounds = array<i64: 64, 256>}]} {
    %c0_i32 = arith.constant 0 : i32
    %c1_i32 = arith.constant 1 : i32
    %0 = arith.muli %c0_i32, %c1_i32 : i32
    %c0_i32_0 = arith.constant 0 : i32
    %1 = arith.addi %c0_i32_0, %0 : i32
    %c64_i32 = arith.constant 64 : i32
    %2 = arith.muli %1, %c64_i32 : i32
    %3 = tpu.assume_multiple %2, 64 : i32
    %4 = arith.index_cast %3 : i32 to index
    %c0 = arith.constant 0 : index
    %5 = vector.load %arg1[%4, %c0] : memref<72x256xbf16, #tpu.memory_space<vmem>>, vector<64x256xbf16>
    %c0_1 = arith.constant 0 : index
    %c0_2 = arith.constant 0 : index
    %c0_3 = arith.constant 0 : index
    %6 = vector.load %arg5[%c0_1, %c0_2, %c0_3] : memref<9x256x256xbf16, #tpu.memory_space<vmem>>, vector<1x256x256xbf16>
    %7 = vector.shape_cast %6 : vector<1x256x256xbf16> to vector<256x256xbf16>
    %cst = arith.constant dense<0.000000e+00> : vector<64x256xf32>
    %8 = tpu.matmul %5, %7, %cst {dimension_numbers = #tpu.dot_dimension_numbers<[1], [0], [0], [1], [0, 0, 1, 1], [], []>} : vector<64x256xbf16>, vector<256x256xbf16>, vector<64x256xf32> -> vector<64x256xf32>
    %9 = arith.index_cast %3 : i32 to index
    %c0_4 = arith.constant 0 : index
    %10 = vector.load %arg2[%9, %c0_4] : memref<72x256xbf16, #tpu.memory_space<vmem>>, vector<64x256xbf16>
    %c1 = arith.constant 1 : index
    %c0_5 = arith.constant 0 : index
    %c0_6 = arith.constant 0 : index
    %11 = vector.load %arg5[%c1, %c0_5, %c0_6] : memref<9x256x256xbf16, #tpu.memory_space<vmem>>, vector<1x256x256xbf16>
    %12 = vector.shape_cast %11 : vector<1x256x256xbf16> to vector<256x256xbf16>
    %cst_7 = arith.constant dense<0.000000e+00> : vector<64x256xf32>
    %13 = tpu.matmul %10, %12, %cst_7 {dimension_numbers = #tpu.dot_dimension_numbers<[1], [0], [0], [1], [0, 0, 1, 1], [], []>} : vector<64x256xbf16>, vector<256x256xbf16>, vector<64x256xf32> -> vector<64x256xf32>
    %14 = arith.addf %8, %13 : vector<64x256xf32>
    %15 = arith.index_cast %3 : i32 to index
    %c0_8 = arith.constant 0 : index
    %16 = vector.load %arg3[%15, %c0_8] : memref<72x256xbf16, #tpu.memory_space<vmem>>, vector<64x256xbf16>
    %c3 = arith.constant 3 : index
    %c0_9 = arith.constant 0 : index
    %c0_10 = arith.constant 0 : index
    %17 = vector.load %arg5[%c3, %c0_9, %c0_10] : memref<9x256x256xbf16, #tpu.memory_space<vmem>>, vector<1x256x256xbf16>
    %18 = vector.shape_cast %17 : vector<1x256x256xbf16> to vector<256x256xbf16>
    %cst_11 = arith.constant dense<0.000000e+00> : vector<64x256xf32>
    %19 = tpu.matmul %16, %18, %cst_11 {dimension_numbers = #tpu.dot_dimension_numbers<[1], [0], [0], [1], [0, 0, 1, 1], [], []>} : vector<64x256xbf16>, vector<256x256xbf16>, vector<64x256xf32> -> vector<64x256xf32>
    %20 = arith.addf %14, %19 : vector<64x256xf32>
    %21 = arith.index_cast %3 : i32 to index
    %c0_12 = arith.constant 0 : index
    %22 = vector.load %arg4[%21, %c0_12] : memref<72x256xbf16, #tpu.memory_space<vmem>>, vector<64x256xbf16>
    %c4 = arith.constant 4 : index
    %c0_13 = arith.constant 0 : index
    %c0_14 = arith.constant 0 : index
    %23 = vector.load %arg5[%c4, %c0_13, %c0_14] : memref<9x256x256xbf16, #tpu.memory_space<vmem>>, vector<1x256x256xbf16>
    %24 = vector.shape_cast %23 : vector<1x256x256xbf16> to vector<256x256xbf16>
    %cst_15 = arith.constant dense<0.000000e+00> : vector<64x256xf32>
    %25 = tpu.matmul %22, %24, %cst_15 {dimension_numbers = #tpu.dot_dimension_numbers<[1], [0], [0], [1], [0, 0, 1, 1], [], []>} : vector<64x256xbf16>, vector<256x256xbf16>, vector<64x256xf32> -> vector<64x256xf32>
    %26 = arith.addf %20, %25 : vector<64x256xf32>
    %27 = arith.index_cast %3 : i32 to index
    %c0_16 = arith.constant 0 : index
    %28 = vector.load %arg1[%27, %c0_16] : memref<72x256xbf16, #tpu.memory_space<vmem>>, vector<65x256xbf16>
    %c2 = arith.constant 2 : index
    %c0_17 = arith.constant 0 : index
    %c0_18 = arith.constant 0 : index
    %29 = vector.load %arg5[%c2, %c0_17, %c0_18] : memref<9x256x256xbf16, #tpu.memory_space<vmem>>, vector<1x256x256xbf16>
    %30 = vector.shape_cast %29 : vector<1x256x256xbf16> to vector<256x256xbf16>
    %cst_19 = arith.constant dense<0.000000e+00> : vector<65x256xf32>
    %31 = tpu.matmul %28, %30, %cst_19 {dimension_numbers = #tpu.dot_dimension_numbers<[1], [0], [0], [1], [0, 0, 1, 1], [], []>} : vector<65x256xbf16>, vector<256x256xbf16>, vector<65x256xf32> -> vector<65x256xf32>
    %32 = arith.index_cast %3 : i32 to index
    %c0_20 = arith.constant 0 : index
    %33 = vector.load %arg3[%32, %c0_20] : memref<72x256xbf16, #tpu.memory_space<vmem>>, vector<65x256xbf16>
    %c5 = arith.constant 5 : index
    %c0_21 = arith.constant 0 : index
    %c0_22 = arith.constant 0 : index
    %34 = vector.load %arg5[%c5, %c0_21, %c0_22] : memref<9x256x256xbf16, #tpu.memory_space<vmem>>, vector<1x256x256xbf16>
    %35 = vector.shape_cast %34 : vector<1x256x256xbf16> to vector<256x256xbf16>
    %cst_23 = arith.constant dense<0.000000e+00> : vector<65x256xf32>
    %36 = tpu.matmul %33, %35, %cst_23 {dimension_numbers = #tpu.dot_dimension_numbers<[1], [0], [0], [1], [0, 0, 1, 1], [], []>} : vector<65x256xbf16>, vector<256x256xbf16>, vector<65x256xf32> -> vector<65x256xf32>
    %37 = arith.addf %31, %36 : vector<65x256xf32>
    %38 = vector.extract_strided_slice %37 {offsets = [1, 0], sizes = [64, 256], strides = [1, 1]} : vector<65x256xf32> to vector<64x256xf32>
    %39 = arith.addf %26, %38 : vector<64x256xf32>
    %40 = arith.index_cast %3 : i32 to index
    %c0_24 = arith.constant 0 : index
    %41 = vector.load %arg1[%40, %c0_24] : memref<72x256xbf16, #tpu.memory_space<vmem>>, vector<70x256xbf16>
    %c6 = arith.constant 6 : index
    %c0_25 = arith.constant 0 : index
    %c0_26 = arith.constant 0 : index
    %42 = vector.load %arg5[%c6, %c0_25, %c0_26] : memref<9x256x256xbf16, #tpu.memory_space<vmem>>, vector<1x256x256xbf16>
    %43 = vector.shape_cast %42 : vector<1x256x256xbf16> to vector<256x256xbf16>
    %cst_27 = arith.constant dense<0.000000e+00> : vector<70x256xf32>
    %44 = tpu.matmul %41, %43, %cst_27 {dimension_numbers = #tpu.dot_dimension_numbers<[1], [0], [0], [1], [0, 0, 1, 1], [], []>} : vector<70x256xbf16>, vector<256x256xbf16>, vector<70x256xf32> -> vector<70x256xf32>
    %45 = arith.index_cast %3 : i32 to index
    %c0_28 = arith.constant 0 : index
    %46 = vector.load %arg2[%45, %c0_28] : memref<72x256xbf16, #tpu.memory_space<vmem>>, vector<70x256xbf16>
    %c7 = arith.constant 7 : index
    %c0_29 = arith.constant 0 : index
    %c0_30 = arith.constant 0 : index
    %47 = vector.load %arg5[%c7, %c0_29, %c0_30] : memref<9x256x256xbf16, #tpu.memory_space<vmem>>, vector<1x256x256xbf16>
    %48 = vector.shape_cast %47 : vector<1x256x256xbf16> to vector<256x256xbf16>
    %cst_31 = arith.constant dense<0.000000e+00> : vector<70x256xf32>
    %49 = tpu.matmul %46, %48, %cst_31 {dimension_numbers = #tpu.dot_dimension_numbers<[1], [0], [0], [1], [0, 0, 1, 1], [], []>} : vector<70x256xbf16>, vector<256x256xbf16>, vector<70x256xf32> -> vector<70x256xf32>
    %50 = arith.addf %44, %49 : vector<70x256xf32>
    %51 = vector.extract_strided_slice %50 {offsets = [6, 0], sizes = [64, 256], strides = [1, 1]} : vector<70x256xf32> to vector<64x256xf32>
    %52 = arith.addf %39, %51 : vector<64x256xf32>
    %53 = arith.index_cast %3 : i32 to index
    %c0_32 = arith.constant 0 : index
    %54 = vector.load %arg1[%53, %c0_32] : memref<72x256xbf16, #tpu.memory_space<vmem>>, vector<71x256xbf16>
    %c8 = arith.constant 8 : index
    %c0_33 = arith.constant 0 : index
    %c0_34 = arith.constant 0 : index
    %55 = vector.load %arg5[%c8, %c0_33, %c0_34] : memref<9x256x256xbf16, #tpu.memory_space<vmem>>, vector<1x256x256xbf16>
    %56 = vector.shape_cast %55 : vector<1x256x256xbf16> to vector<256x256xbf16>
    %cst_35 = arith.constant dense<0.000000e+00> : vector<71x256xf32>
    %57 = tpu.matmul %54, %56, %cst_35 {dimension_numbers = #tpu.dot_dimension_numbers<[1], [0], [0], [1], [0, 0, 1, 1], [], []>} : vector<71x256xbf16>, vector<256x256xbf16>, vector<71x256xf32> -> vector<71x256xf32>
    %58 = vector.extract_strided_slice %57 {offsets = [7, 0], sizes = [64, 256], strides = [1, 1]} : vector<71x256xf32> to vector<64x256xf32>
    %59 = arith.addf %52, %58 : vector<64x256xf32>
    %c0_36 = arith.constant 0 : index
    %c0_37 = arith.constant 0 : index
    %60 = vector.load %arg6[%c0_36, %c0_37] : memref<1x256xf32, #tpu.memory_space<vmem>>, vector<1x256xf32>
    %61 = vector.broadcast %60 : vector<1x256xf32> to vector<64x256xf32>
    %62 = arith.mulf %59, %61 : vector<64x256xf32>
    %c0_38 = arith.constant 0 : index
    %c0_39 = arith.constant 0 : index
    %63 = vector.load %arg7[%c0_38, %c0_39] : memref<1x256xf32, #tpu.memory_space<vmem>>, vector<1x256xf32>
    %64 = vector.broadcast %63 : vector<1x256xf32> to vector<64x256xf32>
    %65 = arith.addf %62, %64 : vector<64x256xf32>
    %cst_40 = arith.constant 0.000000e+00 : f32
    %66 = vector.broadcast %cst_40 : f32 to vector<64x256xf32>
    %67 = arith.maximumf %65, %66 : vector<64x256xf32>
    %68 = arith.truncf %67 : vector<64x256xf32> to vector<64x256xbf16>
    %69 = arith.index_cast %3 : i32 to index
    %c0_41 = arith.constant 0 : index
    %70 = vector.load %arg8[%69, %c0_41] : memref<64x256xbf16, #tpu.memory_space<vmem>>, vector<64x256xbf16>
    tpu.vector_store %arg8[%69, %c0_41], %68 {strides = array<i32>} : memref<64x256xbf16, #tpu.memory_space<vmem>>, vector<64x256xbf16>,
    %c1_i32_42 = arith.constant 1 : i32
    return
  }
  func.func @transform_0(%arg0: i32) -> (i32, i32) {
    %c0_i32 = arith.constant 0 : i32
    %c0_i32_0 = arith.constant 0 : i32
    return %arg0, %c0_i32 : i32, i32
  }
  func.func @transform_1(%arg0: i32) -> (i32, i32) {
    %c0_i32 = arith.constant 0 : i32
    %c0_i32_0 = arith.constant 0 : i32
    return %arg0, %c0_i32 : i32, i32
  }
  func.func @transform_2(%arg0: i32) -> (i32, i32) {
    %c0_i32 = arith.constant 0 : i32
    %c0_i32_0 = arith.constant 0 : i32
    return %arg0, %c0_i32 : i32, i32
  }
  func.func @transform_3(%arg0: i32) -> (i32, i32) {
    %c0_i32 = arith.constant 0 : i32
    %c0_i32_0 = arith.constant 0 : i32
    return %arg0, %c0_i32 : i32, i32
  }
  func.func @transform_4(%arg0: i32) -> (i32, i32, i32) {
    %c0_i32 = arith.constant 0 : i32
    %c0_i32_0 = arith.constant 0 : i32
    %c0_i32_1 = arith.constant 0 : i32
    %c0_i32_2 = arith.constant 0 : i32
    return %c0_i32, %c0_i32_0, %c0_i32_1 : i32, i32, i32
  }
  func.func @transform_5(%arg0: i32) -> (i32, i32) {
    %c0_i32 = arith.constant 0 : i32
    %c0_i32_0 = arith.constant 0 : i32
    %c0_i32_1 = arith.constant 0 : i32
    return %c0_i32, %c0_i32_0 : i32, i32
  }
  func.func @transform_6(%arg0: i32) -> (i32, i32) {
    %c0_i32 = arith.constant 0 : i32
    %c0_i32_0 = arith.constant 0 : i32
    %c0_i32_1 = arith.constant 0 : i32
    return %c0_i32, %c0_i32_0 : i32, i32
  }
  func.func @transform_7(%arg0: i32) -> (i32, i32) {
    %c0_i32 = arith.constant 0 : i32
    %c0_i32_0 = arith.constant 0 : i32
    return %arg0, %c0_i32 : i32, i32
  }
}

module attributes {stable_mosaic.version = 11 : i64} {
  func.func @kernel(%arg0: i32, %arg1: memref<24x256xbf16, #tpu.memory_space<vmem>>, %arg2: memref<24x256xbf16, #tpu.memory_space<vmem>>, %arg3: memref<24x256xbf16, #tpu.memory_space<vmem>>, %arg4: memref<24x256xbf16, #tpu.memory_space<vmem>>, %arg5: memref<9x256x256xbf16, #tpu.memory_space<vmem>>, %arg6: memref<1x256xf32, #tpu.memory_space<vmem>>, %arg7: memref<1x256xf32, #tpu.memory_space<vmem>>, %arg8: memref<16x1xf32, #tpu.memory_space<vmem>>, %arg9: memref<2x256xf32, #tpu.memory_space<vmem>>, %arg10: memref<16x256xf32, #tpu.memory_space<vmem>>) attributes {dimension_semantics = [#tpu.dimension_semantics<parallel>], iteration_bounds = array<i64: 1>, scalar_prefetch = 0 : i64, scratch_operands = 1 : i64, tpu.core_type = #tpu.core_type<tc>, window_params = [{transform_indices = @transform_0, window_bounds = array<i64: 24, 256>}, {transform_indices = @transform_1, window_bounds = array<i64: 24, 256>}, {transform_indices = @transform_2, window_bounds = array<i64: 24, 256>}, {transform_indices = @transform_3, window_bounds = array<i64: 24, 256>}, {pipeline_mode = #tpu.pipeline_mode<synchronous>, transform_indices = @transform_4, window_bounds = array<i64: 9, 256, 256>}, {pipeline_mode = #tpu.pipeline_mode<synchronous>, transform_indices = @transform_5, window_bounds = array<i64: 1, 256>}, {pipeline_mode = #tpu.pipeline_mode<synchronous>, transform_indices = @transform_6, window_bounds = array<i64: 1, 256>}, {pipeline_mode = #tpu.pipeline_mode<synchronous>, transform_indices = @transform_7, window_bounds = array<i64: 16, 1>}, {transform_indices = @transform_8, window_bounds = array<i64: 2, 256>}]} {
    %c0_i32 = arith.constant 0 : i32
    %c1_i32 = arith.constant 1 : i32
    %0 = arith.muli %c0_i32, %c1_i32 : i32
    %c0_i32_0 = arith.constant 0 : i32
    %1 = arith.addi %c0_i32_0, %0 : i32
    %c16_i32 = arith.constant 16 : i32
    %2 = arith.muli %1, %c16_i32 : i32
    %3 = tpu.assume_multiple %2, 16 : i32
    %4 = arith.index_cast %3 : i32 to index
    %c0 = arith.constant 0 : index
    %5 = vector.load %arg1[%4, %c0] : memref<24x256xbf16, #tpu.memory_space<vmem>>, vector<16x256xbf16>
    %c0_1 = arith.constant 0 : index
    %c0_2 = arith.constant 0 : index
    %c0_3 = arith.constant 0 : index
    %6 = vector.load %arg5[%c0_1, %c0_2, %c0_3] : memref<9x256x256xbf16, #tpu.memory_space<vmem>>, vector<1x256x256xbf16>
    %7 = vector.shape_cast %6 : vector<1x256x256xbf16> to vector<256x256xbf16>
    %cst = arith.constant dense<0.000000e+00> : vector<16x256xf32>
    %8 = tpu.matmul %5, %7, %cst {dimension_numbers = #tpu.dot_dimension_numbers<[1], [0], [0], [1], [0, 0, 1, 1], [], []>} : vector<16x256xbf16>, vector<256x256xbf16>, vector<16x256xf32> -> vector<16x256xf32>
    %9 = arith.index_cast %3 : i32 to index
    %c0_4 = arith.constant 0 : index
    %10 = vector.load %arg2[%9, %c0_4] : memref<24x256xbf16, #tpu.memory_space<vmem>>, vector<16x256xbf16>
    %c1 = arith.constant 1 : index
    %c0_5 = arith.constant 0 : index
    %c0_6 = arith.constant 0 : index
    %11 = vector.load %arg5[%c1, %c0_5, %c0_6] : memref<9x256x256xbf16, #tpu.memory_space<vmem>>, vector<1x256x256xbf16>
    %12 = vector.shape_cast %11 : vector<1x256x256xbf16> to vector<256x256xbf16>
    %cst_7 = arith.constant dense<0.000000e+00> : vector<16x256xf32>
    %13 = tpu.matmul %10, %12, %cst_7 {dimension_numbers = #tpu.dot_dimension_numbers<[1], [0], [0], [1], [0, 0, 1, 1], [], []>} : vector<16x256xbf16>, vector<256x256xbf16>, vector<16x256xf32> -> vector<16x256xf32>
    %14 = arith.addf %8, %13 : vector<16x256xf32>
    %15 = arith.index_cast %3 : i32 to index
    %c0_8 = arith.constant 0 : index
    %16 = vector.load %arg3[%15, %c0_8] : memref<24x256xbf16, #tpu.memory_space<vmem>>, vector<16x256xbf16>
    %c3 = arith.constant 3 : index
    %c0_9 = arith.constant 0 : index
    %c0_10 = arith.constant 0 : index
    %17 = vector.load %arg5[%c3, %c0_9, %c0_10] : memref<9x256x256xbf16, #tpu.memory_space<vmem>>, vector<1x256x256xbf16>
    %18 = vector.shape_cast %17 : vector<1x256x256xbf16> to vector<256x256xbf16>
    %cst_11 = arith.constant dense<0.000000e+00> : vector<16x256xf32>
    %19 = tpu.matmul %16, %18, %cst_11 {dimension_numbers = #tpu.dot_dimension_numbers<[1], [0], [0], [1], [0, 0, 1, 1], [], []>} : vector<16x256xbf16>, vector<256x256xbf16>, vector<16x256xf32> -> vector<16x256xf32>
    %20 = arith.addf %14, %19 : vector<16x256xf32>
    %21 = arith.index_cast %3 : i32 to index
    %c0_12 = arith.constant 0 : index
    %22 = vector.load %arg4[%21, %c0_12] : memref<24x256xbf16, #tpu.memory_space<vmem>>, vector<16x256xbf16>
    %c4 = arith.constant 4 : index
    %c0_13 = arith.constant 0 : index
    %c0_14 = arith.constant 0 : index
    %23 = vector.load %arg5[%c4, %c0_13, %c0_14] : memref<9x256x256xbf16, #tpu.memory_space<vmem>>, vector<1x256x256xbf16>
    %24 = vector.shape_cast %23 : vector<1x256x256xbf16> to vector<256x256xbf16>
    %cst_15 = arith.constant dense<0.000000e+00> : vector<16x256xf32>
    %25 = tpu.matmul %22, %24, %cst_15 {dimension_numbers = #tpu.dot_dimension_numbers<[1], [0], [0], [1], [0, 0, 1, 1], [], []>} : vector<16x256xbf16>, vector<256x256xbf16>, vector<16x256xf32> -> vector<16x256xf32>
    %26 = arith.addf %20, %25 : vector<16x256xf32>
    %27 = arith.index_cast %3 : i32 to index
    %c0_16 = arith.constant 0 : index
    %28 = vector.load %arg1[%27, %c0_16] : memref<24x256xbf16, #tpu.memory_space<vmem>>, vector<17x256xbf16>
    %c2 = arith.constant 2 : index
    %c0_17 = arith.constant 0 : index
    %c0_18 = arith.constant 0 : index
    %29 = vector.load %arg5[%c2, %c0_17, %c0_18] : memref<9x256x256xbf16, #tpu.memory_space<vmem>>, vector<1x256x256xbf16>
    %30 = vector.shape_cast %29 : vector<1x256x256xbf16> to vector<256x256xbf16>
    %cst_19 = arith.constant dense<0.000000e+00> : vector<17x256xf32>
    %31 = tpu.matmul %28, %30, %cst_19 {dimension_numbers = #tpu.dot_dimension_numbers<[1], [0], [0], [1], [0, 0, 1, 1], [], []>} : vector<17x256xbf16>, vector<256x256xbf16>, vector<17x256xf32> -> vector<17x256xf32>
    %32 = arith.index_cast %3 : i32 to index
    %c0_20 = arith.constant 0 : index
    %33 = vector.load %arg3[%32, %c0_20] : memref<24x256xbf16, #tpu.memory_space<vmem>>, vector<17x256xbf16>
    %c5 = arith.constant 5 : index
    %c0_21 = arith.constant 0 : index
    %c0_22 = arith.constant 0 : index
    %34 = vector.load %arg5[%c5, %c0_21, %c0_22] : memref<9x256x256xbf16, #tpu.memory_space<vmem>>, vector<1x256x256xbf16>
    %35 = vector.shape_cast %34 : vector<1x256x256xbf16> to vector<256x256xbf16>
    %cst_23 = arith.constant dense<0.000000e+00> : vector<17x256xf32>
    %36 = tpu.matmul %33, %35, %cst_23 {dimension_numbers = #tpu.dot_dimension_numbers<[1], [0], [0], [1], [0, 0, 1, 1], [], []>} : vector<17x256xbf16>, vector<256x256xbf16>, vector<17x256xf32> -> vector<17x256xf32>
    %37 = arith.addf %31, %36 : vector<17x256xf32>
    %38 = vector.extract_strided_slice %37 {offsets = [1, 0], sizes = [16, 256], strides = [1, 1]} : vector<17x256xf32> to vector<16x256xf32>
    %39 = arith.addf %26, %38 : vector<16x256xf32>
    %40 = arith.index_cast %3 : i32 to index
    %c0_24 = arith.constant 0 : index
    %41 = vector.load %arg1[%40, %c0_24] : memref<24x256xbf16, #tpu.memory_space<vmem>>, vector<19x256xbf16>
    %c6 = arith.constant 6 : index
    %c0_25 = arith.constant 0 : index
    %c0_26 = arith.constant 0 : index
    %42 = vector.load %arg5[%c6, %c0_25, %c0_26] : memref<9x256x256xbf16, #tpu.memory_space<vmem>>, vector<1x256x256xbf16>
    %43 = vector.shape_cast %42 : vector<1x256x256xbf16> to vector<256x256xbf16>
    %cst_27 = arith.constant dense<0.000000e+00> : vector<19x256xf32>
    %44 = tpu.matmul %41, %43, %cst_27 {dimension_numbers = #tpu.dot_dimension_numbers<[1], [0], [0], [1], [0, 0, 1, 1], [], []>} : vector<19x256xbf16>, vector<256x256xbf16>, vector<19x256xf32> -> vector<19x256xf32>
    %45 = arith.index_cast %3 : i32 to index
    %c0_28 = arith.constant 0 : index
    %46 = vector.load %arg2[%45, %c0_28] : memref<24x256xbf16, #tpu.memory_space<vmem>>, vector<19x256xbf16>
    %c7 = arith.constant 7 : index
    %c0_29 = arith.constant 0 : index
    %c0_30 = arith.constant 0 : index
    %47 = vector.load %arg5[%c7, %c0_29, %c0_30] : memref<9x256x256xbf16, #tpu.memory_space<vmem>>, vector<1x256x256xbf16>
    %48 = vector.shape_cast %47 : vector<1x256x256xbf16> to vector<256x256xbf16>
    %cst_31 = arith.constant dense<0.000000e+00> : vector<19x256xf32>
    %49 = tpu.matmul %46, %48, %cst_31 {dimension_numbers = #tpu.dot_dimension_numbers<[1], [0], [0], [1], [0, 0, 1, 1], [], []>} : vector<19x256xbf16>, vector<256x256xbf16>, vector<19x256xf32> -> vector<19x256xf32>
    %50 = arith.addf %44, %49 : vector<19x256xf32>
    %51 = vector.extract_strided_slice %50 {offsets = [3, 0], sizes = [16, 256], strides = [1, 1]} : vector<19x256xf32> to vector<16x256xf32>
    %52 = arith.addf %39, %51 : vector<16x256xf32>
    %53 = arith.index_cast %3 : i32 to index
    %c0_32 = arith.constant 0 : index
    %54 = vector.load %arg1[%53, %c0_32] : memref<24x256xbf16, #tpu.memory_space<vmem>>, vector<20x256xbf16>
    %c8 = arith.constant 8 : index
    %c0_33 = arith.constant 0 : index
    %c0_34 = arith.constant 0 : index
    %55 = vector.load %arg5[%c8, %c0_33, %c0_34] : memref<9x256x256xbf16, #tpu.memory_space<vmem>>, vector<1x256x256xbf16>
    %56 = vector.shape_cast %55 : vector<1x256x256xbf16> to vector<256x256xbf16>
    %cst_35 = arith.constant dense<0.000000e+00> : vector<20x256xf32>
    %57 = tpu.matmul %54, %56, %cst_35 {dimension_numbers = #tpu.dot_dimension_numbers<[1], [0], [0], [1], [0, 0, 1, 1], [], []>} : vector<20x256xbf16>, vector<256x256xbf16>, vector<20x256xf32> -> vector<20x256xf32>
    %58 = vector.extract_strided_slice %57 {offsets = [4, 0], sizes = [16, 256], strides = [1, 1]} : vector<20x256xf32> to vector<16x256xf32>
    %59 = arith.addf %52, %58 : vector<16x256xf32>
    %c0_36 = arith.constant 0 : index
    %c0_37 = arith.constant 0 : index
    %60 = vector.load %arg6[%c0_36, %c0_37] : memref<1x256xf32, #tpu.memory_space<vmem>>, vector<1x256xf32>
    %61 = vector.broadcast %60 : vector<1x256xf32> to vector<16x256xf32>
    %62 = arith.mulf %59, %61 : vector<16x256xf32>
    %c0_38 = arith.constant 0 : index
    %c0_39 = arith.constant 0 : index
    %63 = vector.load %arg7[%c0_38, %c0_39] : memref<1x256xf32, #tpu.memory_space<vmem>>, vector<1x256xf32>
    %64 = vector.broadcast %63 : vector<1x256xf32> to vector<16x256xf32>
    %65 = arith.addf %62, %64 : vector<16x256xf32>
    %cst_40 = arith.constant 0.000000e+00 : f32
    %66 = vector.broadcast %cst_40 : f32 to vector<16x256xf32>
    %67 = arith.maximumf %65, %66 : vector<16x256xf32>
    %68 = arith.index_cast %3 : i32 to index
    %c0_41 = arith.constant 0 : index
    %69 = vector.load %arg8[%68, %c0_41] : memref<16x1xf32, #tpu.memory_space<vmem>>, vector<16x1xf32>
    %70 = vector.broadcast %69 : vector<16x1xf32> to vector<16x256xf32>
    %71 = arith.mulf %67, %70 : vector<16x256xf32>
    %72 = arith.index_cast %3 : i32 to index
    %c0_42 = arith.constant 0 : index
    %73 = vector.load %arg10[%72, %c0_42] : memref<16x256xf32, #tpu.memory_space<vmem>>, vector<16x256xf32>
    tpu.vector_store %arg10[%72, %c0_42], %71 {strides = array<i32>} : memref<16x256xf32, #tpu.memory_space<vmem>>, vector<16x256xf32>,
    %c1_i32_43 = arith.constant 1 : i32
    %c0_44 = arith.constant 0 : index
    %c0_45 = arith.constant 0 : index
    %74 = vector.load %arg10[%c0_44, %c0_45] : memref<16x256xf32, #tpu.memory_space<vmem>>, vector<8x256xf32>
    %cst_46 = arith.constant dense<0.000000e+00> : vector<256xf32>
    %75 = vector.multi_reduction <add>, %74, %cst_46 [0] : vector<8x256xf32> to vector<256xf32>
    %76 = vector.shape_cast %75 : vector<256xf32> to vector<1x256xf32>
    %c0_47 = arith.constant 0 : index
    %c0_48 = arith.constant 0 : index
    %77 = vector.load %arg9[%c0_47, %c0_48] : memref<2x256xf32, #tpu.memory_space<vmem>>, vector<1x256xf32>
    tpu.vector_store %arg9[%c0_47, %c0_48], %76 {strides = array<i32>} : memref<2x256xf32, #tpu.memory_space<vmem>>, vector<1x256xf32>,
    %c8_49 = arith.constant 8 : index
    %c0_50 = arith.constant 0 : index
    %78 = vector.load %arg10[%c8_49, %c0_50] : memref<16x256xf32, #tpu.memory_space<vmem>>, vector<8x256xf32>
    %cst_51 = arith.constant dense<0.000000e+00> : vector<256xf32>
    %79 = vector.multi_reduction <add>, %78, %cst_51 [0] : vector<8x256xf32> to vector<256xf32>
    %80 = vector.shape_cast %79 : vector<256xf32> to vector<1x256xf32>
    %c1_52 = arith.constant 1 : index
    %c0_53 = arith.constant 0 : index
    %81 = vector.load %arg9[%c1_52, %c0_53] : memref<2x256xf32, #tpu.memory_space<vmem>>, vector<1x256xf32>
    tpu.vector_store %arg9[%c1_52, %c0_53], %80 {strides = array<i32>} : memref<2x256xf32, #tpu.memory_space<vmem>>, vector<1x256xf32>,
    return
  }
  func.func @transform_0(%arg0: i32) -> (i32, i32) {
    %c0_i32 = arith.constant 0 : i32
    %c0_i32_0 = arith.constant 0 : i32
    return %arg0, %c0_i32 : i32, i32
  }
  func.func @transform_1(%arg0: i32) -> (i32, i32) {
    %c0_i32 = arith.constant 0 : i32
    %c0_i32_0 = arith.constant 0 : i32
    return %arg0, %c0_i32 : i32, i32
  }
  func.func @transform_2(%arg0: i32) -> (i32, i32) {
    %c0_i32 = arith.constant 0 : i32
    %c0_i32_0 = arith.constant 0 : i32
    return %arg0, %c0_i32 : i32, i32
  }
  func.func @transform_3(%arg0: i32) -> (i32, i32) {
    %c0_i32 = arith.constant 0 : i32
    %c0_i32_0 = arith.constant 0 : i32
    return %arg0, %c0_i32 : i32, i32
  }
  func.func @transform_4(%arg0: i32) -> (i32, i32, i32) {
    %c0_i32 = arith.constant 0 : i32
    %c0_i32_0 = arith.constant 0 : i32
    %c0_i32_1 = arith.constant 0 : i32
    %c0_i32_2 = arith.constant 0 : i32
    return %c0_i32, %c0_i32_0, %c0_i32_1 : i32, i32, i32
  }
  func.func @transform_5(%arg0: i32) -> (i32, i32) {
    %c0_i32 = arith.constant 0 : i32
    %c0_i32_0 = arith.constant 0 : i32
    %c0_i32_1 = arith.constant 0 : i32
    return %c0_i32, %c0_i32_0 : i32, i32
  }
  func.func @transform_6(%arg0: i32) -> (i32, i32) {
    %c0_i32 = arith.constant 0 : i32
    %c0_i32_0 = arith.constant 0 : i32
    %c0_i32_1 = arith.constant 0 : i32
    return %c0_i32, %c0_i32_0 : i32, i32
  }
  func.func @transform_7(%arg0: i32) -> (i32, i32) {
    %c0_i32 = arith.constant 0 : i32
    %c0_i32_0 = arith.constant 0 : i32
    %c0_i32_1 = arith.constant 0 : i32
    return %c0_i32, %c0_i32_0 : i32, i32
  }
  func.func @transform_8(%arg0: i32) -> (i32, i32) {
    %c0_i32 = arith.constant 0 : i32
    %c0_i32_0 = arith.constant 0 : i32
    return %arg0, %c0_i32 : i32, i32
  }
}

</mosaic_0001>

<bundles_post_ra>
// kernel: cnn_module_forward.4
= control target key start
LH: loop header
LB: loop body
LE: loop exit
PB: predicated region body
PF: predicated region fallthrough
CT: control target
= control target key end

     0   :  { %vm2000_vm0 = vcmask 1046528   ;;  %vm2697_vm1 = vcmask 1041408   ;;  %vm3064_vm2 = vcmask 1040384   ;;  %s5847_s4 = inlined_call_operand.vmem [shape: bf16[9,256,256], index: 4, kind: input, shape index: {}]   ;;  %s5848_s1 = inlined_call_operand.vmem [shape: bf16[72,256], index: 1, kind: input, shape index: {}]   ;;  %s5849_s2 = inlined_call_operand.vmem [shape: bf16[72,256], index: 2, kind: input, shape index: {}]   ;;  %s5850_s0 = inlined_call_operand.vmem [shape: bf16[72,256], index: 0, kind: input, shape index: {}]   ;;  %s5851_s3 = inlined_call_operand.vmem [shape: bf16[72,256], index: 3, kind: input, shape index: {}]   ;;  %s5852_s5 = inlined_call_operand.vmem [shape: f32[1,256], index: 5, kind: input, shape index: {}]   ;;  %s5853_s6 = inlined_call_operand.vmem [shape: f32[1,256], index: 6, kind: input, shape index: {}]   ;;  %s5854_s7 = inlined_call_operand.vmem [shape: bf16[64,256], index: 7, kind: output, shape index: {}]  }
   0x1   :  { %v4011_v0 = vld [vmem:[%s5847_s4 + $0x104] ss:$8 sps:$4 sm:$0xff]   ;;  %v4015_v2 = vld [vmem:[%s5847_s4 + $0x100] ss:$8 sps:$4 sm:$0xff]   ;;  %v4017_v4 = vld [vmem:[%s5847_s4 + $0x114] ss:$8 sps:$4 sm:$0xff]  }
   0x2   :  { %v4013_v1 = vld [vmem:[%s5847_s4 + $0x504] ss:$8 sps:$4 sm:$0xff]   ;;  %312 = vmatprep.subr.bf16.mxu0 %v4011_v0  ;;  %v4016_v3 = vld [vmem:[%s5847_s4 + $0x500] ss:$8 sps:$4 sm:$0xff]   ;;  %v4019_v5 = vld [vmem:[%s5847_s4 + $0x514] ss:$8 sps:$4 sm:$0xff]  }
   0x3   :  { %1613 = vmatprep.subr.bf16.mxu1 %v4013_v1  ;;  %313 = vmatpush1.bf16.msra.mxu0 %v4015_v2  ;;  %v4021_v6 = vld [vmem:[%s5847_s4 + $0x110] ss:$8 sps:$4 sm:$0xff]   ;;  %v4023_v8 = vld [vmem:[%s5847_s4 + $0x124] ss:$8 sps:$4 sm:$0xff]   ;;  %v4027_v10 = vld [vmem:[%s5847_s4 + $0x120] ss:$8 sps:$4 sm:$0xff]  }
   0x4   :  { %1614 = vmatpush1.bf16.msra.mxu1 %v4016_v3  ;;  %314 = vmatprep.subr.bf16.mxu0 %v4017_v4  ;;  %v4022_v7 = vld [vmem:[%s5847_s4 + $0x510] ss:$8 sps:$4 sm:$0xff]   ;;  %v4025_v9 = vld [vmem:[%s5847_s4 + $0x524] ss:$8 sps:$4 sm:$0xff]   ;;  %v4028_v11 = vld [vmem:[%s5847_s4 + $0x520] ss:$8 sps:$4 sm:$0xff]  }
   0x5   :  { %1615 = vmatprep.subr.bf16.mxu1 %v4019_v5  ;;  %v4029_v12 = vld [vmem:[%s5847_s4 + $0x134] ss:$8 sps:$4 sm:$0xff]   ;;  %v4033_v14 = vld [vmem:[%s5847_s4 + $0x130] ss:$8 sps:$4 sm:$0xff]   ;;  %v4035_v16 = vld [vmem:[%s5847_s4 + $0x144] ss:$8 sps:$4 sm:$0xff]  }
   0x6   :  { %v4031_v13 = vld [vmem:[%s5847_s4 + $0x534] ss:$8 sps:$4 sm:$0xff]   ;;  %v4034_v15 = vld [vmem:[%s5847_s4 + $0x530] ss:$8 sps:$4 sm:$0xff]   ;;  %v4037_v17 = vld [vmem:[%s5847_s4 + $0x544] ss:$8 sps:$4 sm:$0xff]  }
   0x7   :  { %315 = vmatpush1.bf16.msra.mxu0 %v4021_v6  ;;  %v4039_v18 = vld [vmem:[%s5847_s4 + $0x140] ss:$8 sps:$4 sm:$0xff]   ;;  %v4041_v20 = vld [vmem:[%s5847_s4 + $0x154] ss:$8 sps:$4 sm:$0xff]   ;;  %v4045_v22 = vld [vmem:[%s5847_s4 + $0x150] ss:$8 sps:$4 sm:$0xff]  }
   0x8   :  { %1616 = vmatpush1.bf16.msra.mxu1 %v4022_v7  ;;  %316 = vmatprep.subr.bf16.mxu0 %v4023_v8  ;;  %v4040_v19 = vld [vmem:[%s5847_s4 + $0x540] ss:$8 sps:$4 sm:$0xff]   ;;  %v4043_v21 = vld [vmem:[%s5847_s4 + $0x554] ss:$8 sps:$4 sm:$0xff]   ;;  %v4046_v23 = vld [vmem:[%s5847_s4 + $0x550] ss:$8 sps:$4 sm:$0xff]  }
   0x9   :  { %1617 = vmatprep.subr.bf16.mxu1 %v4025_v9  ;;  %v4047_v24 = vld [vmem:[%s5847_s4 + $0x164] ss:$8 sps:$4 sm:$0xff]   ;;  %v4051_v26 = vld [vmem:[%s5847_s4 + $0x160] ss:$8 sps:$4 sm:$0xff]   ;;  %v4053_v28 = vld [vmem:[%s5847_s4 + $0x174] ss:$8 sps:$4 sm:$0xff]  }
   0xa   :  { %v4049_v25 = vld [vmem:[%s5847_s4 + $0x564] ss:$8 sps:$4 sm:$0xff]   ;;  %v4052_v27 = vld [vmem:[%s5847_s4 + $0x560] ss:$8 sps:$4 sm:$0xff]   ;;  %v4055_v29 = vld [vmem:[%s5847_s4 + $0x574] ss:$8 sps:$4 sm:$0xff]  }
   0xb   :  { %317 = vmatpush1.bf16.msra.mxu0 %v4027_v10  ;;  %v4057_v30 = vld [vmem:[%s5847_s4 + $0x170] ss:$8 sps:$4 sm:$0xff]   ;;  %v4059_v32 = vld [vmem:[%s5847_s4 + $0x184] ss:$8 sps:$4 sm:$0xff]   ;;  %v4063_v34 = vld [vmem:[%s5847_s4 + $0x180] ss:$8 sps:$4 sm:$0xff]  }
   0xc   :  { %1618 = vmatpush1.bf16.msra.mxu1 %v4028_v11  ;;  %318 = vmatprep.subr.bf16.mxu0 %v4029_v12  ;;  %v4058_v31 = vld [vmem:[%s5847_s4 + $0x570] ss:$8 sps:$4 sm:$0xff]   ;;  %v4061_v33 = vld [vmem:[%s5847_s4 + $0x584] ss:$8 sps:$4 sm:$0xff]   ;;  %v4064_v35 = vld [vmem:[%s5847_s4 + $0x580] ss:$8 sps:$4 sm:$0xff]  }
   0xd   :  { %1619 = vmatprep.subr.bf16.mxu1 %v4031_v13  ;;  %v4065_v36 = vld [vmem:[%s5847_s4 + $0x194] ss:$8 sps:$4 sm:$0xff]   ;;  %v4069_v38 = vld [vmem:[%s5847_s4 + $0x190] ss:$8 sps:$4 sm:$0xff]   ;;  %v4071_v40 = vld [vmem:[%s5847_s4 + $0x1a4] ss:$8 sps:$4 sm:$0xff]  }
   0xe   :  { %v4067_v37 = vld [vmem:[%s5847_s4 + $0x594] ss:$8 sps:$4 sm:$0xff]   ;;  %v4070_v39 = vld [vmem:[%s5847_s4 + $0x590] ss:$8 sps:$4 sm:$0xff]   ;;  %v4073_v41 = vld [vmem:[%s5847_s4 + $0x5a4] ss:$8 sps:$4 sm:$0xff]  }
   0xf   :  { %319 = vmatpush1.bf16.msra.mxu0 %v4033_v14  ;;  %v4075_v42 = vld [vmem:[%s5847_s4 + $0x1a0] ss:$8 sps:$4 sm:$0xff]   ;;  %v4077_v44 = vld [vmem:[%s5847_s4 + $0x1b4] ss:$8 sps:$4 sm:$0xff]   ;;  %v4081_v46 = vld [vmem:[%s5847_s4 + $0x1b0] ss:$8 sps:$4 sm:$0xff]  }
  0x10   :  { %1620 = vmatpush1.bf16.msra.mxu1 %v4034_v15  ;;  %320 = vmatprep.subr.bf16.mxu0 %v4035_v16  ;;  %v4076_v43 = vld [vmem:[%s5847_s4 + $0x5a0] ss:$8 sps:$4 sm:$0xff]   ;;  %v4079_v45 = vld [vmem:[%s5847_s4 + $0x5b4] ss:$8 sps:$4 sm:$0xff]   ;;  %v4082_v47 = vld [vmem:[%s5847_s4 + $0x5b0] ss:$8 sps:$4 sm:$0xff]  }
  0x11   :  { %1621 = vmatprep.subr.bf16.mxu1 %v4037_v17  ;;  %v4705_v48 = vld [vmem:[%s5848_s1 + $0x4] ss:$8 sps:$4 sm:$0xff]   ;;  %v4087_v52 = vld [vmem:[%s5847_s4 + $0x1c0] ss:$8 sps:$4 sm:$0xff]   ;;  %v4089_v54 = vld [vmem:[%s5847_s4 + $0x1d4] ss:$8 sps:$4 sm:$0xff]  }
  0x12   :  { %v4083_v49 = vld [vmem:[%s5847_s4 + $0x1c4] ss:$8 sps:$4 sm:$0xff]   ;;  %344 = vmatprep.mubr.bf16.mxu0 %v4705_v48  ;;  %v4088_v53 = vld [vmem:[%s5847_s4 + $0x5c0] ss:$8 sps:$4 sm:$0xff]   ;;  %v4091_v55 = vld [vmem:[%s5847_s4 + $0x5d4] ss:$8 sps:$4 sm:$0xff]  }
  0x13   :  { %321 = vmatpush1.bf16.msra.mxu0 %v4039_v18  ;;  %v4085_v50 = vld [vmem:[%s5847_s4 + $0x5c4] ss:$8 sps:$4 sm:$0xff]   ;;  %v4093_v56 = vld [vmem:[%s5847_s4 + $0x1d0] ss:$8 sps:$4 sm:$0xff]   ;;  %v4099_v60 = vld [vmem:[%s5847_s4 + $0x1e0] ss:$8 sps:$4 sm:$0xff]  }
  0x14   :  { %1622 = vmatpush1.bf16.msra.mxu1 %v4040_v19  ;;  %322 = vmatprep.subr.bf16.mxu0 %v4041_v20  ;;  %v4717_v51 = vld [vmem:[%s5849_s2 + $0x4] ss:$8 sps:$4 sm:$0xff]   ;;  %v4094_v57 = vld [vmem:[%s5847_s4 + $0x5d0] ss:$8 sps:$4 sm:$0xff]   ;;  %v4100_v61 = vld [vmem:[%s5847_s4 + $0x5e0] ss:$8 sps:$4 sm:$0xff]  }
  0x15   :  { %1623 = vmatprep.subr.bf16.mxu1 %v4043_v21  ;;  %1645 = vmatprep.mubr.bf16.mxu1 %v4717_v51  ;;  %v4095_v58 = vld [vmem:[%s5847_s4 + $0x1e4] ss:$8 sps:$4 sm:$0xff]   ;;  %v4101_v62 = vld [vmem:[%s5847_s4 + $0x1f4] ss:$8 sps:$4 sm:$0xff]   ;;  %v4105_v0 = vld [vmem:[%s5847_s4 + $0x1f0] ss:$8 sps:$4 sm:$0xff]  }
  0x16   :  { %v4097_v59 = vld [vmem:[%s5847_s4 + $0x5e4] ss:$8 sps:$4 sm:$0xff]   ;;  %v4103_v63 = vld [vmem:[%s5847_s4 + $0x5f4] ss:$8 sps:$4 sm:$0xff]   ;;  %v4106_v1 = vld [vmem:[%s5847_s4 + $0x5f0] ss:$8 sps:$4 sm:$0xff]  }
  0x17   :  { %323 = vmatpush1.bf16.msra.mxu0 %v4045_v22  ;;  %v4112_v2 = vld [vmem:[%s5847_s4 + $0x4] ss:$8 sps:$4 sm:$0xff]   ;;  %v4107_v4 = vld [vmem:[%s5848_s1] ss:$8 sps:$4 sm:$0xff]   ;;  %v4121_v8 = vld [vmem:[%s5847_s4 + $0x14] ss:$8 sps:$4 sm:$0xff]  }
  0x18   :  { %1624 = vmatpush1.bf16.msra.mxu1 %v4046_v23  ;;  %324 = vmatprep.subr.bf16.mxu0 %v4047_v24  ;;  %v4118_v3 = vld [vmem:[%s5847_s4 + $0x204] ss:$8 sps:$4 sm:$0xff]   ;;  %v4110_v5 = vld [vmem:[%s5847_s4] ss:$8 sps:$4 sm:$0xff]   ;;  %v4124_v9 = vld [vmem:[%s5847_s4 + $0x214] ss:$8 sps:$4 sm:$0xff]  }
  0x19   :  { %1625 = vmatprep.subr.bf16.mxu1 %v4049_v25  ;;  %v4113_v6 = vld [vmem:[%s5849_s2] ss:$8 sps:$4 sm:$0xff]   ;;  %v4119_v10 = vld [vmem:[%s5847_s4 + $0x10] ss:$8 sps:$4 sm:$0xff]   ;;  %v4161_v11 = vld [vmem:[%s5849_s2 + $0x14] ss:$8 sps:$4 sm:$0xff]  }
  0x1a   :  { %v4116_v7 = vld [vmem:[%s5847_s4 + $0x200] ss:$8 sps:$4 sm:$0xff]   ;;  %v4122_v12 = vld [vmem:[%s5847_s4 + $0x210] ss:$8 sps:$4 sm:$0xff]   ;;  %v4127_v13 = vld [vmem:[%s5847_s4 + $0x24] ss:$8 sps:$4 sm:$0xff]  }
  0x1b   :  { %325 = vmatpush1.bf16.msra.mxu0 %v4051_v26  ;;  %v4130_v14 = vld [vmem:[%s5847_s4 + $0x224] ss:$8 sps:$4 sm:$0xff]   ;;  %v4125_v15 = vld [vmem:[%s5847_s4 + $0x20] ss:$8 sps:$4 sm:$0xff]   ;;  %v4166_v17 = vld [vmem:[%s5849_s2 + $0x10] ss:$8 sps:$4 sm:$0xff]  }
  0x1c   :  { %1626 = vmatpush1.bf16.msra.mxu1 %v4052_v27  ;;  %326 = vmatprep.subr.bf16.mxu0 %v4053_v28  ;;  %v4128_v16 = vld [vmem:[%s5847_s4 + $0x220] ss:$8 sps:$4 sm:$0xff]   ;;  %v4133_v18 = vld [vmem:[%s5847_s4 + $0x34] ss:$8 sps:$4 sm:$0xff]   ;;  %v4176_v20 = vld [vmem:[%s5849_s2 + $0x24] ss:$8 sps:$4 sm:$0xff]  }
  0x1d   :  { %1627 = vmatprep.subr.bf16.mxu1 %v4055_v29  ;;  %v4136_v19 = vld [vmem:[%s5847_s4 + $0x234] ss:$8 sps:$4 sm:$0xff]   ;;  %v4131_v22 = vld [vmem:[%s5847_s4 + $0x30] ss:$8 sps:$4 sm:$0xff]   ;;  %v4139_v24 = vld [vmem:[%s5847_s4 + $0x44] ss:$8 sps:$4 sm:$0xff]  }
  0x1e   :  { %v4822_v21 = vld [vmem:[%s5848_s1 + $0x14] ss:$8 sps:$4 sm:$0xff]   ;;  %v4134_v23 = vld [vmem:[%s5847_s4 + $0x230] ss:$8 sps:$4 sm:$0xff]   ;;  %v4142_v25 = vld [vmem:[%s5847_s4 + $0x244] ss:$8 sps:$4 sm:$0xff]  }
  0x1f   :  { %327 = vmatpush1.bf16.msra.mxu0 %v4057_v30  ;;  %v4137_v26 = vld [vmem:[%s5847_s4 + $0x40] ss:$8 sps:$4 sm:$0xff]   ;;  %v4843_v27 = vld [vmem:[%s5848_s1 + $0x10] ss:$8 sps:$4 sm:$0xff]   ;;  %v4145_v30 = vld [vmem:[%s5847_s4 + $0x54] ss:$8 sps:$4 sm:$0xff]  }
  0x20   :  { %1628 = vmatpush1.bf16.msra.mxu1 %v4058_v31  ;;  %328 = vmatprep.subr.bf16.mxu0 %v4059_v32  ;;  %v4140_v28 = vld [vmem:[%s5847_s4 + $0x240] ss:$8 sps:$4 sm:$0xff]   ;;  %v4148_v31 = vld [vmem:[%s5847_s4 + $0x254] ss:$8 sps:$4 sm:$0xff]  }
  0x21   :  { %1629 = vmatprep.subr.bf16.mxu1 %v4061_v33  ;;  %v4183_v29 = vld [vmem:[%s5849_s2 + $0x20] ss:$8 sps:$4 sm:$0xff]   ;;  %v4194_v32 = vld [vmem:[%s5849_s2 + $0x34] ss:$8 sps:$4 sm:$0xff]   ;;  %v4864_v33 = vld [vmem:[%s5848_s1 + $0x24] ss:$8 sps:$4 sm:$0xff]  }
  0x23   :  { %329 = vmatpush1.bf16.msra.mxu0 %v4063_v34  ;;  %v4143_v34 = vld [vmem:[%s5847_s4 + $0x50] ss:$8 sps:$4 sm:$0xff]  }
  0x24   :  { %1630 = vmatpush1.bf16.msra.mxu1 %v4064_v35  ;;  %330 = vmatprep.subr.bf16.mxu0 %v4065_v36  ;;  %v4146_v35 = vld [vmem:[%s5847_s4 + $0x250] ss:$8 sps:$4 sm:$0xff]   ;;  %v4151_v36 = vld [vmem:[%s5847_s4 + $0x64] ss:$8 sps:$4 sm:$0xff]  }
  0x25   :  { %1631 = vmatprep.subr.bf16.mxu1 %v4067_v37  ;;  %v4154_v37 = vld [vmem:[%s5847_s4 + $0x264] ss:$8 sps:$4 sm:$0xff]  }
  0x27   :  { %331 = vmatpush1.bf16.msra.mxu0 %v4069_v38  ;;  %v4149_v38 = vld [vmem:[%s5847_s4 + $0x60] ss:$8 sps:$4 sm:$0xff]  }
  0x28   :  { %1632 = vmatpush1.bf16.msra.mxu1 %v4070_v39  ;;  %332 = vmatprep.subr.bf16.mxu0 %v4071_v40  ;;  %v4885_v39 = vld [vmem:[%s5848_s1 + $0x20] ss:$8 sps:$4 sm:$0xff]  }
  0x29   :  { %1633 = vmatprep.subr.bf16.mxu1 %v4073_v41  ;;  %v4152_v40 = vld [vmem:[%s5847_s4 + $0x260] ss:$8 sps:$4 sm:$0xff]   ;;  %v4201_v41 = vld [vmem:[%s5849_s2 + $0x30] ss:$8 sps:$4 sm:$0xff]  }
  0x2b   :  { %333 = vmatpush1.bf16.msra.mxu0 %v4075_v42  ;;  %v4157_v42 = vld [vmem:[%s5847_s4 + $0x74] ss:$8 sps:$4 sm:$0xff]  }
  0x2c   :  { %1634 = vmatpush1.bf16.msra.mxu1 %v4076_v43  ;;  %334 = vmatprep.subr.bf16.mxu0 %v4077_v44  ;;  %v4160_v43 = vld [vmem:[%s5847_s4 + $0x274] ss:$8 sps:$4 sm:$0xff]   ;;  %v1372_v44 = vld [vmem:[%s5849_s2 + $0x40] sm:$0x11] }
  0x2d   :  { %1635 = vmatprep.subr.bf16.mxu1 %v4079_v45  ;;  %v3594_v45 = vcombine.high %v1372_v44, %v1372_v44 }
  0x2f   :  { %335 = vmatpush1.bf16.msra.mxu0 %v4081_v46  ;;  %v4906_v46 = vld [vmem:[%s5848_s1 + $0x34] ss:$8 sps:$4 sm:$0xff]  }
  0x30   :  { %1636 = vmatpush1.bf16.msra.mxu1 %v4082_v47  ;;  %336 = vmatprep.subr.bf16.mxu0 %v4083_v49  ;;  %v4155_v47 = vld [vmem:[%s5847_s4 + $0x70] ss:$8 sps:$4 sm:$0xff]  }
  0x31   :  { %1637 = vmatprep.subr.bf16.mxu1 %v4085_v50  ;;  %v4158_v49 = vld [vmem:[%s5847_s4 + $0x270] ss:$8 sps:$4 sm:$0xff]   ;;  %v4165_v50 = vld [vmem:[%s5847_s4 + $0x84] ss:$8 sps:$4 sm:$0xff]  }
  0x33   :  { %337 = vmatpush1.bf16.msra.mxu0 %v4087_v52  ;;  %v4169_v52 = vld [vmem:[%s5847_s4 + $0x284] ss:$8 sps:$4 sm:$0xff]  }
  0x34   :  { %1638 = vmatpush1.bf16.msra.mxu1 %v4088_v53  ;;  %338 = vmatprep.subr.bf16.mxu0 %v4089_v54  ;;  %v4163_v53 = vld [vmem:[%s5847_s4 + $0x80] ss:$8 sps:$4 sm:$0xff]   ;;  %v4927_v54 = vld [vmem:[%s5848_s1 + $0x30] ss:$8 sps:$4 sm:$0xff]  }
  0x35   :  { %1639 = vmatprep.subr.bf16.mxu1 %v4091_v55  ;;  %v4167_v55 = vld [vmem:[%s5847_s4 + $0x280] ss:$8 sps:$4 sm:$0xff]  }
  0x37   :  { %339 = vmatpush1.bf16.msra.mxu0 %v4093_v56  ;;  %v3593_v56 = vcombine.low %v1372_v44, %v1372_v44  ;;  %v4253_v44 = vld [vmem:[%s5847_s4 + $0x330] ss:$8 sps:$4 sm:$0xff]  }
  0x38   :  { %1640 = vmatpush1.bf16.msra.mxu1 %v4094_v57  ;;  %340 = vmatprep.subr.bf16.mxu0 %v4095_v58  ;;  %v4172_v57 = vld [vmem:[%s5847_s4 + $0x94] ss:$8 sps:$4 sm:$0xff]  }
  0x39   :  { %1641 = vmatprep.subr.bf16.mxu1 %v4097_v59  ;;  %v4175_v58 = vld [vmem:[%s5847_s4 + $0x294] ss:$8 sps:$4 sm:$0xff]   ;;  %v4941_v59 = vld [vmem:[%s5850_s0 + $0x4] ss:$8 sps:$4 sm:$0xff]  }
  0x3b   :  { %341 = vmatpush1.bf16.msra.mxu0 %v4099_v60  ;;  %v4170_v60 = vld [vmem:[%s5847_s4 + $0x90] ss:$8 sps:$4 sm:$0xff]  }
  0x3c   :  { %1642 = vmatpush1.bf16.msra.mxu1 %v4100_v61  ;;  %342 = vmatprep.subr.bf16.mxu0 %v4101_v62  ;;  %v4173_v61 = vld [vmem:[%s5847_s4 + $0x290] ss:$8 sps:$4 sm:$0xff]   ;;  %v4182_v62 = vld [vmem:[%s5847_s4 + $0xa4] ss:$8 sps:$4 sm:$0xff]  }
  0x3d   :  { %1643 = vmatprep.subr.bf16.mxu1 %v4103_v63  ;;  %v4186_v63 = vld [vmem:[%s5847_s4 + $0x2a4] ss:$8 sps:$4 sm:$0xff]  }
  0x3f   :  { %343 = vmatpush1.bf16.msra.mxu0 %v4105_v0  ;;  %v4180_v0 = vld [vmem:[%s5847_s4 + $0xa0] ss:$8 sps:$4 sm:$0xff]  }
  0x40   :  { %1644 = vmatpush1.bf16.msra.mxu1 %v4106_v1  ;;  %585 = vmatprep.subr.bf16.mxu0 %v4112_v2  ;;  %v4184_v1 = vld [vmem:[%s5847_s4 + $0x2a0] ss:$8 sps:$4 sm:$0xff]   ;;  %v4190_v2 = vld [vmem:[%s5847_s4 + $0xb4] ss:$8 sps:$4 sm:$0xff]  }
  0x41   :  { %1901 = vmatprep.subr.bf16.mxu1 %v4118_v3  ;;  %v4193_v3 = vld [vmem:[%s5847_s4 + $0x2b4] ss:$8 sps:$4 sm:$0xff]  }
  0x42   :  { %345 = vmatmul.mubr.bf16.vlgmr.msra.gmra.mrb[0].mxu0 %v4107_v4  ;;  %v4188_v4 = vld [vmem:[%s5847_s4 + $0xb0] ss:$8 sps:$4 sm:$0xff]  }
  0x43   :  { %1646 = vmatmul.mubr.bf16.vlgmr.msra.gmra.mrb[0].mxu1 %v4113_v6  ;;  %586 = vmatpush1.bf16.msra.mxu0 %v4110_v5  ;;  %v4191_v5 = vld [vmem:[%s5847_s4 + $0x2b0] ss:$8 sps:$4 sm:$0xff]   ;;  %v4200_v6 = vld [vmem:[%s5847_s4 + $0xc4] ss:$8 sps:$4 sm:$0xff]  }
  0x44   :  { %1902 = vmatpush1.bf16.msra.mxu1 %v4116_v7  ;;  %587 = vmatprep.subr.bf16.mxu0 %v4121_v8  ;;  %v4204_v7 = vld [vmem:[%s5847_s4 + $0x2c4] ss:$8 sps:$4 sm:$0xff]   ;;  %v4198_v8 = vld [vmem:[%s5847_s4 + $0xc0] ss:$8 sps:$4 sm:$0xff]  }
  0x45   :  { %1903 = vmatprep.subr.bf16.mxu1 %v4124_v9  ;;  %1655 = vmatprep.mubr.bf16.mxu1 %v4161_v11  ;;  %v4202_v9 = vld [vmem:[%s5847_s4 + $0x2c0] ss:$8 sps:$4 sm:$0xff]   ;;  %v4211_v11 = vld [vmem:[%s5847_s4 + $0x2d4] ss:$8 sps:$4 sm:$0xff]  }
  0x46   :  { %354 = vmatprep.mubr.bf16.mxu0 %v4822_v21 }
  0x47   :  { %588 = vmatpush1.bf16.msra.mxu0 %v4119_v10  ;;  %v4208_v10 = vld [vmem:[%s5847_s4 + $0xd4] ss:$8 sps:$4 sm:$0xff]  }
  0x48   :  { %1904 = vmatpush1.bf16.msra.mxu1 %v4122_v12  ;;  %589 = vmatprep.subr.bf16.mxu0 %v4127_v13  ;;  %v4206_v12 = vld [vmem:[%s5847_s4 + $0xd0] ss:$8 sps:$4 sm:$0xff]  }
  0x49   :  { %1905 = vmatprep.subr.bf16.mxu1 %v4130_v14  ;;  %v4209_v13 = vld [vmem:[%s5847_s4 + $0x2d0] ss:$8 sps:$4 sm:$0xff]   ;;  %v4217_v14 = vld [vmem:[%s5847_s4 + $0xe4] ss:$8 sps:$4 sm:$0xff]  }
  0x4a   :  { %355 = vmatmul.mubr.bf16.gmra.mrb[4].mxu0 %v4843_v27 }
  0x4b   :  { %1656 = vmatmul.mubr.bf16.gmra.mrb[4].mxu1 %v4166_v17  ;;  %590 = vmatpush1.bf16.msra.mxu0 %v4125_v15  ;;  %v4221_v15 = vld [vmem:[%s5847_s4 + $0x2e4] ss:$8 sps:$4 sm:$0xff]   ;;  %v4219_v17 = vld [vmem:[%s5847_s4 + $0x2e0] ss:$8 sps:$4 sm:$0xff]  }
  0x4c   :  { %1906 = vmatpush1.bf16.msra.mxu1 %v4128_v16  ;;  %591 = vmatprep.subr.bf16.mxu0 %v4133_v18  ;;  %v4215_v16 = vld [vmem:[%s5847_s4 + $0xe0] ss:$8 sps:$4 sm:$0xff]   ;;  %v4225_v18 = vld [vmem:[%s5847_s4 + $0xf4] ss:$8 sps:$4 sm:$0xff]  }
  0x4d   :  { %1907 = vmatprep.subr.bf16.mxu1 %v4136_v19  ;;  %1665 = vmatprep.mubr.bf16.mxu1 %v4176_v20  ;;  %v4228_v19 = vld [vmem:[%s5847_s4 + $0x2f4] ss:$8 sps:$4 sm:$0xff]   ;;  %v4223_v20 = vld [vmem:[%s5847_s4 + $0xf0] ss:$8 sps:$4 sm:$0xff]  }
  0x4e   :  { %364 = vmatprep.mubr.bf16.mxu0 %v4864_v33 }
  0x4f   :  { %592 = vmatpush1.bf16.msra.mxu0 %v4131_v22  ;;  %v4226_v22 = vld [vmem:[%s5847_s4 + $0x2f0] ss:$8 sps:$4 sm:$0xff]  }
  0x50   :  { %1908 = vmatpush1.bf16.msra.mxu1 %v4134_v23  ;;  %593 = vmatprep.subr.bf16.mxu0 %v4139_v24  ;;  %v4234_v23 = vld [vmem:[%s5847_s4 + $0x304] ss:$8 sps:$4 sm:$0xff]  }
  0x51   :  { %1909 = vmatprep.subr.bf16.mxu1 %v4142_v25  ;;  %v4237_v24 = vld [vmem:[%s5847_s4 + $0x704] ss:$8 sps:$4 sm:$0xff]   ;;  %v5033_v25 = vld [vmem:[%s5850_s0] ss:$8 sps:$4 sm:$0xff]  }
  0x52   :  { %365 = vmatmul.mubr.bf16.gmra.mrb[8].mxu0 %v4885_v39 }
  0x53   :  { %1666 = vmatmul.mubr.bf16.gmra.mrb[8].mxu1 %v4183_v29  ;;  %594 = vmatpush1.bf16.msra.mxu0 %v4137_v26  ;;  %v4232_v26 = vld [vmem:[%s5847_s4 + $0x300] ss:$8 sps:$4 sm:$0xff]   ;;  %v4240_v29 = vld [vmem:[%s5847_s4 + $0x314] ss:$8 sps:$4 sm:$0xff]  }
  0x54   :  { %1910 = vmatpush1.bf16.msra.mxu1 %v4140_v28  ;;  %595 = vmatprep.subr.bf16.mxu0 %v4145_v30  ;;  %v4235_v28 = vld [vmem:[%s5847_s4 + $0x700] ss:$8 sps:$4 sm:$0xff]   ;;  %v4243_v30 = vld [vmem:[%s5847_s4 + $0x714] ss:$8 sps:$4 sm:$0xff]  }
  0x55   :  { %1911 = vmatprep.subr.bf16.mxu1 %v4148_v31  ;;  %1675 = vmatprep.mubr.bf16.mxu1 %v4194_v32  ;;  %v5050_v31 = vld [vmem:[%s5850_s0 + $0x14] ss:$8 sps:$4 sm:$0xff]   ;;  %v4238_v32 = vld [vmem:[%s5847_s4 + $0x310] ss:$8 sps:$4 sm:$0xff]  }
  0x56   :  { %374 = vmatprep.mubr.bf16.mxu0 %v4906_v46 }
  0x57   :  { %596 = vmatpush1.bf16.msra.mxu0 %v4143_v34  ;;  %v4241_v34 = vld [vmem:[%s5847_s4 + $0x710] ss:$8 sps:$4 sm:$0xff]  }
  0x58   :  { %1912 = vmatpush1.bf16.msra.mxu1 %v4146_v35  ;;  %597 = vmatprep.subr.bf16.mxu0 %v4151_v36  ;;  %v4248_v35 = vld [vmem:[%s5847_s4 + $0x324] ss:$8 sps:$4 sm:$0xff]  }
  0x59   :  { %1913 = vmatprep.subr.bf16.mxu1 %v4154_v37  ;;  %v4252_v36 = vld [vmem:[%s5847_s4 + $0x724] ss:$8 sps:$4 sm:$0xff]   ;;  %v5071_v37 = vld [vmem:[%s5850_s0 + $0x10] ss:$8 sps:$4 sm:$0xff]  }
  0x5a   :  { %375 = vmatmul.mubr.bf16.gmra.mrb[12].mxu0 %v4927_v54 }
  0x5b   :  { %1676 = vmatmul.mubr.bf16.gmra.mrb[12].mxu1 %v4201_v41  ;;  %598 = vmatpush1.bf16.msra.mxu0 %v4149_v38  ;;  %v4246_v38 = vld [vmem:[%s5847_s4 + $0x320] ss:$8 sps:$4 sm:$0xff]   ;;  %v4255_v41 = vld [vmem:[%s5847_s4 + $0x334] ss:$8 sps:$4 sm:$0xff]  }
  0x5c   :  { %1914 = vmatpush1.bf16.msra.mxu1 %v4152_v40  ;;  %599 = vmatprep.subr.bf16.mxu0 %v4157_v42  ;;  %v4250_v40 = vld [vmem:[%s5847_s4 + $0x720] ss:$8 sps:$4 sm:$0xff]   ;;  %v4258_v42 = vld [vmem:[%s5847_s4 + $0x734] ss:$8 sps:$4 sm:$0xff]  }
  0x5d   :  { %1915 = vmatprep.subr.bf16.mxu1 %v4160_v43  ;;  %1685 = vmatprep.mubr.bf16.mxu1 %v3594_v45  ;;  %v5088_v43 = vld [vmem:[%s5850_s0 + $0x24] ss:$8 sps:$4 sm:$0xff]   ;;  %v4256_v45 = vld [vmem:[%s5847_s4 + $0x730] ss:$8 sps:$4 sm:$0xff]  }
  0x5e   :  { %617 = vmatprep.mubr.bf16.mxu0 %v4941_v59 }
  0x5f   :  { %600 = vmatpush1.bf16.msra.mxu0 %v4155_v47  ;;  %v4263_v47 = vld [vmem:[%s5847_s4 + $0x344] ss:$8 sps:$4 sm:$0xff]  }
  0x60   :  { %1916 = vmatpush1.bf16.msra.mxu1 %v4158_v49  ;;  %601 = vmatprep.subr.bf16.mxu0 %v4165_v50  ;;  %v4267_v49 = vld [vmem:[%s5847_s4 + $0x744] ss:$8 sps:$4 sm:$0xff]   ;;  %v5109_v50 = vld [vmem:[%s5850_s0 + $0x20] ss:$8 sps:$4 sm:$0xff]  }
  0x61   :  { %1917 = vmatprep.subr.bf16.mxu1 %v4169_v52  ;;  %v4261_v52 = vld [vmem:[%s5847_s4 + $0x340] ss:$8 sps:$4 sm:$0xff]  }
  0x63   :  { %1686 = vmatmul.mubr.bf16.gmra.mrb[16].mxu1 %v3593_v56  ;;  %602 = vmatpush1.bf16.msra.mxu0 %v4163_v53  ;;  %v4265_v53 = vld [vmem:[%s5847_s4 + $0x740] ss:$8 sps:$4 sm:$0xff]   ;;  %v4273_v56 = vld [vmem:[%s5847_s4 + $0x754] ss:$8 sps:$4 sm:$0xff]  }
  0x64   :  { %1918 = vmatpush1.bf16.msra.mxu1 %v4167_v55  ;;  %603 = vmatprep.subr.bf16.mxu0 %v4172_v57  ;;  %v4270_v55 = vld [vmem:[%s5847_s4 + $0x354] ss:$8 sps:$4 sm:$0xff]  }
  0x65   :  { %1919 = vmatprep.subr.bf16.mxu1 %v4175_v58  ;;  %1933 = vmatprep.mubr.bf16.mxu1 %v4941_v59  ;;  %v5126_v57 = vld [vmem:[%s5850_s0 + $0x34] ss:$8 sps:$4 sm:$0xff]   ;;  %v4268_v58 = vld [vmem:[%s5847_s4 + $0x350] ss:$8 sps:$4 sm:$0xff]  }
  0x67   :  { %604 = vmatpush1.bf16.msra.mxu0 %v4170_v60  ;;  %v4271_v60 = vld [vmem:[%s5847_s4 + $0x750] ss:$8 sps:$4 sm:$0xff]  }
  0x68   :  { %1920 = vmatpush1.bf16.msra.mxu1 %v4173_v61  ;;  %605 = vmatprep.subr.bf16.mxu0 %v4182_v62  ;;  %v4278_v61 = vld [vmem:[%s5847_s4 + $0x364] ss:$8 sps:$4 sm:$0xff]  }
  0x69   :  { %1921 = vmatprep.subr.bf16.mxu1 %v4186_v63  ;;  %v4282_v62 = vld [vmem:[%s5847_s4 + $0x764] ss:$8 sps:$4 sm:$0xff]   ;;  %v5146_v63 = vld [vmem:[%s5850_s0 + $0x30] ss:$8 sps:$4 sm:$0xff]  }
  0x6b   :  { %606 = vmatpush1.bf16.msra.mxu0 %v4180_v0  ;;  %v1330_v0 = vld [vmem:[%s5850_s0 + $0x40] sm:$0x11] }
  0x6c   :  { %1922 = vmatpush1.bf16.msra.mxu1 %v4184_v1  ;;  %607 = vmatprep.subr.bf16.mxu0 %v4190_v2  ;;  %v4276_v1 = vld [vmem:[%s5847_s4 + $0x360] ss:$8 sps:$4 sm:$0xff]  }
  0x6d   :  { %1923 = vmatprep.subr.bf16.mxu1 %v4193_v3  ;;  %v4280_v2 = vld [vmem:[%s5847_s4 + $0x760] ss:$8 sps:$4 sm:$0xff]   ;;  %v4285_v3 = vld [vmem:[%s5847_s4 + $0x374] ss:$8 sps:$4 sm:$0xff]  }
  0x6f   :  { %608 = vmatpush1.bf16.msra.mxu0 %v4188_v4  ;;  %v4288_v4 = vld [vmem:[%s5847_s4 + $0x774] ss:$8 sps:$4 sm:$0xff]  }
  0x70   :  { %1924 = vmatpush1.bf16.msra.mxu1 %v4191_v5  ;;  %609 = vmatprep.subr.bf16.mxu0 %v4200_v6  ;;  %v3636_v5 = vcombine.high %v1330_v0, %v1330_v0  ;;  %v4283_v6 = vld [vmem:[%s5847_s4 + $0x370] ss:$8 sps:$4 sm:$0xff]  }
  0x71   :  { %1925 = vmatprep.subr.bf16.mxu1 %v4204_v7  ;;  %v4286_v7 = vld [vmem:[%s5847_s4 + $0x770] ss:$8 sps:$4 sm:$0xff]  }
  0x73   :  { %610 = vmatpush1.bf16.msra.mxu0 %v4198_v8  ;;  %v4292_v8 = vld [vmem:[%s5847_s4 + $0x384] ss:$8 sps:$4 sm:$0xff]  }
  0x74   :  { %1926 = vmatpush1.bf16.msra.mxu1 %v4202_v9  ;;  %611 = vmatprep.subr.bf16.mxu0 %v4208_v10  ;;  %v4296_v9 = vld [vmem:[%s5847_s4 + $0x784] ss:$8 sps:$4 sm:$0xff]   ;;  %v3635_v10 = vcombine.low %v1330_v0, %v1330_v0  ;;  %v4345_v0 = vld [vmem:[%s5847_s4 + $0x410] ss:$8 sps:$4 sm:$0xff]  }
  0x75   :  { %1927 = vmatprep.subr.bf16.mxu1 %v4211_v11  ;;  %v4290_v11 = vld [vmem:[%s5847_s4 + $0x380] ss:$8 sps:$4 sm:$0xff]  }
  0x77   :  { %612 = vmatpush1.bf16.msra.mxu0 %v4206_v12  ;;  %v4294_v12 = vld [vmem:[%s5847_s4 + $0x780] ss:$8 sps:$4 sm:$0xff]  }
  0x78   :  { %1928 = vmatpush1.bf16.msra.mxu1 %v4209_v13  ;;  %613 = vmatprep.subr.bf16.mxu0 %v4217_v14  ;;  %v4299_v13 = vld [vmem:[%s5847_s4 + $0x394] ss:$8 sps:$4 sm:$0xff]   ;;  %v4297_v14 = vld [vmem:[%s5847_s4 + $0x390] ss:$8 sps:$4 sm:$0xff]  }
  0x79   :  { %1929 = vmatprep.subr.bf16.mxu1 %v4221_v15  ;;  %v4300_v15 = vld [vmem:[%s5847_s4 + $0x790] ss:$8 sps:$4 sm:$0xff]  }
  0x7b   :  { %614 = vmatpush1.bf16.msra.mxu0 %v4215_v16  ;;  %v4305_v16 = vld [vmem:[%s5847_s4 + $0x3a4] ss:$8 sps:$4 sm:$0xff]  }
  0x7c   :  { %1930 = vmatpush1.bf16.msra.mxu1 %v4219_v17  ;;  %615 = vmatprep.subr.bf16.mxu0 %v4225_v18  ;;  %v4308_v17 = vld [vmem:[%s5847_s4 + $0x7a4] ss:$8 sps:$4 sm:$0xff]   ;;  %v4303_v18 = vld [vmem:[%s5847_s4 + $0x3a0] ss:$8 sps:$4 sm:$0xff]  }
  0x7d   :  { %1931 = vmatprep.subr.bf16.mxu1 %v4228_v19  ;;  %v4306_v19 = vld [vmem:[%s5847_s4 + $0x7a0] ss:$8 sps:$4 sm:$0xff]  }
  0x7f   :  { %616 = vmatpush1.bf16.msra.mxu0 %v4223_v20  ;;  %v4311_v20 = vld [vmem:[%s5847_s4 + $0x3b4] ss:$8 sps:$4 sm:$0xff]  }
  0x80   :  { %1932 = vmatpush1.bf16.msra.mxu1 %v4226_v22  ;;  %901 = vmatprep.subr.bf16.mxu0 %v4234_v23  ;;  %v4309_v22 = vld [vmem:[%s5847_s4 + $0x3b0] ss:$8 sps:$4 sm:$0xff]  }
  0x81   :  { %2350 = vmatprep.subr.bf16.mxu1 %v4237_v24  ;;  %v4312_v23 = vld [vmem:[%s5847_s4 + $0x7b0] ss:$8 sps:$4 sm:$0xff]   ;;  %v4317_v24 = vld [vmem:[%s5847_s4 + $0x3c4] ss:$8 sps:$4 sm:$0xff]  }
  0x82   :  { %618 = vmatmul.mubr.bf16.vlgmr.msra.gmra.mrb[0].mxu0 %v5033_v25 }
  0x83   :  { %1934 = vmatmul.mubr.bf16.vlgmr.msra.gmra.mrb[0].mxu1 %v5033_v25  ;;  %902 = vmatpush1.bf16.msra.mxu0 %v4232_v26  ;;  %v4320_v26 = vld [vmem:[%s5847_s4 + $0x7c4] ss:$8 sps:$4 sm:$0xff]  }
  0x84   :  { %2351 = vmatpush1.bf16.msra.mxu1 %v4235_v28  ;;  %903 = vmatprep.subr.bf16.mxu0 %v4240_v29  ;;  %v4315_v28 = vld [vmem:[%s5847_s4 + $0x3c0] ss:$8 sps:$4 sm:$0xff]  }
  0x85   :  { %2352 = vmatprep.subr.bf16.mxu1 %v4243_v30  ;;  %1943 = vmatprep.mubr.bf16.mxu1 %v5050_v31  ;;  %v4318_v29 = vld [vmem:[%s5847_s4 + $0x7c0] ss:$8 sps:$4 sm:$0xff]   ;;  %v4323_v30 = vld [vmem:[%s5847_s4 + $0x3d4] ss:$8 sps:$4 sm:$0xff]  }
  0x86   :  { %627 = vmatprep.mubr.bf16.mxu0 %v5050_v31 }
  0x87   :  { %904 = vmatpush1.bf16.msra.mxu0 %v4238_v32  ;;  %v4326_v32 = vld [vmem:[%s5847_s4 + $0x7d4] ss:$8 sps:$4 sm:$0xff]  }
  0x88   :  { %2353 = vmatpush1.bf16.msra.mxu1 %v4241_v34  ;;  %905 = vmatprep.subr.bf16.mxu0 %v4248_v35  ;;  %v4321_v34 = vld [vmem:[%s5847_s4 + $0x3d0] ss:$8 sps:$4 sm:$0xff]  }
  0x89   :  { %2354 = vmatprep.subr.bf16.mxu1 %v4252_v36  ;;  %v4324_v35 = vld [vmem:[%s5847_s4 + $0x7d0] ss:$8 sps:$4 sm:$0xff]   ;;  %v4329_v36 = vld [vmem:[%s5847_s4 + $0x3e4] ss:$8 sps:$4 sm:$0xff]  }
  0x8a   :  { %628 = vmatmul.mubr.bf16.gmra.mrb[4].mxu0 %v5071_v37 }
  0x8b   :  { %1944 = vmatmul.mubr.bf16.gmra.mrb[4].mxu1 %v5071_v37  ;;  %906 = vmatpush1.bf16.msra.mxu0 %v4246_v38  ;;  %v4332_v38 = vld [vmem:[%s5847_s4 + $0x7e4] ss:$8 sps:$4 sm:$0xff]  }
  0x8c   :  { %2355 = vmatpush1.bf16.msra.mxu1 %v4250_v40  ;;  %907 = vmatprep.subr.bf16.mxu0 %v4255_v41  ;;  %v4327_v40 = vld [vmem:[%s5847_s4 + $0x3e0] ss:$8 sps:$4 sm:$0xff]  }
  0x8d   :  { %2356 = vmatprep.subr.bf16.mxu1 %v4258_v42  ;;  %1953 = vmatprep.mubr.bf16.mxu1 %v5088_v43  ;;  %v4330_v41 = vld [vmem:[%s5847_s4 + $0x7e0] ss:$8 sps:$4 sm:$0xff]   ;;  %v4335_v42 = vld [vmem:[%s5847_s4 + $0x3f4] ss:$8 sps:$4 sm:$0xff]  }
  0x8e   :  { %637 = vmatprep.mubr.bf16.mxu0 %v5088_v43 }
  0x8f   :  { %908 = vmatpush1.bf16.msra.mxu0 %v4253_v44  ;;  %v4338_v44 = vld [vmem:[%s5847_s4 + $0x7f4] ss:$8 sps:$4 sm:$0xff]  }
  0x90   :  { %2357 = vmatpush1.bf16.msra.mxu1 %v4256_v45  ;;  %909 = vmatprep.subr.bf16.mxu0 %v4263_v47  ;;  %v4333_v45 = vld [vmem:[%s5847_s4 + $0x3f0] ss:$8 sps:$4 sm:$0xff]  }
  0x91   :  { %2358 = vmatprep.subr.bf16.mxu1 %v4267_v49  ;;  %v4336_v47 = vld [vmem:[%s5847_s4 + $0x7f0] ss:$8 sps:$4 sm:$0xff]   ;;  %v4341_v49 = vld [vmem:[%s5847_s4 + $0x404] ss:$8 sps:$4 sm:$0xff]  }
  0x92   :  { %638 = vmatmul.mubr.bf16.gmra.mrb[8].mxu0 %v5109_v50 }
  0x93   :  { %1954 = vmatmul.mubr.bf16.gmra.mrb[8].mxu1 %v5109_v50  ;;  %910 = vmatpush1.bf16.msra.mxu0 %v4261_v52  ;;  %v4344_v52 = vld [vmem:[%s5847_s4 + $0x604] ss:$8 sps:$4 sm:$0xff]  }
  0x94   :  { %2359 = vmatpush1.bf16.msra.mxu1 %v4265_v53  ;;  %911 = vmatprep.subr.bf16.mxu0 %v4270_v55  ;;  %v4339_v53 = vld [vmem:[%s5847_s4 + $0x400] ss:$8 sps:$4 sm:$0xff]  }
  0x95   :  { %2360 = vmatprep.subr.bf16.mxu1 %v4273_v56  ;;  %1963 = vmatprep.mubr.bf16.mxu1 %v5126_v57  ;;  %v4342_v55 = vld [vmem:[%s5847_s4 + $0x600] ss:$8 sps:$4 sm:$0xff]   ;;  %v4347_v56 = vld [vmem:[%s5847_s4 + $0x414] ss:$8 sps:$4 sm:$0xff]  }
  0x96   :  { %647 = vmatprep.mubr.bf16.mxu0 %v5126_v57 }
  0x97   :  { %912 = vmatpush1.bf16.msra.mxu0 %v4268_v58  ;;  %v4350_v58 = vld [vmem:[%s5847_s4 + $0x614] ss:$8 sps:$4 sm:$0xff]  }
  0x98   :  { %2361 = vmatpush1.bf16.msra.mxu1 %v4271_v60  ;;  %913 = vmatprep.subr.bf16.mxu0 %v4278_v61  ;;  %v4399_v60 = vld [vmem:[%s5849_s2 + $0x14] ss:$8 sps:$4 sm:$0xff]   ;;  %v4510_v61 = vld [vmem:[%s5849_s2] ss:$8 sps:$4 sm:$0xff]  }
  0x99   :  { %2362 = vmatprep.subr.bf16.mxu1 %v4282_v62  ;;  %v4511_v62 = vld [vmem:[%s5848_s1] ss:$8 sps:$4 sm:$0xff]  }
  0x9a   :  { %648 = vmatmul.mubr.bf16.gmra.mrb[12].mxu0 %v5146_v63 }
  0x9b   :  { %1964 = vmatmul.mubr.bf16.gmra.mrb[12].mxu1 %v5146_v63  ;;  %914 = vmatpush1.bf16.msra.mxu0 %v4276_v1  ;;  %v4348_v1 = vld [vmem:[%s5847_s4 + $0x610] ss:$8 sps:$4 sm:$0xff]  }
  0x9c   :  { %2363 = vmatpush1.bf16.msra.mxu1 %v4280_v2  ;;  %915 = vmatprep.subr.bf16.mxu0 %v4285_v3  ;;  %v4353_v2 = vld [vmem:[%s5847_s4 + $0x424] ss:$8 sps:$4 sm:$0xff]  }
  0x9d   :  { %2364 = vmatprep.subr.bf16.mxu1 %v4288_v4  ;;  %1973 = vmatprep.mubr.bf16.mxu1 %v3636_v5  ;;  %v4356_v3 = vld [vmem:[%s5847_s4 + $0x624] ss:$8 sps:$4 sm:$0xff]   ;;  %v4351_v4 = vld [vmem:[%s5847_s4 + $0x420] ss:$8 sps:$4 sm:$0xff]   ;;  %v4401_v5 = vld [vmem:[%s5849_s2 + $0x10] ss:$8 sps:$4 sm:$0xff]  }
  0x9e   :  { %933 = vmatprep.mubr.bf16.mxu0 %v4717_v51  ;;  %v4302_v51 = vld [vmem:[%s5847_s4 + $0x794] ss:$8 sps:$4 sm:$0xff]  }
  0x9f   :  { %916 = vmatpush1.bf16.msra.mxu0 %v4283_v6  ;;  %v4354_v6 = vld [vmem:[%s5847_s4 + $0x620] ss:$8 sps:$4 sm:$0xff]  }
  0xa0   :  { %2365 = vmatpush1.bf16.msra.mxu1 %v4286_v7  ;;  %917 = vmatprep.subr.bf16.mxu0 %v4292_v8  ;;  %v4359_v7 = vld [vmem:[%s5847_s4 + $0x434] ss:$8 sps:$4 sm:$0xff]   ;;  %v4414_v8 = vld [vmem:[%s5849_s2 + $0x24] ss:$8 sps:$4 sm:$0xff]  }
  0xa1   :  { %2366 = vmatprep.subr.bf16.mxu1 %v4296_v9  ;;  %v4357_v9 = vld [vmem:[%s5847_s4 + $0x430] ss:$8 sps:$4 sm:$0xff]  }
  0xa3   :  { %1974 = vmatmul.mubr.bf16.gmra.mrb[16].mxu1 %v3635_v10  ;;  %918 = vmatpush1.bf16.msra.mxu0 %v4290_v11  ;;  %v4360_v10 = vld [vmem:[%s5847_s4 + $0x630] ss:$8 sps:$4 sm:$0xff]   ;;  %v4365_v11 = vld [vmem:[%s5847_s4 + $0x444] ss:$8 sps:$4 sm:$0xff]  }
  0xa4   :  { %2367 = vmatpush1.bf16.msra.mxu1 %v4294_v12  ;;  %919 = vmatprep.subr.bf16.mxu0 %v4299_v13  ;;  %v4368_v12 = vld [vmem:[%s5847_s4 + $0x644] ss:$8 sps:$4 sm:$0xff]   ;;  %v4366_v13 = vld [vmem:[%s5847_s4 + $0x640] ss:$8 sps:$4 sm:$0xff]  }
  0xa5   :  { %2368 = vmatprep.subr.bf16.mxu1 %v4302_v51  ;;  %2382 = vmatprep.mubr.bf16.mxu1 %v4705_v48  ;;  %v4314_v48 = vld [vmem:[%s5847_s4 + $0x7b4] ss:$8 sps:$4 sm:$0xff]   ;;  %v4416_v51 = vld [vmem:[%s5849_s2 + $0x20] ss:$8 sps:$4 sm:$0xff]  }
  0xa7   :  { %920 = vmatpush1.bf16.msra.mxu0 %v4297_v14  ;;  %v4371_v14 = vld [vmem:[%s5847_s4 + $0x454] ss:$8 sps:$4 sm:$0xff]  }
  0xa8   :  { %2369 = vmatpush1.bf16.msra.mxu1 %v4300_v15  ;;  %921 = vmatprep.subr.bf16.mxu0 %v4305_v16  ;;  %v4429_v15 = vld [vmem:[%s5849_s2 + $0x34] ss:$8 sps:$4 sm:$0xff]   ;;  %v4369_v16 = vld [vmem:[%s5847_s4 + $0x450] ss:$8 sps:$4 sm:$0xff]  }
  0xa9   :  { %2370 = vmatprep.subr.bf16.mxu1 %v4308_v17  ;;  %v4372_v17 = vld [vmem:[%s5847_s4 + $0x650] ss:$8 sps:$4 sm:$0xff]  }
  0xab   :  { %922 = vmatpush1.bf16.msra.mxu0 %v4303_v18  ;;  %v4377_v18 = vld [vmem:[%s5847_s4 + $0x464] ss:$8 sps:$4 sm:$0xff]  }
  0xac   :  { %2371 = vmatpush1.bf16.msra.mxu1 %v4306_v19  ;;  %923 = vmatprep.subr.bf16.mxu0 %v4311_v20  ;;  %v4380_v19 = vld [vmem:[%s5847_s4 + $0x664] ss:$8 sps:$4 sm:$0xff]   ;;  %v4375_v20 = vld [vmem:[%s5847_s4 + $0x460] ss:$8 sps:$4 sm:$0xff]  }
  0xad   :  { %2372 = vmatprep.subr.bf16.mxu1 %v4314_v48  ;;  %v2109_v48 = vld [vmem:[%s5848_s1 + $0x40] sm:$0x77] }
  0xaf   :  { %924 = vmatpush1.bf16.msra.mxu0 %v4309_v22  ;;  %v4432_v22 = vld [vmem:[%s5849_s2 + $0x30] ss:$8 sps:$4 sm:$0xff]  }
  0xb0   :  { %2373 = vmatpush1.bf16.msra.mxu1 %v4312_v23  ;;  %925 = vmatprep.subr.bf16.mxu0 %v4317_v24  ;;  %v4383_v23 = vld [vmem:[%s5847_s4 + $0x474] ss:$8 sps:$4 sm:$0xff]   ;;  %v3742_v24 = vcombine.high %v2109_v48, %v2109_v48 }
  0xb1   :  { %2374 = vmatprep.subr.bf16.mxu1 %v4320_v26  ;;  %v4448_v26 = vld [vmem:[%s5851_s3 + $0x4] ss:$8 sps:$4 sm:$0xff]  }
  0xb3   :  { %926 = vmatpush1.bf16.msra.mxu0 %v4315_v28  ;;  %v4381_v28 = vld [vmem:[%s5847_s4 + $0x470] ss:$8 sps:$4 sm:$0xff]  }
  0xb4   :  { %2375 = vmatpush1.bf16.msra.mxu1 %v4318_v29  ;;  %927 = vmatprep.subr.bf16.mxu0 %v4323_v30  ;;  %v4384_v29 = vld [vmem:[%s5847_s4 + $0x670] ss:$8 sps:$4 sm:$0xff]   ;;  %v4389_v30 = vld [vmem:[%s5847_s4 + $0x484] ss:$8 sps:$4 sm:$0xff]  }
  0xb5   :  { %2376 = vmatprep.subr.bf16.mxu1 %v4326_v32  ;;  %v3741_v32 = vcombine.low %v2109_v48, %v2109_v48  ;;  %v4476_v48 = vld [vmem:[%s5847_s4 + $0x860] ss:$8 sps:$4 sm:$0xff]  }
  0xb7   :  { %928 = vmatpush1.bf16.msra.mxu0 %v4321_v34  ;;  %v4387_v34 = vld [vmem:[%s5847_s4 + $0x480] ss:$8 sps:$4 sm:$0xff]  }
  0xb8   :  { %2377 = vmatpush1.bf16.msra.mxu1 %v4324_v35  ;;  %929 = vmatprep.subr.bf16.mxu0 %v4329_v36  ;;  %v4390_v35 = vld [vmem:[%s5847_s4 + $0x680] ss:$8 sps:$4 sm:$0xff]   ;;  %v4395_v36 = vld [vmem:[%s5847_s4 + $0x494] ss:$8 sps:$4 sm:$0xff]  }
  0xb9   :  { %2378 = vmatprep.subr.bf16.mxu1 %v4332_v38  ;;  %v4398_v38 = vld [vmem:[%s5847_s4 + $0x694] ss:$8 sps:$4 sm:$0xff]  }
  0xbb   :  { %930 = vmatpush1.bf16.msra.mxu0 %v4327_v40  ;;  %v4393_v40 = vld [vmem:[%s5847_s4 + $0x490] ss:$8 sps:$4 sm:$0xff]  }
  0xbc   :  { %2379 = vmatpush1.bf16.msra.mxu1 %v4330_v41  ;;  %931 = vmatprep.subr.bf16.mxu0 %v4335_v42  ;;  %v4396_v41 = vld [vmem:[%s5847_s4 + $0x690] ss:$8 sps:$4 sm:$0xff]   ;;  %v4404_v42 = vld [vmem:[%s5847_s4 + $0x4a4] ss:$8 sps:$4 sm:$0xff]  }
  0xbd   :  { %2380 = vmatprep.subr.bf16.mxu1 %v4338_v44  ;;  %v4407_v44 = vld [vmem:[%s5847_s4 + $0x6a4] ss:$8 sps:$4 sm:$0xff]  }
  0xbf   :  { %932 = vmatpush1.bf16.msra.mxu0 %v4333_v45  ;;  %v4402_v45 = vld [vmem:[%s5847_s4 + $0x4a0] ss:$8 sps:$4 sm:$0xff]  }
  0xc0   :  { %2381 = vmatpush1.bf16.msra.mxu1 %v4336_v47  ;;  %1233 = vmatprep.subr.bf16.mxu0 %v4341_v49  ;;  %v4405_v47 = vld [vmem:[%s5847_s4 + $0x6a0] ss:$8 sps:$4 sm:$0xff]   ;;  %v4410_v49 = vld [vmem:[%s5847_s4 + $0x4b4] ss:$8 sps:$4 sm:$0xff]  }
  0xc1   :  { %2598 = vmatprep.subr.bf16.mxu1 %v4344_v52  ;;  %v4408_v52 = vld [vmem:[%s5847_s4 + $0x4b0] ss:$8 sps:$4 sm:$0xff]  }
  0xc2   :  { %934 = vmatmul.mubr.bf16.vlgmr.msra.gmra.mrb[0].mxu0 %v4510_v61  ;;  %v4425_v61 = vld [vmem:[%s5847_s4 + $0x4d4] ss:$8 sps:$4 sm:$0xff]  }
  0xc3   :  { %2383 = vmatmul.mubr.bf16.vlgmr.msra.gmra.mrb[20].mxu1 %v4511_v62  ;;  %1234 = vmatpush1.bf16.msra.mxu0 %v4339_v53  ;;  %v4411_v53 = vld [vmem:[%s5847_s4 + $0x6b0] ss:$8 sps:$4 sm:$0xff]   ;;  %v4428_v62 = vld [vmem:[%s5847_s4 + $0x6d4] ss:$8 sps:$4 sm:$0xff]  }
  0xc4   :  { %2599 = vmatpush1.bf16.msra.mxu1 %v4342_v55  ;;  %1235 = vmatprep.subr.bf16.mxu0 %v4347_v56  ;;  %v4419_v55 = vld [vmem:[%s5847_s4 + $0x4c4] ss:$8 sps:$4 sm:$0xff]  }
  0xc5   :  { %2600 = vmatprep.subr.bf16.mxu1 %v4350_v58  ;;  %2392 = vmatprep.mubr.bf16.mxu1 %v4822_v21  ;;  %v4362_v21 = vld [vmem:[%s5847_s4 + $0x634] ss:$8 sps:$4 sm:$0xff]   ;;  %v4422_v56 = vld [vmem:[%s5847_s4 + $0x6c4] ss:$8 sps:$4 sm:$0xff]   ;;  %v4417_v58 = vld [vmem:[%s5847_s4 + $0x4c0] ss:$8 sps:$4 sm:$0xff]  }
  0xc6   :  { %943 = vmatprep.mubr.bf16.mxu0 %v4399_v60  ;;  %v4420_v60 = vld [vmem:[%s5847_s4 + $0x6c0] ss:$8 sps:$4 sm:$0xff]  }
  0xc7   :  { %1236 = vmatpush1.bf16.msra.mxu0 %v4345_v0  ;;  %v4423_v0 = vld [vmem:[%s5847_s4 + $0x4d0] ss:$8 sps:$4 sm:$0xff]  }
  0xc8   :  { %2601 = vmatpush1.bf16.msra.mxu1 %v4348_v1  ;;  %1237 = vmatprep.subr.bf16.mxu0 %v4353_v2  ;;  %v4426_v1 = vld [vmem:[%s5847_s4 + $0x6d0] ss:$8 sps:$4 sm:$0xff]   ;;  %v4435_v2 = vld [vmem:[%s5847_s4 + $0x4e4] ss:$8 sps:$4 sm:$0xff]  }
  0xc9   :  { %2602 = vmatprep.subr.bf16.mxu1 %v4356_v3  ;;  %v4439_v3 = vld [vmem:[%s5847_s4 + $0x6e4] ss:$8 sps:$4 sm:$0xff]  }
  0xca   :  { %944 = vmatmul.mubr.bf16.gmra.mrb[4].mxu0 %v4401_v5  ;;  %v4437_v5 = vld [vmem:[%s5847_s4 + $0x6e0] ss:$8 sps:$4 sm:$0xff]  }
  0xcb   :  { %2393 = vmatmul.mubr.bf16.gmra.mrb[24].mxu1 %v4843_v27  ;;  %1238 = vmatpush1.bf16.msra.mxu0 %v4351_v4  ;;  %v4363_v27 = vld [vmem:[%s5847_s4 + $0x440] ss:$8 sps:$4 sm:$0xff]  }
  0xcc   :  { %2603 = vmatpush1.bf16.msra.mxu1 %v4354_v6  ;;  %1239 = vmatprep.subr.bf16.mxu0 %v4359_v7  ;;  %v4433_v4 = vld [vmem:[%s5847_s4 + $0x4e0] ss:$8 sps:$4 sm:$0xff]   ;;  %v4442_v6 = vld [vmem:[%s5847_s4 + $0x4f4] ss:$8 sps:$4 sm:$0xff]  }
  0xcd   :  { %2604 = vmatprep.subr.bf16.mxu1 %v4362_v21  ;;  %2402 = vmatprep.mubr.bf16.mxu1 %v4864_v33  ;;  %v4374_v33 = vld [vmem:[%s5847_s4 + $0x654] ss:$8 sps:$4 sm:$0xff]   ;;  %v4440_v21 = vld [vmem:[%s5847_s4 + $0x4f0] ss:$8 sps:$4 sm:$0xff]  }
  0xce   :  { %953 = vmatprep.mubr.bf16.mxu0 %v4414_v8  ;;  %v4445_v7 = vld [vmem:[%s5847_s4 + $0x6f4] ss:$8 sps:$4 sm:$0xff]   ;;  %v4443_v8 = vld [vmem:[%s5847_s4 + $0x6f0] ss:$8 sps:$4 sm:$0xff]  }
  0xcf   :  { %1240 = vmatpush1.bf16.msra.mxu0 %v4357_v9  ;;  %v4451_v9 = vld [vmem:[%s5847_s4 + $0x804] ss:$8 sps:$4 sm:$0xff]  }
  0xd0   :  { %2605 = vmatpush1.bf16.msra.mxu1 %v4360_v10  ;;  %1241 = vmatprep.subr.bf16.mxu0 %v4365_v11  ;;  %v4446_v10 = vld [vmem:[%s5851_s3] ss:$8 sps:$4 sm:$0xff]  }
  0xd1   :  { %2606 = vmatprep.subr.bf16.mxu1 %v4368_v12  ;;  %v4449_v11 = vld [vmem:[%s5847_s4 + $0x800] ss:$8 sps:$4 sm:$0xff]   ;;  %v4454_v12 = vld [vmem:[%s5847_s4 + $0x814] ss:$8 sps:$4 sm:$0xff]  }
  0xd2   :  { %954 = vmatmul.mubr.bf16.gmra.mrb[8].mxu0 %v4416_v51  ;;  %v4460_v51 = vld [vmem:[%s5847_s4 + $0x824] ss:$8 sps:$4 sm:$0xff]  }
  0xd3   :  { %2403 = vmatmul.mubr.bf16.gmra.mrb[28].mxu1 %v4885_v39  ;;  %1242 = vmatpush1.bf16.msra.mxu0 %v4363_v27  ;;  %v4378_v39 = vld [vmem:[%s5847_s4 + $0x660] ss:$8 sps:$4 sm:$0xff]   ;;  %v4455_v27 = vld [vmem:[%s5851_s3 + $0x14] ss:$8 sps:$4 sm:$0xff]  }
  0xd4   :  { %2607 = vmatpush1.bf16.msra.mxu1 %v4366_v13  ;;  %1243 = vmatprep.subr.bf16.mxu0 %v4371_v14  ;;  %v4452_v13 = vld [vmem:[%s5847_s4 + $0x810] ss:$8 sps:$4 sm:$0xff]  }
  0xd5   :  { %2608 = vmatprep.subr.bf16.mxu1 %v4374_v33  ;;  %2412 = vmatprep.mubr.bf16.mxu1 %v4906_v46  ;;  %v4386_v46 = vld [vmem:[%s5847_s4 + $0x674] ss:$8 sps:$4 sm:$0xff]   ;;  %v4457_v14 = vld [vmem:[%s5851_s3 + $0x10] ss:$8 sps:$4 sm:$0xff]  }
  0xd6   :  { %963 = vmatprep.mubr.bf16.mxu0 %v4429_v15  ;;  %v4463_v33 = vld [vmem:[%s5847_s4 + $0x834] ss:$8 sps:$4 sm:$0xff]   ;;  %v4461_v15 = vld [vmem:[%s5847_s4 + $0x830] ss:$8 sps:$4 sm:$0xff]  }
  0xd7   :  { %1244 = vmatpush1.bf16.msra.mxu0 %v4369_v16  ;;  %v4469_v16 = vld [vmem:[%s5847_s4 + $0x844] ss:$8 sps:$4 sm:$0xff]  }
  0xd8   :  { %2609 = vmatpush1.bf16.msra.mxu1 %v4372_v17  ;;  %1245 = vmatprep.subr.bf16.mxu0 %v4377_v18  ;;  %v4466_v17 = vld [vmem:[%s5851_s3 + $0x20] ss:$8 sps:$4 sm:$0xff]   ;;  %v4472_v18 = vld [vmem:[%s5847_s4 + $0x854] ss:$8 sps:$4 sm:$0xff]  }
  0xd9   :  { %2610 = vmatprep.subr.bf16.mxu1 %v4380_v19  ;;  %v4470_v19 = vld [vmem:[%s5847_s4 + $0x850] ss:$8 sps:$4 sm:$0xff]  }
  0xda   :  { %964 = vmatmul.mubr.bf16.gmra.mrb[12].mxu0 %v4432_v22  ;;  %v4481_v22 = vld [vmem:[%s5847_s4 + $0x874] ss:$8 sps:$4 sm:$0xff]  }
  0xdb   :  { %2413 = vmatmul.mubr.bf16.gmra.mrb[32].mxu1 %v4927_v54  ;;  %1246 = vmatpush1.bf16.msra.mxu0 %v4375_v20  ;;  %v4392_v54 = vld [vmem:[%s5847_s4 + $0x684] ss:$8 sps:$4 sm:$0xff]  }
  0xdc   :  { %2611 = vmatpush1.bf16.msra.mxu1 %v4378_v39  ;;  %1247 = vmatprep.subr.bf16.mxu0 %v4383_v23  ;;  %v4478_v20 = vld [vmem:[%s5847_s4 + $0x864] ss:$8 sps:$4 sm:$0xff]   ;;  %v4475_v39 = vld [vmem:[%s5851_s3 + $0x30] ss:$8 sps:$4 sm:$0xff]  }
  0xdd   :  { %2612 = vmatprep.subr.bf16.mxu1 %v4386_v46  ;;  %2422 = vmatprep.mubr.bf16.mxu1 %v3742_v24  ;;  %v4479_v46 = vld [vmem:[%s5847_s4 + $0x870] ss:$8 sps:$4 sm:$0xff]   ;;  %v4486_v24 = vld [vmem:[%s5847_s4 + $0x884] ss:$8 sps:$4 sm:$0xff]  }
  0xde   :  { %1265 = vmatprep.mubr.bf16.mxu0 %v4448_v26  ;;  %v4512_v26 = vld [vmem:[%s5850_s0 + $0x4] ss:$8 sps:$4 sm:$0xff]  }
  0xdf   :  { %1248 = vmatpush1.bf16.msra.mxu0 %v4381_v28 }
  0xe0   :  { %2613 = vmatpush1.bf16.msra.mxu1 %v4384_v29  ;;  %1249 = vmatprep.subr.bf16.mxu0 %v4389_v30  ;;  %v4484_v29 = vld [vmem:[%s5847_s4 + $0x880] ss:$8 sps:$4 sm:$0xff]   ;;  %v4489_v30 = vld [vmem:[%s5847_s4 + $0x894] ss:$8 sps:$4 sm:$0xff]  }
  0xe1   :  { %2614 = vmatprep.subr.bf16.mxu1 %v4392_v54  ;;  %v4487_v54 = vld [vmem:[%s5847_s4 + $0x890] ss:$8 sps:$4 sm:$0xff]  }
  0xe3   :  { %2423 = vmatmul.mubr.bf16.gmra.mrb[36].mxu1 %v3741_v32  ;;  %1250 = vmatpush1.bf16.msra.mxu0 %v4387_v34  ;;  %v4492_v32 = vld [vmem:[%s5847_s4 + $0x8a4] ss:$8 sps:$4 sm:$0xff]   ;;  %v4490_v34 = vld [vmem:[%s5847_s4 + $0x8a0] ss:$8 sps:$4 sm:$0xff]  }
  0xe4   :  { %2615 = vmatpush1.bf16.msra.mxu1 %v4390_v35  ;;  %1251 = vmatprep.subr.bf16.mxu0 %v4395_v36  ;;  %v4495_v35 = vld [vmem:[%s5847_s4 + $0x8b4] ss:$8 sps:$4 sm:$0xff]   ;;  %v4493_v36 = vld [vmem:[%s5847_s4 + $0x8b0] ss:$8 sps:$4 sm:$0xff]  }
  0xe5   :  { %2616 = vmatprep.subr.bf16.mxu1 %v4398_v38  ;;  %2630 = vmatprep.mubr.bf16.mxu1 %v4941_v59  ;;  %v4413_v59 = vld [vmem:[%s5847_s4 + $0x6b4] ss:$8 sps:$4 sm:$0xff]   ;;  %v4496_v38 = vld [vmem:[%s5847_s4 + $0x8c0] ss:$8 sps:$4 sm:$0xff]  }
  0xe7   :  { %1252 = vmatpush1.bf16.msra.mxu0 %v4393_v40  ;;  %v4501_v40 = vld [vmem:[%s5847_s4 + $0x8d4] ss:$8 sps:$4 sm:$0xff]  }
  0xe8   :  { %2617 = vmatpush1.bf16.msra.mxu1 %v4396_v41  ;;  %1253 = vmatprep.subr.bf16.mxu0 %v4404_v42  ;;  %v4499_v41 = vld [vmem:[%s5847_s4 + $0x8d0] ss:$8 sps:$4 sm:$0xff]   ;;  %v4504_v42 = vld [vmem:[%s5847_s4 + $0x8e4] ss:$8 sps:$4 sm:$0xff]  }
  0xe9   :  { %2618 = vmatprep.subr.bf16.mxu1 %v4407_v44  ;;  %v4502_v44 = vld [vmem:[%s5847_s4 + $0x8e0] ss:$8 sps:$4 sm:$0xff]  }
  0xeb   :  { %1254 = vmatpush1.bf16.msra.mxu0 %v4402_v45  ;;  %v4507_v45 = vld [vmem:[%s5847_s4 + $0x8f4] ss:$8 sps:$4 sm:$0xff]  }
  0xec   :  { %2619 = vmatpush1.bf16.msra.mxu1 %v4405_v47  ;;  %1255 = vmatprep.subr.bf16.mxu0 %v4410_v49  ;;  %v4505_v47 = vld [vmem:[%s5847_s4 + $0x8f0] ss:$8 sps:$4 sm:$0xff]   ;;  %v2764_v49 = vld [vmem:[%s5850_s0 + $0x40] sm:$0xff] }
  0xed   :  { %2620 = vmatprep.subr.bf16.mxu1 %v4413_v59  ;;  %v3842_v59 = vcombine.high %v2764_v49, %v2764_v49 }
  0xef   :  { %1256 = vmatpush1.bf16.msra.mxu0 %v4408_v52  ;;  %v4513_v52 = vld [vmem:[%s5850_s0] ss:$8 sps:$4 sm:$0xff]  }
  0xf0   :  { %2621 = vmatpush1.bf16.msra.mxu1 %v4411_v53  ;;  %1257 = vmatprep.subr.bf16.mxu0 %v4419_v55  ;;  %v4514_v53 = vld [vmem:[%s5850_s0 + $0x14] ss:$8 sps:$4 sm:$0xff]   ;;  %v3841_v55 = vcombine.low %v2764_v49, %v2764_v49 }
  0xf1   :  { %2622 = vmatprep.subr.bf16.mxu1 %v4422_v56  ;;  %v4515_v56 = vld [vmem:[%s5850_s0 + $0x10] ss:$8 sps:$4 sm:$0xff]  }
  0xf3   :  { %1258 = vmatpush1.bf16.msra.mxu0 %v4417_v58  ;;  %v4516_v58 = vld [vmem:[%s5850_s0 + $0x24] ss:$8 sps:$4 sm:$0xff]  }
  0xf4   :  { %2623 = vmatpush1.bf16.msra.mxu1 %v4420_v60  ;;  %1259 = vmatprep.subr.bf16.mxu0 %v4425_v61 }
  0xf5   :  { %2624 = vmatprep.subr.bf16.mxu1 %v4428_v62 }
  0xf7   :  { %1260 = vmatpush1.bf16.msra.mxu0 %v4423_v0 }
  0xf8   :  { %2625 = vmatpush1.bf16.msra.mxu1 %v4426_v1  ;;  %1261 = vmatprep.subr.bf16.mxu0 %v4435_v2 }
  0xf9   :  { %2626 = vmatprep.subr.bf16.mxu1 %v4439_v3 }
  0xfb   :  { %1262 = vmatpush1.bf16.msra.mxu0 %v4433_v4 }
  0xfc   :  { %2627 = vmatpush1.bf16.msra.mxu1 %v4437_v5  ;;  %1263 = vmatprep.subr.bf16.mxu0 %v4442_v6 }
  0xfd   :  { %2628 = vmatprep.subr.bf16.mxu1 %v4445_v7 }
  0xff   :  { %1264 = vmatpush1.bf16.msra.mxu0 %v4440_v21 }
 0x100   :  { %2629 = vmatpush1.bf16.msra.mxu1 %v4443_v8  ;;  %2965 = vmatprep.subr.bf16.mxu0 %v4451_v9 }
 0x101   :  { %3891 = vmatprep.subr.bf16.mxu1 %v4451_v9 }
 0x102   :  { %1266 = vmatmul.mubr.bf16.vlgmr.msra.gmra.mrb[0].mxu0 %v4446_v10 }
 0x103   :  { %2631 = vmatmul.mubr.bf16.vlgmr.msra.gmra.mrb[20].mxu1 %v5033_v25  ;;  %2966 = vmatpush1.bf16.msra.mxu0 %v4449_v11  ;;  %v4458_v25 = vld [vmem:[%s5847_s4 + $0x820] ss:$8 sps:$4 sm:$0xff]  }
 0x104   :  { %3907 = vmatpush1.bf16.msra.mxu1 %v4449_v11  ;;  %2967 = vmatprep.subr.bf16.mxu0 %v4454_v12 }
 0x105   :  { %3892 = vmatprep.subr.bf16.mxu1 %v4454_v12  ;;  %1275 = vmatprep.mubr.bf16.mxu0 %v4455_v27 }
 0x106   :  { %2640 = vmatprep.mubr.bf16.mxu1 %v5050_v31  ;;  %v4464_v31 = vld [vmem:[%s5851_s3 + $0x24] ss:$8 sps:$4 sm:$0xff]  }
 0x107   :  { %2968 = vmatpush1.bf16.msra.mxu0 %v4452_v13 }
 0x108   :  { %3908 = vmatpush1.bf16.msra.mxu1 %v4452_v13  ;;  %2969 = vmatprep.subr.bf16.mxu0 %v4460_v51 }
 0x109   :  { %3893 = vmatprep.subr.bf16.mxu1 %v4460_v51 }
 0x10a   :  { %1276 = vmatmul.mubr.bf16.gmra.mrb[4].mxu0 %v4457_v14 }
 0x10b   :  { %2641 = vmatmul.mubr.bf16.gmra.mrb[24].mxu1 %v5071_v37  ;;  %2970 = vmatpush1.bf16.msra.mxu0 %v4458_v25  ;;  %v4467_v37 = vld [vmem:[%s5847_s4 + $0x840] ss:$8 sps:$4 sm:$0xff]  }
 0x10c   :  { %3909 = vmatpush1.bf16.msra.mxu1 %v4458_v25  ;;  %2971 = vmatprep.subr.bf16.mxu0 %v4463_v33 }
 0x10d   :  { %3894 = vmatprep.subr.bf16.mxu1 %v4463_v33  ;;  %1285 = vmatprep.mubr.bf16.mxu0 %v4464_v31 }
 0x10e   :  { %2650 = vmatprep.mubr.bf16.mxu1 %v5088_v43  ;;  %v4473_v43 = vld [vmem:[%s5851_s3 + $0x34] ss:$8 sps:$4 sm:$0xff]  }
 0x10f   :  { %2972 = vmatpush1.bf16.msra.mxu0 %v4461_v15 }
 0x110   :  { %3910 = vmatpush1.bf16.msra.mxu1 %v4461_v15  ;;  %2973 = vmatprep.subr.bf16.mxu0 %v4469_v16 }
 0x111   :  { %3895 = vmatprep.subr.bf16.mxu1 %v4469_v16 }
 0x112   :  { %1286 = vmatmul.mubr.bf16.gmra.mrb[8].mxu0 %v4466_v17 }
 0x113   :  { %2651 = vmatmul.mubr.bf16.gmra.mrb[28].mxu1 %v5109_v50  ;;  %2974 = vmatpush1.bf16.msra.mxu0 %v4467_v37  ;;  %v2067_v50 = vld [vmem:[%s5850_s0 + $0x40] sm:$0x77] }
 0x114   :  { %3911 = vmatpush1.bf16.msra.mxu1 %v4467_v37  ;;  %2975 = vmatprep.subr.bf16.mxu0 %v4472_v18  ;;  %v3776_v23 = vcombine.high %v2067_v50, %v2067_v50  ;;  %v3775_v28 = vcombine.low %v2067_v50, %v2067_v50 }
 0x115   :  { %3896 = vmatprep.subr.bf16.mxu1 %v4472_v18  ;;  %1295 = vmatprep.mubr.bf16.mxu0 %v4473_v43 }
 0x116   :  { %2660 = vmatprep.mubr.bf16.mxu1 %v5126_v57 }
 0x117   :  { %2976 = vmatpush1.bf16.msra.mxu0 %v4470_v19 }
 0x118   :  { %3912 = vmatpush1.bf16.msra.mxu1 %v4470_v19  ;;  %2977 = vmatprep.subr.bf16.mxu0 %v4478_v20 }
 0x119   :  { %3897 = vmatprep.subr.bf16.mxu1 %v4478_v20 }
 0x11a   :  { %1296 = vmatmul.mubr.bf16.gmra.mrb[12].mxu0 %v4475_v39 }
 0x11b   :  { %2661 = vmatmul.mubr.bf16.gmra.mrb[32].mxu1 %v5146_v63  ;;  %2978 = vmatpush1.bf16.msra.mxu0 %v4476_v48 }
 0x11c   :  { %3913 = vmatpush1.bf16.msra.mxu1 %v4476_v48  ;;  %2979 = vmatprep.subr.bf16.mxu0 %v4481_v22 }
 0x11d   :  { %3898 = vmatprep.subr.bf16.mxu1 %v4481_v22  ;;  %2670 = vmatprep.mubr.bf16.mxu1 %v3776_v23 }
 0x11e   :  { %2997 = vmatprep.mubr.bf16.mxu0 %v4512_v26 }
 0x11f   :  { %2980 = vmatpush1.bf16.msra.mxu0 %v4479_v46 }
 0x120   :  { %3914 = vmatpush1.bf16.msra.mxu1 %v4479_v46  ;;  %2981 = vmatprep.subr.bf16.mxu0 %v4486_v24 }
 0x121   :  { %3899 = vmatprep.subr.bf16.mxu1 %v4486_v24 }
 0x123   :  { %2671 = vmatmul.mubr.bf16.gmra.mrb[36].mxu1 %v3775_v28  ;;  %2982 = vmatpush1.bf16.msra.mxu0 %v4484_v29 }
 0x124   :  { %3915 = vmatpush1.bf16.msra.mxu1 %v4484_v29  ;;  %2983 = vmatprep.subr.bf16.mxu0 %v4489_v30 }
 0x125   :  { %3900 = vmatprep.subr.bf16.mxu1 %v4489_v30  ;;  %3027 = vmatprep.mubr.bf16.mxu1 %v5126_v57  ;;  %v4498_v57 = vld [vmem:[%s5847_s4 + $0x8c4] ss:$8 sps:$4 sm:$0xff]  }
 0x127   :  { %2984 = vmatpush1.bf16.msra.mxu0 %v4487_v54 }
 0x128   :  { %3916 = vmatpush1.bf16.msra.mxu1 %v4487_v54  ;;  %2985 = vmatprep.subr.bf16.mxu0 %v4492_v32 }
 0x129   :  { %3901 = vmatprep.subr.bf16.mxu1 %v4492_v32 }
 0x12b   :  { %2986 = vmatpush1.bf16.msra.mxu0 %v4490_v34 }
 0x12c   :  { %3917 = vmatpush1.bf16.msra.mxu1 %v4490_v34  ;;  %2987 = vmatprep.subr.bf16.mxu0 %v4495_v35 }
 0x12d   :  { %3902 = vmatprep.subr.bf16.mxu1 %v4495_v35 }
 0x12f   :  { %2988 = vmatpush1.bf16.msra.mxu0 %v4493_v36 }
 0x130   :  { %3918 = vmatpush1.bf16.msra.mxu1 %v4493_v36  ;;  %2989 = vmatprep.subr.bf16.mxu0 %v4498_v57 }
 0x131   :  { %3903 = vmatprep.subr.bf16.mxu1 %v4498_v57 }
 0x133   :  { %2990 = vmatpush1.bf16.msra.mxu0 %v4496_v38 }
 0x134   :  { %3919 = vmatpush1.bf16.msra.mxu1 %v4496_v38  ;;  %2991 = vmatprep.subr.bf16.mxu0 %v4501_v40 }
 0x135   :  { %3904 = vmatprep.subr.bf16.mxu1 %v4501_v40 }
 0x137   :  { %2992 = vmatpush1.bf16.msra.mxu0 %v4499_v41 }
 0x138   :  { %3920 = vmatpush1.bf16.msra.mxu1 %v4499_v41  ;;  %2993 = vmatprep.subr.bf16.mxu0 %v4504_v42 }
 0x139   :  { %3905 = vmatprep.subr.bf16.mxu1 %v4504_v42 }
 0x13b   :  { %2994 = vmatpush1.bf16.msra.mxu0 %v4502_v44 }
 0x13c   :  { %3921 = vmatpush1.bf16.msra.mxu1 %v4502_v44  ;;  %2995 = vmatprep.subr.bf16.mxu0 %v4507_v45 }
 0x13d   :  { %3906 = vmatprep.subr.bf16.mxu1 %v4507_v45 }
 0x13f   :  { %2996 = vmatpush1.bf16.msra.mxu0 %v4505_v47 }
 0x140   :  { %3922 = vmatpush1.bf16.msra.mxu1 %v4505_v47 }
 0x142   :  { %2998 = vmatmul.mubr.bf16.vlgmr.msra.gmra.mrb[16].mxu0 %v4513_v52 }
 0x143   :  { %3028 = vmatmul.mubr.bf16.vlgmr.msra.gmra.mrb[40].mxu1 %v5146_v63  ;;  %3007 = vmatprep.mubr.bf16.mxu0 %v4514_v53  ;;  %v4517_v63 = vld [vmem:[%s5850_s0 + $0x20] ss:$8 sps:$4 sm:$0xff]  }
 0x144   :  { %3037 = vmatprep.mubr.bf16.mxu1 %v3842_v59 }
 0x14a   :  { %3008 = vmatmul.mubr.bf16.gmra.mrb[20].mxu0 %v4515_v56 }
 0x14b   :  { %3038 = vmatmul.mubr.bf16.gmra.mrb[44].mxu1 %v3841_v55  ;;  %3017 = vmatprep.mubr.bf16.mxu0 %v4516_v58 }
 0x152   :  { %3018 = vmatmul.mubr.bf16.gmra.mrb[24].mxu0 %v4517_v63 }
 0x156   :  { %v1935_v60 = vpop.f32.mrb[0].mxu1 }
 0x157   :  { %v1937_v61 = vpop.f32.mrb[1].mxu1  ;;  %v2001_v0 = vrot.slane %v1935_v60, 1 }
 0x158   :  { %v1939_v62 = vpop.f32.mrb[2].mxu1  ;;  %v2004_v3 = vrot.slane %v1937_v61, 1 }
 0x159   :  { %v2002_v1 = vrot.slane %v1939_v62, 1  ;;  %v1941_v2 = vpop.f32.mrb[3].mxu1 }
 0x15a   :  { %v2005_v4 = vrot.slane %v1941_v2, 1 }
 0x15b   :  { %v2003_v5 = vsel %vm2000_vm0, %v2001_v0, %v2002_v1 }
 0x15c   :  { %v2006_v6 = vsel %vm2000_vm0, %v2004_v3, %v2005_v4 }
 0x15e   :  { %v1945_v7 = vpop.f32.mrb[4].mxu1 }
 0x15f   :  { %v2007_v21 = vrot.slane %v1945_v7, 1  ;;  %v1947_v8 = vpop.f32.mrb[5].mxu1 }
 0x160   :  { %v2009_v9 = vrot.slane %v1947_v8, 1  ;;  %v1949_v10 = vpop.f32.mrb[6].mxu1 }
 0x161   :  { %v2011_v11 = vrot.slane %v1949_v10, 1  ;;  %v1951_v12 = vpop.f32.mrb[7].mxu1  ;;  %v2008_v27 = vsel %vm2000_vm0, %v2002_v1, %v2007_v21 }
 0x162   :  { %v2013_v13 = vrot.slane %v1951_v12, 1  ;;  %v2010_v51 = vsel %vm2000_vm0, %v2005_v4, %v2009_v9 }
 0x163   :  { %v2012_v14 = vsel %vm2000_vm0, %v2007_v21, %v2011_v11 }
 0x164   :  { %v2014_v25 = vsel %vm2000_vm0, %v2009_v9, %v2013_v13 }
 0x166   :  { %v1955_v33 = vpop.f32.mrb[8].mxu1 }
 0x167   :  { %v2015_v31 = vrot.slane %v1955_v33, 1  ;;  %v1957_v15 = vpop.f32.mrb[9].mxu1 }
 0x168   :  { %v2017_v16 = vrot.slane %v1957_v15, 1  ;;  %v1959_v17 = vpop.f32.mrb[10].mxu1 }
 0x169   :  { %v2019_v37 = vrot.slane %v1959_v17, 1  ;;  %v1961_v18 = vpop.f32.mrb[11].mxu1  ;;  %v2016_v43 = vsel %vm2000_vm0, %v2011_v11, %v2015_v31 }
 0x16a   :  { %v2021_v19 = vrot.slane %v1961_v18, 1  ;;  %v2018_v20 = vsel %vm2000_vm0, %v2013_v13, %v2017_v16 }
 0x16b   :  { %v5658_v39 = vsel %vm2000_vm0, %v2015_v31, %v2019_v37 }
 0x16c   :  { %v5661_v50 = vsel %vm2000_vm0, %v2017_v16, %v2021_v19 }
 0x16e   :  { %v1965_v48 = vpop.f32.mrb[12].mxu1 }
 0x16f   :  { %v2023_v22 = vrot.slane %v1965_v48, 1  ;;  %v1967_v23 = vpop.f32.mrb[13].mxu1 }
 0x170   :  { %v2025_v46 = vrot.slane %v1967_v23, 1  ;;  %v1969_v24 = vpop.f32.mrb[14].mxu1 }
 0x171   :  { %v2027_v26 = vrot.slane %v1969_v24, 1  ;;  %v1971_v28 = vpop.f32.mrb[15].mxu1  ;;  %v5664_v29 = vsel %vm2000_vm0, %v2019_v37, %v2023_v22 }
 0x172   :  { %v2029_v30 = vrot.slane %v1971_v28, 1  ;;  %v5667_v54 = vsel %vm2000_vm0, %v2021_v19, %v2025_v46 }
 0x173   :  { %v5670_v32 = vsel %vm2000_vm0, %v2023_v22, %v2027_v26 }
 0x174   :  { %v5673_v34 = vsel %vm2000_vm0, %v2025_v46, %v2029_v30 }
 0x176   :  { %v1975_v35 = vpop.f32.mrb[16].mxu1 }
 0x177   :  { %v2031_v36 = vrot.slane %v1975_v35, 1  ;;  %v1977_v57 = vpop.f32.mrb[17].mxu1 }
 0x178   :  { %v2033_v38 = vrot.slane %v1977_v57, 1  ;;  %v1979_v40 = vpop.f32.mrb[18].mxu1 }
 0x179   :  { %v1980_v41 = vpop.f32.mrb[19].mxu1  ;;  %v5676_v42 = vsel %vm2000_vm0, %v2027_v26, %v2031_v36 }
 0x17a   :  { %v5679_v44 = vsel %vm2000_vm0, %v2029_v30, %v2033_v38 }
 0x1d5   :  { %v1267_v45 = vpop.f32.mrb[0].mxu0 }
 0x1d6   :  { %v2632_v47 = vpop.f32.mrb[20].mxu1  ;;  %v2051_v49 = vadd.f32 %v2003_v5, %v1267_v45  ;;  %v1269_v59 = vpop.f32.mrb[1].mxu0 }
 0x1d7   :  { %v2634_v52 = vpop.f32.mrb[21].mxu1  ;;  %v2052_v53 = vadd.f32 %v2006_v6, %v1269_v59  ;;  %v1271_v55 = vpop.f32.mrb[2].mxu0  ;;  %v2698_v58 = vrot.slane %v2632_v47, 6 }
 0x1d8   :  { %v2636_v56 = vpop.f32.mrb[22].mxu1  ;;  %v2053_v63 = vadd.f32 %v2008_v27, %v1271_v55  ;;  %v1273_v61 = vpop.f32.mrb[3].mxu0  ;;  %v2701_v0 = vrot.slane %v2634_v52, 6 }
 0x1d9   :  { %v2699_v60 = vrot.slane %v2636_v56, 6  ;;  %v2638_v62 = vpop.f32.mrb[23].mxu1  ;;  %v2054_v1 = vadd.f32 %v2010_v51, %v1273_v61 }
 0x1da   :  { %v2702_v2 = vrot.slane %v2638_v62, 6 }
 0x1db   :  { %v2700_v3 = vsel %vm2697_vm1, %v2698_v58, %v2699_v60 }
 0x1dc   :  { %v5682_v4 = vadd.f32 %v2700_v3, %v2051_v49  ;;  %v2703_v5 = vsel %vm2697_vm1, %v2701_v0, %v2702_v2 }
 0x1dd   :  { %v5685_v7 = vadd.f32 %v2703_v5, %v2052_v53  ;;  %v1277_v6 = vpop.f32.mrb[4].mxu0 }
 0x1de   :  { %v2642_v21 = vpop.f32.mrb[24].mxu1  ;;  %v2055_v8 = vadd.f32 %v2012_v14, %v1277_v6  ;;  %v1279_v10 = vpop.f32.mrb[5].mxu0 }
 0x1df   :  { %v2704_v9 = vrot.slane %v2642_v21, 6  ;;  %v2644_v11 = vpop.f32.mrb[25].mxu1  ;;  %v2056_v12 = vadd.f32 %v2014_v25, %v1279_v10  ;;  %v1281_v13 = vpop.f32.mrb[6].mxu0 }
 0x1e0   :  { %v2706_v27 = vrot.slane %v2644_v11, 6  ;;  %v2646_v33 = vpop.f32.mrb[26].mxu1  ;;  %v2057_v31 = vadd.f32 %v2016_v43, %v1281_v13  ;;  %v1283_v16 = vpop.f32.mrb[7].mxu0 }
 0x1e1   :  { %v2705_v51 = vsel %vm2697_vm1, %v2699_v60, %v2704_v9  ;;  %v2708_v15 = vrot.slane %v2646_v33, 6  ;;  %v2648_v17 = vpop.f32.mrb[27].mxu1  ;;  %v2058_v19 = vadd.f32 %v2018_v20, %v1283_v16 }
 0x1e2   :  { %v5688_v37 = vadd.f32 %v2705_v51, %v2053_v63  ;;  %v2707_v18 = vsel %vm2697_vm1, %v2702_v2, %v2706_v27  ;;  %v2710_v48 = vrot.slane %v2648_v17, 6 }
 0x1e3   :  { %v5691_v14 = vadd.f32 %v2707_v18, %v2054_v1  ;;  %v2709_v22 = vsel %vm2697_vm1, %v2704_v9, %v2708_v15 }
 0x1e4   :  { %v5694_v25 = vadd.f32 %v2709_v22, %v2055_v8  ;;  %v2711_v23 = vsel %vm2697_vm1, %v2706_v27, %v2710_v48 }
 0x1e5   :  { %v5697_v46 = vadd.f32 %v2711_v23, %v2056_v12  ;;  %v1287_v43 = vpop.f32.mrb[8].mxu0 }
 0x1e6   :  { %v2652_v24 = vpop.f32.mrb[28].mxu1  ;;  %v2059_v26 = vadd.f32 %v5658_v39, %v1287_v43  ;;  %v1289_v30 = vpop.f32.mrb[9].mxu0  ;;  %v3133_v43 = vlaneseq }
 0x1e7   :  { %v2712_v28 = vrot.slane %v2652_v24, 6  ;;  %v2654_v35 = vpop.f32.mrb[29].mxu1  ;;  %v2060_v20 = vadd.f32 %v5661_v50, %v1289_v30  ;;  %v1291_v57 = vpop.f32.mrb[10].mxu0 }
 0x1e8   :  { %v2714_v36 = vrot.slane %v2654_v35, 6  ;;  %v2656_v38 = vpop.f32.mrb[30].mxu1  ;;  %v2061_v41 = vadd.f32 %v5664_v29, %v1291_v57  ;;  %v1293_v47 = vpop.f32.mrb[11].mxu0  ;;  %v3134_v24 = vshrl.u32 %v3133_v43, 7  ;;  %v3131_v57 = vld [vmem:[%s5852_s5] sm:$0x3] }
 0x1e9   :  { %v2713_v40 = vsel %vm2697_vm1, %v2708_v15, %v2712_v28  ;;  %v2716_v45 = vrot.slane %v2656_v38, 6  ;;  %v2658_v49 = vpop.f32.mrb[31].mxu1  ;;  %v2062_v39 = vadd.f32 %v5667_v54, %v1293_v47 }
 0x1ea   :  { %v5703_v59 = vadd.f32 %v2713_v40, %v2057_v31  ;;  %v2715_v52 = vsel %vm2697_vm1, %v2710_v48, %v2714_v36  ;;  %v2718_v53 = vrot.slane %v2658_v49, 6  ;;  %v3135_v30 = vsub.s32 0, %v3134_v24 }
 0x1eb   :  { %v5707_v55 = vadd.f32 %v2715_v52, %v2058_v19  ;;  %v2717_v50 = vsel %vm2697_vm1, %v2712_v28, %v2716_v45  ;;  %v3139_v38 = vsub.s32 1, %v3134_v24 }
 0x1ec   :  { %v5710_v56 = vadd.f32 %v2717_v50, %v2059_v26  ;;  %v2719_v58 = vsel %vm2697_vm1, %v2714_v36, %v2718_v53 }
 0x1ed   :  { %v5713_v63 = vadd.f32 %v2719_v58, %v2060_v20  ;;  %v1297_v29 = vpop.f32.mrb[12].mxu0 }
 0x1ee   :  { %v2662_v60 = vpop.f32.mrb[32].mxu1  ;;  %v2063_v61 = vadd.f32 %v5670_v32, %v1297_v29  ;;  %v1299_v0 = vpop.f32.mrb[13].mxu0  ;;  %v5745_v29 = vrot.slane %v3131_v57, %v3135_v30 }
 0x1ef   :  { %v2720_v62 = vrot.slane %v2662_v60, 6  ;;  %v2664_v1 = vpop.f32.mrb[33].mxu1  ;;  %v2064_v54 = vadd.f32 %v5673_v34, %v1299_v0  ;;  %v1301_v3 = vpop.f32.mrb[14].mxu0 }
 0x1f0   :  { %v2722_v2 = vrot.slane %v2664_v1, 6  ;;  %v2666_v5 = vpop.f32.mrb[34].mxu1  ;;  %v2065_v21 = vadd.f32 %v5676_v42, %v1301_v3  ;;  %v1303_v9 = vpop.f32.mrb[15].mxu0 }
 0x1f1   :  { %v2721_v6 = vsel %vm2697_vm1, %v2716_v45, %v2720_v62  ;;  %v2724_v8 = vrot.slane %v2666_v5, 6  ;;  %v2668_v10 = vpop.f32.mrb[35].mxu1  ;;  %v2066_v32 = vadd.f32 %v5679_v44, %v1303_v9  ;;  %v3159_v45 = vld [vmem:[%s5853_s6] sm:$0x3] }
 0x1f2   :  { %v5719_v11 = vadd.f32 %v2721_v6, %v2061_v41  ;;  %v2723_v12 = vsel %vm2697_vm1, %v2718_v53, %v2722_v2  ;;  %v2726_v27 = vrot.slane %v2668_v10, 6  ;;  %v5748_v0 = vrot.slane %v3159_v45, %v3135_v30 }
 0x1f3   :  { %v5723_v13 = vadd.f32 %v2723_v12, %v2062_v39  ;;  %v2725_v34 = vsel %vm2697_vm1, %v2720_v62, %v2724_v8 }
 0x1f4   :  { %v2760_v33 = vadd.f32 %v2725_v34, %v2063_v61  ;;  %v2727_v51 = vsel %vm2697_vm1, %v2722_v2, %v2726_v27 }
 0x1f5   :  { %v2761_v31 = vadd.f32 %v2727_v51, %v2064_v54  ;;  %v5753_v54 = vrot.slane %v3131_v57, %v3139_v38 }
 0x1f6   :  { %v2672_v15 = vpop.f32.mrb[36].mxu1 }
 0x1f7   :  { %v2728_v42 = vrot.slane %v2672_v15, 6  ;;  %v2674_v16 = vpop.f32.mrb[37].mxu1 }
 0x1f8   :  { %v2730_v17 = vrot.slane %v2674_v16, 6  ;;  %v2676_v18 = vpop.f32.mrb[38].mxu1 }
 0x1f9   :  { %v2729_v19 = vsel %vm2697_vm1, %v2724_v8, %v2728_v42  ;;  %v2677_v48 = vpop.f32.mrb[39].mxu1  ;;  %v5761_v8 = vrot.slane %v3159_v45, %v3139_v38 }
 0x1fa   :  { %v5728_v22 = vadd.f32 %v2729_v19, %v2065_v21  ;;  %v2731_v44 = vsel %vm2697_vm1, %v2726_v27, %v2730_v17 }
 0x1fb   :  { %v5731_v23 = vadd.f32 %v2731_v44, %v2066_v32 }
 0x215   :  { %v2999_v26 = vpop.f32.mrb[16].mxu0 }
 0x216   :  { %v5733_v28 = vpop.f32.mrb[40].mxu1  ;;  %v3001_v20 = vpop.f32.mrb[17].mxu0  ;;  %v3065_v49 = vrot.slane %v2999_v26, 7 }
 0x217   :  { %v3087_v35 = vrot.slane %v5733_v28, 7  ;;  %v5736_v36 = vpop.f32.mrb[41].mxu1  ;;  %v3003_v41 = vpop.f32.mrb[18].mxu0  ;;  %v3068_v58 = vrot.slane %v3001_v20, 7 }
 0x218   :  { %v3089_v40 = vrot.slane %v5736_v36, 7  ;;  %v3033_v47 = vpop.f32.mrb[42].mxu1  ;;  %v3066_v52 = vrot.slane %v3003_v41, 7  ;;  %v3005_v53 = vpop.f32.mrb[19].mxu0 }
 0x219   :  { %v3091_v39 = vrot.slane %v3033_v47, 7  ;;  %v3035_v50 = vpop.f32.mrb[43].mxu1  ;;  %v3069_v60 = vrot.slane %v3005_v53, 7 }
 0x21a   :  { %v3093_v61 = vrot.slane %v3035_v50, 7  ;;  %v3067_v62 = vsel %vm3064_vm2, %v3065_v49, %v3066_v52 }
 0x21b   :  { %v3092_v1 = vsel %vm3064_vm2, %v3087_v35, %v3091_v39  ;;  %v3115_v2 = vadd.f32 %v3067_v62, %v5682_v4  ;;  %v3070_v5 = vsel %vm3064_vm2, %v3068_v58, %v3069_v60 }
 0x21c   :  { %v3127_v3 = vadd.f32 %v3092_v1, %v2760_v33  ;;  %v3094_v6 = vsel %vm3064_vm2, %v3089_v40, %v3093_v61  ;;  %v3116_v21 = vadd.f32 %v3070_v5, %v5685_v7 }
 0x21d   :  { %v3128_v9 = vadd.f32 %v3094_v6, %v2761_v31  ;;  %v3143_v10 = vmul.f32 %v5745_v29, %v3115_v2  ;;  %v3009_v32 = vpop.f32.mrb[20].mxu0 }
 0x21e   :  { %v3155_v12 = vmul.f32 %v5745_v29, %v3127_v3  ;;  %v3039_v27 = vpop.f32.mrb[44].mxu1  ;;  %v3144_v4 = vmul.f32 %v5753_v54, %v3116_v21  ;;  %v3071_v33 = vrot.slane %v3009_v32, 7  ;;  %v3011_v15 = vpop.f32.mrb[21].mxu0 }
 0x21f   :  { %v3156_v34 = vmul.f32 %v5753_v54, %v3128_v9  ;;  %v3095_v51 = vrot.slane %v3039_v27, 7  ;;  %v3041_v42 = vpop.f32.mrb[45].mxu1  ;;  %v3171_v16 = vadd.f32 %v5748_v0, %v3143_v10  ;;  %v3073_v17 = vrot.slane %v3011_v15, 7  ;;  %v3013_v18 = vpop.f32.mrb[22].mxu0 }
 0x220   :  { %v3183_v7 = vadd.f32 %v5748_v0, %v3155_v12  ;;  %v3097_v31 = vrot.slane %v3041_v42, 7  ;;  %v3043_v19 = vpop.f32.mrb[46].mxu1  ;;  %v3172_v48 = vadd.f32 %v5761_v8, %v3144_v4  ;;  %v3072_v43 = vsel %vm3064_vm2, %v3066_v52, %v3071_v33  ;;  %v3015_v26 = vpop.f32.mrb[23].mxu0 }
 0x221   :  { %v3184_v44 = vadd.f32 %v5761_v8, %v3156_v34  ;;  %v3096_v24 = vsel %vm3064_vm2, %v3091_v39, %v3095_v51  ;;  %v3044_v30 = vpop.f32.mrb[47].mxu1  ;;  %v3187_v20 = vmax.f32 %v3171_v16, 0.0  ;;  %v3117_v38 = vadd.f32 %v3072_v43, %v5688_v37 }
 0x222   :  { %v3199_v57 = vmax.f32 %v3183_v7, 0.0  ;;  %v3129_v41 = vadd.f32 %v3096_v24, %v5728_v22  ;;  %v3188_v45 = vmax.f32 %v3172_v48, 0.0  ;;  %v3074_v49 = vsel %vm3064_vm2, %v3069_v60, %v3073_v17 }
 0x223   :  { %v3200_v47 = vmax.f32 %v3184_v44, 0.0  ;;  %v3098_v53 = vsel %vm3064_vm2, %v3093_v61, %v3097_v31  ;;  %v3145_v50 = vmul.f32 %v5745_v29, %v3117_v38  ;;  %v3118_v39 = vadd.f32 %v3074_v49, %v5691_v14 }
 0x224   :  { %v3157_v52 = vmul.f32 %v5745_v29, %v3129_v41  ;;  %v3130_v58 = vadd.f32 %v3098_v53, %v5731_v23  ;;  %v3883_v62 = vpack.c.bf16 %v3188_v45, %v3187_v20  ;;  %v3075_v2 = vrot.slane %v3013_v18, 7 }
 0x225   :  { %v3889_v1 = vpack.c.bf16 %v3200_v47, %v3199_v57  ;;  %v3077_v37 = vrot.slane %v3015_v26, 7  ;;  %v3173_v22 = vadd.f32 %v5748_v0, %v3145_v50  ;;  %v3146_v60 = vmul.f32 %v5753_v54, %v3118_v39  ;;  %v3019_v5 = vpop.f32.mrb[24].mxu0 }
 0x226   :  { %v3185_v3 = vadd.f32 %v5748_v0, %v3157_v52  ;;  %v3158_v61 = vmul.f32 %v5753_v54, %v3130_v58  ;;  %3253 = vst [vmem:[%s5854_s7] sm:$0xff] %v3883_v62  ;;  %v3076_v14 = vsel %vm3064_vm2, %v3071_v33, %v3075_v2  ;;  %v3079_v6 = vrot.slane %v3019_v5, 7  ;;  %v3021_v21 = vpop.f32.mrb[25].mxu0 }
 0x227   :  { %3259 = vst [vmem:[%s5854_s7 + $0x30] sm:$0xff] %v3889_v1  ;;  %v3078_v23 = vsel %vm3064_vm2, %v3073_v17, %v3077_v37  ;;  %v3189_v9 = vmax.f32 %v3173_v22, 0.0  ;;  %v3174_v12 = vadd.f32 %v5761_v8, %v3146_v60  ;;  %v3023_v27 = vpop.f32.mrb[26].mxu0  ;;  %v3119_v4 = vadd.f32 %v3076_v14, %v5694_v25 }
 0x228   :  { %v3201_v10 = vmax.f32 %v3185_v3, 0.0  ;;  %v3186_v32 = vadd.f32 %v5761_v8, %v3158_v61  ;;  %v3120_v34 = vadd.f32 %v3078_v23, %v5697_v46  ;;  %v3080_v51 = vsel %vm3064_vm2, %v3075_v2, %v3079_v6  ;;  %v3025_v42 = vpop.f32.mrb[27].mxu0 }
 0x229   :  { %v3081_v15 = vrot.slane %v3021_v21, 7  ;;  %v3190_v33 = vmax.f32 %v3174_v12, 0.0  ;;  %v3121_v7 = vadd.f32 %v3080_v51, %v5703_v59  ;;  %v3083_v17 = vrot.slane %v3023_v27, 7 }
 0x22a   :  { %v3202_v16 = vmax.f32 %v3186_v32, 0.0  ;;  %v3147_v31 = vmul.f32 %v5745_v29, %v3119_v4  ;;  %v3148_v18 = vmul.f32 %v5753_v54, %v3120_v34  ;;  %v3085_v48 = vrot.slane %v3025_v42, 7 }
 0x22b   :  { %v3082_v19 = vsel %vm3064_vm2, %v3077_v37, %v3081_v15  ;;  %v3884_v44 = vpack.c.bf16 %v3190_v33, %v3189_v9  ;;  %v3149_v46 = vmul.f32 %v5745_v29, %v3121_v7  ;;  %v3084_v59 = vsel %vm3064_vm2, %v3079_v6, %v3083_v17 }
 0x22c   :  { %v3890_v25 = vpack.c.bf16 %v3202_v16, %v3201_v10  ;;  %v3122_v43 = vadd.f32 %v3082_v19, %v5707_v55  ;;  %v3175_v24 = vadd.f32 %v5748_v0, %v3147_v31  ;;  %v3176_v26 = vadd.f32 %v5761_v8, %v3148_v18 }
 0x22d   :  { %v3088_v30 = vsel %vm3064_vm2, %v3083_v17, %v3087_v35  ;;  %3254 = vst [vmem:[%s5854_s7 + $0x8] sm:$0xff] %v3884_v44  ;;  %v3177_v55 = vadd.f32 %v5748_v0, %v3149_v46  ;;  %v3123_v57 = vadd.f32 %v3084_v59, %v5710_v56  ;;  %v3086_v35 = vsel %vm3064_vm2, %v3081_v15, %v3085_v48 }
 0x22e   :  { %3260 = vst [vmem:[%s5854_s7 + $0x38] sm:$0xff] %v3890_v25  ;;  %v3150_v20 = vmul.f32 %v5753_v54, %v3122_v43  ;;  %v3125_v38 = vadd.f32 %v3088_v30, %v5719_v11  ;;  %v3191_v41 = vmax.f32 %v3175_v24, 0.0  ;;  %v3192_v28 = vmax.f32 %v3176_v26, 0.0 }
 0x22f   :  { %v3090_v45 = vsel %vm3064_vm2, %v3085_v48, %v3089_v40  ;;  %v3193_v47 = vmax.f32 %v3177_v55, 0.0  ;;  %v3151_v53 = vmul.f32 %v5745_v29, %v3123_v57  ;;  %v3124_v56 = vadd.f32 %v3086_v35, %v5713_v63 }
 0x230   :  { %v3178_v49 = vadd.f32 %v5761_v8, %v3150_v20  ;;  %v3153_v50 = vmul.f32 %v5745_v29, %v3125_v38  ;;  %v3885_v52 = vpack.c.bf16 %v3192_v28, %v3191_v41  ;;  %v3126_v11 = vadd.f32 %v3090_v45, %v5723_v13 }
 0x231   :  { %v3179_v58 = vadd.f32 %v5748_v0, %v3151_v53  ;;  %v3152_v36 = vmul.f32 %v5753_v54, %v3124_v56 }
 0x232   :  { %v3194_v39 = vmax.f32 %v3178_v49, 0.0  ;;  %v3181_v62 = vadd.f32 %v5748_v0, %v3153_v50  ;;  %3255 = vst [vmem:[%s5854_s7 + $0x10] sm:$0xff] %v3885_v52  ;;  %v3154_v40 = vmul.f32 %v5753_v54, %v3126_v11 }
 0x233   :  { %v3195_v29 = vmax.f32 %v3179_v58, 0.0  ;;  %v3180_v63 = vadd.f32 %v5761_v8, %v3152_v36 }
 0x234   :  { %v3886_v1 = vpack.c.bf16 %v3194_v39, %v3193_v47  ;;  %v3197_v2 = vmax.f32 %v3181_v62, 0.0  ;;  %v3182_v13 = vadd.f32 %v5761_v8, %v3154_v40 }
 0x235   :  { %v3196_v0 = vmax.f32 %v3180_v63, 0.0 }
 0x236   :  { %3256 = vst [vmem:[%s5854_s7 + $0x18] sm:$0xff] %v3886_v1  ;;  %v3198_v37 = vmax.f32 %v3182_v13, 0.0 }
 0x237   :  { %v3887_v22 = vpack.c.bf16 %v3196_v0, %v3195_v29 }
 0x238   :  { %v3888_v3 = vpack.c.bf16 %v3198_v37, %v3197_v2 }
 0x239   :  { %3257 = vst [vmem:[%s5854_s7 + $0x20] sm:$0xff] %v3887_v22 }
 0x23a   :  { %3258 = vst [vmem:[%s5854_s7 + $0x28] sm:$0xff] %v3888_v3 }

// kernel: cnn_module_forward.5
= control target key start
LH: loop header
LB: loop body
LE: loop exit
PB: predicated region body
PF: predicated region fallthrough
CT: control target
= control target key end

     0   :  { %s4672_s0 = inlined_call_operand.vmem [shape: bf16[24,256], index: 0, kind: input, shape index: {}]   ;;  %s4673_s1 = inlined_call_operand.vmem [shape: bf16[24,256], index: 1, kind: input, shape index: {}]   ;;  %s4674_s2 = inlined_call_operand.vmem [shape: bf16[24,256], index: 2, kind: input, shape index: {}]   ;;  %s4675_s3 = inlined_call_operand.vmem [shape: bf16[24,256], index: 3, kind: input, shape index: {}]   ;;  %s4676_s4 = inlined_call_operand.vmem [shape: bf16[9,256,256], index: 4, kind: input, shape index: {}]   ;;  %s4677_s5 = inlined_call_operand.vmem [shape: f32[1,256], index: 5, kind: input, shape index: {}]   ;;  %s4678_s6 = inlined_call_operand.vmem [shape: f32[1,256], index: 6, kind: input, shape index: {}]   ;;  %s4679_s7 = inlined_call_operand.vmem [shape: f32[16,1], index: 7, kind: input, shape index: {}]   ;;  %s4680_s8 = inlined_call_operand.hbm [shape: f32[2,256], index: 8, kind: output, shape index: {}]  }
   0x1   :  { %v3174_v0 = vld [vmem:[%s4676_s4 + $0x104] ss:$8 sps:$4 sm:$0xff]   ;;  %v3178_v2 = vld [vmem:[%s4676_s4 + $0x100] ss:$8 sps:$4 sm:$0xff]   ;;  %v3180_v4 = vld [vmem:[%s4676_s4 + $0x114] ss:$8 sps:$4 sm:$0xff]  }
   0x2   :  { %v3176_v1 = vld [vmem:[%s4676_s4 + $0x504] ss:$8 sps:$4 sm:$0xff]   ;;  %274 = vmatprep.subr.bf16.mxu0 %v3174_v0  ;;  %v3179_v3 = vld [vmem:[%s4676_s4 + $0x500] ss:$8 sps:$4 sm:$0xff]   ;;  %v3182_v5 = vld [vmem:[%s4676_s4 + $0x514] ss:$8 sps:$4 sm:$0xff]  }
   0x3   :  { %1287 = vmatprep.subr.bf16.mxu1 %v3176_v1  ;;  %275 = vmatpush1.bf16.msra.mxu0 %v3178_v2  ;;  %v3184_v6 = vld [vmem:[%s4676_s4 + $0x110] ss:$8 sps:$4 sm:$0xff]   ;;  %v3186_v8 = vld [vmem:[%s4676_s4 + $0x124] ss:$8 sps:$4 sm:$0xff]   ;;  %v3190_v10 = vld [vmem:[%s4676_s4 + $0x120] ss:$8 sps:$4 sm:$0xff]  }
   0x4   :  { %1288 = vmatpush1.bf16.msra.mxu1 %v3179_v3  ;;  %276 = vmatprep.subr.bf16.mxu0 %v3180_v4  ;;  %v3185_v7 = vld [vmem:[%s4676_s4 + $0x510] ss:$8 sps:$4 sm:$0xff]   ;;  %v3188_v9 = vld [vmem:[%s4676_s4 + $0x524] ss:$8 sps:$4 sm:$0xff]   ;;  %v3191_v11 = vld [vmem:[%s4676_s4 + $0x520] ss:$8 sps:$4 sm:$0xff]  }
   0x5   :  { %1289 = vmatprep.subr.bf16.mxu1 %v3182_v5  ;;  %v3192_v12 = vld [vmem:[%s4676_s4 + $0x134] ss:$8 sps:$4 sm:$0xff]   ;;  %v3196_v14 = vld [vmem:[%s4676_s4 + $0x130] ss:$8 sps:$4 sm:$0xff]   ;;  %v3198_v16 = vld [vmem:[%s4676_s4 + $0x144] ss:$8 sps:$4 sm:$0xff]  }
   0x6   :  { %v3194_v13 = vld [vmem:[%s4676_s4 + $0x534] ss:$8 sps:$4 sm:$0xff]   ;;  %v3197_v15 = vld [vmem:[%s4676_s4 + $0x530] ss:$8 sps:$4 sm:$0xff]   ;;  %v3200_v17 = vld [vmem:[%s4676_s4 + $0x544] ss:$8 sps:$4 sm:$0xff]  }
   0x7   :  { %277 = vmatpush1.bf16.msra.mxu0 %v3184_v6  ;;  %v3202_v18 = vld [vmem:[%s4676_s4 + $0x140] ss:$8 sps:$4 sm:$0xff]   ;;  %v3204_v20 = vld [vmem:[%s4676_s4 + $0x154] ss:$8 sps:$4 sm:$0xff]   ;;  %v3208_v22 = vld [vmem:[%s4676_s4 + $0x150] ss:$8 sps:$4 sm:$0xff]  }
   0x8   :  { %1290 = vmatpush1.bf16.msra.mxu1 %v3185_v7  ;;  %278 = vmatprep.subr.bf16.mxu0 %v3186_v8  ;;  %v3203_v19 = vld [vmem:[%s4676_s4 + $0x540] ss:$8 sps:$4 sm:$0xff]   ;;  %v3206_v21 = vld [vmem:[%s4676_s4 + $0x554] ss:$8 sps:$4 sm:$0xff]   ;;  %v3209_v23 = vld [vmem:[%s4676_s4 + $0x550] ss:$8 sps:$4 sm:$0xff]  }
   0x9   :  { %1291 = vmatprep.subr.bf16.mxu1 %v3188_v9  ;;  %v3210_v24 = vld [vmem:[%s4676_s4 + $0x164] ss:$8 sps:$4 sm:$0xff]   ;;  %v3214_v26 = vld [vmem:[%s4676_s4 + $0x160] ss:$8 sps:$4 sm:$0xff]   ;;  %v3216_v28 = vld [vmem:[%s4676_s4 + $0x174] ss:$8 sps:$4 sm:$0xff]  }
   0xa   :  { %v3212_v25 = vld [vmem:[%s4676_s4 + $0x564] ss:$8 sps:$4 sm:$0xff]   ;;  %v3215_v27 = vld [vmem:[%s4676_s4 + $0x560] ss:$8 sps:$4 sm:$0xff]   ;;  %v3218_v29 = vld [vmem:[%s4676_s4 + $0x574] ss:$8 sps:$4 sm:$0xff]  }
   0xb   :  { %279 = vmatpush1.bf16.msra.mxu0 %v3190_v10  ;;  %v3220_v30 = vld [vmem:[%s4676_s4 + $0x170] ss:$8 sps:$4 sm:$0xff]   ;;  %v3222_v32 = vld [vmem:[%s4676_s4 + $0x184] ss:$8 sps:$4 sm:$0xff]   ;;  %v3226_v34 = vld [vmem:[%s4676_s4 + $0x180] ss:$8 sps:$4 sm:$0xff]  }
   0xc   :  { %1292 = vmatpush1.bf16.msra.mxu1 %v3191_v11  ;;  %280 = vmatprep.subr.bf16.mxu0 %v3192_v12  ;;  %v3221_v31 = vld [vmem:[%s4676_s4 + $0x570] ss:$8 sps:$4 sm:$0xff]   ;;  %v3224_v33 = vld [vmem:[%s4676_s4 + $0x584] ss:$8 sps:$4 sm:$0xff]   ;;  %v3227_v35 = vld [vmem:[%s4676_s4 + $0x580] ss:$8 sps:$4 sm:$0xff]  }
   0xd   :  { %1293 = vmatprep.subr.bf16.mxu1 %v3194_v13  ;;  %v3228_v36 = vld [vmem:[%s4676_s4 + $0x194] ss:$8 sps:$4 sm:$0xff]   ;;  %v3232_v38 = vld [vmem:[%s4676_s4 + $0x190] ss:$8 sps:$4 sm:$0xff]   ;;  %v3234_v40 = vld [vmem:[%s4676_s4 + $0x1a4] ss:$8 sps:$4 sm:$0xff]  }
   0xe   :  { %v3230_v37 = vld [vmem:[%s4676_s4 + $0x594] ss:$8 sps:$4 sm:$0xff]   ;;  %v3233_v39 = vld [vmem:[%s4676_s4 + $0x590] ss:$8 sps:$4 sm:$0xff]   ;;  %v3236_v41 = vld [vmem:[%s4676_s4 + $0x5a4] ss:$8 sps:$4 sm:$0xff]  }
   0xf   :  { %281 = vmatpush1.bf16.msra.mxu0 %v3196_v14  ;;  %v3238_v42 = vld [vmem:[%s4676_s4 + $0x1a0] ss:$8 sps:$4 sm:$0xff]   ;;  %v3240_v44 = vld [vmem:[%s4676_s4 + $0x1b4] ss:$8 sps:$4 sm:$0xff]   ;;  %v3244_v46 = vld [vmem:[%s4676_s4 + $0x1b0] ss:$8 sps:$4 sm:$0xff]  }
  0x10   :  { %1294 = vmatpush1.bf16.msra.mxu1 %v3197_v15  ;;  %282 = vmatprep.subr.bf16.mxu0 %v3198_v16  ;;  %v3239_v43 = vld [vmem:[%s4676_s4 + $0x5a0] ss:$8 sps:$4 sm:$0xff]   ;;  %v3242_v45 = vld [vmem:[%s4676_s4 + $0x5b4] ss:$8 sps:$4 sm:$0xff]   ;;  %v3245_v47 = vld [vmem:[%s4676_s4 + $0x5b0] ss:$8 sps:$4 sm:$0xff]  }
  0x11   :  { %1295 = vmatprep.subr.bf16.mxu1 %v3200_v17  ;;  %v3846_v48 = vld [vmem:[%s4673_s1 + $0x4] ss:$8 sps:$4 sm:$0xff]   ;;  %v3250_v52 = vld [vmem:[%s4676_s4 + $0x1c0] ss:$8 sps:$4 sm:$0xff]   ;;  %v3252_v54 = vld [vmem:[%s4676_s4 + $0x1d4] ss:$8 sps:$4 sm:$0xff]  }
  0x12   :  { %v3246_v49 = vld [vmem:[%s4676_s4 + $0x1c4] ss:$8 sps:$4 sm:$0xff]   ;;  %306 = vmatprep.mubr.bf16.mxu0 %v3846_v48  ;;  %v3251_v53 = vld [vmem:[%s4676_s4 + $0x5c0] ss:$8 sps:$4 sm:$0xff]   ;;  %v3254_v55 = vld [vmem:[%s4676_s4 + $0x5d4] ss:$8 sps:$4 sm:$0xff]  }
  0x13   :  { %283 = vmatpush1.bf16.msra.mxu0 %v3202_v18  ;;  %v3248_v50 = vld [vmem:[%s4676_s4 + $0x5c4] ss:$8 sps:$4 sm:$0xff]   ;;  %v3256_v56 = vld [vmem:[%s4676_s4 + $0x1d0] ss:$8 sps:$4 sm:$0xff]   ;;  %v3262_v60 = vld [vmem:[%s4676_s4 + $0x1e0] ss:$8 sps:$4 sm:$0xff]  }
  0x14   :  { %1296 = vmatpush1.bf16.msra.mxu1 %v3203_v19  ;;  %284 = vmatprep.subr.bf16.mxu0 %v3204_v20  ;;  %v3858_v51 = vld [vmem:[%s4674_s2 + $0x4] ss:$8 sps:$4 sm:$0xff]   ;;  %v3257_v57 = vld [vmem:[%s4676_s4 + $0x5d0] ss:$8 sps:$4 sm:$0xff]   ;;  %v3263_v61 = vld [vmem:[%s4676_s4 + $0x5e0] ss:$8 sps:$4 sm:$0xff]  }
  0x15   :  { %1297 = vmatprep.subr.bf16.mxu1 %v3206_v21  ;;  %1319 = vmatprep.mubr.bf16.mxu1 %v3858_v51  ;;  %v3258_v58 = vld [vmem:[%s4676_s4 + $0x1e4] ss:$8 sps:$4 sm:$0xff]   ;;  %v3264_v62 = vld [vmem:[%s4676_s4 + $0x1f4] ss:$8 sps:$4 sm:$0xff]   ;;  %v3268_v0 = vld [vmem:[%s4676_s4 + $0x1f0] ss:$8 sps:$4 sm:$0xff]  }
  0x16   :  { %v3260_v59 = vld [vmem:[%s4676_s4 + $0x5e4] ss:$8 sps:$4 sm:$0xff]   ;;  %v3266_v63 = vld [vmem:[%s4676_s4 + $0x5f4] ss:$8 sps:$4 sm:$0xff]   ;;  %v3269_v1 = vld [vmem:[%s4676_s4 + $0x5f0] ss:$8 sps:$4 sm:$0xff]  }
  0x17   :  { %285 = vmatpush1.bf16.msra.mxu0 %v3208_v22  ;;  %v3275_v2 = vld [vmem:[%s4676_s4 + $0x4] ss:$8 sps:$4 sm:$0xff]   ;;  %v3912_v4 = vld [vmem:[%s4673_s1] ss:$8 sps:$4 sm:$0xff]   ;;  %v3284_v8 = vld [vmem:[%s4676_s4 + $0x14] ss:$8 sps:$4 sm:$0xff]  }
  0x18   :  { %1298 = vmatpush1.bf16.msra.mxu1 %v3209_v23  ;;  %286 = vmatprep.subr.bf16.mxu0 %v3210_v24  ;;  %v3281_v3 = vld [vmem:[%s4676_s4 + $0x204] ss:$8 sps:$4 sm:$0xff]   ;;  %v3273_v5 = vld [vmem:[%s4676_s4] ss:$8 sps:$4 sm:$0xff]   ;;  %v3287_v9 = vld [vmem:[%s4676_s4 + $0x214] ss:$8 sps:$4 sm:$0xff]  }
  0x19   :  { %1299 = vmatprep.subr.bf16.mxu1 %v3212_v25  ;;  %v3920_v6 = vld [vmem:[%s4674_s2] ss:$8 sps:$4 sm:$0xff]   ;;  %v3282_v10 = vld [vmem:[%s4676_s4 + $0x10] ss:$8 sps:$4 sm:$0xff]   ;;  %v3290_v12 = vld [vmem:[%s4676_s4 + $0x24] ss:$8 sps:$4 sm:$0xff]  }
  0x1a   :  { %v3279_v7 = vld [vmem:[%s4676_s4 + $0x200] ss:$8 sps:$4 sm:$0xff]   ;;  %v3285_v11 = vld [vmem:[%s4676_s4 + $0x210] ss:$8 sps:$4 sm:$0xff]   ;;  %v3293_v13 = vld [vmem:[%s4676_s4 + $0x224] ss:$8 sps:$4 sm:$0xff]  }
  0x1b   :  { %287 = vmatpush1.bf16.msra.mxu0 %v3214_v26  ;;  %v3288_v14 = vld [vmem:[%s4676_s4 + $0x20] ss:$8 sps:$4 sm:$0xff]   ;;  %v3296_v16 = vld [vmem:[%s4676_s4 + $0x34] ss:$8 sps:$4 sm:$0xff]   ;;  %v3294_v18 = vld [vmem:[%s4676_s4 + $0x30] ss:$8 sps:$4 sm:$0xff]  }
  0x1c   :  { %1300 = vmatpush1.bf16.msra.mxu1 %v3215_v27  ;;  %288 = vmatprep.subr.bf16.mxu0 %v3216_v28  ;;  %v3291_v15 = vld [vmem:[%s4676_s4 + $0x220] ss:$8 sps:$4 sm:$0xff]   ;;  %v3299_v17 = vld [vmem:[%s4676_s4 + $0x234] ss:$8 sps:$4 sm:$0xff]   ;;  %v3297_v19 = vld [vmem:[%s4676_s4 + $0x230] ss:$8 sps:$4 sm:$0xff]  }
  0x1d   :  { %1301 = vmatprep.subr.bf16.mxu1 %v3218_v29  ;;  %v3302_v20 = vld [vmem:[%s4676_s4 + $0x44] ss:$8 sps:$4 sm:$0xff]   ;;  %v3300_v22 = vld [vmem:[%s4676_s4 + $0x40] ss:$8 sps:$4 sm:$0xff]   ;;  %v3308_v24 = vld [vmem:[%s4676_s4 + $0x54] ss:$8 sps:$4 sm:$0xff]  }
  0x1e   :  { %v3305_v21 = vld [vmem:[%s4676_s4 + $0x244] ss:$8 sps:$4 sm:$0xff]   ;;  %v3303_v23 = vld [vmem:[%s4676_s4 + $0x240] ss:$8 sps:$4 sm:$0xff]   ;;  %v3311_v25 = vld [vmem:[%s4676_s4 + $0x254] ss:$8 sps:$4 sm:$0xff]  }
  0x1f   :  { %289 = vmatpush1.bf16.msra.mxu0 %v3220_v30  ;;  %v1076_v26 = vld [vmem:[%s4674_s2 + $0x10] sm:$0x11] }
  0x20   :  { %1302 = vmatpush1.bf16.msra.mxu1 %v3221_v31  ;;  %290 = vmatprep.subr.bf16.mxu0 %v3222_v32  ;;  %v3306_v27 = vld [vmem:[%s4676_s4 + $0x50] ss:$8 sps:$4 sm:$0xff]   ;;  %v2843_v28 = vcombine.high %v1076_v26, %v1076_v26  ;;  %v2842_v29 = vcombine.low %v1076_v26, %v1076_v26  ;;  %v3314_v31 = vld [vmem:[%s4676_s4 + $0x64] ss:$8 sps:$4 sm:$0xff]   ;;  %v3390_v26 = vld [vmem:[%s4676_s4 + $0x320] ss:$8 sps:$4 sm:$0xff]  }
  0x21   :  { %1303 = vmatprep.subr.bf16.mxu1 %v3224_v33  ;;  %v3309_v30 = vld [vmem:[%s4676_s4 + $0x250] ss:$8 sps:$4 sm:$0xff]   ;;  %v3317_v32 = vld [vmem:[%s4676_s4 + $0x264] ss:$8 sps:$4 sm:$0xff]   ;;  %v3312_v33 = vld [vmem:[%s4676_s4 + $0x60] ss:$8 sps:$4 sm:$0xff]  }
  0x23   :  { %291 = vmatpush1.bf16.msra.mxu0 %v3226_v34  ;;  %v3315_v34 = vld [vmem:[%s4676_s4 + $0x260] ss:$8 sps:$4 sm:$0xff]  }
  0x24   :  { %1304 = vmatpush1.bf16.msra.mxu1 %v3227_v35  ;;  %292 = vmatprep.subr.bf16.mxu0 %v3228_v36  ;;  %v3320_v35 = vld [vmem:[%s4676_s4 + $0x74] ss:$8 sps:$4 sm:$0xff]  }
  0x25   :  { %1305 = vmatprep.subr.bf16.mxu1 %v3230_v37  ;;  %v3323_v36 = vld [vmem:[%s4676_s4 + $0x274] ss:$8 sps:$4 sm:$0xff]   ;;  %v4011_v37 = vld [vmem:[%s4672_s0 + $0x4] ss:$8 sps:$4 sm:$0xff]  }
  0x27   :  { %293 = vmatpush1.bf16.msra.mxu0 %v3232_v38  ;;  %v3318_v38 = vld [vmem:[%s4676_s4 + $0x70] ss:$8 sps:$4 sm:$0xff]  }
  0x28   :  { %1306 = vmatpush1.bf16.msra.mxu1 %v3233_v39  ;;  %294 = vmatprep.subr.bf16.mxu0 %v3234_v40  ;;  %v3321_v39 = vld [vmem:[%s4676_s4 + $0x270] ss:$8 sps:$4 sm:$0xff]   ;;  %v3326_v40 = vld [vmem:[%s4676_s4 + $0x84] ss:$8 sps:$4 sm:$0xff]  }
  0x29   :  { %1307 = vmatprep.subr.bf16.mxu1 %v3236_v41  ;;  %v3329_v41 = vld [vmem:[%s4676_s4 + $0x284] ss:$8 sps:$4 sm:$0xff]  }
  0x2b   :  { %295 = vmatpush1.bf16.msra.mxu0 %v3238_v42  ;;  %v3324_v42 = vld [vmem:[%s4676_s4 + $0x80] ss:$8 sps:$4 sm:$0xff]  }
  0x2c   :  { %1308 = vmatpush1.bf16.msra.mxu1 %v3239_v43  ;;  %296 = vmatprep.subr.bf16.mxu0 %v3240_v44  ;;  %v3327_v43 = vld [vmem:[%s4676_s4 + $0x280] ss:$8 sps:$4 sm:$0xff]   ;;  %v3332_v44 = vld [vmem:[%s4676_s4 + $0x94] ss:$8 sps:$4 sm:$0xff]  }
  0x2d   :  { %1309 = vmatprep.subr.bf16.mxu1 %v3242_v45  ;;  %v3335_v45 = vld [vmem:[%s4676_s4 + $0x294] ss:$8 sps:$4 sm:$0xff]  }
  0x2f   :  { %297 = vmatpush1.bf16.msra.mxu0 %v3244_v46  ;;  %v3330_v46 = vld [vmem:[%s4676_s4 + $0x90] ss:$8 sps:$4 sm:$0xff]  }
  0x30   :  { %1310 = vmatpush1.bf16.msra.mxu1 %v3245_v47  ;;  %298 = vmatprep.subr.bf16.mxu0 %v3246_v49  ;;  %v3333_v47 = vld [vmem:[%s4676_s4 + $0x290] ss:$8 sps:$4 sm:$0xff]   ;;  %v3338_v49 = vld [vmem:[%s4676_s4 + $0xa4] ss:$8 sps:$4 sm:$0xff]  }
  0x31   :  { %1311 = vmatprep.subr.bf16.mxu1 %v3248_v50  ;;  %v3341_v50 = vld [vmem:[%s4676_s4 + $0x2a4] ss:$8 sps:$4 sm:$0xff]  }
  0x33   :  { %299 = vmatpush1.bf16.msra.mxu0 %v3250_v52  ;;  %v3336_v52 = vld [vmem:[%s4676_s4 + $0xa0] ss:$8 sps:$4 sm:$0xff]  }
  0x34   :  { %1312 = vmatpush1.bf16.msra.mxu1 %v3251_v53  ;;  %300 = vmatprep.subr.bf16.mxu0 %v3252_v54  ;;  %v3339_v53 = vld [vmem:[%s4676_s4 + $0x2a0] ss:$8 sps:$4 sm:$0xff]   ;;  %v3344_v54 = vld [vmem:[%s4676_s4 + $0xb4] ss:$8 sps:$4 sm:$0xff]  }
  0x35   :  { %1313 = vmatprep.subr.bf16.mxu1 %v3254_v55  ;;  %v3347_v55 = vld [vmem:[%s4676_s4 + $0x2b4] ss:$8 sps:$4 sm:$0xff]  }
  0x37   :  { %301 = vmatpush1.bf16.msra.mxu0 %v3256_v56  ;;  %v3342_v56 = vld [vmem:[%s4676_s4 + $0xb0] ss:$8 sps:$4 sm:$0xff]  }
  0x38   :  { %1314 = vmatpush1.bf16.msra.mxu1 %v3257_v57  ;;  %302 = vmatprep.subr.bf16.mxu0 %v3258_v58  ;;  %v3345_v57 = vld [vmem:[%s4676_s4 + $0x2b0] ss:$8 sps:$4 sm:$0xff]   ;;  %v3350_v58 = vld [vmem:[%s4676_s4 + $0xc4] ss:$8 sps:$4 sm:$0xff]  }
  0x39   :  { %1315 = vmatprep.subr.bf16.mxu1 %v3260_v59  ;;  %v3353_v59 = vld [vmem:[%s4676_s4 + $0x2c4] ss:$8 sps:$4 sm:$0xff]  }
  0x3b   :  { %303 = vmatpush1.bf16.msra.mxu0 %v3262_v60  ;;  %v3348_v60 = vld [vmem:[%s4676_s4 + $0xc0] ss:$8 sps:$4 sm:$0xff]  }
  0x3c   :  { %1316 = vmatpush1.bf16.msra.mxu1 %v3263_v61  ;;  %304 = vmatprep.subr.bf16.mxu0 %v3264_v62  ;;  %v3351_v61 = vld [vmem:[%s4676_s4 + $0x2c0] ss:$8 sps:$4 sm:$0xff]   ;;  %v3356_v62 = vld [vmem:[%s4676_s4 + $0xd4] ss:$8 sps:$4 sm:$0xff]  }
  0x3d   :  { %1317 = vmatprep.subr.bf16.mxu1 %v3266_v63  ;;  %v3359_v63 = vld [vmem:[%s4676_s4 + $0x2d4] ss:$8 sps:$4 sm:$0xff]  }
  0x3f   :  { %305 = vmatpush1.bf16.msra.mxu0 %v3268_v0  ;;  %v3354_v0 = vld [vmem:[%s4676_s4 + $0xd0] ss:$8 sps:$4 sm:$0xff]  }
  0x40   :  { %1318 = vmatpush1.bf16.msra.mxu1 %v3269_v1  ;;  %487 = vmatprep.subr.bf16.mxu0 %v3275_v2  ;;  %v3357_v1 = vld [vmem:[%s4676_s4 + $0x2d0] ss:$8 sps:$4 sm:$0xff]   ;;  %v3363_v2 = vld [vmem:[%s4676_s4 + $0xe4] ss:$8 sps:$4 sm:$0xff]  }
  0x41   :  { %1515 = vmatprep.subr.bf16.mxu1 %v3281_v3  ;;  %v3367_v3 = vld [vmem:[%s4676_s4 + $0x2e4] ss:$8 sps:$4 sm:$0xff]  }
  0x42   :  { %307 = vmatmul.mubr.bf16.vlgmr.msra.gmra.mrb[0].mxu0 %v3912_v4 }
  0x43   :  { %1320 = vmatmul.mubr.bf16.vlgmr.msra.gmra.mrb[0].mxu1 %v3920_v6  ;;  %488 = vmatpush1.bf16.msra.mxu0 %v3273_v5  ;;  %v3361_v5 = vld [vmem:[%s4676_s4 + $0xe0] ss:$8 sps:$4 sm:$0xff]  }
  0x44   :  { %1516 = vmatpush1.bf16.msra.mxu1 %v3279_v7  ;;  %489 = vmatprep.subr.bf16.mxu0 %v3284_v8  ;;  %v3365_v7 = vld [vmem:[%s4676_s4 + $0x2e0] ss:$8 sps:$4 sm:$0xff]   ;;  %v3370_v8 = vld [vmem:[%s4676_s4 + $0xf4] ss:$8 sps:$4 sm:$0xff]  }
  0x45   :  { %1517 = vmatprep.subr.bf16.mxu1 %v3287_v9  ;;  %1329 = vmatprep.mubr.bf16.mxu1 %v2843_v28  ;;  %v3373_v9 = vld [vmem:[%s4676_s4 + $0x2f4] ss:$8 sps:$4 sm:$0xff]  }
  0x46   :  { %519 = vmatprep.mubr.bf16.mxu0 %v4011_v37  ;;  %v3399_v28 = vld [vmem:[%s4676_s4 + $0x334] ss:$8 sps:$4 sm:$0xff]  }
  0x47   :  { %490 = vmatpush1.bf16.msra.mxu0 %v3282_v10  ;;  %v3368_v10 = vld [vmem:[%s4676_s4 + $0xf0] ss:$8 sps:$4 sm:$0xff]  }
  0x48   :  { %1518 = vmatpush1.bf16.msra.mxu1 %v3285_v11  ;;  %491 = vmatprep.subr.bf16.mxu0 %v3290_v12  ;;  %v3371_v11 = vld [vmem:[%s4676_s4 + $0x2f0] ss:$8 sps:$4 sm:$0xff]   ;;  %v3379_v12 = vld [vmem:[%s4676_s4 + $0x304] ss:$8 sps:$4 sm:$0xff]  }
  0x49   :  { %1519 = vmatprep.subr.bf16.mxu1 %v3293_v13  ;;  %v3382_v13 = vld [vmem:[%s4676_s4 + $0x704] ss:$8 sps:$4 sm:$0xff]  }
  0x4b   :  { %492 = vmatpush1.bf16.msra.mxu0 %v3288_v14  ;;  %1330 = vmatmul.mubr.bf16.gmra.mrb[4].mxu1 %v2842_v29  ;;  %v4126_v14 = vld [vmem:[%s4672_s0] ss:$8 sps:$4 sm:$0xff]   ;;  %v3397_v29 = vld [vmem:[%s4676_s4 + $0x330] ss:$8 sps:$4 sm:$0xff]  }
  0x4c   :  { %1520 = vmatpush1.bf16.msra.mxu1 %v3291_v15  ;;  %493 = vmatprep.subr.bf16.mxu0 %v3296_v16  ;;  %v1040_v15 = vld [vmem:[%s4672_s0 + $0x10] sm:$0x11]  ;;  %v3377_v16 = vld [vmem:[%s4676_s4 + $0x300] ss:$8 sps:$4 sm:$0xff]  }
  0x4d   :  { %1521 = vmatprep.subr.bf16.mxu1 %v3299_v17  ;;  %1547 = vmatprep.mubr.bf16.mxu1 %v4011_v37  ;;  %v3380_v17 = vld [vmem:[%s4676_s4 + $0x700] ss:$8 sps:$4 sm:$0xff]  }
  0x4f   :  { %494 = vmatpush1.bf16.msra.mxu0 %v3294_v18  ;;  %v3385_v18 = vld [vmem:[%s4676_s4 + $0x314] ss:$8 sps:$4 sm:$0xff]  }
  0x50   :  { %1522 = vmatpush1.bf16.msra.mxu1 %v3297_v19  ;;  %495 = vmatprep.subr.bf16.mxu0 %v3302_v20  ;;  %v3388_v19 = vld [vmem:[%s4676_s4 + $0x714] ss:$8 sps:$4 sm:$0xff]   ;;  %v2879_v20 = vcombine.high %v1040_v15, %v1040_v15 }
  0x51   :  { %1523 = vmatprep.subr.bf16.mxu1 %v3305_v21  ;;  %v3383_v21 = vld [vmem:[%s4676_s4 + $0x310] ss:$8 sps:$4 sm:$0xff]  }
  0x53   :  { %496 = vmatpush1.bf16.msra.mxu0 %v3300_v22  ;;  %v3386_v22 = vld [vmem:[%s4676_s4 + $0x710] ss:$8 sps:$4 sm:$0xff]  }
  0x54   :  { %1524 = vmatpush1.bf16.msra.mxu1 %v3303_v23  ;;  %497 = vmatprep.subr.bf16.mxu0 %v3308_v24  ;;  %v3392_v23 = vld [vmem:[%s4676_s4 + $0x324] ss:$8 sps:$4 sm:$0xff]  }
  0x55   :  { %1525 = vmatprep.subr.bf16.mxu1 %v3311_v25  ;;  %v3396_v24 = vld [vmem:[%s4676_s4 + $0x724] ss:$8 sps:$4 sm:$0xff]   ;;  %v2878_v25 = vcombine.low %v1040_v15, %v1040_v15  ;;  %v3466_v15 = vld [vmem:[%s4676_s4 + $0x7e0] ss:$8 sps:$4 sm:$0xff]  }
  0x57   :  { %498 = vmatpush1.bf16.msra.mxu0 %v3306_v27  ;;  %v3394_v27 = vld [vmem:[%s4676_s4 + $0x720] ss:$8 sps:$4 sm:$0xff]  }
  0x58   :  { %1526 = vmatpush1.bf16.msra.mxu1 %v3309_v30  ;;  %499 = vmatprep.subr.bf16.mxu0 %v3314_v31  ;;  %v3400_v30 = vld [vmem:[%s4676_s4 + $0x730] ss:$8 sps:$4 sm:$0xff]   ;;  %v3405_v31 = vld [vmem:[%s4676_s4 + $0x344] ss:$8 sps:$4 sm:$0xff]  }
  0x59   :  { %1527 = vmatprep.subr.bf16.mxu1 %v3317_v32  ;;  %v3408_v32 = vld [vmem:[%s4676_s4 + $0x744] ss:$8 sps:$4 sm:$0xff]  }
  0x5b   :  { %500 = vmatpush1.bf16.msra.mxu0 %v3312_v33  ;;  %v3403_v33 = vld [vmem:[%s4676_s4 + $0x340] ss:$8 sps:$4 sm:$0xff]  }
  0x5c   :  { %1528 = vmatpush1.bf16.msra.mxu1 %v3315_v34  ;;  %501 = vmatprep.subr.bf16.mxu0 %v3320_v35  ;;  %v3406_v34 = vld [vmem:[%s4676_s4 + $0x740] ss:$8 sps:$4 sm:$0xff]   ;;  %v3411_v35 = vld [vmem:[%s4676_s4 + $0x354] ss:$8 sps:$4 sm:$0xff]  }
  0x5d   :  { %1529 = vmatprep.subr.bf16.mxu1 %v3323_v36  ;;  %v3409_v36 = vld [vmem:[%s4676_s4 + $0x350] ss:$8 sps:$4 sm:$0xff]  }
  0x5f   :  { %502 = vmatpush1.bf16.msra.mxu0 %v3318_v38  ;;  %v3412_v38 = vld [vmem:[%s4676_s4 + $0x750] ss:$8 sps:$4 sm:$0xff]  }
  0x60   :  { %1530 = vmatpush1.bf16.msra.mxu1 %v3321_v39  ;;  %503 = vmatprep.subr.bf16.mxu0 %v3326_v40  ;;  %v3417_v39 = vld [vmem:[%s4676_s4 + $0x364] ss:$8 sps:$4 sm:$0xff]  }
  0x61   :  { %1531 = vmatprep.subr.bf16.mxu1 %v3329_v41  ;;  %v3420_v40 = vld [vmem:[%s4676_s4 + $0x764] ss:$8 sps:$4 sm:$0xff]   ;;  %v3415_v41 = vld [vmem:[%s4676_s4 + $0x360] ss:$8 sps:$4 sm:$0xff]  }
  0x63   :  { %504 = vmatpush1.bf16.msra.mxu0 %v3324_v42  ;;  %v3418_v42 = vld [vmem:[%s4676_s4 + $0x760] ss:$8 sps:$4 sm:$0xff]  }
  0x64   :  { %1532 = vmatpush1.bf16.msra.mxu1 %v3327_v43  ;;  %505 = vmatprep.subr.bf16.mxu0 %v3332_v44  ;;  %v3423_v43 = vld [vmem:[%s4676_s4 + $0x374] ss:$8 sps:$4 sm:$0xff]  }
  0x65   :  { %1533 = vmatprep.subr.bf16.mxu1 %v3335_v45  ;;  %v3426_v44 = vld [vmem:[%s4676_s4 + $0x774] ss:$8 sps:$4 sm:$0xff]   ;;  %v3421_v45 = vld [vmem:[%s4676_s4 + $0x370] ss:$8 sps:$4 sm:$0xff]  }
  0x67   :  { %506 = vmatpush1.bf16.msra.mxu0 %v3330_v46  ;;  %v3424_v46 = vld [vmem:[%s4676_s4 + $0x770] ss:$8 sps:$4 sm:$0xff]  }
  0x68   :  { %1534 = vmatpush1.bf16.msra.mxu1 %v3333_v47  ;;  %507 = vmatprep.subr.bf16.mxu0 %v3338_v49  ;;  %v3429_v47 = vld [vmem:[%s4676_s4 + $0x384] ss:$8 sps:$4 sm:$0xff]  }
  0x69   :  { %1535 = vmatprep.subr.bf16.mxu1 %v3341_v50  ;;  %v3432_v49 = vld [vmem:[%s4676_s4 + $0x784] ss:$8 sps:$4 sm:$0xff]   ;;  %v3427_v50 = vld [vmem:[%s4676_s4 + $0x380] ss:$8 sps:$4 sm:$0xff]  }
  0x6b   :  { %508 = vmatpush1.bf16.msra.mxu0 %v3336_v52  ;;  %v3430_v52 = vld [vmem:[%s4676_s4 + $0x780] ss:$8 sps:$4 sm:$0xff]  }
  0x6c   :  { %1536 = vmatpush1.bf16.msra.mxu1 %v3339_v53  ;;  %509 = vmatprep.subr.bf16.mxu0 %v3344_v54  ;;  %v3435_v53 = vld [vmem:[%s4676_s4 + $0x394] ss:$8 sps:$4 sm:$0xff]  }
  0x6d   :  { %1537 = vmatprep.subr.bf16.mxu1 %v3347_v55  ;;  %v3438_v54 = vld [vmem:[%s4676_s4 + $0x794] ss:$8 sps:$4 sm:$0xff]   ;;  %v3433_v55 = vld [vmem:[%s4676_s4 + $0x390] ss:$8 sps:$4 sm:$0xff]  }
  0x6f   :  { %510 = vmatpush1.bf16.msra.mxu0 %v3342_v56  ;;  %v3436_v56 = vld [vmem:[%s4676_s4 + $0x790] ss:$8 sps:$4 sm:$0xff]  }
  0x70   :  { %1538 = vmatpush1.bf16.msra.mxu1 %v3345_v57  ;;  %511 = vmatprep.subr.bf16.mxu0 %v3350_v58  ;;  %v3441_v57 = vld [vmem:[%s4676_s4 + $0x3a4] ss:$8 sps:$4 sm:$0xff]  }
  0x71   :  { %1539 = vmatprep.subr.bf16.mxu1 %v3353_v59  ;;  %v3444_v58 = vld [vmem:[%s4676_s4 + $0x7a4] ss:$8 sps:$4 sm:$0xff]   ;;  %v3439_v59 = vld [vmem:[%s4676_s4 + $0x3a0] ss:$8 sps:$4 sm:$0xff]  }
  0x73   :  { %512 = vmatpush1.bf16.msra.mxu0 %v3348_v60  ;;  %v3442_v60 = vld [vmem:[%s4676_s4 + $0x7a0] ss:$8 sps:$4 sm:$0xff]  }
  0x74   :  { %1540 = vmatpush1.bf16.msra.mxu1 %v3351_v61  ;;  %513 = vmatprep.subr.bf16.mxu0 %v3356_v62  ;;  %v3447_v61 = vld [vmem:[%s4676_s4 + $0x3b4] ss:$8 sps:$4 sm:$0xff]  }
  0x75   :  { %1541 = vmatprep.subr.bf16.mxu1 %v3359_v63  ;;  %v3450_v62 = vld [vmem:[%s4676_s4 + $0x7b4] ss:$8 sps:$4 sm:$0xff]   ;;  %v3445_v63 = vld [vmem:[%s4676_s4 + $0x3b0] ss:$8 sps:$4 sm:$0xff]  }
  0x77   :  { %514 = vmatpush1.bf16.msra.mxu0 %v3354_v0  ;;  %v3448_v0 = vld [vmem:[%s4676_s4 + $0x7b0] ss:$8 sps:$4 sm:$0xff]  }
  0x78   :  { %1542 = vmatpush1.bf16.msra.mxu1 %v3357_v1  ;;  %515 = vmatprep.subr.bf16.mxu0 %v3363_v2  ;;  %v3453_v1 = vld [vmem:[%s4676_s4 + $0x3c4] ss:$8 sps:$4 sm:$0xff]  }
  0x79   :  { %1543 = vmatprep.subr.bf16.mxu1 %v3367_v3  ;;  %v3456_v2 = vld [vmem:[%s4676_s4 + $0x7c4] ss:$8 sps:$4 sm:$0xff]   ;;  %v3451_v3 = vld [vmem:[%s4676_s4 + $0x3c0] ss:$8 sps:$4 sm:$0xff]  }
  0x7b   :  { %516 = vmatpush1.bf16.msra.mxu0 %v3361_v5  ;;  %v3454_v5 = vld [vmem:[%s4676_s4 + $0x7c0] ss:$8 sps:$4 sm:$0xff]  }
  0x7c   :  { %1544 = vmatpush1.bf16.msra.mxu1 %v3365_v7  ;;  %517 = vmatprep.subr.bf16.mxu0 %v3370_v8  ;;  %v3459_v7 = vld [vmem:[%s4676_s4 + $0x3d4] ss:$8 sps:$4 sm:$0xff]  }
  0x7d   :  { %1545 = vmatprep.subr.bf16.mxu1 %v3373_v9  ;;  %v3462_v8 = vld [vmem:[%s4676_s4 + $0x7d4] ss:$8 sps:$4 sm:$0xff]   ;;  %v3457_v9 = vld [vmem:[%s4676_s4 + $0x3d0] ss:$8 sps:$4 sm:$0xff]  }
  0x7f   :  { %518 = vmatpush1.bf16.msra.mxu0 %v3368_v10  ;;  %v3460_v10 = vld [vmem:[%s4676_s4 + $0x7d0] ss:$8 sps:$4 sm:$0xff]  }
  0x80   :  { %1546 = vmatpush1.bf16.msra.mxu1 %v3371_v11  ;;  %737 = vmatprep.subr.bf16.mxu0 %v3379_v12  ;;  %v3465_v11 = vld [vmem:[%s4676_s4 + $0x3e4] ss:$8 sps:$4 sm:$0xff]  }
  0x81   :  { %1838 = vmatprep.subr.bf16.mxu1 %v3382_v13  ;;  %v3468_v12 = vld [vmem:[%s4676_s4 + $0x7e4] ss:$8 sps:$4 sm:$0xff]   ;;  %v3463_v13 = vld [vmem:[%s4676_s4 + $0x3e0] ss:$8 sps:$4 sm:$0xff]  }
  0x82   :  { %520 = vmatmul.mubr.bf16.vlgmr.msra.gmra.mrb[0].mxu0 %v4126_v14 }
  0x83   :  { %1548 = vmatmul.mubr.bf16.vlgmr.msra.gmra.mrb[0].mxu1 %v4126_v14  ;;  %738 = vmatpush1.bf16.msra.mxu0 %v3377_v16  ;;  %v3471_v16 = vld [vmem:[%s4676_s4 + $0x3f4] ss:$8 sps:$4 sm:$0xff]  }
  0x84   :  { %1839 = vmatpush1.bf16.msra.mxu1 %v3380_v17  ;;  %739 = vmatprep.subr.bf16.mxu0 %v3385_v18  ;;  %v3474_v17 = vld [vmem:[%s4676_s4 + $0x7f4] ss:$8 sps:$4 sm:$0xff]   ;;  %v3469_v18 = vld [vmem:[%s4676_s4 + $0x3f0] ss:$8 sps:$4 sm:$0xff]  }
  0x85   :  { %1840 = vmatprep.subr.bf16.mxu1 %v3388_v19  ;;  %1557 = vmatprep.mubr.bf16.mxu1 %v2879_v20  ;;  %v3472_v19 = vld [vmem:[%s4676_s4 + $0x7f0] ss:$8 sps:$4 sm:$0xff]   ;;  %v3477_v20 = vld [vmem:[%s4676_s4 + $0x404] ss:$8 sps:$4 sm:$0xff]  }
  0x86   :  { %769 = vmatprep.mubr.bf16.mxu0 %v3858_v51  ;;  %v3402_v51 = vld [vmem:[%s4676_s4 + $0x734] ss:$8 sps:$4 sm:$0xff]  }
  0x87   :  { %740 = vmatpush1.bf16.msra.mxu0 %v3383_v21  ;;  %v3480_v21 = vld [vmem:[%s4676_s4 + $0x604] ss:$8 sps:$4 sm:$0xff]  }
  0x88   :  { %1841 = vmatpush1.bf16.msra.mxu1 %v3386_v22  ;;  %741 = vmatprep.subr.bf16.mxu0 %v3392_v23  ;;  %v3475_v22 = vld [vmem:[%s4676_s4 + $0x400] ss:$8 sps:$4 sm:$0xff]  }
  0x89   :  { %1842 = vmatprep.subr.bf16.mxu1 %v3396_v24  ;;  %v3478_v23 = vld [vmem:[%s4676_s4 + $0x600] ss:$8 sps:$4 sm:$0xff]   ;;  %v1627_v24 = vld [vmem:[%s4673_s1 + $0x10] sm:$0x33] }
  0x8b   :  { %1558 = vmatmul.mubr.bf16.gmra.mrb[4].mxu1 %v2878_v25  ;;  %742 = vmatpush1.bf16.msra.mxu0 %v3390_v26  ;;  %v3483_v25 = vld [vmem:[%s4676_s4 + $0x414] ss:$8 sps:$4 sm:$0xff]  }
  0x8c   :  { %1843 = vmatpush1.bf16.msra.mxu1 %v3394_v27  ;;  %743 = vmatprep.subr.bf16.mxu0 %v3399_v28  ;;  %v3486_v26 = vld [vmem:[%s4676_s4 + $0x614] ss:$8 sps:$4 sm:$0xff]   ;;  %v2979_v27 = vcombine.high %v1627_v24, %v1627_v24  ;;  %v3575_v28 = vld [vmem:[%s4675_s3 + $0x4] ss:$8 sps:$4 sm:$0xff]  }
  0x8d   :  { %1844 = vmatprep.subr.bf16.mxu1 %v3402_v51  ;;  %1870 = vmatprep.mubr.bf16.mxu1 %v3846_v48  ;;  %v3414_v48 = vld [vmem:[%s4676_s4 + $0x754] ss:$8 sps:$4 sm:$0xff]   ;;  %v3481_v51 = vld [vmem:[%s4676_s4 + $0x410] ss:$8 sps:$4 sm:$0xff]  }
  0x8f   :  { %744 = vmatpush1.bf16.msra.mxu0 %v3397_v29  ;;  %v3484_v29 = vld [vmem:[%s4676_s4 + $0x610] ss:$8 sps:$4 sm:$0xff]  }
  0x90   :  { %1845 = vmatpush1.bf16.msra.mxu1 %v3400_v30  ;;  %745 = vmatprep.subr.bf16.mxu0 %v3405_v31  ;;  %v3489_v30 = vld [vmem:[%s4676_s4 + $0x424] ss:$8 sps:$4 sm:$0xff]  }
  0x91   :  { %1846 = vmatprep.subr.bf16.mxu1 %v3408_v32 }
  0x93   :  { %746 = vmatpush1.bf16.msra.mxu0 %v3403_v33 }
  0x94   :  { %1847 = vmatpush1.bf16.msra.mxu1 %v3406_v34  ;;  %747 = vmatprep.subr.bf16.mxu0 %v3411_v35 }
  0x95   :  { %1848 = vmatprep.subr.bf16.mxu1 %v3414_v48 }
  0x97   :  { %748 = vmatpush1.bf16.msra.mxu0 %v3409_v36 }
  0x98   :  { %1849 = vmatpush1.bf16.msra.mxu1 %v3412_v38  ;;  %749 = vmatprep.subr.bf16.mxu0 %v3417_v39 }
  0x99   :  { %1850 = vmatprep.subr.bf16.mxu1 %v3420_v40 }
  0x9b   :  { %750 = vmatpush1.bf16.msra.mxu0 %v3415_v41 }
  0x9c   :  { %1851 = vmatpush1.bf16.msra.mxu1 %v3418_v42  ;;  %751 = vmatprep.subr.bf16.mxu0 %v3423_v43 }
  0x9d   :  { %1852 = vmatprep.subr.bf16.mxu1 %v3426_v44 }
  0x9f   :  { %752 = vmatpush1.bf16.msra.mxu0 %v3421_v45 }
  0xa0   :  { %1853 = vmatpush1.bf16.msra.mxu1 %v3424_v46  ;;  %753 = vmatprep.subr.bf16.mxu0 %v3429_v47 }
  0xa1   :  { %1854 = vmatprep.subr.bf16.mxu1 %v3432_v49 }
  0xa3   :  { %754 = vmatpush1.bf16.msra.mxu0 %v3427_v50 }
  0xa4   :  { %1855 = vmatpush1.bf16.msra.mxu1 %v3430_v52  ;;  %755 = vmatprep.subr.bf16.mxu0 %v3435_v53 }
  0xa5   :  { %1856 = vmatprep.subr.bf16.mxu1 %v3438_v54 }
  0xa7   :  { %756 = vmatpush1.bf16.msra.mxu0 %v3433_v55 }
  0xa8   :  { %1857 = vmatpush1.bf16.msra.mxu1 %v3436_v56  ;;  %757 = vmatprep.subr.bf16.mxu0 %v3441_v57 }
  0xa9   :  { %1858 = vmatprep.subr.bf16.mxu1 %v3444_v58 }
  0xab   :  { %758 = vmatpush1.bf16.msra.mxu0 %v3439_v59 }
  0xac   :  { %1859 = vmatpush1.bf16.msra.mxu1 %v3442_v60  ;;  %759 = vmatprep.subr.bf16.mxu0 %v3447_v61 }
  0xad   :  { %1860 = vmatprep.subr.bf16.mxu1 %v3450_v62 }
  0xaf   :  { %760 = vmatpush1.bf16.msra.mxu0 %v3445_v63 }
  0xb0   :  { %1861 = vmatpush1.bf16.msra.mxu1 %v3448_v0  ;;  %761 = vmatprep.subr.bf16.mxu0 %v3453_v1 }
  0xb1   :  { %1862 = vmatprep.subr.bf16.mxu1 %v3456_v2 }
  0xb3   :  { %762 = vmatpush1.bf16.msra.mxu0 %v3451_v3 }
  0xb4   :  { %1863 = vmatpush1.bf16.msra.mxu1 %v3454_v5  ;;  %763 = vmatprep.subr.bf16.mxu0 %v3459_v7 }
  0xb5   :  { %1864 = vmatprep.subr.bf16.mxu1 %v3462_v8 }
  0xb7   :  { %764 = vmatpush1.bf16.msra.mxu0 %v3457_v9 }
  0xb8   :  { %1865 = vmatpush1.bf16.msra.mxu1 %v3460_v10  ;;  %765 = vmatprep.subr.bf16.mxu0 %v3465_v11 }
  0xb9   :  { %1866 = vmatprep.subr.bf16.mxu1 %v3468_v12 }
  0xbb   :  { %766 = vmatpush1.bf16.msra.mxu0 %v3463_v13 }
  0xbc   :  { %1867 = vmatpush1.bf16.msra.mxu1 %v3466_v15  ;;  %767 = vmatprep.subr.bf16.mxu0 %v3471_v16 }
  0xbd   :  { %1868 = vmatprep.subr.bf16.mxu1 %v3474_v17 }
  0xbf   :  { %768 = vmatpush1.bf16.msra.mxu0 %v3469_v18 }
  0xc0   :  { %1869 = vmatpush1.bf16.msra.mxu1 %v3472_v19  ;;  %991 = vmatprep.subr.bf16.mxu0 %v3477_v20 }
  0xc1   :  { %2056 = vmatprep.subr.bf16.mxu1 %v3480_v21 }
  0xc2   :  { %770 = vmatmul.mubr.bf16.vlgmr.msra.gmra.mrb[0].mxu0 %v3920_v6 }
  0xc3   :  { %1871 = vmatmul.mubr.bf16.vlgmr.msra.gmra.mrb[8].mxu1 %v3912_v4  ;;  %992 = vmatpush1.bf16.msra.mxu0 %v3475_v22  ;;  %v3492_v4 = vld [vmem:[%s4676_s4 + $0x624] ss:$8 sps:$4 sm:$0xff]  }
  0xc4   :  { %2057 = vmatpush1.bf16.msra.mxu1 %v3478_v23  ;;  %993 = vmatprep.subr.bf16.mxu0 %v3483_v25 }
  0xc5   :  { %2058 = vmatprep.subr.bf16.mxu1 %v3486_v26  ;;  %1880 = vmatprep.mubr.bf16.mxu1 %v2979_v27 }
  0xc6   :  { %1023 = vmatprep.mubr.bf16.mxu0 %v3575_v28 }
  0xc7   :  { %13 = vsyncpa [#allocation4], 0  ;;  %v2978_v6 = vcombine.low %v1627_v24, %v1627_v24  ;;  %994 = vmatpush1.bf16.msra.mxu0 %v3481_v51  ;;  %v3487_v31 = vld [vmem:[%s4676_s4 + $0x420] ss:$8 sps:$4 sm:$0xff]   ;;  %v3495_v33 = vld [vmem:[%s4676_s4 + $0x434] ss:$8 sps:$4 sm:$0xff]  }
  0xc8   :  { %2059 = vmatpush1.bf16.msra.mxu1 %v3484_v29  ;;  %v3490_v32 = vld [vmem:[%s4676_s4 + $0x620] ss:$8 sps:$4 sm:$0xff]   ;;  %995 = vmatprep.subr.bf16.mxu0 %v3489_v30  ;;  %v3498_v34 = vld [vmem:[%s4676_s4 + $0x634] ss:$8 sps:$4 sm:$0xff]   ;;  %v3493_v35 = vld [vmem:[%s4676_s4 + $0x430] ss:$8 sps:$4 sm:$0xff]  }
  0xc9   :  { %2060 = vmatprep.subr.bf16.mxu1 %v3492_v4  ;;  %v3496_v48 = vld [vmem:[%s4676_s4 + $0x630] ss:$8 sps:$4 sm:$0xff]   ;;  %v3501_v36 = vld [vmem:[%s4676_s4 + $0x444] ss:$8 sps:$4 sm:$0xff]   ;;  %v3499_v39 = vld [vmem:[%s4676_s4 + $0x440] ss:$8 sps:$4 sm:$0xff]  }
  0xca   :  { %v3504_v38 = vld [vmem:[%s4676_s4 + $0x644] ss:$8 sps:$4 sm:$0xff]   ;;  %v3502_v40 = vld [vmem:[%s4676_s4 + $0x640] ss:$8 sps:$4 sm:$0xff]   ;;  %v3507_v41 = vld [vmem:[%s4676_s4 + $0x454] ss:$8 sps:$4 sm:$0xff]  }
  0xcb   :  { %1881 = vmatmul.mubr.bf16.gmra.mrb[12].mxu1 %v2978_v6  ;;  %996 = vmatpush1.bf16.msra.mxu0 %v3487_v31  ;;  %v3505_v42 = vld [vmem:[%s4676_s4 + $0x450] ss:$8 sps:$4 sm:$0xff]   ;;  %v3513_v44 = vld [vmem:[%s4676_s4 + $0x464] ss:$8 sps:$4 sm:$0xff]   ;;  %v3511_v46 = vld [vmem:[%s4676_s4 + $0x460] ss:$8 sps:$4 sm:$0xff]  }
  0xcc   :  { %2061 = vmatpush1.bf16.msra.mxu1 %v3490_v32  ;;  %997 = vmatprep.subr.bf16.mxu0 %v3495_v33  ;;  %v3508_v43 = vld [vmem:[%s4676_s4 + $0x650] ss:$8 sps:$4 sm:$0xff]   ;;  %v3516_v45 = vld [vmem:[%s4676_s4 + $0x664] ss:$8 sps:$4 sm:$0xff]   ;;  %v3514_v47 = vld [vmem:[%s4676_s4 + $0x660] ss:$8 sps:$4 sm:$0xff]  }
  0xcd   :  { %2062 = vmatprep.subr.bf16.mxu1 %v3498_v34  ;;  %2088 = vmatprep.mubr.bf16.mxu1 %v4011_v37  ;;  %v3510_v37 = vld [vmem:[%s4676_s4 + $0x654] ss:$8 sps:$4 sm:$0xff]   ;;  %v3517_v52 = vld [vmem:[%s4676_s4 + $0x470] ss:$8 sps:$4 sm:$0xff]   ;;  %v3525_v54 = vld [vmem:[%s4676_s4 + $0x484] ss:$8 sps:$4 sm:$0xff]  }
  0xce   :  { %v3519_v49 = vld [vmem:[%s4676_s4 + $0x474] ss:$8 sps:$4 sm:$0xff]   ;;  %v3520_v53 = vld [vmem:[%s4676_s4 + $0x670] ss:$8 sps:$4 sm:$0xff]   ;;  %v3528_v55 = vld [vmem:[%s4676_s4 + $0x684] ss:$8 sps:$4 sm:$0xff]  }
  0xcf   :  { %998 = vmatpush1.bf16.msra.mxu0 %v3493_v35  ;;  %v3522_v50 = vld [vmem:[%s4676_s4 + $0x674] ss:$8 sps:$4 sm:$0xff]   ;;  %v3523_v56 = vld [vmem:[%s4676_s4 + $0x480] ss:$8 sps:$4 sm:$0xff]   ;;  %v3651_v61 = vmov 0   ;;  %vm1572_vm0 = vcmask 1046528  }
  0xd0   :  { %2063 = vmatpush1.bf16.msra.mxu1 %v3496_v48  ;;  %999 = vmatprep.subr.bf16.mxu0 %v3501_v36  ;;  %v3526_v57 = vld [vmem:[%s4676_s4 + $0x680] ss:$8 sps:$4 sm:$0xff]   ;;  %v3531_v58 = vld [vmem:[%s4676_s4 + $0x494] ss:$8 sps:$4 sm:$0xff]   ;;  %v3529_v62 = vld [vmem:[%s4676_s4 + $0x490] ss:$8 sps:$4 sm:$0xff]  }
  0xd1   :  { %2064 = vmatprep.subr.bf16.mxu1 %v3504_v38  ;;  %v3534_v59 = vld [vmem:[%s4676_s4 + $0x694] ss:$8 sps:$4 sm:$0xff]   ;;  %v2437_v60 = vld [vmem:[%s4679_s7] sm:$0xff]  ;;  %3173 = vset.pattern.permute.xlu0 %v3651_v61  ;;  %v3532_v63 = vld [vmem:[%s4676_s4 + $0x690] ss:$8 sps:$4 sm:$0xff]   ;;  %vm2113_vm1 = vcmask 1044480  }
  0xd2   :  { %2441 = vperm.xlu0 %3173, %v2437_v60   ;;  %v2438_v0 = vld [vmem:[%s4679_s7 + $0x8] sm:$0xff]  ;;  %v3543_v7 = vld [vmem:[%s4676_s4 + $0x4b4] ss:$8 sps:$4 sm:$0xff]   ;;  %v3541_v9 = vld [vmem:[%s4676_s4 + $0x4b0] ss:$8 sps:$4 sm:$0xff]   ;;  %vm2382_vm2 = vcmask 1043456  }
  0xd3   :  { %1000 = vmatpush1.bf16.msra.mxu0 %v3499_v39  ;;  %v3537_v1 = vld [vmem:[%s4676_s4 + $0x4a4] ss:$8 sps:$4 sm:$0xff]   ;;  %v3535_v3 = vld [vmem:[%s4676_s4 + $0x4a0] ss:$8 sps:$4 sm:$0xff]   ;;  %v3546_v8 = vld [vmem:[%s4676_s4 + $0x6b4] ss:$8 sps:$4 sm:$0xff]  }
  0xd4   :  { %2065 = vmatpush1.bf16.msra.mxu1 %v3502_v40  ;;  %1001 = vmatprep.subr.bf16.mxu0 %v3507_v41  ;;  %v3540_v2 = vld [vmem:[%s4676_s4 + $0x6a4] ss:$8 sps:$4 sm:$0xff]   ;;  %v3538_v5 = vld [vmem:[%s4676_s4 + $0x6a0] ss:$8 sps:$4 sm:$0xff]   ;;  %v3544_v10 = vld [vmem:[%s4676_s4 + $0x6b0] ss:$8 sps:$4 sm:$0xff]  }
  0xd5   :  { %2066 = vmatprep.subr.bf16.mxu1 %v3510_v37  ;;  %v3549_v11 = vld [vmem:[%s4676_s4 + $0x4c4] ss:$8 sps:$4 sm:$0xff]   ;;  %v3547_v13 = vld [vmem:[%s4676_s4 + $0x4c0] ss:$8 sps:$4 sm:$0xff]   ;;  %v3555_v16 = vld [vmem:[%s4676_s4 + $0x4d4] ss:$8 sps:$4 sm:$0xff]  }
  0xd6   :  { %2446 = vperm.xlu0 %3173, %v2438_v0   ;;  %v3552_v12 = vld [vmem:[%s4676_s4 + $0x6c4] ss:$8 sps:$4 sm:$0xff]   ;;  %v3550_v15 = vld [vmem:[%s4676_s4 + $0x6c0] ss:$8 sps:$4 sm:$0xff]   ;;  %v3558_v17 = vld [vmem:[%s4676_s4 + $0x6d4] ss:$8 sps:$4 sm:$0xff]  }
  0xd7   :  { %1002 = vmatpush1.bf16.msra.mxu0 %v3505_v42  ;;  %v3553_v18 = vld [vmem:[%s4676_s4 + $0x4d0] ss:$8 sps:$4 sm:$0xff]   ;;  %v3562_v20 = vld [vmem:[%s4676_s4 + $0x4e4] ss:$8 sps:$4 sm:$0xff]   ;;  %v3560_v22 = vld [vmem:[%s4676_s4 + $0x4e0] ss:$8 sps:$4 sm:$0xff]  }
  0xd8   :  { %2067 = vmatpush1.bf16.msra.mxu1 %v3508_v43  ;;  %1003 = vmatprep.subr.bf16.mxu0 %v3513_v44  ;;  %v3556_v19 = vld [vmem:[%s4676_s4 + $0x6d0] ss:$8 sps:$4 sm:$0xff]   ;;  %v3566_v21 = vld [vmem:[%s4676_s4 + $0x6e4] ss:$8 sps:$4 sm:$0xff]   ;;  %v3564_v23 = vld [vmem:[%s4676_s4 + $0x6e0] ss:$8 sps:$4 sm:$0xff]  }
  0xd9   :  { %2068 = vmatprep.subr.bf16.mxu1 %v3516_v45  ;;  %v3569_v24 = vld [vmem:[%s4676_s4 + $0x4f4] ss:$8 sps:$4 sm:$0xff]   ;;  %v3567_v26 = vld [vmem:[%s4676_s4 + $0x4f0] ss:$8 sps:$4 sm:$0xff]   ;;  %v3578_v28 = vld [vmem:[%s4676_s4 + $0x804] ss:$8 sps:$4 sm:$0xff]  }
  0xda   :  { %v3572_v25 = vld [vmem:[%s4676_s4 + $0x6f4] ss:$8 sps:$4 sm:$0xff]   ;;  %v3570_v27 = vld [vmem:[%s4676_s4 + $0x6f0] ss:$8 sps:$4 sm:$0xff]   ;;  %v3573_v51 = vld [vmem:[%s4675_s3] ss:$8 sps:$4 sm:$0xff]  }
  0xdb   :  { %1004 = vmatpush1.bf16.msra.mxu0 %v3511_v46  ;;  %v1591_v29 = vld [vmem:[%s4672_s0 + $0x10] sm:$0x33]  ;;  %v3576_v30 = vld [vmem:[%s4676_s4 + $0x800] ss:$8 sps:$4 sm:$0xff]   ;;  %v3586_v32 = vld [vmem:[%s4676_s4 + $0x824] ss:$8 sps:$4 sm:$0xff]  }
  0xdc   :  { %2069 = vmatpush1.bf16.msra.mxu1 %v3514_v47  ;;  %1005 = vmatprep.subr.bf16.mxu0 %v3519_v49  ;;  %v3581_v4 = vld [vmem:[%s4676_s4 + $0x814] ss:$8 sps:$4 sm:$0xff]   ;;  %v3013_v6 = vcombine.high %v1591_v29, %v1591_v29  ;;  %v3579_v31 = vld [vmem:[%s4676_s4 + $0x810] ss:$8 sps:$4 sm:$0xff]   ;;  %v3626_v33 = vld [vmem:[%s4672_s0 + $0x4] ss:$8 sps:$4 sm:$0xff]   ;;  %v4553_v34 = vcombine.low %v1591_v29, %v1591_v29 }
  0xdd   :  { %2070 = vmatprep.subr.bf16.mxu1 %v3522_v50  ;;  %v3584_v35 = vld [vmem:[%s4676_s4 + $0x820] ss:$8 sps:$4 sm:$0xff]   ;;  %v3589_v48 = vld [vmem:[%s4676_s4 + $0x834] ss:$8 sps:$4 sm:$0xff]   ;;  %v3587_v36 = vld [vmem:[%s4676_s4 + $0x830] ss:$8 sps:$4 sm:$0xff]  }
  0xde   :  { %v3592_v38 = vld [vmem:[%s4676_s4 + $0x844] ss:$8 sps:$4 sm:$0xff]   ;;  %v3590_v39 = vld [vmem:[%s4676_s4 + $0x840] ss:$8 sps:$4 sm:$0xff]   ;;  %v3595_v40 = vld [vmem:[%s4676_s4 + $0x854] ss:$8 sps:$4 sm:$0xff]  }
  0xdf   :  { %1006 = vmatpush1.bf16.msra.mxu0 %v3517_v52  ;;  %v3593_v41 = vld [vmem:[%s4676_s4 + $0x850] ss:$8 sps:$4 sm:$0xff]   ;;  %v3598_v37 = vld [vmem:[%s4676_s4 + $0x864] ss:$8 sps:$4 sm:$0xff]   ;;  %v3596_v42 = vld [vmem:[%s4676_s4 + $0x860] ss:$8 sps:$4 sm:$0xff]  }
  0xe0   :  { %2071 = vmatpush1.bf16.msra.mxu1 %v3520_v53  ;;  %1007 = vmatprep.subr.bf16.mxu0 %v3525_v54  ;;  %v3601_v43 = vld [vmem:[%s4676_s4 + $0x874] ss:$8 sps:$4 sm:$0xff]   ;;  %v3599_v44 = vld [vmem:[%s4676_s4 + $0x870] ss:$8 sps:$4 sm:$0xff]   ;;  %v3604_v45 = vld [vmem:[%s4676_s4 + $0x884] ss:$8 sps:$4 sm:$0xff]  }
  0xe1   :  { %2072 = vmatprep.subr.bf16.mxu1 %v3528_v55  ;;  %v3602_v46 = vld [vmem:[%s4676_s4 + $0x880] ss:$8 sps:$4 sm:$0xff]   ;;  %v3607_v47 = vld [vmem:[%s4676_s4 + $0x894] ss:$8 sps:$4 sm:$0xff]   ;;  %v3605_v49 = vld [vmem:[%s4676_s4 + $0x890] ss:$8 sps:$4 sm:$0xff]  }
  0xe2   :  { %v3610_v50 = vld [vmem:[%s4676_s4 + $0x8a4] ss:$8 sps:$4 sm:$0xff]   ;;  %v3608_v52 = vld [vmem:[%s4676_s4 + $0x8a0] ss:$8 sps:$4 sm:$0xff]   ;;  %v3613_v53 = vld [vmem:[%s4676_s4 + $0x8b4] ss:$8 sps:$4 sm:$0xff]  }
  0xe3   :  { %1008 = vmatpush1.bf16.msra.mxu0 %v3523_v56  ;;  %v3611_v54 = vld [vmem:[%s4676_s4 + $0x8b0] ss:$8 sps:$4 sm:$0xff]   ;;  %v3616_v55 = vld [vmem:[%s4676_s4 + $0x8c4] ss:$8 sps:$4 sm:$0xff]   ;;  %v3614_v56 = vld [vmem:[%s4676_s4 + $0x8c0] ss:$8 sps:$4 sm:$0xff]  }
  0xe4   :  { %2073 = vmatpush1.bf16.msra.mxu1 %v3526_v57  ;;  %1009 = vmatprep.subr.bf16.mxu0 %v3531_v58  ;;  %v3619_v57 = vld [vmem:[%s4676_s4 + $0x8d4] ss:$8 sps:$4 sm:$0xff]   ;;  %v3617_v58 = vld [vmem:[%s4676_s4 + $0x8d0] ss:$8 sps:$4 sm:$0xff]   ;;  %v3620_v60 = vld [vmem:[%s4676_s4 + $0x8e0] ss:$8 sps:$4 sm:$0xff]  }
  0xe5   :  { %2074 = vmatprep.subr.bf16.mxu1 %v3534_v59  ;;  %v3622_v59 = vld [vmem:[%s4676_s4 + $0x8e4] ss:$8 sps:$4 sm:$0xff]   ;;  %v3625_v61 = vld [vmem:[%s4676_s4 + $0x8f4] ss:$8 sps:$4 sm:$0xff]  }
  0xe7   :  { %1010 = vmatpush1.bf16.msra.mxu0 %v3529_v62  ;;  %v3623_v62 = vld [vmem:[%s4676_s4 + $0x8f0] ss:$8 sps:$4 sm:$0xff]  }
  0xe8   :  { %2075 = vmatpush1.bf16.msra.mxu1 %v3532_v63  ;;  %1011 = vmatprep.subr.bf16.mxu0 %v3537_v1 }
  0xe9   :  { %2076 = vmatprep.subr.bf16.mxu1 %v3540_v2 }
  0xeb   :  { %1012 = vmatpush1.bf16.msra.mxu0 %v3535_v3 }
  0xec   :  { %2077 = vmatpush1.bf16.msra.mxu1 %v3538_v5  ;;  %1013 = vmatprep.subr.bf16.mxu0 %v3543_v7 }
  0xed   :  { %2078 = vmatprep.subr.bf16.mxu1 %v3546_v8 }
  0xef   :  { %1014 = vmatpush1.bf16.msra.mxu0 %v3541_v9 }
  0xf0   :  { %2079 = vmatpush1.bf16.msra.mxu1 %v3544_v10  ;;  %1015 = vmatprep.subr.bf16.mxu0 %v3549_v11 }
  0xf1   :  { %2080 = vmatprep.subr.bf16.mxu1 %v3552_v12 }
  0xf3   :  { %1016 = vmatpush1.bf16.msra.mxu0 %v3547_v13 }
  0xf4   :  { %2081 = vmatpush1.bf16.msra.mxu1 %v3550_v15  ;;  %1017 = vmatprep.subr.bf16.mxu0 %v3555_v16 }
  0xf5   :  { %2082 = vmatprep.subr.bf16.mxu1 %v3558_v17 }
  0xf7   :  { %1018 = vmatpush1.bf16.msra.mxu0 %v3553_v18 }
  0xf8   :  { %2083 = vmatpush1.bf16.msra.mxu1 %v3556_v19  ;;  %1019 = vmatprep.subr.bf16.mxu0 %v3562_v20 }
  0xf9   :  { %2084 = vmatprep.subr.bf16.mxu1 %v3566_v21 }
  0xfb   :  { %1020 = vmatpush1.bf16.msra.mxu0 %v3560_v22 }
  0xfc   :  { %2085 = vmatpush1.bf16.msra.mxu1 %v3564_v23  ;;  %1021 = vmatprep.subr.bf16.mxu0 %v3569_v24 }
  0xfd   :  { %2086 = vmatprep.subr.bf16.mxu1 %v3572_v25 }
  0xff   :  { %1022 = vmatpush1.bf16.msra.mxu0 %v3567_v26 }
 0x100   :  { %2087 = vmatpush1.bf16.msra.mxu1 %v3570_v27  ;;  %2325 = vmatprep.subr.bf16.mxu0 %v3578_v28 }
 0x101   :  { %3110 = vmatprep.subr.bf16.mxu1 %v3578_v28 }
 0x102   :  { %1024 = vmatmul.mubr.bf16.vlgmr.msra.gmra.mrb[0].mxu0 %v3573_v51 }
 0x103   :  { %2089 = vmatmul.mubr.bf16.vlgmr.msra.gmra.mrb[8].mxu1 %v4126_v14  ;;  %2326 = vmatpush1.bf16.msra.mxu0 %v3576_v30 }
 0x104   :  { %3126 = vmatpush1.bf16.msra.mxu1 %v3576_v30  ;;  %2327 = vmatprep.subr.bf16.mxu0 %v3581_v4 }
 0x105   :  { %3111 = vmatprep.subr.bf16.mxu1 %v3581_v4  ;;  %2098 = vmatprep.mubr.bf16.mxu1 %v3013_v6 }
 0x106   :  { %2357 = vmatprep.mubr.bf16.mxu0 %v3626_v33 }
 0x107   :  { %2328 = vmatpush1.bf16.msra.mxu0 %v3579_v31 }
 0x108   :  { %3127 = vmatpush1.bf16.msra.mxu1 %v3579_v31  ;;  %2329 = vmatprep.subr.bf16.mxu0 %v3586_v32 }
 0x109   :  { %3112 = vmatprep.subr.bf16.mxu1 %v3586_v32 }
 0x10b   :  { %2099 = vmatmul.mubr.bf16.gmra.mrb[12].mxu1 %v4553_v34  ;;  %2330 = vmatpush1.bf16.msra.mxu0 %v3584_v35 }
 0x10c   :  { %3128 = vmatpush1.bf16.msra.mxu1 %v3584_v35  ;;  %2331 = vmatprep.subr.bf16.mxu0 %v3589_v48 }
 0x10d   :  { %3113 = vmatprep.subr.bf16.mxu1 %v3589_v48  ;;  %2367 = vmatprep.mubr.bf16.mxu1 %v3013_v6 }
 0x10f   :  { %2332 = vmatpush1.bf16.msra.mxu0 %v3587_v36 }
 0x110   :  { %3129 = vmatpush1.bf16.msra.mxu1 %v3587_v36  ;;  %2333 = vmatprep.subr.bf16.mxu0 %v3592_v38 }
 0x111   :  { %3114 = vmatprep.subr.bf16.mxu1 %v3592_v38 }
 0x113   :  { %2334 = vmatpush1.bf16.msra.mxu0 %v3590_v39 }
 0x114   :  { %3130 = vmatpush1.bf16.msra.mxu1 %v3590_v39  ;;  %2335 = vmatprep.subr.bf16.mxu0 %v3595_v40 }
 0x115   :  { %3115 = vmatprep.subr.bf16.mxu1 %v3595_v40 }
 0x117   :  { %2336 = vmatpush1.bf16.msra.mxu0 %v3593_v41 }
 0x118   :  { %3131 = vmatpush1.bf16.msra.mxu1 %v3593_v41  ;;  %2337 = vmatprep.subr.bf16.mxu0 %v3598_v37 }
 0x119   :  { %3116 = vmatprep.subr.bf16.mxu1 %v3598_v37 }
 0x11b   :  { %2338 = vmatpush1.bf16.msra.mxu0 %v3596_v42 }
 0x11c   :  { %3132 = vmatpush1.bf16.msra.mxu1 %v3596_v42  ;;  %2339 = vmatprep.subr.bf16.mxu0 %v3601_v43 }
 0x11d   :  { %3117 = vmatprep.subr.bf16.mxu1 %v3601_v43 }
 0x11f   :  { %2340 = vmatpush1.bf16.msra.mxu0 %v3599_v44 }
 0x120   :  { %3133 = vmatpush1.bf16.msra.mxu1 %v3599_v44  ;;  %2341 = vmatprep.subr.bf16.mxu0 %v3604_v45 }
 0x121   :  { %3118 = vmatprep.subr.bf16.mxu1 %v3604_v45  ;;  %v2403_v45 = vlaneseq }
 0x123   :  { %2342 = vmatpush1.bf16.msra.mxu0 %v3602_v46  ;;  %vm2493_vm3 = vcmp.lt.s32.totalorder %v2403_v45, 256 }
 0x124   :  { %3134 = vmatpush1.bf16.msra.mxu1 %v3602_v46  ;;  %2343 = vmatprep.subr.bf16.mxu0 %v3607_v47  ;;  %v4644_v46 = vshrl.u32 %v2403_v45, 7 }
 0x125   :  { %3119 = vmatprep.subr.bf16.mxu1 %v3607_v47 }
 0x127   :  { %2344 = vmatpush1.bf16.msra.mxu0 %v3605_v49 }
 0x128   :  { %3135 = vmatpush1.bf16.msra.mxu1 %v3605_v49  ;;  %2345 = vmatprep.subr.bf16.mxu0 %v3610_v50 }
 0x129   :  { %3120 = vmatprep.subr.bf16.mxu1 %v3610_v50  ;;  %v2405_v50 = vsub.s32 0, %v4644_v46 }
 0x12b   :  { %2346 = vmatpush1.bf16.msra.mxu0 %v3608_v52 }
 0x12c   :  { %3136 = vmatpush1.bf16.msra.mxu1 %v3608_v52  ;;  %2347 = vmatprep.subr.bf16.mxu0 %v3613_v53 }
 0x12d   :  { %3121 = vmatprep.subr.bf16.mxu1 %v3613_v53 }
 0x12f   :  { %2348 = vmatpush1.bf16.msra.mxu0 %v3611_v54 }
 0x130   :  { %3137 = vmatpush1.bf16.msra.mxu1 %v3611_v54  ;;  %2349 = vmatprep.subr.bf16.mxu0 %v3616_v55 }
 0x131   :  { %3122 = vmatprep.subr.bf16.mxu1 %v3616_v55  ;;  %v2401_v55 = vld [vmem:[%s4677_s5] sm:$0x3]  ;;  %s3653_s5 = smov [#allocation3]  }
 0x133   :  { %2350 = vmatpush1.bf16.msra.mxu0 %v3614_v56 }
 0x134   :  { %3138 = vmatpush1.bf16.msra.mxu1 %v3614_v56  ;;  %2351 = vmatprep.subr.bf16.mxu0 %v3619_v57  ;;  %v2409_v56 = vsub.s32 1, %v4644_v46 }
 0x135   :  { %3123 = vmatprep.subr.bf16.mxu1 %v3619_v57 }
 0x137   :  { %2352 = vmatpush1.bf16.msra.mxu0 %v3617_v58 }
 0x138   :  { %3139 = vmatpush1.bf16.msra.mxu1 %v3617_v58  ;;  %2353 = vmatprep.subr.bf16.mxu0 %v3622_v59 }
 0x139   :  { %3124 = vmatprep.subr.bf16.mxu1 %v3622_v59 }
 0x13b   :  { %2354 = vmatpush1.bf16.msra.mxu0 %v3620_v60 }
 0x13c   :  { %3140 = vmatpush1.bf16.msra.mxu1 %v3620_v60  ;;  %2355 = vmatprep.subr.bf16.mxu0 %v3625_v61  ;;  %v2417_v60 = vld [vmem:[%s4678_s6] sm:$0x3]  ;;  %s2536_s6 = sshll.u32 %s3653_s5, 4  ;;  %s2537_s6 = int_to_ptr.vmem [resolvable:$true] %s2536_s6 }
 0x13d   :  { %3125 = vmatprep.subr.bf16.mxu1 %v3625_v61  ;;  %s3627_s28 = scalar_lea.vmem %s2537_s6, 64  ;;  %p3632_p1 = scmp.lt.s32.totalorder %s2537_s6, %s2537_s6 }
 0x13e   :  { %p3628_p0 = scmp.ne.s32.totalorder %s2537_s6, %s3627_s28  ;;  %p3633_p2 = scmp.lt.s32.totalorder %s3627_s28, %s3627_s28 }
 0x13f   :  { %2356 = vmatpush1.bf16.msra.mxu0 %v3623_v62 }
 0x140   :  { %3141 = vmatpush1.bf16.msra.mxu1 %v3623_v62  ;;  %p3634_p3 = por %p3633_p2, %p3632_p1 }
 0x142   :  { %2358 = vmatmul.mubr.bf16.vlgmr.msra.gmra.mrb[4].mxu0 %v4126_v14  ;;  %p3635_p4 = pnand %p3634_p3, %p3628_p0 }
 0x143   :  { %2368 = vmatmul.mubr.bf16.vlgmr.msra.gmra.mrb[16].mxu1 %v4553_v34 }
 0x156   :  { %v1549_v63 = vpop.f32.mrb[0].mxu1 }
 0x157   :  { %v1551_v0 = vpop.f32.mrb[1].mxu1  ;;  %v1573_v2 = vrot.slane %v1549_v63, 1 }
 0x158   :  { %v1553_v1 = vpop.f32.mrb[2].mxu1  ;;  %v1576_v7 = vrot.slane %v1551_v0, 1 }
 0x159   :  { %v1574_v3 = vrot.slane %v1553_v1, 1  ;;  %v1555_v5 = vpop.f32.mrb[3].mxu1 }
 0x15a   :  { %v1577_v8 = vrot.slane %v1555_v5, 1 }
 0x15b   :  { %v1575_v9 = vsel %vm1572_vm0, %v1573_v2, %v1574_v3 }
 0x15c   :  { %v1578_v10 = vsel %vm1572_vm0, %v1576_v7, %v1577_v8 }
 0x15e   :  { %v1559_v11 = vpop.f32.mrb[4].mxu1 }
 0x15f   :  { %v1579_v12 = vrot.slane %v1559_v11, 1  ;;  %v1561_v13 = vpop.f32.mrb[5].mxu1 }
 0x160   :  { %v1581_v15 = vrot.slane %v1561_v13, 1  ;;  %v1563_v16 = vpop.f32.mrb[6].mxu1 }
 0x161   :  { %v1564_v17 = vpop.f32.mrb[7].mxu1  ;;  %v1580_v14 = vsel %vm1572_vm0, %v1574_v3, %v1579_v12  ;;  %v2406_v3 = vrot.slane %v2401_v55, %v2405_v50 }
 0x162   :  { %v1582_v18 = vsel %vm1572_vm0, %v1577_v8, %v1581_v15  ;;  %v2410_v8 = vrot.slane %v2401_v55, %v2409_v56  ;;  %v2442_v17 = vpop.permute.xlu0 %2441 }
 0x1d5   :  { %v1025_v19 = vpop.f32.mrb[0].mxu0 }
 0x1d6   :  { %v2090_v20 = vpop.f32.mrb[8].mxu1  ;;  %v1587_v21 = vadd.f32 %v1575_v9, %v1025_v19  ;;  %v1027_v22 = vpop.f32.mrb[1].mxu0  ;;  %v2422_v9 = vrot.slane %v2417_v60, %v2405_v50 }
 0x1d7   :  { %v2092_v23 = vpop.f32.mrb[9].mxu1  ;;  %v1588_v24 = vadd.f32 %v1578_v10, %v1027_v22  ;;  %v1029_v25 = vpop.f32.mrb[2].mxu0  ;;  %v2114_v27 = vrot.slane %v2090_v20, 3 }
 0x1d8   :  { %v2094_v26 = vpop.f32.mrb[10].mxu1  ;;  %v1589_v28 = vadd.f32 %v1580_v14, %v1029_v25  ;;  %v1031_v29 = vpop.f32.mrb[3].mxu0  ;;  %v2117_v4 = vrot.slane %v2092_v23, 3  ;;  %v2426_v14 = vrot.slane %v2417_v60, %v2409_v56 }
 0x1d9   :  { %v2115_v51 = vrot.slane %v2094_v26, 3  ;;  %v2096_v30 = vpop.f32.mrb[11].mxu1  ;;  %v1590_v6 = vadd.f32 %v1582_v18, %v1031_v29 }
 0x1da   :  { %v2118_v31 = vrot.slane %v2096_v30, 3 }
 0x1db   :  { %v2116_v32 = vsel %vm2113_vm1, %v2114_v27, %v2115_v51 }
 0x1dc   :  { %v2128_v33 = vadd.f32 %v2116_v32, %v1587_v21  ;;  %v2119_v34 = vsel %vm2113_vm1, %v2117_v4, %v2118_v31 }
 0x1dd   :  { %v2129_v35 = vadd.f32 %v2119_v34, %v1588_v24 }
 0x1de   :  { %v2100_v48 = vpop.f32.mrb[12].mxu1 }
 0x1df   :  { %v2120_v36 = vrot.slane %v2100_v48, 3  ;;  %v2102_v38 = vpop.f32.mrb[13].mxu1 }
 0x1e0   :  { %v2122_v39 = vrot.slane %v2102_v38, 3  ;;  %v2104_v40 = vpop.f32.mrb[14].mxu1 }
 0x1e1   :  { %v2121_v41 = vsel %vm2113_vm1, %v2115_v51, %v2120_v36  ;;  %v2105_v37 = vpop.f32.mrb[15].mxu1  ;;  %v2447_v51 = vpop.permute.xlu0 %2446  ;;  %v3652_v40 = vmov 1966171168  }
 0x1e2   :  { %v2130_v42 = vadd.f32 %v2121_v41, %v1589_v28  ;;  %v2123_v43 = vsel %vm2113_vm1, %v2118_v31, %v2122_v39  ;;  %v2477_v41 = vunpack.c.l.s4 %v3652_v40 }
 0x1e3   :  { %v2131_v44 = vadd.f32 %v2123_v43, %v1590_v6 }
 0x215   :  { %v2359_v47 = vpop.f32.mrb[4].mxu0 }
 0x216   :  { %v2369_v49 = vpop.f32.mrb[16].mxu1  ;;  %v2361_v53 = vpop.f32.mrb[5].mxu0  ;;  %v2383_v61 = vrot.slane %v2359_v47, 4 }
 0x217   :  { %v2389_v52 = vrot.slane %v2369_v49, 4  ;;  %v2371_v54 = vpop.f32.mrb[17].mxu1  ;;  %v2363_v58 = vpop.f32.mrb[6].mxu0  ;;  %v2386_v1 = vrot.slane %v2361_v53, 4  ;;  %v2478_v53 = vunpack.c.0.s8 %v2477_v41 }
 0x218   :  { %v2391_v57 = vrot.slane %v2371_v54, 4  ;;  %v2373_v59 = vpop.f32.mrb[18].mxu1  ;;  %v2384_v62 = vrot.slane %v2363_v58, 4  ;;  %v2365_v63 = vpop.f32.mrb[7].mxu0 }
 0x219   :  { %v2374_v0 = vpop.f32.mrb[19].mxu1  ;;  %v2387_v2 = vrot.slane %v2365_v63, 4 }
 0x21a   :  { %v2385_v5 = vsel %vm2382_vm2, %v2383_v61, %v2384_v62  ;;  %v2390_v7 = vsel %vm2382_vm2, %v2384_v62, %v2389_v52  ;;  %v2481_v62 = vsub.s32 %v2478_v53, %v4644_v46 }
 0x21b   :  { %v2397_v10 = vadd.f32 %v2385_v5, %v2128_v33  ;;  %v2399_v11 = vadd.f32 %v2390_v7, %v2130_v42  ;;  %v2388_v12 = vsel %vm2382_vm2, %v2386_v1, %v2387_v2  ;;  %v2392_v13 = vsel %vm2382_vm2, %v2387_v2, %v2391_v57 }
 0x21c   :  { %v2398_v15 = vadd.f32 %v2388_v12, %v2129_v35  ;;  %v2400_v16 = vadd.f32 %v2392_v13, %v2131_v44 }
 0x21d   :  { %v2413_v18 = vmul.f32 %v2406_v3, %v2397_v10  ;;  %v2415_v19 = vmul.f32 %v2406_v3, %v2399_v11 }
 0x21e   :  { %v2414_v20 = vmul.f32 %v2410_v8, %v2398_v15  ;;  %v2416_v21 = vmul.f32 %v2410_v8, %v2400_v16 }
 0x21f   :  { %v2429_v22 = vadd.f32 %v2422_v9, %v2413_v18  ;;  %v2431_v23 = vadd.f32 %v2422_v9, %v2415_v19 }
 0x220   :  { %v2430_v24 = vadd.f32 %v2426_v14, %v2414_v20  ;;  %v2432_v25 = vadd.f32 %v2426_v14, %v2416_v21 }
 0x221   :  { %v2433_v26 = vmax.f32 %v2429_v22, 0.0  ;;  %v2435_v27 = vmax.f32 %v2431_v23, 0.0 }
 0x222   :  { %v2434_v28 = vmax.f32 %v2430_v24, 0.0  ;;  %v2436_v29 = vmax.f32 %v2432_v25, 0.0 }
 0x223   :  { %v2449_v30 = vmul.f32 %v2442_v17, %v2433_v26  ;;  %v2451_v4 = vmul.f32 %v2447_v51, %v2435_v27 }
 0x224   :  { %v2450_v6 = vmul.f32 %v2442_v17, %v2434_v28  ;;  %v2452_v31 = vmul.f32 %v2447_v51, %v2436_v29 }
 0x225   :  { %v2461_v32 = vrot.slane %v2449_v30, 4  ;;  %v2498_v33 = vrot.slane %v2451_v4, 4 }
 0x226   :  { %v2467_v34 = vrot.slane %v2450_v6, 4  ;;  %v2504_v35 = vrot.slane %v2452_v31, 4 }
 0x227   :  { %v2462_v48 = vadd.f32 %v2461_v32, %v2449_v30  ;;  %v2499_v36 = vadd.f32 %v2498_v33, %v2451_v4 }
 0x228   :  { %v2468_v38 = vadd.f32 %v2467_v34, %v2450_v6  ;;  %v2505_v39 = vadd.f32 %v2504_v35, %v2452_v31 }
 0x229   :  { %v2463_v37 = vrot.slane %v2462_v48, 2  ;;  %v2500_v42 = vrot.slane %v2499_v36, 2 }
 0x22a   :  { %v2469_v43 = vrot.slane %v2468_v38, 2  ;;  %v2506_v44 = vrot.slane %v2505_v39, 2 }
 0x22b   :  { %v2464_v47 = vadd.f32 %v2463_v37, %v2462_v48  ;;  %v2501_v49 = vadd.f32 %v2500_v42, %v2499_v36 }
 0x22c   :  { %v2470_v50 = vadd.f32 %v2469_v43, %v2468_v38  ;;  %v2507_v52 = vadd.f32 %v2506_v44, %v2505_v39 }
 0x22d   :  { %v2465_v54 = vrot.slane %v2464_v47, 1  ;;  %v2502_v55 = vrot.slane %v2501_v49, 1 }
 0x22e   :  { %v2471_v56 = vrot.slane %v2470_v50, 1  ;;  %v2508_v57 = vrot.slane %v2507_v52, 1 }
 0x22f   :  { %v2466_v58 = vadd.f32 %v2465_v54, %v2464_v47  ;;  %v2503_v59 = vadd.f32 %v2502_v55, %v2501_v49 }
 0x230   :  { %v2472_v60 = vadd.f32 %v2471_v56, %v2470_v50  ;;  %v2509_v61 = vadd.f32 %v2508_v57, %v2507_v52 }
 0x232   :  { %v2512_v63 = vcombine.low %v2503_v59, %v2509_v61  ;;  %v2475_v0 = vcombine.low %v2466_v58, %v2472_v60 }
 0x234   :  { %v2482_v1 = vrot.slane %v2475_v0, %v2481_v62  ;;  %v2519_v2 = vrot.slane %v2512_v63, %v2481_v62 }
 0x236   :  { %v2489_v3 = vrot.slane %v2482_v1, %v2481_v62  ;;  %v2526_v5 = vrot.slane %v2519_v2, %v2481_v62 }
 0x238   :  { %2495 = vst.msk [vmem:[#allocation3] ss:$2 sm:$0x3] %vm2493_vm3, %v2489_v3  ;;  %2529 = vst.msk [vmem:[#allocation3 + $0x1] ss:$2 sm:$0x3] %vm2493_vm3, %v2526_v5 }
 0x239   :  { %3638 = shalt.err (!%p3635_p4)
}
 0x23a   :  { %s3639_s30 = scalar_lea.hbm %s4680_s8, 64 }
 0x23b   :  { %p3640_p5 = scmp.ne.s32.totalorder %s4680_s8, %s3639_s30  ;;  %p3643_p6 = scmp.lt.u32.totalorder %s3639_s30, %s4680_s8 }
 0x23d   :  { %p3645_p7 = pnand %p3643_p6, %p3640_p5 }
 0x23f   :  { %3648 = shalt.err (!%p3645_p7)
}
 0x240   :  { %2539 = dma.vmem_to_hbm [thread:$0]  %s2537_s6, 64, %s4680_s8, [#allocation4]  }
 0x241   :  { %3649 = dma.done.wait [#allocation4], 64  }
 0x242   :  { %3650 = vsyncadd [#allocation4], 4294967232 }
 0x243   :  { %2543 = vsyncpa [#allocation4], 1 }

// kernel: cnn_module_forward.3
= control target key start
LH: loop header
LB: loop body
LE: loop exit
PB: predicated region body
PF: predicated region fallthrough
CT: control target
= control target key end

     0   :  { %vm3584_vm0 = vcmask 1046528   ;;  %vm5041_vm1 = vcmask 1043456   ;;  %vm5738_vm2 = vcmask 1042432   ;;  %s11190_s4 = inlined_call_operand.vmem [shape: bf16[9,256,256], index: 4, kind: input, shape index: {}]   ;;  %s11191_s1 = inlined_call_operand.vmem [shape: bf16[256,256], index: 1, kind: input, shape index: {}]   ;;  %s11192_s2 = inlined_call_operand.vmem [shape: bf16[256,256], index: 2, kind: input, shape index: {}]   ;;  %s11193_s0 = inlined_call_operand.vmem [shape: bf16[256,256], index: 0, kind: input, shape index: {}]   ;;  %s11194_s3 = inlined_call_operand.vmem [shape: bf16[256,256], index: 3, kind: input, shape index: {}]   ;;  %s11195_s5 = inlined_call_operand.vmem [shape: f32[1,256], index: 5, kind: input, shape index: {}]   ;;  %s11196_s6 = inlined_call_operand.vmem [shape: f32[1,256], index: 6, kind: input, shape index: {}]   ;;  %s11197_s7 = inlined_call_operand.vmem [shape: bf16[240,256], index: 7, kind: output, shape index: {}]  }
   0x1   :  { %v7595_v0 = vld [vmem:[%s11190_s4 + $0x104] ss:$8 sps:$4 sm:$0xff]   ;;  %v7599_v2 = vld [vmem:[%s11190_s4 + $0x100] ss:$8 sps:$4 sm:$0xff]   ;;  %v7601_v4 = vld [vmem:[%s11190_s4 + $0x114] ss:$8 sps:$4 sm:$0xff]  }
   0x2   :  { %v7597_v1 = vld [vmem:[%s11190_s4 + $0x504] ss:$8 sps:$4 sm:$0xff]   ;;  %466 = vmatprep.subr.bf16.mxu0 %v7595_v0  ;;  %v7600_v3 = vld [vmem:[%s11190_s4 + $0x500] ss:$8 sps:$4 sm:$0xff]   ;;  %v7603_v5 = vld [vmem:[%s11190_s4 + $0x514] ss:$8 sps:$4 sm:$0xff]  }
   0x3   :  { %2823 = vmatprep.subr.bf16.mxu1 %v7597_v1  ;;  %467 = vmatpush1.bf16.msra.mxu0 %v7599_v2  ;;  %v7605_v6 = vld [vmem:[%s11190_s4 + $0x110] ss:$8 sps:$4 sm:$0xff]   ;;  %v7607_v8 = vld [vmem:[%s11190_s4 + $0x124] ss:$8 sps:$4 sm:$0xff]   ;;  %v7611_v10 = vld [vmem:[%s11190_s4 + $0x120] ss:$8 sps:$4 sm:$0xff]  }
   0x4   :  { %2824 = vmatpush1.bf16.msra.mxu1 %v7600_v3  ;;  %468 = vmatprep.subr.bf16.mxu0 %v7601_v4  ;;  %v7606_v7 = vld [vmem:[%s11190_s4 + $0x510] ss:$8 sps:$4 sm:$0xff]   ;;  %v7609_v9 = vld [vmem:[%s11190_s4 + $0x524] ss:$8 sps:$4 sm:$0xff]   ;;  %v7612_v11 = vld [vmem:[%s11190_s4 + $0x520] ss:$8 sps:$4 sm:$0xff]  }
   0x5   :  { %2825 = vmatprep.subr.bf16.mxu1 %v7603_v5  ;;  %v7613_v12 = vld [vmem:[%s11190_s4 + $0x134] ss:$8 sps:$4 sm:$0xff]   ;;  %v7617_v14 = vld [vmem:[%s11190_s4 + $0x130] ss:$8 sps:$4 sm:$0xff]   ;;  %v7619_v16 = vld [vmem:[%s11190_s4 + $0x144] ss:$8 sps:$4 sm:$0xff]  }
   0x6   :  { %v7615_v13 = vld [vmem:[%s11190_s4 + $0x534] ss:$8 sps:$4 sm:$0xff]   ;;  %v7618_v15 = vld [vmem:[%s11190_s4 + $0x530] ss:$8 sps:$4 sm:$0xff]   ;;  %v7621_v17 = vld [vmem:[%s11190_s4 + $0x544] ss:$8 sps:$4 sm:$0xff]  }
   0x7   :  { %469 = vmatpush1.bf16.msra.mxu0 %v7605_v6  ;;  %v7623_v18 = vld [vmem:[%s11190_s4 + $0x140] ss:$8 sps:$4 sm:$0xff]   ;;  %v7625_v20 = vld [vmem:[%s11190_s4 + $0x154] ss:$8 sps:$4 sm:$0xff]   ;;  %v7629_v22 = vld [vmem:[%s11190_s4 + $0x150] ss:$8 sps:$4 sm:$0xff]  }
   0x8   :  { %2826 = vmatpush1.bf16.msra.mxu1 %v7606_v7  ;;  %470 = vmatprep.subr.bf16.mxu0 %v7607_v8  ;;  %v7624_v19 = vld [vmem:[%s11190_s4 + $0x540] ss:$8 sps:$4 sm:$0xff]   ;;  %v7627_v21 = vld [vmem:[%s11190_s4 + $0x554] ss:$8 sps:$4 sm:$0xff]   ;;  %v7630_v23 = vld [vmem:[%s11190_s4 + $0x550] ss:$8 sps:$4 sm:$0xff]  }
   0x9   :  { %2827 = vmatprep.subr.bf16.mxu1 %v7609_v9  ;;  %v7631_v24 = vld [vmem:[%s11190_s4 + $0x164] ss:$8 sps:$4 sm:$0xff]   ;;  %v7635_v26 = vld [vmem:[%s11190_s4 + $0x160] ss:$8 sps:$4 sm:$0xff]   ;;  %v7637_v28 = vld [vmem:[%s11190_s4 + $0x174] ss:$8 sps:$4 sm:$0xff]  }
   0xa   :  { %v7633_v25 = vld [vmem:[%s11190_s4 + $0x564] ss:$8 sps:$4 sm:$0xff]   ;;  %v7636_v27 = vld [vmem:[%s11190_s4 + $0x560] ss:$8 sps:$4 sm:$0xff]   ;;  %v7639_v29 = vld [vmem:[%s11190_s4 + $0x574] ss:$8 sps:$4 sm:$0xff]  }
   0xb   :  { %471 = vmatpush1.bf16.msra.mxu0 %v7611_v10  ;;  %v7641_v30 = vld [vmem:[%s11190_s4 + $0x170] ss:$8 sps:$4 sm:$0xff]   ;;  %v7643_v32 = vld [vmem:[%s11190_s4 + $0x184] ss:$8 sps:$4 sm:$0xff]   ;;  %v7647_v34 = vld [vmem:[%s11190_s4 + $0x180] ss:$8 sps:$4 sm:$0xff]  }
   0xc   :  { %2828 = vmatpush1.bf16.msra.mxu1 %v7612_v11  ;;  %472 = vmatprep.subr.bf16.mxu0 %v7613_v12  ;;  %v7642_v31 = vld [vmem:[%s11190_s4 + $0x570] ss:$8 sps:$4 sm:$0xff]   ;;  %v7645_v33 = vld [vmem:[%s11190_s4 + $0x584] ss:$8 sps:$4 sm:$0xff]   ;;  %v7648_v35 = vld [vmem:[%s11190_s4 + $0x580] ss:$8 sps:$4 sm:$0xff]  }
   0xd   :  { %2829 = vmatprep.subr.bf16.mxu1 %v7615_v13  ;;  %v7649_v36 = vld [vmem:[%s11190_s4 + $0x194] ss:$8 sps:$4 sm:$0xff]   ;;  %v7653_v38 = vld [vmem:[%s11190_s4 + $0x190] ss:$8 sps:$4 sm:$0xff]   ;;  %v7655_v40 = vld [vmem:[%s11190_s4 + $0x1a4] ss:$8 sps:$4 sm:$0xff]  }
   0xe   :  { %v7651_v37 = vld [vmem:[%s11190_s4 + $0x594] ss:$8 sps:$4 sm:$0xff]   ;;  %v7654_v39 = vld [vmem:[%s11190_s4 + $0x590] ss:$8 sps:$4 sm:$0xff]   ;;  %v7657_v41 = vld [vmem:[%s11190_s4 + $0x5a4] ss:$8 sps:$4 sm:$0xff]  }
   0xf   :  { %473 = vmatpush1.bf16.msra.mxu0 %v7617_v14  ;;  %v7659_v42 = vld [vmem:[%s11190_s4 + $0x1a0] ss:$8 sps:$4 sm:$0xff]   ;;  %v7661_v44 = vld [vmem:[%s11190_s4 + $0x1b4] ss:$8 sps:$4 sm:$0xff]   ;;  %v7665_v46 = vld [vmem:[%s11190_s4 + $0x1b0] ss:$8 sps:$4 sm:$0xff]  }
  0x10   :  { %2830 = vmatpush1.bf16.msra.mxu1 %v7618_v15  ;;  %474 = vmatprep.subr.bf16.mxu0 %v7619_v16  ;;  %v7660_v43 = vld [vmem:[%s11190_s4 + $0x5a0] ss:$8 sps:$4 sm:$0xff]   ;;  %v7663_v45 = vld [vmem:[%s11190_s4 + $0x5b4] ss:$8 sps:$4 sm:$0xff]   ;;  %v7666_v47 = vld [vmem:[%s11190_s4 + $0x5b0] ss:$8 sps:$4 sm:$0xff]  }
  0x11   :  { %2831 = vmatprep.subr.bf16.mxu1 %v7621_v17  ;;  %v7667_v48 = vld [vmem:[%s11190_s4 + $0x1c4] ss:$8 sps:$4 sm:$0xff]   ;;  %v7671_v52 = vld [vmem:[%s11190_s4 + $0x1c0] ss:$8 sps:$4 sm:$0xff]   ;;  %v7673_v54 = vld [vmem:[%s11190_s4 + $0x1d4] ss:$8 sps:$4 sm:$0xff]  }
  0x12   :  { %v7693_v49 = vld [vmem:[%s11191_s1 + $0x4] ss:$8 sps:$4 sm:$0xff]   ;;  %v7672_v53 = vld [vmem:[%s11190_s4 + $0x5c0] ss:$8 sps:$4 sm:$0xff]   ;;  %v7675_v55 = vld [vmem:[%s11190_s4 + $0x5d4] ss:$8 sps:$4 sm:$0xff]  }
  0x13   :  { %475 = vmatpush1.bf16.msra.mxu0 %v7623_v18  ;;  %v7669_v50 = vld [vmem:[%s11190_s4 + $0x5c4] ss:$8 sps:$4 sm:$0xff]   ;;  %498 = vmatprep.mubr.bf16.mxu0 %v7693_v49  ;;  %v7677_v56 = vld [vmem:[%s11190_s4 + $0x1d0] ss:$8 sps:$4 sm:$0xff]   ;;  %v7683_v60 = vld [vmem:[%s11190_s4 + $0x1e0] ss:$8 sps:$4 sm:$0xff]  }
  0x14   :  { %2832 = vmatpush1.bf16.msra.mxu1 %v7624_v19  ;;  %476 = vmatprep.subr.bf16.mxu0 %v7625_v20  ;;  %v7696_v51 = vld [vmem:[%s11192_s2 + $0x4] ss:$8 sps:$4 sm:$0xff]   ;;  %v7678_v57 = vld [vmem:[%s11190_s4 + $0x5d0] ss:$8 sps:$4 sm:$0xff]   ;;  %v7684_v61 = vld [vmem:[%s11190_s4 + $0x5e0] ss:$8 sps:$4 sm:$0xff]  }
  0x15   :  { %2833 = vmatprep.subr.bf16.mxu1 %v7627_v21  ;;  %2855 = vmatprep.mubr.bf16.mxu1 %v7696_v51  ;;  %v7679_v58 = vld [vmem:[%s11190_s4 + $0x1e4] ss:$8 sps:$4 sm:$0xff]   ;;  %v7685_v62 = vld [vmem:[%s11190_s4 + $0x1f4] ss:$8 sps:$4 sm:$0xff]   ;;  %v7689_v0 = vld [vmem:[%s11190_s4 + $0x1f0] ss:$8 sps:$4 sm:$0xff]  }
  0x16   :  { %v7681_v59 = vld [vmem:[%s11190_s4 + $0x5e4] ss:$8 sps:$4 sm:$0xff]   ;;  %v7687_v63 = vld [vmem:[%s11190_s4 + $0x5f4] ss:$8 sps:$4 sm:$0xff]   ;;  %v7690_v1 = vld [vmem:[%s11190_s4 + $0x5f0] ss:$8 sps:$4 sm:$0xff]  }
  0x17   :  { %477 = vmatpush1.bf16.msra.mxu0 %v7629_v22  ;;  %v7699_v2 = vld [vmem:[%s11190_s4 + $0x4] ss:$8 sps:$4 sm:$0xff]   ;;  %v7691_v3 = vld [vmem:[%s11191_s1] ss:$8 sps:$4 sm:$0xff]   ;;  %v7703_v8 = vld [vmem:[%s11191_s1 + $0x14] ss:$8 sps:$4 sm:$0xff]  }
  0x18   :  { %2834 = vmatpush1.bf16.msra.mxu1 %v7630_v23  ;;  %478 = vmatprep.subr.bf16.mxu0 %v7631_v24  ;;  %v7702_v4 = vld [vmem:[%s11190_s4 + $0x204] ss:$8 sps:$4 sm:$0xff]   ;;  %v7694_v5 = vld [vmem:[%s11192_s2] ss:$8 sps:$4 sm:$0xff]   ;;  %v7705_v9 = vld [vmem:[%s11192_s2 + $0x14] ss:$8 sps:$4 sm:$0xff]  }
  0x19   :  { %2835 = vmatprep.subr.bf16.mxu1 %v7633_v25  ;;  %v7697_v6 = vld [vmem:[%s11190_s4] ss:$8 sps:$4 sm:$0xff]   ;;  %v7710_v10 = vld [vmem:[%s11190_s4 + $0x14] ss:$8 sps:$4 sm:$0xff]   ;;  %v7708_v12 = vld [vmem:[%s11190_s4 + $0x10] ss:$8 sps:$4 sm:$0xff]  }
  0x1a   :  { %v7700_v7 = vld [vmem:[%s11190_s4 + $0x200] ss:$8 sps:$4 sm:$0xff]   ;;  %v7714_v11 = vld [vmem:[%s11190_s4 + $0x214] ss:$8 sps:$4 sm:$0xff]   ;;  %v7712_v13 = vld [vmem:[%s11190_s4 + $0x210] ss:$8 sps:$4 sm:$0xff]  }
  0x1b   :  { %479 = vmatpush1.bf16.msra.mxu0 %v7635_v26  ;;  %v7719_v14 = vld [vmem:[%s11190_s4 + $0x24] ss:$8 sps:$4 sm:$0xff]   ;;  %v7707_v16 = vld [vmem:[%s11191_s1 + $0x10] ss:$8 sps:$4 sm:$0xff]   ;;  %v7717_v19 = vld [vmem:[%s11190_s4 + $0x20] ss:$8 sps:$4 sm:$0xff]  }
  0x1c   :  { %2836 = vmatpush1.bf16.msra.mxu1 %v7636_v27  ;;  %480 = vmatprep.subr.bf16.mxu0 %v7637_v28  ;;  %v7726_v15 = vld [vmem:[%s11190_s4 + $0x224] ss:$8 sps:$4 sm:$0xff]   ;;  %v7711_v17 = vld [vmem:[%s11192_s2 + $0x10] ss:$8 sps:$4 sm:$0xff]   ;;  %v7724_v21 = vld [vmem:[%s11190_s4 + $0x220] ss:$8 sps:$4 sm:$0xff]  }
  0x1d   :  { %2837 = vmatprep.subr.bf16.mxu1 %v7639_v29  ;;  %v7715_v18 = vld [vmem:[%s11191_s1 + $0x24] ss:$8 sps:$4 sm:$0xff]   ;;  %v7731_v22 = vld [vmem:[%s11190_s4 + $0x34] ss:$8 sps:$4 sm:$0xff]   ;;  %v7729_v24 = vld [vmem:[%s11190_s4 + $0x30] ss:$8 sps:$4 sm:$0xff]  }
  0x1e   :  { %v7720_v20 = vld [vmem:[%s11192_s2 + $0x24] ss:$8 sps:$4 sm:$0xff]   ;;  %v7738_v23 = vld [vmem:[%s11190_s4 + $0x234] ss:$8 sps:$4 sm:$0xff]   ;;  %v7722_v25 = vld [vmem:[%s11191_s1 + $0x20] ss:$8 sps:$4 sm:$0xff]  }
  0x1f   :  { %481 = vmatpush1.bf16.msra.mxu0 %v7641_v30  ;;  %v7723_v26 = vld [vmem:[%s11192_s2 + $0x20] ss:$8 sps:$4 sm:$0xff]   ;;  %v7736_v27 = vld [vmem:[%s11190_s4 + $0x230] ss:$8 sps:$4 sm:$0xff]   ;;  %v7727_v28 = vld [vmem:[%s11191_s1 + $0x34] ss:$8 sps:$4 sm:$0xff]  }
  0x20   :  { %2838 = vmatpush1.bf16.msra.mxu1 %v7642_v31  ;;  %482 = vmatprep.subr.bf16.mxu0 %v7643_v32  ;;  %v7741_v29 = vld [vmem:[%s11190_s4 + $0x44] ss:$8 sps:$4 sm:$0xff]   ;;  %v7732_v31 = vld [vmem:[%s11192_s2 + $0x34] ss:$8 sps:$4 sm:$0xff]   ;;  %v7739_v32 = vld [vmem:[%s11190_s4 + $0x40] ss:$8 sps:$4 sm:$0xff]  }
  0x21   :  { %2839 = vmatprep.subr.bf16.mxu1 %v7645_v33  ;;  %v7750_v30 = vld [vmem:[%s11190_s4 + $0x244] ss:$8 sps:$4 sm:$0xff]   ;;  %v7748_v33 = vld [vmem:[%s11190_s4 + $0x240] ss:$8 sps:$4 sm:$0xff]   ;;  %v7784_v51 = vld [vmem:[%s11190_s4 + $0x270] ss:$8 sps:$4 sm:$0xff]  }
  0x22   :  { %v7746_v49 = vld [vmem:[%s11191_s1 + $0x40] ss:$8 sps:$4 sm:$0xff]  }
  0x23   :  { %483 = vmatpush1.bf16.msra.mxu0 %v7647_v34  ;;  %v7753_v34 = vld [vmem:[%s11190_s4 + $0x54] ss:$8 sps:$4 sm:$0xff]  }
  0x24   :  { %2840 = vmatpush1.bf16.msra.mxu1 %v7648_v35  ;;  %484 = vmatprep.subr.bf16.mxu0 %v7649_v36  ;;  %v7762_v35 = vld [vmem:[%s11190_s4 + $0x254] ss:$8 sps:$4 sm:$0xff]   ;;  %v7751_v36 = vld [vmem:[%s11190_s4 + $0x50] ss:$8 sps:$4 sm:$0xff]  }
  0x25   :  { %2841 = vmatprep.subr.bf16.mxu1 %v7651_v37  ;;  %v7734_v37 = vld [vmem:[%s11191_s1 + $0x30] ss:$8 sps:$4 sm:$0xff]  }
  0x27   :  { %485 = vmatpush1.bf16.msra.mxu0 %v7653_v38  ;;  %v7735_v38 = vld [vmem:[%s11192_s2 + $0x30] ss:$8 sps:$4 sm:$0xff]  }
  0x28   :  { %2842 = vmatpush1.bf16.msra.mxu1 %v7654_v39  ;;  %486 = vmatprep.subr.bf16.mxu0 %v7655_v40  ;;  %v7760_v39 = vld [vmem:[%s11190_s4 + $0x250] ss:$8 sps:$4 sm:$0xff]   ;;  %v7765_v40 = vld [vmem:[%s11190_s4 + $0x64] ss:$8 sps:$4 sm:$0xff]  }
  0x29   :  { %2843 = vmatprep.subr.bf16.mxu1 %v7657_v41  ;;  %v7774_v41 = vld [vmem:[%s11190_s4 + $0x264] ss:$8 sps:$4 sm:$0xff]  }
  0x2b   :  { %487 = vmatpush1.bf16.msra.mxu0 %v7659_v42  ;;  %v7742_v42 = vld [vmem:[%s11191_s1 + $0x44] ss:$8 sps:$4 sm:$0xff]  }
  0x2c   :  { %2844 = vmatpush1.bf16.msra.mxu1 %v7660_v43  ;;  %488 = vmatprep.subr.bf16.mxu0 %v7661_v44  ;;  %v7744_v43 = vld [vmem:[%s11192_s2 + $0x44] ss:$8 sps:$4 sm:$0xff]   ;;  %v7763_v44 = vld [vmem:[%s11190_s4 + $0x60] ss:$8 sps:$4 sm:$0xff]  }
  0x2d   :  { %2845 = vmatprep.subr.bf16.mxu1 %v7663_v45  ;;  %v7772_v45 = vld [vmem:[%s11190_s4 + $0x260] ss:$8 sps:$4 sm:$0xff]  }
  0x2f   :  { %489 = vmatpush1.bf16.msra.mxu0 %v7665_v46  ;;  %v7777_v46 = vld [vmem:[%s11190_s4 + $0x74] ss:$8 sps:$4 sm:$0xff]  }
  0x30   :  { %2846 = vmatpush1.bf16.msra.mxu1 %v7666_v47  ;;  %490 = vmatprep.subr.bf16.mxu0 %v7667_v48  ;;  %v7786_v47 = vld [vmem:[%s11190_s4 + $0x274] ss:$8 sps:$4 sm:$0xff]   ;;  %v7775_v48 = vld [vmem:[%s11190_s4 + $0x70] ss:$8 sps:$4 sm:$0xff]  }
  0x31   :  { %2847 = vmatprep.subr.bf16.mxu1 %v7669_v50  ;;  %v7747_v50 = vld [vmem:[%s11192_s2 + $0x40] ss:$8 sps:$4 sm:$0xff]  }
  0x33   :  { %491 = vmatpush1.bf16.msra.mxu0 %v7671_v52  ;;  %v7754_v52 = vld [vmem:[%s11191_s1 + $0x54] ss:$8 sps:$4 sm:$0xff]  }
  0x34   :  { %2848 = vmatpush1.bf16.msra.mxu1 %v7672_v53  ;;  %492 = vmatprep.subr.bf16.mxu0 %v7673_v54  ;;  %v7789_v53 = vld [vmem:[%s11190_s4 + $0x84] ss:$8 sps:$4 sm:$0xff]  }
  0x35   :  { %2849 = vmatprep.subr.bf16.mxu1 %v7675_v55  ;;  %v7798_v54 = vld [vmem:[%s11190_s4 + $0x284] ss:$8 sps:$4 sm:$0xff]   ;;  %v7756_v55 = vld [vmem:[%s11192_s2 + $0x54] ss:$8 sps:$4 sm:$0xff]  }
  0x37   :  { %493 = vmatpush1.bf16.msra.mxu0 %v7677_v56  ;;  %v7787_v56 = vld [vmem:[%s11190_s4 + $0x80] ss:$8 sps:$4 sm:$0xff]  }
  0x38   :  { %2850 = vmatpush1.bf16.msra.mxu1 %v7678_v57  ;;  %494 = vmatprep.subr.bf16.mxu0 %v7679_v58  ;;  %v7796_v57 = vld [vmem:[%s11190_s4 + $0x280] ss:$8 sps:$4 sm:$0xff]   ;;  %v7801_v58 = vld [vmem:[%s11190_s4 + $0x94] ss:$8 sps:$4 sm:$0xff]  }
  0x39   :  { %2851 = vmatprep.subr.bf16.mxu1 %v7681_v59  ;;  %v7810_v59 = vld [vmem:[%s11190_s4 + $0x294] ss:$8 sps:$4 sm:$0xff]  }
  0x3b   :  { %495 = vmatpush1.bf16.msra.mxu0 %v7683_v60  ;;  %v7799_v60 = vld [vmem:[%s11190_s4 + $0x90] ss:$8 sps:$4 sm:$0xff]  }
  0x3c   :  { %2852 = vmatpush1.bf16.msra.mxu1 %v7684_v61  ;;  %496 = vmatprep.subr.bf16.mxu0 %v7685_v62  ;;  %v7758_v61 = vld [vmem:[%s11191_s1 + $0x50] ss:$8 sps:$4 sm:$0xff]  }
  0x3d   :  { %2853 = vmatprep.subr.bf16.mxu1 %v7687_v63  ;;  %v7759_v62 = vld [vmem:[%s11192_s2 + $0x50] ss:$8 sps:$4 sm:$0xff]  }
  0x3e   :  { %v7808_v63 = vld [vmem:[%s11190_s4 + $0x290] ss:$8 sps:$4 sm:$0xff]  }
  0x3f   :  { %497 = vmatpush1.bf16.msra.mxu0 %v7689_v0  ;;  %v7813_v0 = vld [vmem:[%s11190_s4 + $0xa4] ss:$8 sps:$4 sm:$0xff]  }
  0x40   :  { %2854 = vmatpush1.bf16.msra.mxu1 %v7690_v1  ;;  %959 = vmatprep.subr.bf16.mxu0 %v7699_v2  ;;  %v7822_v1 = vld [vmem:[%s11190_s4 + $0x2a4] ss:$8 sps:$4 sm:$0xff]  }
  0x41   :  { %3331 = vmatprep.subr.bf16.mxu1 %v7702_v4  ;;  %v7766_v2 = vld [vmem:[%s11191_s1 + $0x64] ss:$8 sps:$4 sm:$0xff]   ;;  %v7811_v4 = vld [vmem:[%s11190_s4 + $0xa0] ss:$8 sps:$4 sm:$0xff]  }
  0x42   :  { %499 = vmatmul.mubr.bf16.vlgmr.msra.gmra.mrb[0].mxu0 %v7691_v3  ;;  %v7768_v3 = vld [vmem:[%s11192_s2 + $0x64] ss:$8 sps:$4 sm:$0xff]  }
  0x43   :  { %2856 = vmatmul.mubr.bf16.vlgmr.msra.gmra.mrb[0].mxu1 %v7694_v5  ;;  %960 = vmatpush1.bf16.msra.mxu0 %v7697_v6  ;;  %v7820_v5 = vld [vmem:[%s11190_s4 + $0x2a0] ss:$8 sps:$4 sm:$0xff]   ;;  %v7825_v6 = vld [vmem:[%s11190_s4 + $0xb4] ss:$8 sps:$4 sm:$0xff]  }
  0x44   :  { %3332 = vmatpush1.bf16.msra.mxu1 %v7700_v7  ;;  %508 = vmatprep.mubr.bf16.mxu0 %v7703_v8  ;;  %v7834_v7 = vld [vmem:[%s11190_s4 + $0x2b4] ss:$8 sps:$4 sm:$0xff]   ;;  %v7823_v8 = vld [vmem:[%s11190_s4 + $0xb0] ss:$8 sps:$4 sm:$0xff]  }
  0x45   :  { %2865 = vmatprep.mubr.bf16.mxu1 %v7705_v9  ;;  %961 = vmatprep.subr.bf16.mxu0 %v7710_v10  ;;  %v7770_v9 = vld [vmem:[%s11191_s1 + $0x60] ss:$8 sps:$4 sm:$0xff]  }
  0x46   :  { %3333 = vmatprep.subr.bf16.mxu1 %v7714_v11  ;;  %v7771_v10 = vld [vmem:[%s11192_s2 + $0x60] ss:$8 sps:$4 sm:$0xff]   ;;  %v7832_v11 = vld [vmem:[%s11190_s4 + $0x2b0] ss:$8 sps:$4 sm:$0xff]  }
  0x47   :  { %962 = vmatpush1.bf16.msra.mxu0 %v7708_v12  ;;  %v7778_v12 = vld [vmem:[%s11191_s1 + $0x74] ss:$8 sps:$4 sm:$0xff]  }
  0x48   :  { %3334 = vmatpush1.bf16.msra.mxu1 %v7712_v13  ;;  %963 = vmatprep.subr.bf16.mxu0 %v7719_v14  ;;  %v7837_v13 = vld [vmem:[%s11190_s4 + $0xc4] ss:$8 sps:$4 sm:$0xff]   ;;  %v7780_v14 = vld [vmem:[%s11192_s2 + $0x74] ss:$8 sps:$4 sm:$0xff]  }
  0x49   :  { %3335 = vmatprep.subr.bf16.mxu1 %v7726_v15  ;;  %v7846_v15 = vld [vmem:[%s11190_s4 + $0x2c4] ss:$8 sps:$4 sm:$0xff]  }
  0x4a   :  { %509 = vmatmul.mubr.bf16.gmra.mrb[4].mxu0 %v7707_v16  ;;  %v7835_v16 = vld [vmem:[%s11190_s4 + $0xc0] ss:$8 sps:$4 sm:$0xff]  }
  0x4b   :  { %2866 = vmatmul.mubr.bf16.gmra.mrb[4].mxu1 %v7711_v17  ;;  %518 = vmatprep.mubr.bf16.mxu0 %v7715_v18  ;;  %v7844_v17 = vld [vmem:[%s11190_s4 + $0x2c0] ss:$8 sps:$4 sm:$0xff]   ;;  %v7849_v18 = vld [vmem:[%s11190_s4 + $0xd4] ss:$8 sps:$4 sm:$0xff]  }
  0x4c   :  { %2875 = vmatprep.mubr.bf16.mxu1 %v7720_v20  ;;  %964 = vmatpush1.bf16.msra.mxu0 %v7717_v19  ;;  %v7847_v19 = vld [vmem:[%s11190_s4 + $0xd0] ss:$8 sps:$4 sm:$0xff]  }
  0x4d   :  { %3336 = vmatpush1.bf16.msra.mxu1 %v7724_v21  ;;  %965 = vmatprep.subr.bf16.mxu0 %v7731_v22  ;;  %v7856_v20 = vld [vmem:[%s11190_s4 + $0x2d0] ss:$8 sps:$4 sm:$0xff]   ;;  %v7858_v21 = vld [vmem:[%s11190_s4 + $0x2d4] ss:$8 sps:$4 sm:$0xff]  }
  0x4e   :  { %3337 = vmatprep.subr.bf16.mxu1 %v7738_v23  ;;  %v7782_v22 = vld [vmem:[%s11191_s1 + $0x70] ss:$8 sps:$4 sm:$0xff]   ;;  %v7861_v23 = vld [vmem:[%s11190_s4 + $0xe4] ss:$8 sps:$4 sm:$0xff]  }
  0x50   :  { %966 = vmatpush1.bf16.msra.mxu0 %v7729_v24  ;;  %v7783_v24 = vld [vmem:[%s11192_s2 + $0x70] ss:$8 sps:$4 sm:$0xff]  }
  0x51   :  { %3338 = vmatpush1.bf16.msra.mxu1 %v7736_v27  ;;  %967 = vmatprep.subr.bf16.mxu0 %v7741_v29  ;;  %v7859_v27 = vld [vmem:[%s11190_s4 + $0xe0] ss:$8 sps:$4 sm:$0xff]   ;;  %v7870_v29 = vld [vmem:[%s11190_s4 + $0x2e4] ss:$8 sps:$4 sm:$0xff]  }
  0x52   :  { %3339 = vmatprep.subr.bf16.mxu1 %v7750_v30  ;;  %519 = vmatmul.mubr.bf16.gmra.mrb[8].mxu0 %v7722_v25  ;;  %v7790_v25 = vld [vmem:[%s11191_s1 + $0x84] ss:$8 sps:$4 sm:$0xff]   ;;  %v7873_v30 = vld [vmem:[%s11190_s4 + $0xf4] ss:$8 sps:$4 sm:$0xff]  }
  0x53   :  { %2876 = vmatmul.mubr.bf16.gmra.mrb[8].mxu1 %v7723_v26  ;;  %528 = vmatprep.mubr.bf16.mxu0 %v7727_v28  ;;  %v7792_v26 = vld [vmem:[%s11192_s2 + $0x84] ss:$8 sps:$4 sm:$0xff]   ;;  %v7868_v28 = vld [vmem:[%s11190_s4 + $0x2e0] ss:$8 sps:$4 sm:$0xff]  }
  0x54   :  { %2885 = vmatprep.mubr.bf16.mxu1 %v7732_v31  ;;  %968 = vmatpush1.bf16.msra.mxu0 %v7739_v32  ;;  %v7794_v31 = vld [vmem:[%s11191_s1 + $0x80] ss:$8 sps:$4 sm:$0xff]  }
  0x55   :  { %3340 = vmatpush1.bf16.msra.mxu1 %v7748_v33  ;;  %969 = vmatprep.subr.bf16.mxu0 %v7753_v34  ;;  %v7795_v32 = vld [vmem:[%s11192_s2 + $0x80] ss:$8 sps:$4 sm:$0xff]   ;;  %v7871_v33 = vld [vmem:[%s11190_s4 + $0xf0] ss:$8 sps:$4 sm:$0xff]   ;;  %v7802_v34 = vld [vmem:[%s11191_s1 + $0x94] ss:$8 sps:$4 sm:$0xff]  }
  0x56   :  { %3341 = vmatprep.subr.bf16.mxu1 %v7762_v35  ;;  %v7880_v35 = vld [vmem:[%s11190_s4 + $0x304] ss:$8 sps:$4 sm:$0xff]  }
  0x58   :  { %970 = vmatpush1.bf16.msra.mxu0 %v7751_v36  ;;  %v7804_v36 = vld [vmem:[%s11192_s2 + $0x94] ss:$8 sps:$4 sm:$0xff]  }
  0x59   :  { %3342 = vmatpush1.bf16.msra.mxu1 %v7760_v39  ;;  %971 = vmatprep.subr.bf16.mxu0 %v7765_v40  ;;  %v7893_v39 = vld [vmem:[%s11190_s4 + $0x704] ss:$8 sps:$4 sm:$0xff]   ;;  %v7806_v40 = vld [vmem:[%s11191_s1 + $0x90] ss:$8 sps:$4 sm:$0xff]  }
  0x5a   :  { %3343 = vmatprep.subr.bf16.mxu1 %v7774_v41  ;;  %529 = vmatmul.mubr.bf16.gmra.mrb[12].mxu0 %v7734_v37  ;;  %v7884_v37 = vld [vmem:[%s11190_s4 + $0x2f4] ss:$8 sps:$4 sm:$0xff]   ;;  %v7807_v41 = vld [vmem:[%s11192_s2 + $0x90] ss:$8 sps:$4 sm:$0xff]  }
  0x5b   :  { %2886 = vmatmul.mubr.bf16.gmra.mrb[12].mxu1 %v7735_v38  ;;  %538 = vmatprep.mubr.bf16.mxu0 %v7742_v42  ;;  %v7882_v38 = vld [vmem:[%s11190_s4 + $0x2f0] ss:$8 sps:$4 sm:$0xff]   ;;  %v7814_v42 = vld [vmem:[%s11191_s1 + $0xa4] ss:$8 sps:$4 sm:$0xff]  }
  0x5c   :  { %2895 = vmatprep.mubr.bf16.mxu1 %v7744_v43  ;;  %972 = vmatpush1.bf16.msra.mxu0 %v7763_v44  ;;  %v7816_v43 = vld [vmem:[%s11192_s2 + $0xa4] ss:$8 sps:$4 sm:$0xff]   ;;  %v7818_v44 = vld [vmem:[%s11191_s1 + $0xa0] ss:$8 sps:$4 sm:$0xff]  }
  0x5d   :  { %3344 = vmatpush1.bf16.msra.mxu1 %v7772_v45  ;;  %973 = vmatprep.subr.bf16.mxu0 %v7777_v46  ;;  %v7819_v45 = vld [vmem:[%s11192_s2 + $0xa0] ss:$8 sps:$4 sm:$0xff]   ;;  %v7826_v46 = vld [vmem:[%s11191_s1 + $0xb4] ss:$8 sps:$4 sm:$0xff]  }
  0x5e   :  { %3345 = vmatprep.subr.bf16.mxu1 %v7786_v47  ;;  %v7828_v47 = vld [vmem:[%s11192_s2 + $0xb4] ss:$8 sps:$4 sm:$0xff]  }
  0x60   :  { %974 = vmatpush1.bf16.msra.mxu0 %v7775_v48  ;;  %v7830_v48 = vld [vmem:[%s11191_s1 + $0xb0] ss:$8 sps:$4 sm:$0xff]  }
  0x61   :  { %3346 = vmatpush1.bf16.msra.mxu1 %v7784_v51  ;;  %975 = vmatprep.subr.bf16.mxu0 %v7789_v53  ;;  %v7840_v51 = vld [vmem:[%s11192_s2 + $0xc4] ss:$8 sps:$4 sm:$0xff]   ;;  %v7843_v53 = vld [vmem:[%s11192_s2 + $0xc0] ss:$8 sps:$4 sm:$0xff]  }
  0x62   :  { %3347 = vmatprep.subr.bf16.mxu1 %v7798_v54  ;;  %539 = vmatmul.mubr.bf16.gmra.mrb[16].mxu0 %v7746_v49  ;;  %v7831_v49 = vld [vmem:[%s11192_s2 + $0xb0] ss:$8 sps:$4 sm:$0xff]   ;;  %v7850_v54 = vld [vmem:[%s11191_s1 + $0xd4] ss:$8 sps:$4 sm:$0xff]  }
  0x63   :  { %2896 = vmatmul.mubr.bf16.gmra.mrb[16].mxu1 %v7747_v50  ;;  %548 = vmatprep.mubr.bf16.mxu0 %v7754_v52  ;;  %v7838_v50 = vld [vmem:[%s11191_s1 + $0xc4] ss:$8 sps:$4 sm:$0xff]   ;;  %v7842_v52 = vld [vmem:[%s11191_s1 + $0xc0] ss:$8 sps:$4 sm:$0xff]  }
  0x64   :  { %2905 = vmatprep.mubr.bf16.mxu1 %v7756_v55  ;;  %976 = vmatpush1.bf16.msra.mxu0 %v7787_v56  ;;  %v7852_v55 = vld [vmem:[%s11192_s2 + $0xd4] ss:$8 sps:$4 sm:$0xff]   ;;  %v7854_v56 = vld [vmem:[%s11191_s1 + $0xd0] ss:$8 sps:$4 sm:$0xff]  }
  0x65   :  { %3348 = vmatpush1.bf16.msra.mxu1 %v7796_v57  ;;  %977 = vmatprep.subr.bf16.mxu0 %v7801_v58  ;;  %v7855_v57 = vld [vmem:[%s11192_s2 + $0xd0] ss:$8 sps:$4 sm:$0xff]   ;;  %v7862_v58 = vld [vmem:[%s11191_s1 + $0xe4] ss:$8 sps:$4 sm:$0xff]  }
  0x66   :  { %3349 = vmatprep.subr.bf16.mxu1 %v7810_v59  ;;  %v7864_v59 = vld [vmem:[%s11192_s2 + $0xe4] ss:$8 sps:$4 sm:$0xff]  }
  0x68   :  { %978 = vmatpush1.bf16.msra.mxu0 %v7799_v60  ;;  %v2472_v60 = vld [vmem:[%s11192_s2 + $0xf0] sm:$0x11] }
  0x69   :  { %3350 = vmatpush1.bf16.msra.mxu1 %v7808_v63  ;;  %979 = vmatprep.subr.bf16.mxu0 %v7813_v0  ;;  %v7876_v63 = vld [vmem:[%s11193_s0 + $0x4] ss:$8 sps:$4 sm:$0xff]   ;;  %v6840_v0 = vcombine.high %v2472_v60, %v2472_v60 }
  0x6a   :  { %3351 = vmatprep.subr.bf16.mxu1 %v7822_v1  ;;  %549 = vmatmul.mubr.bf16.gmra.mrb[20].mxu0 %v7758_v61  ;;  %v7866_v61 = vld [vmem:[%s11191_s1 + $0xe0] ss:$8 sps:$4 sm:$0xff]  }
  0x6b   :  { %2906 = vmatmul.mubr.bf16.gmra.mrb[20].mxu1 %v7759_v62  ;;  %558 = vmatprep.mubr.bf16.mxu0 %v7766_v2  ;;  %v7867_v62 = vld [vmem:[%s11192_s2 + $0xe0] ss:$8 sps:$4 sm:$0xff]  }
  0x6c   :  { %2915 = vmatprep.mubr.bf16.mxu1 %v7768_v3  ;;  %980 = vmatpush1.bf16.msra.mxu0 %v7811_v4  ;;  %v7874_v1 = vld [vmem:[%s11193_s0] ss:$8 sps:$4 sm:$0xff]   ;;  %v6839_v3 = vcombine.low %v2472_v60, %v2472_v60  ;;  %v7885_v4 = vld [vmem:[%s11193_s0 + $0x14] ss:$8 sps:$4 sm:$0xff]  }
  0x6d   :  { %3352 = vmatpush1.bf16.msra.mxu1 %v7820_v5  ;;  %981 = vmatprep.subr.bf16.mxu0 %v7825_v6  ;;  %v7878_v2 = vld [vmem:[%s11190_s4 + $0x300] ss:$8 sps:$4 sm:$0xff]   ;;  %v7890_v5 = vld [vmem:[%s11190_s4 + $0x314] ss:$8 sps:$4 sm:$0xff]   ;;  %v7888_v6 = vld [vmem:[%s11190_s4 + $0x310] ss:$8 sps:$4 sm:$0xff]  }
  0x6e   :  { %3353 = vmatprep.subr.bf16.mxu1 %v7834_v7  ;;  %v7898_v7 = vld [vmem:[%s11190_s4 + $0x324] ss:$8 sps:$4 sm:$0xff]   ;;  %v7981_v60 = vld [vmem:[%s11190_s4 + $0x7a0] ss:$8 sps:$4 sm:$0xff]  }
  0x70   :  { %982 = vmatpush1.bf16.msra.mxu0 %v7823_v8  ;;  %v7887_v8 = vld [vmem:[%s11193_s0 + $0x10] ss:$8 sps:$4 sm:$0xff]  }
  0x71   :  { %3354 = vmatpush1.bf16.msra.mxu1 %v7832_v11  ;;  %983 = vmatprep.subr.bf16.mxu0 %v7837_v13  ;;  %v7896_v11 = vld [vmem:[%s11190_s4 + $0x320] ss:$8 sps:$4 sm:$0xff]   ;;  %v7907_v13 = vld [vmem:[%s11190_s4 + $0x334] ss:$8 sps:$4 sm:$0xff]  }
  0x72   :  { %3355 = vmatprep.subr.bf16.mxu1 %v7846_v15  ;;  %559 = vmatmul.mubr.bf16.gmra.mrb[24].mxu0 %v7770_v9  ;;  %v7891_v9 = vld [vmem:[%s11190_s4 + $0x700] ss:$8 sps:$4 sm:$0xff]   ;;  %v7905_v15 = vld [vmem:[%s11190_s4 + $0x330] ss:$8 sps:$4 sm:$0xff]  }
  0x73   :  { %2916 = vmatmul.mubr.bf16.gmra.mrb[24].mxu1 %v7771_v10  ;;  %568 = vmatprep.mubr.bf16.mxu0 %v7778_v12  ;;  %v7894_v10 = vld [vmem:[%s11193_s0 + $0x24] ss:$8 sps:$4 sm:$0xff]   ;;  %v7902_v12 = vld [vmem:[%s11190_s4 + $0x714] ss:$8 sps:$4 sm:$0xff]  }
  0x74   :  { %2925 = vmatprep.mubr.bf16.mxu1 %v7780_v14  ;;  %984 = vmatpush1.bf16.msra.mxu0 %v7835_v16  ;;  %v7900_v14 = vld [vmem:[%s11190_s4 + $0x710] ss:$8 sps:$4 sm:$0xff]   ;;  %v7911_v16 = vld [vmem:[%s11190_s4 + $0x724] ss:$8 sps:$4 sm:$0xff]  }
  0x75   :  { %3356 = vmatpush1.bf16.msra.mxu1 %v7844_v17  ;;  %985 = vmatprep.subr.bf16.mxu0 %v7849_v18  ;;  %v7914_v17 = vld [vmem:[%s11190_s4 + $0x344] ss:$8 sps:$4 sm:$0xff]   ;;  %v7899_v18 = vld [vmem:[%s11193_s0 + $0x20] ss:$8 sps:$4 sm:$0xff]  }
  0x76   :  { %3357 = vmatprep.subr.bf16.mxu1 %v7858_v21  ;;  %v7912_v21 = vld [vmem:[%s11190_s4 + $0x340] ss:$8 sps:$4 sm:$0xff]  }
  0x78   :  { %986 = vmatpush1.bf16.msra.mxu0 %v7847_v19  ;;  %v7903_v19 = vld [vmem:[%s11193_s0 + $0x34] ss:$8 sps:$4 sm:$0xff]  }
  0x79   :  { %3358 = vmatpush1.bf16.msra.mxu1 %v7856_v20  ;;  %987 = vmatprep.subr.bf16.mxu0 %v7861_v23  ;;  %v7909_v20 = vld [vmem:[%s11190_s4 + $0x720] ss:$8 sps:$4 sm:$0xff]   ;;  %v7923_v23 = vld [vmem:[%s11190_s4 + $0x354] ss:$8 sps:$4 sm:$0xff]  }
  0x7a   :  { %569 = vmatmul.mubr.bf16.gmra.mrb[28].mxu0 %v7782_v22  ;;  %3359 = vmatprep.subr.bf16.mxu1 %v7870_v29  ;;  %v7920_v22 = vld [vmem:[%s11190_s4 + $0x734] ss:$8 sps:$4 sm:$0xff]   ;;  %v7932_v29 = vld [vmem:[%s11190_s4 + $0x364] ss:$8 sps:$4 sm:$0xff]  }
  0x7b   :  { %2926 = vmatmul.mubr.bf16.gmra.mrb[28].mxu1 %v7783_v24  ;;  %578 = vmatprep.mubr.bf16.mxu0 %v7790_v25  ;;  %v7918_v24 = vld [vmem:[%s11190_s4 + $0x730] ss:$8 sps:$4 sm:$0xff]  }
  0x7c   :  { %2935 = vmatprep.mubr.bf16.mxu1 %v7792_v26  ;;  %988 = vmatpush1.bf16.msra.mxu0 %v7859_v27  ;;  %v7908_v25 = vld [vmem:[%s11193_s0 + $0x30] ss:$8 sps:$4 sm:$0xff]   ;;  %v7929_v27 = vld [vmem:[%s11190_s4 + $0x744] ss:$8 sps:$4 sm:$0xff]  }
  0x7d   :  { %989 = vmatprep.subr.bf16.mxu0 %v7873_v30  ;;  %3360 = vmatpush1.bf16.msra.mxu1 %v7868_v28  ;;  %v7921_v26 = vld [vmem:[%s11190_s4 + $0x350] ss:$8 sps:$4 sm:$0xff]   ;;  %v7915_v28 = vld [vmem:[%s11193_s0 + $0x44] ss:$8 sps:$4 sm:$0xff]   ;;  %v7927_v30 = vld [vmem:[%s11190_s4 + $0x740] ss:$8 sps:$4 sm:$0xff]  }
  0x7e   :  { %3361 = vmatprep.subr.bf16.mxu1 %v7884_v37  ;;  %v7947_v37 = vld [vmem:[%s11190_s4 + $0x764] ss:$8 sps:$4 sm:$0xff]  }
  0x80   :  { %990 = vmatpush1.bf16.msra.mxu0 %v7871_v33  ;;  %v7941_v33 = vld [vmem:[%s11190_s4 + $0x374] ss:$8 sps:$4 sm:$0xff]  }
  0x81   :  { %1517 = vmatprep.subr.bf16.mxu0 %v7880_v35  ;;  %3362 = vmatpush1.bf16.msra.mxu1 %v7882_v38  ;;  %v7939_v35 = vld [vmem:[%s11190_s4 + $0x370] ss:$8 sps:$4 sm:$0xff]   ;;  %v7950_v38 = vld [vmem:[%s11190_s4 + $0x384] ss:$8 sps:$4 sm:$0xff]  }
  0x82   :  { %579 = vmatmul.mubr.bf16.gmra.mrb[32].mxu0 %v7794_v31  ;;  %4277 = vmatprep.subr.bf16.mxu1 %v7893_v39  ;;  %v7930_v31 = vld [vmem:[%s11190_s4 + $0x360] ss:$8 sps:$4 sm:$0xff]   ;;  %v7924_v39 = vld [vmem:[%s11193_s0 + $0x54] ss:$8 sps:$4 sm:$0xff]  }
  0x83   :  { %2936 = vmatmul.mubr.bf16.gmra.mrb[32].mxu1 %v7795_v32  ;;  %588 = vmatprep.mubr.bf16.mxu0 %v7802_v34  ;;  %v7938_v32 = vld [vmem:[%s11190_s4 + $0x754] ss:$8 sps:$4 sm:$0xff]   ;;  %v7936_v34 = vld [vmem:[%s11190_s4 + $0x750] ss:$8 sps:$4 sm:$0xff]  }
  0x84   :  { %2945 = vmatprep.mubr.bf16.mxu1 %v7804_v36  ;;  %v7917_v36 = vld [vmem:[%s11193_s0 + $0x40] ss:$8 sps:$4 sm:$0xff]  }
  0x8a   :  { %589 = vmatmul.mubr.bf16.gmra.mrb[36].mxu0 %v7806_v40  ;;  %v7945_v40 = vld [vmem:[%s11190_s4 + $0x760] ss:$8 sps:$4 sm:$0xff]  }
  0x8b   :  { %2946 = vmatmul.mubr.bf16.gmra.mrb[36].mxu1 %v7807_v41  ;;  %598 = vmatprep.mubr.bf16.mxu0 %v7814_v42  ;;  %v7948_v41 = vld [vmem:[%s11190_s4 + $0x380] ss:$8 sps:$4 sm:$0xff]   ;;  %v7956_v42 = vld [vmem:[%s11190_s4 + $0x774] ss:$8 sps:$4 sm:$0xff]  }
  0x8c   :  { %2955 = vmatprep.mubr.bf16.mxu1 %v7816_v43  ;;  %v7959_v43 = vld [vmem:[%s11190_s4 + $0x394] ss:$8 sps:$4 sm:$0xff]  }
  0x92   :  { %599 = vmatmul.mubr.bf16.gmra.mrb[40].mxu0 %v7818_v44  ;;  %v7954_v44 = vld [vmem:[%s11190_s4 + $0x770] ss:$8 sps:$4 sm:$0xff]  }
  0x93   :  { %2956 = vmatmul.mubr.bf16.gmra.mrb[40].mxu1 %v7819_v45  ;;  %608 = vmatprep.mubr.bf16.mxu0 %v7826_v46  ;;  %v7957_v45 = vld [vmem:[%s11190_s4 + $0x390] ss:$8 sps:$4 sm:$0xff]   ;;  %v7965_v46 = vld [vmem:[%s11190_s4 + $0x784] ss:$8 sps:$4 sm:$0xff]  }
  0x94   :  { %2965 = vmatprep.mubr.bf16.mxu1 %v7828_v47  ;;  %v7926_v47 = vld [vmem:[%s11193_s0 + $0x50] ss:$8 sps:$4 sm:$0xff]  }
  0x9a   :  { %609 = vmatmul.mubr.bf16.gmra.mrb[44].mxu0 %v7830_v48  ;;  %v7968_v48 = vld [vmem:[%s11190_s4 + $0x3a4] ss:$8 sps:$4 sm:$0xff]  }
  0x9b   :  { %2966 = vmatmul.mubr.bf16.gmra.mrb[44].mxu1 %v7831_v49  ;;  %618 = vmatprep.mubr.bf16.mxu0 %v7838_v50  ;;  %v7933_v49 = vld [vmem:[%s11193_s0 + $0x64] ss:$8 sps:$4 sm:$0xff]   ;;  %v7963_v50 = vld [vmem:[%s11190_s4 + $0x780] ss:$8 sps:$4 sm:$0xff]  }
  0x9c   :  { %2975 = vmatprep.mubr.bf16.mxu1 %v7840_v51  ;;  %v7966_v51 = vld [vmem:[%s11190_s4 + $0x3a0] ss:$8 sps:$4 sm:$0xff]  }
  0xa2   :  { %619 = vmatmul.mubr.bf16.gmra.mrb[48].mxu0 %v7842_v52  ;;  %v7974_v52 = vld [vmem:[%s11190_s4 + $0x794] ss:$8 sps:$4 sm:$0xff]  }
  0xa3   :  { %2976 = vmatmul.mubr.bf16.gmra.mrb[48].mxu1 %v7843_v53  ;;  %628 = vmatprep.mubr.bf16.mxu0 %v7850_v54  ;;  %v7977_v53 = vld [vmem:[%s11190_s4 + $0x3b4] ss:$8 sps:$4 sm:$0xff]   ;;  %v7972_v54 = vld [vmem:[%s11190_s4 + $0x790] ss:$8 sps:$4 sm:$0xff]  }
  0xa4   :  { %2985 = vmatprep.mubr.bf16.mxu1 %v7852_v55  ;;  %v7975_v55 = vld [vmem:[%s11190_s4 + $0x3b0] ss:$8 sps:$4 sm:$0xff]  }
  0xaa   :  { %629 = vmatmul.mubr.bf16.gmra.mrb[52].mxu0 %v7854_v56  ;;  %v7983_v56 = vld [vmem:[%s11190_s4 + $0x7a4] ss:$8 sps:$4 sm:$0xff]  }
  0xab   :  { %2986 = vmatmul.mubr.bf16.gmra.mrb[52].mxu1 %v7855_v57  ;;  %638 = vmatprep.mubr.bf16.mxu0 %v7862_v58  ;;  %v7935_v57 = vld [vmem:[%s11193_s0 + $0x60] ss:$8 sps:$4 sm:$0xff]   ;;  %v7986_v58 = vld [vmem:[%s11190_s4 + $0x3c4] ss:$8 sps:$4 sm:$0xff]  }
  0xac   :  { %2995 = vmatprep.mubr.bf16.mxu1 %v7864_v59  ;;  %v7942_v59 = vld [vmem:[%s11193_s0 + $0x74] ss:$8 sps:$4 sm:$0xff]  }
  0xb2   :  { %639 = vmatmul.mubr.bf16.gmra.mrb[56].mxu0 %v7866_v61  ;;  %v7984_v61 = vld [vmem:[%s11190_s4 + $0x3c0] ss:$8 sps:$4 sm:$0xff]  }
  0xb3   :  { %2996 = vmatmul.mubr.bf16.gmra.mrb[56].mxu1 %v7867_v62  ;;  %991 = vmatprep.mubr.bf16.mxu0 %v7876_v63  ;;  %v7992_v62 = vld [vmem:[%s11190_s4 + $0x7b4] ss:$8 sps:$4 sm:$0xff]  }
  0xb4   :  { %3005 = vmatprep.mubr.bf16.mxu1 %v6840_v0  ;;  %v7990_v0 = vld [vmem:[%s11190_s4 + $0x7b0] ss:$8 sps:$4 sm:$0xff]  }
  0xba   :  { %992 = vmatmul.mubr.bf16.vlgmr.msra.gmra.mrb[0].mxu0 %v7874_v1 }
  0xbb   :  { %3006 = vmatmul.mubr.bf16.gmra.mrb[60].mxu1 %v6839_v3  ;;  %1518 = vmatpush1.bf16.msra.mxu0 %v7878_v2  ;;  %v8001_v2 = vld [vmem:[%s11190_s4 + $0x7c4] ss:$8 sps:$4 sm:$0xff]   ;;  %v7944_v3 = vld [vmem:[%s11193_s0 + $0x70] ss:$8 sps:$4 sm:$0xff]  }
  0xbc   :  { %1001 = vmatprep.mubr.bf16.mxu0 %v7885_v4  ;;  %3363 = vmatprep.mubr.bf16.mxu1 %v7876_v63  ;;  %v7995_v63 = vld [vmem:[%s11190_s4 + $0x3d4] ss:$8 sps:$4 sm:$0xff]  }
  0xbd   :  { %1519 = vmatprep.subr.bf16.mxu0 %v7890_v5  ;;  %v7951_v5 = vld [vmem:[%s11193_s0 + $0x84] ss:$8 sps:$4 sm:$0xff]  }
  0xbf   :  { %1520 = vmatpush1.bf16.msra.mxu0 %v7888_v6  ;;  %v7999_v6 = vld [vmem:[%s11190_s4 + $0x7c0] ss:$8 sps:$4 sm:$0xff]  }
  0xc0   :  { %1521 = vmatprep.subr.bf16.mxu0 %v7898_v7  ;;  %v8002_v7 = vld [vmem:[%s11190_s4 + $0x3e0] ss:$8 sps:$4 sm:$0xff]  }
  0xc2   :  { %1002 = vmatmul.mubr.bf16.gmra.mrb[4].mxu0 %v7887_v8 }
  0xc3   :  { %3364 = vmatmul.mubr.bf16.vlgmr.msra.gmra.mrb[0].mxu1 %v7874_v1  ;;  %1011 = vmatprep.mubr.bf16.mxu0 %v7894_v10  ;;  %v7993_v1 = vld [vmem:[%s11190_s4 + $0x3d0] ss:$8 sps:$4 sm:$0xff]  }
  0xc4   :  { %4278 = vmatpush1.bf16.msra.mxu1 %v7891_v9  ;;  %3373 = vmatprep.mubr.bf16.mxu1 %v7885_v4  ;;  %v8004_v4 = vld [vmem:[%s11190_s4 + $0x3e4] ss:$8 sps:$4 sm:$0xff]   ;;  %v8013_v9 = vld [vmem:[%s11190_s4 + $0x3f4] ss:$8 sps:$4 sm:$0xff]  }
  0xc5   :  { %1522 = vmatpush1.bf16.msra.mxu0 %v7896_v11  ;;  %4279 = vmatprep.subr.bf16.mxu1 %v7902_v12  ;;  %v8011_v11 = vld [vmem:[%s11190_s4 + $0x3f0] ss:$8 sps:$4 sm:$0xff]   ;;  %v8019_v12 = vld [vmem:[%s11190_s4 + $0x404] ss:$8 sps:$4 sm:$0xff]  }
  0xc6   :  { %1523 = vmatprep.subr.bf16.mxu0 %v7907_v13  ;;  %v7953_v13 = vld [vmem:[%s11193_s0 + $0x80] ss:$8 sps:$4 sm:$0xff]  }
  0xc8   :  { %4280 = vmatpush1.bf16.msra.mxu1 %v7900_v14  ;;  %v8022_v14 = vld [vmem:[%s11190_s4 + $0x7e4] ss:$8 sps:$4 sm:$0xff]  }
  0xc9   :  { %1524 = vmatpush1.bf16.msra.mxu0 %v7905_v15  ;;  %4281 = vmatprep.subr.bf16.mxu1 %v7911_v16  ;;  %v7960_v15 = vld [vmem:[%s11193_s0 + $0x94] ss:$8 sps:$4 sm:$0xff]   ;;  %v8020_v16 = vld [vmem:[%s11190_s4 + $0x7e0] ss:$8 sps:$4 sm:$0xff]  }
  0xca   :  { %1525 = vmatprep.subr.bf16.mxu0 %v7914_v17  ;;  %1012 = vmatmul.mubr.bf16.gmra.mrb[8].mxu0 %v7899_v18  ;;  %v8033_v17 = vld [vmem:[%s11190_s4 + $0x7f4] ss:$8 sps:$4 sm:$0xff]  }
  0xcb   :  { %3374 = vmatmul.mubr.bf16.gmra.mrb[4].mxu1 %v7887_v8  ;;  %1021 = vmatprep.mubr.bf16.mxu0 %v7903_v19  ;;  %v8010_v8 = vld [vmem:[%s11190_s4 + $0x7d4] ss:$8 sps:$4 sm:$0xff]  }
  0xcc   :  { %3383 = vmatprep.mubr.bf16.mxu1 %v7894_v10  ;;  %4282 = vmatpush1.bf16.msra.mxu1 %v7909_v20  ;;  %v8008_v10 = vld [vmem:[%s11190_s4 + $0x7d0] ss:$8 sps:$4 sm:$0xff]   ;;  %v8045_v20 = vld [vmem:[%s11190_s4 + $0x604] ss:$8 sps:$4 sm:$0xff]  }
  0xcd   :  { %1526 = vmatpush1.bf16.msra.mxu0 %v7912_v21  ;;  %4283 = vmatprep.subr.bf16.mxu1 %v7920_v22  ;;  %v7969_v21 = vld [vmem:[%s11193_s0 + $0xa4] ss:$8 sps:$4 sm:$0xff]   ;;  %v7971_v22 = vld [vmem:[%s11193_s0 + $0xa0] ss:$8 sps:$4 sm:$0xff]  }
  0xce   :  { %1527 = vmatprep.subr.bf16.mxu0 %v7923_v23  ;;  %v7978_v23 = vld [vmem:[%s11193_s0 + $0xb4] ss:$8 sps:$4 sm:$0xff]  }
  0xd0   :  { %4284 = vmatpush1.bf16.msra.mxu1 %v7918_v24  ;;  %v7980_v24 = vld [vmem:[%s11193_s0 + $0xb0] ss:$8 sps:$4 sm:$0xff]  }
  0xd1   :  { %1528 = vmatpush1.bf16.msra.mxu0 %v7921_v26  ;;  %4285 = vmatprep.subr.bf16.mxu1 %v7929_v27  ;;  %v7989_v26 = vld [vmem:[%s11193_s0 + $0xc0] ss:$8 sps:$4 sm:$0xff]   ;;  %v7996_v27 = vld [vmem:[%s11193_s0 + $0xd4] ss:$8 sps:$4 sm:$0xff]  }
  0xd2   :  { %1529 = vmatprep.subr.bf16.mxu0 %v7932_v29  ;;  %1022 = vmatmul.mubr.bf16.gmra.mrb[12].mxu0 %v7908_v25  ;;  %v8005_v29 = vld [vmem:[%s11193_s0 + $0xe4] ss:$8 sps:$4 sm:$0xff]  }
  0xd3   :  { %3384 = vmatmul.mubr.bf16.gmra.mrb[8].mxu1 %v7899_v18  ;;  %1031 = vmatprep.mubr.bf16.mxu0 %v7915_v28  ;;  %v8031_v18 = vld [vmem:[%s11190_s4 + $0x7f0] ss:$8 sps:$4 sm:$0xff]  }
  0xd4   :  { %3393 = vmatprep.mubr.bf16.mxu1 %v7903_v19  ;;  %4286 = vmatpush1.bf16.msra.mxu1 %v7927_v30  ;;  %v7962_v19 = vld [vmem:[%s11193_s0 + $0x90] ss:$8 sps:$4 sm:$0xff]   ;;  %v8007_v30 = vld [vmem:[%s11193_s0 + $0xe0] ss:$8 sps:$4 sm:$0xff]  }
  0xd5   :  { %1530 = vmatpush1.bf16.msra.mxu0 %v7930_v31  ;;  %4287 = vmatprep.subr.bf16.mxu1 %v7938_v32  ;;  %v8016_v31 = vld [vmem:[%s11192_s2 + $0x4] ss:$8 sps:$4 sm:$0xff]   ;;  %v2408_v32 = vld [vmem:[%s11193_s0 + $0xf0] sm:$0x11] }
  0xd6   :  { %1531 = vmatprep.subr.bf16.mxu0 %v7941_v33  ;;  %v8014_v33 = vld [vmem:[%s11192_s2] ss:$8 sps:$4 sm:$0xff]  }
  0xd8   :  { %4288 = vmatpush1.bf16.msra.mxu1 %v7936_v34  ;;  %v8017_v34 = vld [vmem:[%s11190_s4 + $0x400] ss:$8 sps:$4 sm:$0xff]  }
  0xd9   :  { %1532 = vmatpush1.bf16.msra.mxu0 %v7939_v35  ;;  %4289 = vmatprep.subr.bf16.mxu1 %v7947_v37  ;;  %v8023_v35 = vld [vmem:[%s11192_s2 + $0x14] ss:$8 sps:$4 sm:$0xff]  }
  0xda   :  { %1533 = vmatprep.subr.bf16.mxu0 %v7950_v38  ;;  %1032 = vmatmul.mubr.bf16.gmra.mrb[16].mxu0 %v7917_v36  ;;  %v8029_v37 = vld [vmem:[%s11190_s4 + $0x414] ss:$8 sps:$4 sm:$0xff]   ;;  %v8027_v38 = vld [vmem:[%s11190_s4 + $0x410] ss:$8 sps:$4 sm:$0xff]  }
  0xdb   :  { %3394 = vmatmul.mubr.bf16.gmra.mrb[12].mxu1 %v7908_v25  ;;  %1041 = vmatprep.mubr.bf16.mxu0 %v7924_v39  ;;  %v7987_v25 = vld [vmem:[%s11193_s0 + $0xc4] ss:$8 sps:$4 sm:$0xff]  }
  0xdc   :  { %3403 = vmatprep.mubr.bf16.mxu1 %v7915_v28  ;;  %4290 = vmatpush1.bf16.msra.mxu1 %v7945_v40  ;;  %v7998_v28 = vld [vmem:[%s11193_s0 + $0xd0] ss:$8 sps:$4 sm:$0xff]  }
  0xdd   :  { %1534 = vmatpush1.bf16.msra.mxu0 %v7948_v41  ;;  %4291 = vmatprep.subr.bf16.mxu1 %v7956_v42  ;;  %v8026_v40 = vld [vmem:[%s11192_s2 + $0x10] ss:$8 sps:$4 sm:$0xff]   ;;  %v6903_v41 = vcombine.low %v2408_v32, %v2408_v32  ;;  %v8034_v42 = vld [vmem:[%s11192_s2 + $0x24] ss:$8 sps:$4 sm:$0xff]  }
  0xde   :  { %1535 = vmatprep.subr.bf16.mxu0 %v7959_v43  ;;  %v8041_v43 = vld [vmem:[%s11191_s1 + $0x4] ss:$8 sps:$4 sm:$0xff]  }
  0xe0   :  { %4292 = vmatpush1.bf16.msra.mxu1 %v7954_v44  ;;  %v8036_v44 = vld [vmem:[%s11190_s4 + $0x420] ss:$8 sps:$4 sm:$0xff]  }
  0xe1   :  { %1536 = vmatpush1.bf16.msra.mxu0 %v7957_v45  ;;  %4293 = vmatprep.subr.bf16.mxu1 %v7965_v46  ;;  %v8050_v45 = vld [vmem:[%s11190_s4 + $0x434] ss:$8 sps:$4 sm:$0xff]   ;;  %v8048_v46 = vld [vmem:[%s11190_s4 + $0x430] ss:$8 sps:$4 sm:$0xff]  }
  0xe2   :  { %1537 = vmatprep.subr.bf16.mxu0 %v7968_v48  ;;  %1042 = vmatmul.mubr.bf16.gmra.mrb[20].mxu0 %v7926_v47  ;;  %v8039_v48 = vld [vmem:[%s11191_s1] ss:$8 sps:$4 sm:$0xff]  }
  0xe3   :  { %3404 = vmatmul.mubr.bf16.gmra.mrb[16].mxu1 %v7917_v36  ;;  %1051 = vmatprep.mubr.bf16.mxu0 %v7933_v49  ;;  %v6904_v36 = vcombine.high %v2408_v32, %v2408_v32  ;;  %v8090_v32 = vld [vmem:[%s11191_s1 + $0x40] ss:$8 sps:$4 sm:$0xff]  }
  0xe4   :  { %3413 = vmatprep.mubr.bf16.mxu1 %v7924_v39  ;;  %4294 = vmatpush1.bf16.msra.mxu1 %v7963_v50  ;;  %v8038_v39 = vld [vmem:[%s11190_s4 + $0x424] ss:$8 sps:$4 sm:$0xff]   ;;  %v8043_v50 = vld [vmem:[%s11190_s4 + $0x600] ss:$8 sps:$4 sm:$0xff]  }
  0xe5   :  { %1538 = vmatpush1.bf16.msra.mxu0 %v7966_v51  ;;  %4295 = vmatprep.subr.bf16.mxu1 %v7974_v52  ;;  %v8046_v51 = vld [vmem:[%s11192_s2 + $0x34] ss:$8 sps:$4 sm:$0xff]  }
  0xe6   :  { %1539 = vmatprep.subr.bf16.mxu0 %v7977_v53  ;;  %v8051_v52 = vld [vmem:[%s11191_s1 + $0x14] ss:$8 sps:$4 sm:$0xff]  }
  0xe7   :  { %v8057_v53 = vld [vmem:[%s11190_s4 + $0x614] ss:$8 sps:$4 sm:$0xff]  }
  0xe8   :  { %4296 = vmatpush1.bf16.msra.mxu1 %v7972_v54  ;;  %v8058_v54 = vld [vmem:[%s11190_s4 + $0x440] ss:$8 sps:$4 sm:$0xff]  }
  0xe9   :  { %1540 = vmatpush1.bf16.msra.mxu0 %v7975_v55  ;;  %4297 = vmatprep.subr.bf16.mxu1 %v7983_v56  ;;  %v8072_v55 = vld [vmem:[%s11190_s4 + $0x454] ss:$8 sps:$4 sm:$0xff]   ;;  %v8055_v56 = vld [vmem:[%s11190_s4 + $0x610] ss:$8 sps:$4 sm:$0xff]  }
  0xea   :  { %1541 = vmatprep.subr.bf16.mxu0 %v7986_v58  ;;  %1052 = vmatmul.mubr.bf16.gmra.mrb[24].mxu0 %v7935_v57  ;;  %v8070_v58 = vld [vmem:[%s11190_s4 + $0x450] ss:$8 sps:$4 sm:$0xff]  }
  0xeb   :  { %3414 = vmatmul.mubr.bf16.gmra.mrb[20].mxu1 %v7926_v47  ;;  %1061 = vmatprep.mubr.bf16.mxu0 %v7942_v59  ;;  %v8060_v47 = vld [vmem:[%s11190_s4 + $0x444] ss:$8 sps:$4 sm:$0xff]  }
  0xec   :  { %3423 = vmatprep.mubr.bf16.mxu1 %v7933_v49  ;;  %4298 = vmatpush1.bf16.msra.mxu1 %v7981_v60  ;;  %v8042_v49 = vld [vmem:[%s11192_s2 + $0x20] ss:$8 sps:$4 sm:$0xff]   ;;  %v8054_v60 = vld [vmem:[%s11191_s1 + $0x10] ss:$8 sps:$4 sm:$0xff]  }
  0xed   :  { %1542 = vmatpush1.bf16.msra.mxu0 %v7984_v61  ;;  %4299 = vmatprep.subr.bf16.mxu1 %v7992_v62  ;;  %v8061_v61 = vld [vmem:[%s11192_s2 + $0x44] ss:$8 sps:$4 sm:$0xff]  }
  0xee   :  { %1543 = vmatprep.subr.bf16.mxu0 %v7995_v63  ;;  %v8063_v62 = vld [vmem:[%s11191_s1 + $0x24] ss:$8 sps:$4 sm:$0xff]   ;;  %v8067_v63 = vld [vmem:[%s11190_s4 + $0x620] ss:$8 sps:$4 sm:$0xff]  }
  0xf0   :  { %4300 = vmatpush1.bf16.msra.mxu1 %v7990_v0  ;;  %v8084_v0 = vld [vmem:[%s11190_s4 + $0x464] ss:$8 sps:$4 sm:$0xff]  }
  0xf1   :  { %1544 = vmatpush1.bf16.msra.mxu0 %v7993_v1  ;;  %4301 = vmatprep.subr.bf16.mxu1 %v8001_v2  ;;  %v8081_v1 = vld [vmem:[%s11190_s4 + $0x634] ss:$8 sps:$4 sm:$0xff]   ;;  %v8082_v2 = vld [vmem:[%s11190_s4 + $0x460] ss:$8 sps:$4 sm:$0xff]  }
  0xf2   :  { %1545 = vmatprep.subr.bf16.mxu0 %v8004_v4  ;;  %1062 = vmatmul.mubr.bf16.gmra.mrb[28].mxu0 %v7944_v3  ;;  %v8079_v4 = vld [vmem:[%s11190_s4 + $0x630] ss:$8 sps:$4 sm:$0xff]  }
  0xf3   :  { %3424 = vmatmul.mubr.bf16.gmra.mrb[24].mxu1 %v7935_v57  ;;  %1071 = vmatprep.mubr.bf16.mxu0 %v7951_v5  ;;  %v8069_v57 = vld [vmem:[%s11190_s4 + $0x624] ss:$8 sps:$4 sm:$0xff]  }
  0xf4   :  { %3433 = vmatprep.mubr.bf16.mxu1 %v7942_v59  ;;  %4302 = vmatpush1.bf16.msra.mxu1 %v7999_v6  ;;  %v8053_v59 = vld [vmem:[%s11192_s2 + $0x30] ss:$8 sps:$4 sm:$0xff]  }
  0xf5   :  { %1546 = vmatpush1.bf16.msra.mxu0 %v8002_v7  ;;  %4303 = vmatprep.subr.bf16.mxu1 %v8010_v8  ;;  %v8094_v6 = vld [vmem:[%s11190_s4 + $0x470] ss:$8 sps:$4 sm:$0xff]   ;;  %v8065_v7 = vld [vmem:[%s11192_s2 + $0x40] ss:$8 sps:$4 sm:$0xff]  }
  0xf6   :  { %1547 = vmatprep.subr.bf16.mxu0 %v8013_v9  ;;  %v8066_v8 = vld [vmem:[%s11191_s1 + $0x20] ss:$8 sps:$4 sm:$0xff]   ;;  %v8073_v9 = vld [vmem:[%s11192_s2 + $0x54] ss:$8 sps:$4 sm:$0xff]  }
  0xf8   :  { %4304 = vmatpush1.bf16.msra.mxu1 %v8008_v10  ;;  %v8075_v10 = vld [vmem:[%s11191_s1 + $0x34] ss:$8 sps:$4 sm:$0xff]  }
  0xf9   :  { %1548 = vmatpush1.bf16.msra.mxu0 %v8011_v11  ;;  %4305 = vmatprep.subr.bf16.mxu1 %v8022_v14  ;;  %v8091_v11 = vld [vmem:[%s11190_s4 + $0x640] ss:$8 sps:$4 sm:$0xff]  }
  0xfa   :  { %2135 = vmatprep.subr.bf16.mxu0 %v8019_v12  ;;  %1072 = vmatmul.mubr.bf16.gmra.mrb[32].mxu0 %v7953_v13  ;;  %v8108_v12 = vld [vmem:[%s11190_s4 + $0x484] ss:$8 sps:$4 sm:$0xff]   ;;  %v8106_v14 = vld [vmem:[%s11190_s4 + $0x480] ss:$8 sps:$4 sm:$0xff]  }
  0xfb   :  { %3434 = vmatmul.mubr.bf16.gmra.mrb[28].mxu1 %v7944_v3  ;;  %1081 = vmatprep.mubr.bf16.mxu0 %v7960_v15  ;;  %v8096_v3 = vld [vmem:[%s11190_s4 + $0x474] ss:$8 sps:$4 sm:$0xff]  }
  0xfc   :  { %3443 = vmatprep.mubr.bf16.mxu1 %v7951_v5  ;;  %4306 = vmatpush1.bf16.msra.mxu1 %v8020_v16  ;;  %v8093_v5 = vld [vmem:[%s11190_s4 + $0x644] ss:$8 sps:$4 sm:$0xff]   ;;  %v8103_v16 = vld [vmem:[%s11190_s4 + $0x650] ss:$8 sps:$4 sm:$0xff]  }
  0xfd   :  { %4307 = vmatprep.subr.bf16.mxu1 %v8033_v17  ;;  %v8117_v17 = vld [vmem:[%s11190_s4 + $0x664] ss:$8 sps:$4 sm:$0xff]  }
 0x100   :  { %4308 = vmatpush1.bf16.msra.mxu1 %v8031_v18  ;;  %v8118_v18 = vld [vmem:[%s11190_s4 + $0x490] ss:$8 sps:$4 sm:$0xff]  }
 0x101   :  { %4788 = vmatprep.subr.bf16.mxu1 %v8045_v20  ;;  %v8078_v20 = vld [vmem:[%s11191_s1 + $0x30] ss:$8 sps:$4 sm:$0xff]  }
 0x102   :  { %1082 = vmatmul.mubr.bf16.gmra.mrb[36].mxu0 %v7962_v19 }
 0x103   :  { %3444 = vmatmul.mubr.bf16.gmra.mrb[32].mxu1 %v7953_v13  ;;  %1091 = vmatprep.mubr.bf16.mxu0 %v7969_v21  ;;  %v8105_v13 = vld [vmem:[%s11190_s4 + $0x654] ss:$8 sps:$4 sm:$0xff]  }
 0x104   :  { %3453 = vmatprep.mubr.bf16.mxu1 %v7960_v15  ;;  %v8120_v15 = vld [vmem:[%s11190_s4 + $0x494] ss:$8 sps:$4 sm:$0xff]  }
 0x10a   :  { %1092 = vmatmul.mubr.bf16.gmra.mrb[40].mxu0 %v7971_v22 }
 0x10b   :  { %3454 = vmatmul.mubr.bf16.gmra.mrb[36].mxu1 %v7962_v19  ;;  %1101 = vmatprep.mubr.bf16.mxu0 %v7978_v23  ;;  %v8077_v19 = vld [vmem:[%s11192_s2 + $0x50] ss:$8 sps:$4 sm:$0xff]  }
 0x10c   :  { %3463 = vmatprep.mubr.bf16.mxu1 %v7969_v21  ;;  %v8085_v21 = vld [vmem:[%s11192_s2 + $0x64] ss:$8 sps:$4 sm:$0xff]  }
 0x112   :  { %1102 = vmatmul.mubr.bf16.gmra.mrb[44].mxu0 %v7980_v24 }
 0x113   :  { %3464 = vmatmul.mubr.bf16.gmra.mrb[40].mxu1 %v7971_v22  ;;  %1111 = vmatprep.mubr.bf16.mxu0 %v7987_v25  ;;  %v8087_v22 = vld [vmem:[%s11191_s1 + $0x44] ss:$8 sps:$4 sm:$0xff]  }
 0x114   :  { %3473 = vmatprep.mubr.bf16.mxu1 %v7978_v23  ;;  %v8115_v23 = vld [vmem:[%s11190_s4 + $0x660] ss:$8 sps:$4 sm:$0xff]  }
 0x11a   :  { %1112 = vmatmul.mubr.bf16.gmra.mrb[48].mxu0 %v7989_v26 }
 0x11b   :  { %3474 = vmatmul.mubr.bf16.gmra.mrb[44].mxu1 %v7980_v24  ;;  %1121 = vmatprep.mubr.bf16.mxu0 %v7996_v27  ;;  %v8132_v24 = vld [vmem:[%s11190_s4 + $0x4a4] ss:$8 sps:$4 sm:$0xff]  }
 0x11c   :  { %3483 = vmatprep.mubr.bf16.mxu1 %v7987_v25  ;;  %v8129_v25 = vld [vmem:[%s11190_s4 + $0x674] ss:$8 sps:$4 sm:$0xff]  }
 0x122   :  { %1122 = vmatmul.mubr.bf16.gmra.mrb[52].mxu0 %v7998_v28 }
 0x123   :  { %3484 = vmatmul.mubr.bf16.gmra.mrb[48].mxu1 %v7989_v26  ;;  %1131 = vmatprep.mubr.bf16.mxu0 %v8005_v29  ;;  %v8130_v26 = vld [vmem:[%s11190_s4 + $0x4a0] ss:$8 sps:$4 sm:$0xff]  }
 0x124   :  { %3493 = vmatprep.mubr.bf16.mxu1 %v7996_v27  ;;  %v8144_v27 = vld [vmem:[%s11190_s4 + $0x4b4] ss:$8 sps:$4 sm:$0xff]  }
 0x12a   :  { %1132 = vmatmul.mubr.bf16.gmra.mrb[56].mxu0 %v8007_v30 }
 0x12b   :  { %3494 = vmatmul.mubr.bf16.gmra.mrb[52].mxu1 %v7998_v28  ;;  %1549 = vmatprep.mubr.bf16.mxu0 %v8016_v31  ;;  %v8127_v28 = vld [vmem:[%s11190_s4 + $0x670] ss:$8 sps:$4 sm:$0xff]   ;;  %v8089_v31 = vld [vmem:[%s11192_s2 + $0x60] ss:$8 sps:$4 sm:$0xff]  }
 0x12c   :  { %3503 = vmatprep.mubr.bf16.mxu1 %v8005_v29  ;;  %v8141_v29 = vld [vmem:[%s11190_s4 + $0x684] ss:$8 sps:$4 sm:$0xff]  }
 0x132   :  { %1550 = vmatmul.mubr.bf16.vlgmr.msra.gmra.mrb[0].mxu0 %v8014_v33  ;;  %v8097_v33 = vld [vmem:[%s11192_s2 + $0x74] ss:$8 sps:$4 sm:$0xff]  }
 0x133   :  { %3504 = vmatmul.mubr.bf16.gmra.mrb[56].mxu1 %v8007_v30  ;;  %2136 = vmatpush1.bf16.msra.mxu0 %v8017_v34  ;;  %v8142_v30 = vld [vmem:[%s11190_s4 + $0x4b0] ss:$8 sps:$4 sm:$0xff]   ;;  %v8099_v34 = vld [vmem:[%s11191_s1 + $0x54] ss:$8 sps:$4 sm:$0xff]  }
 0x134   :  { %1559 = vmatprep.mubr.bf16.mxu0 %v8023_v35  ;;  %3513 = vmatprep.mubr.bf16.mxu1 %v6904_v36  ;;  %v8139_v35 = vld [vmem:[%s11190_s4 + $0x680] ss:$8 sps:$4 sm:$0xff]   ;;  %v8156_v36 = vld [vmem:[%s11190_s4 + $0x4c4] ss:$8 sps:$4 sm:$0xff]  }
 0x135   :  { %2137 = vmatprep.subr.bf16.mxu0 %v8029_v37  ;;  %v8153_v37 = vld [vmem:[%s11190_s4 + $0x694] ss:$8 sps:$4 sm:$0xff]  }
 0x137   :  { %2138 = vmatpush1.bf16.msra.mxu0 %v8027_v38  ;;  %v8154_v38 = vld [vmem:[%s11190_s4 + $0x4c0] ss:$8 sps:$4 sm:$0xff]  }
 0x138   :  { %2139 = vmatprep.subr.bf16.mxu0 %v8038_v39  ;;  %v8168_v39 = vld [vmem:[%s11190_s4 + $0x4d4] ss:$8 sps:$4 sm:$0xff]  }
 0x13a   :  { %1560 = vmatmul.mubr.bf16.gmra.mrb[4].mxu0 %v8026_v40  ;;  %v8151_v40 = vld [vmem:[%s11190_s4 + $0x690] ss:$8 sps:$4 sm:$0xff]  }
 0x13b   :  { %3514 = vmatmul.mubr.bf16.gmra.mrb[60].mxu1 %v6903_v41  ;;  %1569 = vmatprep.mubr.bf16.mxu0 %v8034_v42  ;;  %v8165_v41 = vld [vmem:[%s11190_s4 + $0x6a4] ss:$8 sps:$4 sm:$0xff]   ;;  %v8166_v42 = vld [vmem:[%s11190_s4 + $0x4d0] ss:$8 sps:$4 sm:$0xff]  }
 0x13c   :  { %4309 = vmatprep.mubr.bf16.mxu1 %v8041_v43  ;;  %2140 = vmatpush1.bf16.msra.mxu0 %v8036_v44  ;;  %v8101_v43 = vld [vmem:[%s11192_s2 + $0x70] ss:$8 sps:$4 sm:$0xff]  }
 0x13d   :  { %2141 = vmatprep.subr.bf16.mxu0 %v8050_v45  ;;  %v8102_v44 = vld [vmem:[%s11191_s1 + $0x50] ss:$8 sps:$4 sm:$0xff]   ;;  %v8109_v45 = vld [vmem:[%s11192_s2 + $0x84] ss:$8 sps:$4 sm:$0xff]  }
 0x140   :  { %2142 = vmatpush1.bf16.msra.mxu0 %v8048_v46  ;;  %v8111_v46 = vld [vmem:[%s11191_s1 + $0x64] ss:$8 sps:$4 sm:$0xff]  }
 0x141   :  { %2143 = vmatprep.subr.bf16.mxu0 %v8060_v47  ;;  %v8163_v47 = vld [vmem:[%s11190_s4 + $0x6a0] ss:$8 sps:$4 sm:$0xff]  }
 0x142   :  { %1570 = vmatmul.mubr.bf16.gmra.mrb[8].mxu0 %v8042_v49  ;;  %v8177_v49 = vld [vmem:[%s11190_s4 + $0x6b4] ss:$8 sps:$4 sm:$0xff]  }
 0x143   :  { %4310 = vmatmul.mubr.bf16.vlgmr.msra.gmra.mrb[64].mxu1 %v8039_v48  ;;  %1579 = vmatprep.mubr.bf16.mxu0 %v8046_v51  ;;  %v8180_v48 = vld [vmem:[%s11190_s4 + $0x4e4] ss:$8 sps:$4 sm:$0xff]   ;;  %v8192_v51 = vld [vmem:[%s11190_s4 + $0x4f4] ss:$8 sps:$4 sm:$0xff]  }
 0x144   :  { %4789 = vmatpush1.bf16.msra.mxu1 %v8043_v50  ;;  %4317 = vmatprep.mubr.bf16.mxu1 %v8051_v52  ;;  %v8178_v50 = vld [vmem:[%s11190_s4 + $0x4e0] ss:$8 sps:$4 sm:$0xff]   ;;  %v8175_v52 = vld [vmem:[%s11190_s4 + $0x6b0] ss:$8 sps:$4 sm:$0xff]  }
 0x145   :  { %4790 = vmatprep.subr.bf16.mxu1 %v8057_v53  ;;  %2144 = vmatpush1.bf16.msra.mxu0 %v8058_v54  ;;  %v8189_v53 = vld [vmem:[%s11190_s4 + $0x6c4] ss:$8 sps:$4 sm:$0xff]   ;;  %v8190_v54 = vld [vmem:[%s11190_s4 + $0x4f0] ss:$8 sps:$4 sm:$0xff]  }
 0x146   :  { %2145 = vmatprep.subr.bf16.mxu0 %v8072_v55  ;;  %v8113_v55 = vld [vmem:[%s11192_s2 + $0x80] ss:$8 sps:$4 sm:$0xff]  }
 0x148   :  { %4791 = vmatpush1.bf16.msra.mxu1 %v8055_v56  ;;  %v8114_v56 = vld [vmem:[%s11191_s1 + $0x60] ss:$8 sps:$4 sm:$0xff]  }
 0x149   :  { %4792 = vmatprep.subr.bf16.mxu1 %v8069_v57  ;;  %2146 = vmatpush1.bf16.msra.mxu0 %v8070_v58  ;;  %v8121_v57 = vld [vmem:[%s11192_s2 + $0x94] ss:$8 sps:$4 sm:$0xff]  }
 0x14a   :  { %1580 = vmatmul.mubr.bf16.gmra.mrb[12].mxu0 %v8053_v59  ;;  %2147 = vmatprep.subr.bf16.mxu0 %v8084_v0  ;;  %v8123_v58 = vld [vmem:[%s11191_s1 + $0x74] ss:$8 sps:$4 sm:$0xff]   ;;  %v8187_v59 = vld [vmem:[%s11190_s4 + $0x6c0] ss:$8 sps:$4 sm:$0xff]   ;;  %v8125_v0 = vld [vmem:[%s11192_s2 + $0x90] ss:$8 sps:$4 sm:$0xff]  }
 0x14b   :  { %4318 = vmatmul.mubr.bf16.gmra.mrb[68].mxu1 %v8054_v60  ;;  %1589 = vmatprep.mubr.bf16.mxu0 %v8061_v61  ;;  %v8204_v60 = vld [vmem:[%s11190_s4 + $0x804] ss:$8 sps:$4 sm:$0xff]   ;;  %v8201_v61 = vld [vmem:[%s11190_s4 + $0x6d4] ss:$8 sps:$4 sm:$0xff]  }
 0x14c   :  { %4327 = vmatprep.mubr.bf16.mxu1 %v8063_v62  ;;  %4793 = vmatpush1.bf16.msra.mxu1 %v8067_v63  ;;  %v8199_v62 = vld [vmem:[%s11190_s4 + $0x6d0] ss:$8 sps:$4 sm:$0xff]   ;;  %v8213_v63 = vld [vmem:[%s11190_s4 + $0x6e4] ss:$8 sps:$4 sm:$0xff]  }
 0x14d   :  { %4794 = vmatprep.subr.bf16.mxu1 %v8081_v1  ;;  %2148 = vmatpush1.bf16.msra.mxu0 %v8082_v2  ;;  %v8126_v1 = vld [vmem:[%s11191_s1 + $0x70] ss:$8 sps:$4 sm:$0xff]   ;;  %v8133_v2 = vld [vmem:[%s11192_s2 + $0xa4] ss:$8 sps:$4 sm:$0xff]  }
 0x14e   :  { %2149 = vmatprep.subr.bf16.mxu0 %v8096_v3  ;;  %v8135_v3 = vld [vmem:[%s11191_s1 + $0x84] ss:$8 sps:$4 sm:$0xff]  }
 0x150   :  { %4795 = vmatpush1.bf16.msra.mxu1 %v8079_v4  ;;  %v8211_v4 = vld [vmem:[%s11190_s4 + $0x6e0] ss:$8 sps:$4 sm:$0xff]  }
 0x151   :  { %4796 = vmatprep.subr.bf16.mxu1 %v8093_v5  ;;  %2150 = vmatpush1.bf16.msra.mxu0 %v8094_v6  ;;  %v8228_v5 = vld [vmem:[%s11190_s4 + $0x6f4] ss:$8 sps:$4 sm:$0xff]   ;;  %v8226_v6 = vld [vmem:[%s11190_s4 + $0x6f0] ss:$8 sps:$4 sm:$0xff]  }
 0x152   :  { %1590 = vmatmul.mubr.bf16.gmra.mrb[16].mxu0 %v8065_v7  ;;  %2151 = vmatprep.subr.bf16.mxu0 %v8108_v12  ;;  %v8137_v7 = vld [vmem:[%s11192_s2 + $0xa0] ss:$8 sps:$4 sm:$0xff]   ;;  %v8150_v12 = vld [vmem:[%s11191_s1 + $0x90] ss:$8 sps:$4 sm:$0xff]  }
 0x153   :  { %4328 = vmatmul.mubr.bf16.gmra.mrb[72].mxu1 %v8066_v8  ;;  %1599 = vmatprep.mubr.bf16.mxu0 %v8073_v9  ;;  %v8138_v8 = vld [vmem:[%s11191_s1 + $0x80] ss:$8 sps:$4 sm:$0xff]   ;;  %v8145_v9 = vld [vmem:[%s11192_s2 + $0xb4] ss:$8 sps:$4 sm:$0xff]  }
 0x154   :  { %4337 = vmatprep.mubr.bf16.mxu1 %v8075_v10  ;;  %4797 = vmatpush1.bf16.msra.mxu1 %v8091_v11  ;;  %v8147_v10 = vld [vmem:[%s11191_s1 + $0x94] ss:$8 sps:$4 sm:$0xff]   ;;  %v8149_v11 = vld [vmem:[%s11192_s2 + $0xb0] ss:$8 sps:$4 sm:$0xff]  }
 0x155   :  { %4798 = vmatprep.subr.bf16.mxu1 %v8105_v13  ;;  %2152 = vmatpush1.bf16.msra.mxu0 %v8106_v14  ;;  %v8157_v13 = vld [vmem:[%s11192_s2 + $0xc4] ss:$8 sps:$4 sm:$0xff]  }
 0x156   :  { %2153 = vmatprep.subr.bf16.mxu0 %v8120_v15  ;;  %v8159_v14 = vld [vmem:[%s11191_s1 + $0xa4] ss:$8 sps:$4 sm:$0xff]   ;;  %v8161_v15 = vld [vmem:[%s11192_s2 + $0xc0] ss:$8 sps:$4 sm:$0xff]  }
 0x158   :  { %4799 = vmatpush1.bf16.msra.mxu1 %v8103_v16  ;;  %v8162_v16 = vld [vmem:[%s11191_s1 + $0xa0] ss:$8 sps:$4 sm:$0xff]  }
 0x159   :  { %4800 = vmatprep.subr.bf16.mxu1 %v8117_v17  ;;  %2154 = vmatpush1.bf16.msra.mxu0 %v8118_v18  ;;  %v8169_v17 = vld [vmem:[%s11192_s2 + $0xd4] ss:$8 sps:$4 sm:$0xff]  }
 0x15a   :  { %1600 = vmatmul.mubr.bf16.gmra.mrb[20].mxu0 %v8077_v19  ;;  %2155 = vmatprep.subr.bf16.mxu0 %v8132_v24  ;;  %v8171_v18 = vld [vmem:[%s11191_s1 + $0xb4] ss:$8 sps:$4 sm:$0xff]   ;;  %v8181_v24 = vld [vmem:[%s11192_s2 + $0xe4] ss:$8 sps:$4 sm:$0xff]  }
 0x15b   :  { %4338 = vmatmul.mubr.bf16.gmra.mrb[76].mxu1 %v8078_v20  ;;  %1609 = vmatprep.mubr.bf16.mxu0 %v8085_v21  ;;  %v8173_v21 = vld [vmem:[%s11192_s2 + $0xd0] ss:$8 sps:$4 sm:$0xff]  }
 0x15c   :  { %4347 = vmatprep.mubr.bf16.mxu1 %v8087_v22  ;;  %4801 = vmatpush1.bf16.msra.mxu1 %v8115_v23  ;;  %v8174_v22 = vld [vmem:[%s11191_s1 + $0xb0] ss:$8 sps:$4 sm:$0xff]  }
 0x15d   :  { %4802 = vmatprep.subr.bf16.mxu1 %v8129_v25  ;;  %2156 = vmatpush1.bf16.msra.mxu0 %v8130_v26  ;;  %v8183_v25 = vld [vmem:[%s11191_s1 + $0xc4] ss:$8 sps:$4 sm:$0xff]  }
 0x15e   :  { %2157 = vmatprep.subr.bf16.mxu0 %v8144_v27 }
 0x160   :  { %4803 = vmatpush1.bf16.msra.mxu1 %v8127_v28 }
 0x161   :  { %4804 = vmatprep.subr.bf16.mxu1 %v8141_v29  ;;  %2158 = vmatpush1.bf16.msra.mxu0 %v8142_v30 }
 0x162   :  { %1610 = vmatmul.mubr.bf16.gmra.mrb[24].mxu0 %v8089_v31  ;;  %2159 = vmatprep.subr.bf16.mxu0 %v8156_v36  ;;  %v8185_v36 = vld [vmem:[%s11192_s2 + $0xe0] ss:$8 sps:$4 sm:$0xff]  }
 0x163   :  { %4348 = vmatmul.mubr.bf16.gmra.mrb[80].mxu1 %v8090_v32  ;;  %1619 = vmatprep.mubr.bf16.mxu0 %v8097_v33 }
 0x164   :  { %4357 = vmatprep.mubr.bf16.mxu1 %v8099_v34  ;;  %4805 = vmatpush1.bf16.msra.mxu1 %v8139_v35 }
 0x165   :  { %4806 = vmatprep.subr.bf16.mxu1 %v8153_v37  ;;  %2160 = vmatpush1.bf16.msra.mxu0 %v8154_v38  ;;  %v8186_v37 = vld [vmem:[%s11191_s1 + $0xc0] ss:$8 sps:$4 sm:$0xff]  }
 0x166   :  { %2161 = vmatprep.subr.bf16.mxu0 %v8168_v39 }
 0x168   :  { %4807 = vmatpush1.bf16.msra.mxu1 %v8151_v40  ;;  %v8195_v40 = vld [vmem:[%s11194_s3 + $0x4] ss:$8 sps:$4 sm:$0xff]  }
 0x169   :  { %4808 = vmatprep.subr.bf16.mxu1 %v8165_v41  ;;  %2162 = vmatpush1.bf16.msra.mxu0 %v8166_v42  ;;  %v8196_v41 = vld [vmem:[%s11191_s1 + $0xd4] ss:$8 sps:$4 sm:$0xff]  }
 0x16a   :  { %1620 = vmatmul.mubr.bf16.gmra.mrb[28].mxu0 %v8101_v43  ;;  %2163 = vmatprep.subr.bf16.mxu0 %v8180_v48 }
 0x16b   :  { %4358 = vmatmul.mubr.bf16.gmra.mrb[84].mxu1 %v8102_v44  ;;  %1629 = vmatprep.mubr.bf16.mxu0 %v8109_v45 }
 0x16c   :  { %4367 = vmatprep.mubr.bf16.mxu1 %v8111_v46  ;;  %4809 = vmatpush1.bf16.msra.mxu1 %v8163_v47 }
 0x16d   :  { %4810 = vmatprep.subr.bf16.mxu1 %v8177_v49  ;;  %2164 = vmatpush1.bf16.msra.mxu0 %v8178_v50 }
 0x16e   :  { %2165 = vmatprep.subr.bf16.mxu0 %v8192_v51 }
 0x170   :  { %4811 = vmatpush1.bf16.msra.mxu1 %v8175_v52  ;;  %v8193_v52 = vld [vmem:[%s11194_s3] ss:$8 sps:$4 sm:$0xff]  }
 0x171   :  { %4812 = vmatprep.subr.bf16.mxu1 %v8189_v53  ;;  %2166 = vmatpush1.bf16.msra.mxu0 %v8190_v54  ;;  %v8198_v53 = vld [vmem:[%s11191_s1 + $0xd0] ss:$8 sps:$4 sm:$0xff]  }
 0x172   :  { %1630 = vmatmul.mubr.bf16.gmra.mrb[32].mxu0 %v8113_v55  ;;  %5485 = vmatprep.subr.bf16.mxu0 %v8204_v60 }
 0x173   :  { %4368 = vmatmul.mubr.bf16.gmra.mrb[88].mxu1 %v8114_v56  ;;  %1639 = vmatprep.mubr.bf16.mxu0 %v8121_v57  ;;  %v9641_v56 = vld [vmem:[%s11190_s4 + $0x800] ss:$8 sps:$4 sm:$0xff]   ;;  %v8205_v57 = vld [vmem:[%s11194_s3 + $0x14] ss:$8 sps:$4 sm:$0xff]  }
 0x174   :  { %4377 = vmatprep.mubr.bf16.mxu1 %v8123_v58  ;;  %4813 = vmatpush1.bf16.msra.mxu1 %v8187_v59 }
 0x175   :  { %4814 = vmatprep.subr.bf16.mxu1 %v8201_v61  ;;  %v9652_v61 = vld [vmem:[%s11190_s4 + $0x814] ss:$8 sps:$4 sm:$0xff]  }
 0x178   :  { %4815 = vmatpush1.bf16.msra.mxu1 %v8199_v62 }
 0x179   :  { %4816 = vmatprep.subr.bf16.mxu1 %v8213_v63 }
 0x17a   :  { %1640 = vmatmul.mubr.bf16.gmra.mrb[36].mxu0 %v8125_v0 }
 0x17b   :  { %4378 = vmatmul.mubr.bf16.gmra.mrb[92].mxu1 %v8126_v1  ;;  %1649 = vmatprep.mubr.bf16.mxu0 %v8133_v2  ;;  %v9667_v2 = vld [vmem:[%s11190_s4 + $0x810] ss:$8 sps:$4 sm:$0xff]  }
 0x17c   :  { %4387 = vmatprep.mubr.bf16.mxu1 %v8135_v3  ;;  %4817 = vmatpush1.bf16.msra.mxu1 %v8211_v4  ;;  %v9676_v4 = vld [vmem:[%s11190_s4 + $0x824] ss:$8 sps:$4 sm:$0xff]  }
 0x17d   :  { %4818 = vmatprep.subr.bf16.mxu1 %v8228_v5 }
 0x180   :  { %4819 = vmatpush1.bf16.msra.mxu1 %v8226_v6  ;;  %v8209_v6 = vld [vmem:[%s11194_s3 + $0x10] ss:$8 sps:$4 sm:$0xff]  }
 0x181   :  { %7255 = vmatprep.subr.bf16.mxu1 %v8204_v60  ;;  %v8207_v60 = vld [vmem:[%s11191_s1 + $0xe4] ss:$8 sps:$4 sm:$0xff]  }
 0x182   :  { %1650 = vmatmul.mubr.bf16.gmra.mrb[40].mxu0 %v8137_v7 }
 0x183   :  { %4388 = vmatmul.mubr.bf16.gmra.mrb[96].mxu1 %v8138_v8  ;;  %1659 = vmatprep.mubr.bf16.mxu0 %v8145_v9  ;;  %v8210_v9 = vld [vmem:[%s11191_s1 + $0xe0] ss:$8 sps:$4 sm:$0xff]  }
 0x184   :  { %4397 = vmatprep.mubr.bf16.mxu1 %v8147_v10  ;;  %v8217_v10 = vld [vmem:[%s11194_s3 + $0x24] ss:$8 sps:$4 sm:$0xff]  }
 0x18a   :  { %1660 = vmatmul.mubr.bf16.gmra.mrb[44].mxu0 %v8149_v11 }
 0x18b   :  { %4398 = vmatmul.mubr.bf16.gmra.mrb[100].mxu1 %v8150_v12  ;;  %1669 = vmatprep.mubr.bf16.mxu0 %v8157_v13  ;;  %v8219_v13 = vld [vmem:[%s11191_s1 + $0xf4] ss:$8 sps:$4 sm:$0x3f]  }
 0x18c   :  { %4407 = vmatprep.mubr.bf16.mxu1 %v8159_v14 }
 0x192   :  { %1670 = vmatmul.mubr.bf16.gmra.mrb[48].mxu0 %v8161_v15 }
 0x193   :  { %4408 = vmatmul.mubr.bf16.gmra.mrb[104].mxu1 %v8162_v16  ;;  %1679 = vmatprep.mubr.bf16.mxu0 %v8169_v17  ;;  %v9694_v16 = vld [vmem:[%s11190_s4 + $0x820] ss:$8 sps:$4 sm:$0xff]  }
 0x194   :  { %4417 = vmatprep.mubr.bf16.mxu1 %v8171_v18 }
 0x196   :  { %v3365_v19 = vpop.f32.mrb[0].mxu1 }
 0x197   :  { %v3367_v20 = vpop.f32.mrb[1].mxu1  ;;  %v3585_v26 = vrot.slane %v3365_v19, 1  ;;  %v9703_v19 = vld [vmem:[%s11190_s4 + $0x834] ss:$8 sps:$4 sm:$0xff]  }
 0x198   :  { %v3369_v23 = vpop.f32.mrb[2].mxu1  ;;  %v3588_v29 = vrot.slane %v3367_v20, 1 }
 0x199   :  { %v3586_v27 = vrot.slane %v3369_v23, 1  ;;  %v3371_v28 = vpop.f32.mrb[3].mxu1  ;;  %v9718_v23 = vld [vmem:[%s11190_s4 + $0x830] ss:$8 sps:$4 sm:$0xff]  }
 0x19a   :  { %v3589_v30 = vrot.slane %v3371_v28, 1  ;;  %1680 = vmatmul.mubr.bf16.gmra.mrb[52].mxu0 %v8173_v21 }
 0x19b   :  { %4418 = vmatmul.mubr.bf16.gmra.mrb[108].mxu1 %v8174_v22  ;;  %v9603_v31 = vsel %vm3584_vm0, %v3585_v26, %v3586_v27  ;;  %1689 = vmatprep.mubr.bf16.mxu0 %v8181_v24  ;;  %v9727_v26 = vld [vmem:[%s11190_s4 + $0x844] ss:$8 sps:$4 sm:$0xff]  }
 0x19c   :  { %4427 = vmatprep.mubr.bf16.mxu1 %v8183_v25  ;;  %v9606_v32 = vsel %vm3584_vm0, %v3588_v29, %v3589_v30  ;;  %v8224_v25 = vld [vmem:[%s11194_s3 + $0x20] ss:$8 sps:$4 sm:$0xff]   ;;  %v8225_v29 = vld [vmem:[%s11191_s1 + $0xf0] ss:$8 sps:$4 sm:$0x3f]  }
 0x19e   :  { %v3375_v33 = vpop.f32.mrb[4].mxu1 }
 0x19f   :  { %v3591_v34 = vrot.slane %v3375_v33, 1  ;;  %v3377_v35 = vpop.f32.mrb[5].mxu1 }
 0x1a0   :  { %v3593_v38 = vrot.slane %v3377_v35, 1  ;;  %v3379_v39 = vpop.f32.mrb[6].mxu1  ;;  %v9738_v35 = vld [vmem:[%s11193_s0 + $0x4] ss:$8 sps:$4 sm:$0xff]  }
 0x1a1   :  { %v3595_v42 = vrot.slane %v3379_v39, 1  ;;  %v3381_v43 = vpop.f32.mrb[7].mxu1  ;;  %v9621_v44 = vsel %vm3584_vm0, %v3586_v27, %v3591_v34 }
 0x1a2   :  { %v3597_v45 = vrot.slane %v3381_v43, 1  ;;  %v9624_v46 = vsel %vm3584_vm0, %v3589_v30, %v3593_v38  ;;  %1690 = vmatmul.mubr.bf16.gmra.mrb[56].mxu0 %v8185_v36 }
 0x1a3   :  { %4428 = vmatmul.mubr.bf16.gmra.mrb[112].mxu1 %v8186_v37  ;;  %v9627_v47 = vsel %vm3584_vm0, %v3591_v34, %v3595_v42  ;;  %2167 = vmatprep.mubr.bf16.mxu0 %v8195_v40  ;;  %v8229_v34 = vld [vmem:[%s11194_s3 + $0x34] ss:$8 sps:$4 sm:$0xff]  }
 0x1a4   :  { %4437 = vmatprep.mubr.bf16.mxu1 %v8196_v41  ;;  %v9630_v48 = vsel %vm3584_vm0, %v3593_v38, %v3597_v45  ;;  %v9744_v38 = vld [vmem:[%s11190_s4 + $0x840] ss:$8 sps:$4 sm:$0xff]   ;;  %v9753_v41 = vld [vmem:[%s11190_s4 + $0x854] ss:$8 sps:$4 sm:$0xff]  }
 0x1a6   :  { %v3385_v49 = vpop.f32.mrb[8].mxu1 }
 0x1a7   :  { %v3599_v50 = vrot.slane %v3385_v49, 1  ;;  %v3387_v51 = vpop.f32.mrb[9].mxu1  ;;  %v9769_v49 = vld [vmem:[%s11190_s4 + $0x850] ss:$8 sps:$4 sm:$0xff]  }
 0x1a8   :  { %v3601_v54 = vrot.slane %v3387_v51, 1  ;;  %v3389_v55 = vpop.f32.mrb[10].mxu1  ;;  %v9775_v51 = vld [vmem:[%s11190_s4 + $0x864] ss:$8 sps:$4 sm:$0xff]  }
 0x1a9   :  { %v3603_v58 = vrot.slane %v3389_v55, 1  ;;  %v3391_v59 = vpop.f32.mrb[11].mxu1  ;;  %v9655_v62 = vsel %vm3584_vm0, %v3595_v42, %v3599_v50  ;;  %v8237_v55 = vld [vmem:[%s11194_s3 + $0x30] ss:$8 sps:$4 sm:$0xff]  }
 0x1aa   :  { %v3605_v63 = vrot.slane %v3391_v59, 1  ;;  %v9658_v0 = vsel %vm3584_vm0, %v3597_v45, %v3601_v54  ;;  %2168 = vmatmul.mubr.bf16.vlgmr.msra.gmra.mrb[0].mxu0 %v8193_v52  ;;  %v8241_v59 = vld [vmem:[%s11194_s3 + $0x44] ss:$8 sps:$4 sm:$0xff]  }
 0x1ab   :  { %4438 = vmatmul.mubr.bf16.gmra.mrb[116].mxu1 %v8198_v53  ;;  %v9661_v1 = vsel %vm3584_vm0, %v3599_v50, %v3603_v58  ;;  %5486 = vmatpush1.bf16.msra.mxu0 %v9641_v56 }
 0x1ac   :  { %2177 = vmatprep.mubr.bf16.mxu0 %v8205_v57  ;;  %v9670_v3 = vsel %vm3584_vm0, %v3601_v54, %v3605_v63  ;;  %4447 = vmatprep.mubr.bf16.mxu1 %v8207_v60  ;;  %v9780_v54 = vld [vmem:[%s11193_s0] ss:$8 sps:$4 sm:$0xff]  }
 0x1ad   :  { %5487 = vmatprep.subr.bf16.mxu0 %v9652_v61 }
 0x1ae   :  { %v3395_v5 = vpop.f32.mrb[12].mxu1 }
 0x1af   :  { %v3607_v7 = vrot.slane %v3395_v5, 1  ;;  %v3397_v8 = vpop.f32.mrb[13].mxu1  ;;  %5488 = vmatpush1.bf16.msra.mxu0 %v9667_v2  ;;  %v9791_v5 = vld [vmem:[%s11193_s0 + $0x14] ss:$8 sps:$4 sm:$0xff]  }
 0x1b0   :  { %v3609_v11 = vrot.slane %v3397_v8, 1  ;;  %v3399_v12 = vpop.f32.mrb[14].mxu1  ;;  %5489 = vmatprep.subr.bf16.mxu0 %v9676_v4  ;;  %v9800_v8 = vld [vmem:[%s11190_s4 + $0x860] ss:$8 sps:$4 sm:$0xff]  }
 0x1b1   :  { %v3611_v14 = vrot.slane %v3399_v12, 1  ;;  %v3401_v15 = vpop.f32.mrb[15].mxu1  ;;  %v9698_v17 = vsel %vm3584_vm0, %v3603_v58, %v3607_v7 }
 0x1b2   :  { %v3613_v18 = vrot.slane %v3401_v15, 1  ;;  %v9706_v20 = vsel %vm3584_vm0, %v3605_v63, %v3609_v11  ;;  %2178 = vmatmul.mubr.bf16.gmra.mrb[4].mxu0 %v8209_v6 }
 0x1b3   :  { %4448 = vmatmul.mubr.bf16.gmra.mrb[120].mxu1 %v8210_v9  ;;  %v9709_v21 = vsel %vm3584_vm0, %v3607_v7, %v3611_v14  ;;  %2187 = vmatprep.mubr.bf16.mxu0 %v8217_v10  ;;  %v9810_v10 = vld [vmem:[%s11190_s4 + $0x874] ss:$8 sps:$4 sm:$0xff]  }
 0x1b4   :  { %4457 = vmatprep.mubr.bf16.mxu1 %v8219_v13  ;;  %v9712_v22 = vsel %vm3584_vm0, %v3609_v11, %v3613_v18  ;;  %5490 = vmatpush1.bf16.msra.mxu0 %v9694_v16 }
 0x1b5   :  { %5491 = vmatprep.subr.bf16.mxu0 %v9703_v19 }
 0x1b6   :  { %v3405_v24 = vpop.f32.mrb[16].mxu1 }
 0x1b7   :  { %v3615_v27 = vrot.slane %v3405_v24, 1  ;;  %v3407_v28 = vpop.f32.mrb[17].mxu1  ;;  %v9833_v24 = vld [vmem:[%s11193_s0 + $0x10] ss:$8 sps:$4 sm:$0xff]  }
 0x1b8   :  { %v3617_v30 = vrot.slane %v3407_v28, 1  ;;  %v3409_v33 = vpop.f32.mrb[18].mxu1  ;;  %5492 = vmatpush1.bf16.msra.mxu0 %v9718_v23  ;;  %v9843_v28 = vld [vmem:[%s11193_s0 + $0x24] ss:$8 sps:$4 sm:$0xff]  }
 0x1b9   :  { %v3619_v36 = vrot.slane %v3409_v33, 1  ;;  %v3411_v37 = vpop.f32.mrb[19].mxu1  ;;  %v9747_v39 = vsel %vm3584_vm0, %v3611_v14, %v3615_v27  ;;  %5493 = vmatprep.subr.bf16.mxu0 %v9727_v26  ;;  %v9825_v14 = vld [vmem:[%s11190_s4 + $0x870] ss:$8 sps:$4 sm:$0xff]   ;;  %v9849_v33 = vld [vmem:[%s11190_s4 + $0x884] ss:$8 sps:$4 sm:$0xff]  }
 0x1ba   :  { %v3621_v40 = vrot.slane %v3411_v37, 1  ;;  %v9756_v42 = vsel %vm3584_vm0, %v3613_v18, %v3617_v30  ;;  %2188 = vmatmul.mubr.bf16.gmra.mrb[8].mxu0 %v8224_v25 }
 0x1bb   :  { %4458 = vmatmul.mubr.bf16.gmra.mrb[124].mxu1 %v8225_v29  ;;  %v9759_v43 = vsel %vm3584_vm0, %v3615_v27, %v3619_v36  ;;  %2197 = vmatprep.mubr.bf16.mxu0 %v8229_v34  ;;  %v8250_v27 = vld [vmem:[%s11194_s3 + $0x54] ss:$8 sps:$4 sm:$0xff]  }
 0x1bc   :  { %4820 = vmatprep.mubr.bf16.mxu1 %v9738_v35  ;;  %v9763_v45 = vsel %vm3584_vm0, %v3617_v30, %v3621_v40  ;;  %5494 = vmatpush1.bf16.msra.mxu0 %v9744_v38 }
 0x1bd   :  { %5495 = vmatprep.subr.bf16.mxu0 %v9753_v41 }
 0x1be   :  { %v3415_v50 = vpop.f32.mrb[20].mxu1 }
 0x1bf   :  { %v3623_v52 = vrot.slane %v3415_v50, 1  ;;  %v3417_v53 = vpop.f32.mrb[21].mxu1 }
 0x1c0   :  { %v3625_v57 = vrot.slane %v3417_v53, 1  ;;  %v3419_v58 = vpop.f32.mrb[22].mxu1  ;;  %5496 = vmatpush1.bf16.msra.mxu0 %v9769_v49  ;;  %v9883_v53 = vld [vmem:[%s11190_s4 + $0x890] ss:$8 sps:$4 sm:$0xff]  }
 0x1c1   :  { %v3627_v60 = vrot.slane %v3419_v58, 1  ;;  %v3421_v63 = vpop.f32.mrb[23].mxu1  ;;  %v9795_v6 = vsel %vm3584_vm0, %v3619_v36, %v3623_v52  ;;  %5497 = vmatprep.subr.bf16.mxu0 %v9775_v51  ;;  %v9858_v36 = vld [vmem:[%s11190_s4 + $0x880] ss:$8 sps:$4 sm:$0xff]   ;;  %v8254_v58 = vld [vmem:[%s11194_s3 + $0x50] ss:$8 sps:$4 sm:$0xff]  }
 0x1c2   :  { %v3629_v7 = vrot.slane %v3421_v63, 1  ;;  %v9804_v9 = vsel %vm3584_vm0, %v3621_v40, %v3625_v57  ;;  %2198 = vmatmul.mubr.bf16.gmra.mrb[12].mxu0 %v8237_v55  ;;  %v9900_v63 = vld [vmem:[%s11193_s0 + $0x34] ss:$8 sps:$4 sm:$0xff]  }
 0x1c3   :  { %4821 = vmatmul.mubr.bf16.vlgmr.msra.gmra.mrb[64].mxu1 %v9780_v54  ;;  %v9813_v11 = vsel %vm3584_vm0, %v3623_v52, %v3627_v60  ;;  %2207 = vmatprep.mubr.bf16.mxu0 %v8241_v59 }
 0x1c4   :  { %7271 = vmatpush1.bf16.msra.mxu1 %v9641_v56  ;;  %v9817_v12 = vsel %vm3584_vm0, %v3625_v57, %v3629_v7  ;;  %4828 = vmatprep.mubr.bf16.mxu1 %v9791_v5  ;;  %v8245_v56 = vld [vmem:[%s11194_s3 + $0x40] ss:$8 sps:$4 sm:$0xff]  }
 0x1c5   :  { %7256 = vmatprep.subr.bf16.mxu1 %v9652_v61  ;;  %5498 = vmatpush1.bf16.msra.mxu0 %v9800_v8 }
 0x1c6   :  { %v3425_v13 = vpop.f32.mrb[24].mxu1  ;;  %5499 = vmatprep.subr.bf16.mxu0 %v9810_v10 }
 0x1c7   :  { %v3631_v15 = vrot.slane %v3425_v13, 1  ;;  %v3427_v18 = vpop.f32.mrb[25].mxu1 }
 0x1c8   :  { %v3633_v61 = vrot.slane %v3427_v18, 1  ;;  %v3429_v25 = vpop.f32.mrb[26].mxu1  ;;  %7272 = vmatpush1.bf16.msra.mxu1 %v9667_v2 }
 0x1c9   :  { %v3635_v29 = vrot.slane %v3429_v25, 1  ;;  %v3431_v30 = vpop.f32.mrb[27].mxu1  ;;  %7257 = vmatprep.subr.bf16.mxu1 %v9676_v4  ;;  %v9852_v2 = vsel %vm3584_vm0, %v3627_v60, %v3631_v15  ;;  %5500 = vmatpush1.bf16.msra.mxu0 %v9825_v14  ;;  %v9867_v4 = vld [vmem:[%s11190_s4 + $0x894] ss:$8 sps:$4 sm:$0xff]   ;;  %v8259_v60 = vld [vmem:[%s11194_s3 + $0x64] ss:$8 sps:$4 sm:$0xff]  }
 0x1ca   :  { %v3637_v34 = vrot.slane %v3431_v30, 1  ;;  %v9861_v37 = vsel %vm3584_vm0, %v3629_v7, %v3633_v61  ;;  %2208 = vmatmul.mubr.bf16.gmra.mrb[16].mxu0 %v8245_v56  ;;  %5501 = vmatprep.subr.bf16.mxu0 %v9849_v33  ;;  %v9925_v25 = vld [vmem:[%s11190_s4 + $0x8b4] ss:$8 sps:$4 sm:$0xff]   ;;  %v9941_v30 = vld [vmem:[%s11190_s4 + $0x8b0] ss:$8 sps:$4 sm:$0xff]  }
 0x1cb   :  { %4829 = vmatmul.mubr.bf16.gmra.mrb[68].mxu1 %v9833_v24  ;;  %v9870_v40 = vsel %vm3584_vm0, %v3631_v15, %v3635_v29  ;;  %2217 = vmatprep.mubr.bf16.mxu0 %v8250_v27  ;;  %v9906_v15 = vld [vmem:[%s11190_s4 + $0x8a4] ss:$8 sps:$4 sm:$0xff]  }
 0x1cc   :  { %4838 = vmatprep.mubr.bf16.mxu1 %v9843_v28  ;;  %v9874_v50 = vsel %vm3584_vm0, %v3633_v61, %v3637_v34  ;;  %7273 = vmatpush1.bf16.msra.mxu1 %v9694_v16  ;;  %v9891_v16 = vld [vmem:[%s11193_s0 + $0x20] ss:$8 sps:$4 sm:$0xff]  }
 0x1cd   :  { %11199 = vst [vmem:[#allocation2_spill] sm:$0xff] %v9874_v50  ;;  %7258 = vmatprep.subr.bf16.mxu1 %v9703_v19  ;;  %5502 = vmatpush1.bf16.msra.mxu0 %v9858_v36  ;;  %v9916_v61 = vld [vmem:[%s11190_s4 + $0x8a0] ss:$8 sps:$4 sm:$0xff]  }
 0x1ce   :  { %v3435_v52 = vpop.f32.mrb[28].mxu1  ;;  %5503 = vmatprep.subr.bf16.mxu0 %v9867_v4 }
 0x1cf   :  { %v3639_v55 = vrot.slane %v3435_v52, 1  ;;  %v3437_v57 = vpop.f32.mrb[29].mxu1 }
 0x1d0   :  { %v3641_v19 = vrot.slane %v3437_v57, 1  ;;  %v3439_v59 = vpop.f32.mrb[30].mxu1  ;;  %7274 = vmatpush1.bf16.msra.mxu1 %v9718_v23 }
 0x1d1   :  { %v3643_v7 = vrot.slane %v3439_v59, 1  ;;  %v3441_v13 = vpop.f32.mrb[31].mxu1  ;;  %v9909_v18 = vsel %vm3584_vm0, %v3635_v29, %v3639_v55  ;;  %7259 = vmatprep.subr.bf16.mxu1 %v9727_v26  ;;  %5504 = vmatpush1.bf16.msra.mxu0 %v9883_v53 }
 0x1d2   :  { %11200 = vst [vmem:[#allocation3_spill] sm:$0xff] %v9909_v18  ;;  %v3645_v56 = vrot.slane %v3441_v13, 1  ;;  %v9919_v23 = vsel %vm3584_vm0, %v3637_v34, %v3641_v19  ;;  %2218 = vmatmul.mubr.bf16.gmra.mrb[20].mxu0 %v8254_v58  ;;  %5505 = vmatprep.subr.bf16.mxu0 %v9906_v15  ;;  %v8268_v58 = vld [vmem:[%s11194_s3 + $0x74] ss:$8 sps:$4 sm:$0xff]   ;;  %v9964_v13 = vld [vmem:[%s11190_s4 + $0x8c4] ss:$8 sps:$4 sm:$0xff]  }
 0x1d3   :  { %11201 = vst [vmem:[#allocation4_spill] sm:$0xff] %v9919_v23  ;;  %4839 = vmatmul.mubr.bf16.gmra.mrb[72].mxu1 %v9891_v16  ;;  %v9928_v26 = vsel %vm3584_vm0, %v3639_v55, %v3643_v7  ;;  %2227 = vmatprep.mubr.bf16.mxu0 %v8259_v60  ;;  %v8263_v55 = vld [vmem:[%s11194_s3 + $0x60] ss:$8 sps:$4 sm:$0xff]  }
 0x1d4   :  { %11202 = vst [vmem:[#allocation5_spill] sm:$0xff] %v9928_v26  ;;  %4848 = vmatprep.mubr.bf16.mxu1 %v9900_v63  ;;  %v9932_v27 = vsel %vm3584_vm0, %v3641_v19, %v3645_v56  ;;  %7275 = vmatpush1.bf16.msra.mxu1 %v9744_v38  ;;  %v9949_v38 = vld [vmem:[%s11193_s0 + $0x30] ss:$8 sps:$4 sm:$0xff]   ;;  %v9958_v19 = vld [vmem:[%s11193_s0 + $0x44] ss:$8 sps:$4 sm:$0xff]  }
 0x1d5   :  { %11203 = vst [vmem:[#allocation6_spill] sm:$0xff] %v9932_v27  ;;  %7260 = vmatprep.subr.bf16.mxu1 %v9753_v41  ;;  %5506 = vmatpush1.bf16.msra.mxu0 %v9916_v61  ;;  %v10022_v27 = vld [vmem:[%s11190_s4 + $0x8e4] ss:$8 sps:$4 sm:$0xff]  }
 0x1d6   :  { %v3445_v29 = vpop.f32.mrb[32].mxu1  ;;  %5507 = vmatprep.subr.bf16.mxu0 %v9925_v25 }
 0x1d7   :  { %v3647_v34 = vrot.slane %v3445_v29, 1  ;;  %v3447_v52 = vpop.f32.mrb[33].mxu1 }
 0x1d8   :  { %v3649_v41 = vrot.slane %v3447_v52, 1  ;;  %v3449_v57 = vpop.f32.mrb[34].mxu1  ;;  %7276 = vmatpush1.bf16.msra.mxu1 %v9769_v49 }
 0x1d9   :  { %v3651_v59 = vrot.slane %v3449_v57, 1  ;;  %v3451_v60 = vpop.f32.mrb[35].mxu1  ;;  %v9967_v29 = vsel %vm3584_vm0, %v3643_v7, %v3647_v34  ;;  %7261 = vmatprep.subr.bf16.mxu1 %v9775_v51  ;;  %5508 = vmatpush1.bf16.msra.mxu0 %v9941_v30  ;;  %v9974_v57 = vld [vmem:[%s11190_s4 + $0x8c0] ss:$8 sps:$4 sm:$0xff]   ;;  %v9983_v7 = vld [vmem:[%s11190_s4 + $0x8d4] ss:$8 sps:$4 sm:$0xff]  }
 0x1da   :  { %11204 = vst [vmem:[#allocation7_spill] sm:$0xff] %v9967_v29  ;;  %v3653_v52 = vrot.slane %v3451_v60, 1  ;;  %v9977_v49 = vsel %vm3584_vm0, %v3645_v56, %v3649_v41  ;;  %2228 = vmatmul.mubr.bf16.gmra.mrb[24].mxu0 %v8263_v55  ;;  %5509 = vmatprep.subr.bf16.mxu0 %v9964_v13 }
 0x1db   :  { %11205 = vst [vmem:[#allocation8_spill] sm:$0xff] %v9977_v49  ;;  %4849 = vmatmul.mubr.bf16.gmra.mrb[76].mxu1 %v9949_v38  ;;  %v9986_v51 = vsel %vm3584_vm0, %v3647_v34, %v3651_v59  ;;  %2237 = vmatprep.mubr.bf16.mxu0 %v8268_v58  ;;  %v9999_v34 = vld [vmem:[%s11190_s4 + $0x8d0] ss:$8 sps:$4 sm:$0xff]  }
 0x1dc   :  { %11206 = vst [vmem:[#allocation9_spill] sm:$0xff] %v9986_v51  ;;  %4858 = vmatprep.mubr.bf16.mxu1 %v9958_v19  ;;  %v9990_v60 = vsel %vm3584_vm0, %v3649_v41, %v3653_v52  ;;  %7277 = vmatpush1.bf16.msra.mxu1 %v9800_v8  ;;  %v8272_v41 = vld [vmem:[%s11194_s3 + $0x70] ss:$8 sps:$4 sm:$0xff]   ;;  %v10007_v8 = vld [vmem:[%s11193_s0 + $0x40] ss:$8 sps:$4 sm:$0xff]  }
 0x1dd   :  { %11207 = vst [vmem:[#allocation10_spill] sm:$0xff] %v9990_v60  ;;  %7262 = vmatprep.subr.bf16.mxu1 %v9810_v10  ;;  %5510 = vmatpush1.bf16.msra.mxu0 %v9974_v57  ;;  %v8277_v51 = vld [vmem:[%s11194_s3 + $0x84] ss:$8 sps:$4 sm:$0xff]  }
 0x1de   :  { %v3455_v56 = vpop.f32.mrb[36].mxu1  ;;  %5511 = vmatprep.subr.bf16.mxu0 %v9983_v7 }
 0x1df   :  { %v3655_v55 = vrot.slane %v3455_v56, 1  ;;  %v3457_v58 = vpop.f32.mrb[37].mxu1  ;;  %v10016_v56 = vld [vmem:[%s11193_s0 + $0x54] ss:$8 sps:$4 sm:$0xff]  }
 0x1e0   :  { %v3657_v10 = vrot.slane %v3457_v58, 1  ;;  %v3459_v60 = vpop.f32.mrb[38].mxu1  ;;  %7278 = vmatpush1.bf16.msra.mxu1 %v9825_v14 }
 0x1e1   :  { %v3659_v49 = vrot.slane %v3459_v60, 1  ;;  %v3461_v29 = vpop.f32.mrb[39].mxu1  ;;  %v10025_v58 = vsel %vm3584_vm0, %v3651_v59, %v3655_v55  ;;  %7263 = vmatprep.subr.bf16.mxu1 %v9849_v33  ;;  %5512 = vmatpush1.bf16.msra.mxu0 %v9999_v34  ;;  %v10032_v60 = vld [vmem:[%s11190_s4 + $0x8e0] ss:$8 sps:$4 sm:$0xff]   ;;  %v10041_v59 = vld [vmem:[%s11190_s4 + $0x8f4] ss:$8 sps:$4 sm:$0xff]  }
 0x1e2   :  { %11208 = vst [vmem:[#allocation11_spill] sm:$0xff] %v10025_v58  ;;  %v3661_v26 = vrot.slane %v3461_v29, 1  ;;  %v10035_v14 = vsel %vm3584_vm0, %v3653_v52, %v3657_v10  ;;  %2238 = vmatmul.mubr.bf16.gmra.mrb[28].mxu0 %v8272_v41  ;;  %5513 = vmatprep.subr.bf16.mxu0 %v10022_v27 }
 0x1e3   :  { %11209 = vst [vmem:[#allocation12_spill] sm:$0xff] %v10035_v14  ;;  %4859 = vmatmul.mubr.bf16.gmra.mrb[80].mxu1 %v10007_v8  ;;  %v10044_v33 = vsel %vm3584_vm0, %v3655_v55, %v3659_v49  ;;  %2247 = vmatprep.mubr.bf16.mxu0 %v8277_v51  ;;  %v10057_v55 = vld [vmem:[%s11190_s4 + $0x8f0] ss:$8 sps:$4 sm:$0xff]  }
 0x1e4   :  { %11210 = vst [vmem:[#allocation13_spill] sm:$0xff] %v10044_v33  ;;  %4868 = vmatprep.mubr.bf16.mxu1 %v10016_v56  ;;  %v10048_v29 = vsel %vm3584_vm0, %v3657_v10, %v3661_v26  ;;  %7279 = vmatpush1.bf16.msra.mxu1 %v9858_v36  ;;  %v8281_v10 = vld [vmem:[%s11194_s3 + $0x80] ss:$8 sps:$4 sm:$0xff]   ;;  %v10065_v36 = vld [vmem:[%s11193_s0 + $0x50] ss:$8 sps:$4 sm:$0xff]  }
 0x1e5   :  { %11211 = vst [vmem:[#allocation14_spill] sm:$0xff] %v10048_v29  ;;  %7264 = vmatprep.subr.bf16.mxu1 %v9867_v4  ;;  %5514 = vmatpush1.bf16.msra.mxu0 %v10032_v60  ;;  %v8286_v33 = vld [vmem:[%s11194_s3 + $0x94] ss:$8 sps:$4 sm:$0xff]  }
 0x1e6   :  { %v3465_v52 = vpop.f32.mrb[40].mxu1  ;;  %5515 = vmatprep.subr.bf16.mxu0 %v10041_v59 }
 0x1e7   :  { %v3663_v51 = vrot.slane %v3465_v52, 1  ;;  %v3467_v41 = vpop.f32.mrb[41].mxu1  ;;  %v10074_v52 = vld [vmem:[%s11193_s0 + $0x64] ss:$8 sps:$4 sm:$0xff]  }
 0x1e8   :  { %v3665_v4 = vrot.slane %v3467_v41, 1  ;;  %v3469_v29 = vpop.f32.mrb[42].mxu1  ;;  %7280 = vmatpush1.bf16.msra.mxu1 %v9883_v53 }
 0x1e9   :  { %v3667_v14 = vrot.slane %v3469_v29, 1  ;;  %v3471_v58 = vpop.f32.mrb[43].mxu1  ;;  %v10078_v23 = vsel %vm3584_vm0, %v3659_v49, %v3663_v51  ;;  %7265 = vmatprep.subr.bf16.mxu1 %v9906_v15  ;;  %5516 = vmatpush1.bf16.msra.mxu0 %v10057_v55 }
 0x1ea   :  { %v3669_v18 = vrot.slane %v3471_v58, 1  ;;  %v10083_v41 = vsel %vm3584_vm0, %v3661_v26, %v3665_v4  ;;  %2248 = vmatmul.mubr.bf16.gmra.mrb[32].mxu0 %v8281_v10  ;;  %v8290_v58 = vld [vmem:[%s11194_s3 + $0x90] ss:$8 sps:$4 sm:$0xff]  }
 0x1eb   :  { %4869 = vmatmul.mubr.bf16.gmra.mrb[84].mxu1 %v10065_v36  ;;  %v10087_v50 = vsel %vm3584_vm0, %v3663_v51, %v3667_v14  ;;  %2257 = vmatprep.mubr.bf16.mxu0 %v8286_v33  ;;  %v10101_v33 = vld [vmem:[%s11193_s0 + $0x60] ss:$8 sps:$4 sm:$0xff]  }
 0x1ec   :  { %11212 = vst [vmem:[#allocation15_spill] sm:$0xff] %v10087_v50  ;;  %4878 = vmatprep.mubr.bf16.mxu1 %v10074_v52  ;;  %v10091_v53 = vsel %vm3584_vm0, %v3665_v4, %v3669_v18  ;;  %7281 = vmatpush1.bf16.msra.mxu1 %v9916_v61  ;;  %v8295_v61 = vld [vmem:[%s11194_s3 + $0xa4] ss:$8 sps:$4 sm:$0xff]  }
 0x1ed   :  { %11213 = vst [vmem:[#allocation16_spill] sm:$0xff] %v10091_v53  ;;  %7266 = vmatprep.subr.bf16.mxu1 %v9925_v25  ;;  %v10109_v25 = vld [vmem:[%s11193_s0 + $0x74] ss:$8 sps:$4 sm:$0xff]  }
 0x1ee   :  { %v3475_v15 = vpop.f32.mrb[44].mxu1 }
 0x1ef   :  { %v3671_v49 = vrot.slane %v3475_v15, 1  ;;  %v3477_v26 = vpop.f32.mrb[45].mxu1 }
 0x1f0   :  { %v3673_v29 = vrot.slane %v3477_v26, 1  ;;  %v3479_v51 = vpop.f32.mrb[46].mxu1  ;;  %7282 = vmatpush1.bf16.msra.mxu1 %v9941_v30 }
 0x1f1   :  { %v3675_v10 = vrot.slane %v3479_v51, 1  ;;  %v3481_v4 = vpop.f32.mrb[47].mxu1  ;;  %v10113_v15 = vsel %vm3584_vm0, %v3667_v14, %v3671_v49  ;;  %7267 = vmatprep.subr.bf16.mxu1 %v9964_v13 }
 0x1f2   :  { %11214 = vst [vmem:[#allocation17_spill] sm:$0xff] %v10113_v15  ;;  %v3677_v53 = vrot.slane %v3481_v4, 1  ;;  %v10117_v26 = vsel %vm3584_vm0, %v3669_v18, %v3673_v29  ;;  %2258 = vmatmul.mubr.bf16.gmra.mrb[36].mxu0 %v8290_v58  ;;  %v8299_v58 = vld [vmem:[%s11194_s3 + $0xa0] ss:$8 sps:$4 sm:$0xff]  }
 0x1f3   :  { %11215 = vst [vmem:[#allocation18_spill] sm:$0xff] %v10117_v26  ;;  %4879 = vmatmul.mubr.bf16.gmra.mrb[88].mxu1 %v10101_v33  ;;  %v10121_v50 = vsel %vm3584_vm0, %v3671_v49, %v3675_v10  ;;  %2267 = vmatprep.mubr.bf16.mxu0 %v8295_v61  ;;  %v10135_v49 = vld [vmem:[%s11193_s0 + $0x70] ss:$8 sps:$4 sm:$0xff]  }
 0x1f4   :  { %11216 = vst [vmem:[#allocation19_spill] sm:$0xff] %v10121_v50  ;;  %4888 = vmatprep.mubr.bf16.mxu1 %v10109_v25  ;;  %v10125_v30 = vsel %vm3584_vm0, %v3673_v29, %v3677_v53  ;;  %7283 = vmatpush1.bf16.msra.mxu1 %v9974_v57  ;;  %v8304_v57 = vld [vmem:[%s11194_s3 + $0xb4] ss:$8 sps:$4 sm:$0xff]  }
 0x1f5   :  { %11217 = vst [vmem:[#allocation20_spill] sm:$0xff] %v10125_v30  ;;  %7268 = vmatprep.subr.bf16.mxu1 %v9983_v7  ;;  %v10143_v7 = vld [vmem:[%s11193_s0 + $0x84] ss:$8 sps:$4 sm:$0xff]  }
 0x1f6   :  { %v3485_v14 = vpop.f32.mrb[48].mxu1 }
 0x1f7   :  { %v3679_v13 = vrot.slane %v3485_v14, 1  ;;  %v3487_v18 = vpop.f32.mrb[49].mxu1 }
 0x1f8   :  { %v3681_v51 = vrot.slane %v3487_v18, 1  ;;  %v3489_v61 = vpop.f32.mrb[50].mxu1  ;;  %7284 = vmatpush1.bf16.msra.mxu1 %v9999_v34 }
 0x1f9   :  { %v3683_v29 = vrot.slane %v3489_v61, 1  ;;  %v3491_v4 = vpop.f32.mrb[51].mxu1  ;;  %v10147_v14 = vsel %vm3584_vm0, %v3675_v10, %v3679_v13  ;;  %7269 = vmatprep.subr.bf16.mxu1 %v10022_v27 }
 0x1fa   :  { %11218 = vst [vmem:[#allocation21_spill] sm:$0xff] %v10147_v14  ;;  %v3685_v30 = vrot.slane %v3491_v4, 1  ;;  %v10151_v18 = vsel %vm3584_vm0, %v3677_v53, %v3681_v51  ;;  %2268 = vmatmul.mubr.bf16.gmra.mrb[40].mxu0 %v8299_v58  ;;  %v8308_v58 = vld [vmem:[%s11194_s3 + $0xb0] ss:$8 sps:$4 sm:$0xff]  }
 0x1fb   :  { %11219 = vst [vmem:[#allocation22_spill] sm:$0xff] %v10151_v18  ;;  %4889 = vmatmul.mubr.bf16.gmra.mrb[92].mxu1 %v10135_v49  ;;  %v10155_v50 = vsel %vm3584_vm0, %v3679_v13, %v3683_v29  ;;  %2277 = vmatprep.mubr.bf16.mxu0 %v8304_v57  ;;  %v10169_v13 = vld [vmem:[%s11193_s0 + $0x80] ss:$8 sps:$4 sm:$0xff]  }
 0x1fc   :  { %11220 = vst [vmem:[#allocation23_spill] sm:$0xff] %v10155_v50  ;;  %4898 = vmatprep.mubr.bf16.mxu1 %v10143_v7  ;;  %v10159_v34 = vsel %vm3584_vm0, %v3681_v51, %v3685_v30  ;;  %7285 = vmatpush1.bf16.msra.mxu1 %v10032_v60  ;;  %v8313_v60 = vld [vmem:[%s11194_s3 + $0xc4] ss:$8 sps:$4 sm:$0xff]  }
 0x1fd   :  { %11221 = vst [vmem:[#allocation24_spill] sm:$0xff] %v10159_v34  ;;  %7270 = vmatprep.subr.bf16.mxu1 %v10041_v59  ;;  %v10177_v59 = vld [vmem:[%s11193_s0 + $0x94] ss:$8 sps:$4 sm:$0xff]  }
 0x1fe   :  { %v3495_v10 = vpop.f32.mrb[52].mxu1 }
 0x1ff   :  { %v3687_v27 = vrot.slane %v3495_v10, 1  ;;  %v3497_v53 = vpop.f32.mrb[53].mxu1 }
 0x200   :  { %v3689_v61 = vrot.slane %v3497_v53, 1  ;;  %v3499_v57 = vpop.f32.mrb[54].mxu1  ;;  %7286 = vmatpush1.bf16.msra.mxu1 %v10057_v55 }
 0x201   :  { %v3691_v51 = vrot.slane %v3499_v57, 1  ;;  %v3501_v4 = vpop.f32.mrb[55].mxu1  ;;  %v10181_v10 = vsel %vm3584_vm0, %v3683_v29, %v3687_v27 }
 0x202   :  { %11222 = vst [vmem:[#allocation25_spill] sm:$0xff] %v10181_v10  ;;  %v3693_v34 = vrot.slane %v3501_v4, 1  ;;  %v10184_v53 = vsel %vm3584_vm0, %v3685_v30, %v3689_v61  ;;  %2278 = vmatmul.mubr.bf16.gmra.mrb[44].mxu0 %v8308_v58  ;;  %v8317_v30 = vld [vmem:[%s11194_s3 + $0xc0] ss:$8 sps:$4 sm:$0xff]   ;;  %v10200_v58 = vld [vmem:[%s11193_s0 + $0x90] ss:$8 sps:$4 sm:$0xff]  }
 0x203   :  { %11223 = vst [vmem:[#allocation26_spill] sm:$0xff] %v10184_v53  ;;  %4899 = vmatmul.mubr.bf16.gmra.mrb[96].mxu1 %v10169_v13  ;;  %v10188_v50 = vsel %vm3584_vm0, %v3687_v27, %v3691_v51  ;;  %2287 = vmatprep.mubr.bf16.mxu0 %v8313_v60  ;;  %v8322_v60 = vld [vmem:[%s11194_s3 + $0xd4] ss:$8 sps:$4 sm:$0xff]  }
 0x204   :  { %11224 = vst [vmem:[#allocation27_spill] sm:$0xff] %v10188_v50  ;;  %4908 = vmatprep.mubr.bf16.mxu1 %v10177_v59  ;;  %v10192_v57 = vsel %vm3584_vm0, %v3689_v61, %v3693_v34  ;;  %v8324_v61 = vld [vmem:[%s11193_s0 + $0xa4] ss:$8 sps:$4 sm:$0xff]  }
 0x205   :  { %11225 = vst [vmem:[#allocation28_spill] sm:$0xff] %v10192_v57 }
 0x206   :  { %v3505_v55 = vpop.f32.mrb[56].mxu1 }
 0x207   :  { %v3695_v18 = vrot.slane %v3505_v55, 1  ;;  %v3507_v29 = vpop.f32.mrb[57].mxu1 }
 0x208   :  { %v3697_v27 = vrot.slane %v3507_v29, 1  ;;  %v3509_v4 = vpop.f32.mrb[58].mxu1 }
 0x209   :  { %v3699_v55 = vrot.slane %v3509_v4, 1  ;;  %v3511_v57 = vpop.f32.mrb[59].mxu1  ;;  %v10209_v50 = vsel %vm3584_vm0, %v3691_v51, %v3695_v18  ;;  %v8326_v51 = vld [vmem:[%s11194_s3 + $0xd0] ss:$8 sps:$4 sm:$0xff]  }
 0x20a   :  { %v3701_v53 = vrot.slane %v3511_v57, 1  ;;  %v10212_v10 = vsel %vm3584_vm0, %v3693_v34, %v3697_v27  ;;  %2288 = vmatmul.mubr.bf16.gmra.mrb[48].mxu0 %v8317_v30  ;;  %v8327_v34 = vld [vmem:[%s11193_s0 + $0xa0] ss:$8 sps:$4 sm:$0xff]  }
 0x20b   :  { %4909 = vmatmul.mubr.bf16.gmra.mrb[100].mxu1 %v10200_v58  ;;  %v10216_v29 = vsel %vm3584_vm0, %v3695_v18, %v3699_v55  ;;  %2297 = vmatprep.mubr.bf16.mxu0 %v8322_v60  ;;  %v8331_v18 = vld [vmem:[%s11194_s3 + $0xe4] ss:$8 sps:$4 sm:$0xff]  }
 0x20c   :  { %4918 = vmatprep.mubr.bf16.mxu1 %v8324_v61  ;;  %v10219_v14 = vsel %vm3584_vm0, %v3697_v27, %v3701_v53  ;;  %v8333_v27 = vld [vmem:[%s11193_s0 + $0xb4] ss:$8 sps:$4 sm:$0xff]  }
 0x20d   :  { %11226 = vst [vmem:[#allocation29_spill] sm:$0xff] %v10219_v14 }
 0x20e   :  { %v3515_v4 = vpop.f32.mrb[60].mxu1 }
 0x20f   :  { %v3703_v26 = vrot.slane %v3515_v4, 1  ;;  %v3517_v15 = vpop.f32.mrb[61].mxu1 }
 0x210   :  { %v3705_v57 = vrot.slane %v3517_v15, 1  ;;  %v3519_v30 = vpop.f32.mrb[62].mxu1  ;;  %v8335_v15 = vld [vmem:[%s11194_s3 + $0xe0] ss:$8 sps:$4 sm:$0xff]  }
 0x211   :  { %v3520_v60 = vpop.f32.mrb[63].mxu1  ;;  %v10234_v4 = vsel %vm3584_vm0, %v3699_v55, %v3703_v26  ;;  %v8336_v30 = vld [vmem:[%s11193_s0 + $0xb0] ss:$8 sps:$4 sm:$0xff]   ;;  %v8340_v26 = vld [vmem:[%s11193_s0 + $0xc4] ss:$8 sps:$4 sm:$0xff]  }
 0x212   :  { %v10237_v14 = vsel %vm3584_vm0, %v3701_v53, %v3705_v57  ;;  %2298 = vmatmul.mubr.bf16.gmra.mrb[52].mxu0 %v8326_v51  ;;  %v8342_v53 = vld [vmem:[%s11193_s0 + $0xc0] ss:$8 sps:$4 sm:$0xff]   ;;  %v8343_v55 = vld [vmem:[%s11193_s0 + $0xd4] ss:$8 sps:$4 sm:$0xff]   ;;  %v8345_v51 = vld [vmem:[%s11193_s0 + $0xd0] ss:$8 sps:$4 sm:$0xff]  }
 0x213   :  { %4919 = vmatmul.mubr.bf16.gmra.mrb[104].mxu1 %v8327_v34  ;;  %2307 = vmatprep.mubr.bf16.mxu0 %v8331_v18  ;;  %v8348_v57 = vld [vmem:[%s11193_s0 + $0xe0] ss:$8 sps:$4 sm:$0xff]  }
 0x214   :  { %4928 = vmatprep.mubr.bf16.mxu1 %v8333_v27 }
 0x21a   :  { %2308 = vmatmul.mubr.bf16.gmra.mrb[56].mxu0 %v8335_v15 }
 0x21b   :  { %4929 = vmatmul.mubr.bf16.gmra.mrb[108].mxu1 %v8336_v30  ;;  %5517 = vmatprep.mubr.bf16.mxu0 %v9738_v35  ;;  %v8346_v35 = vld [vmem:[%s11193_s0 + $0xe4] ss:$8 sps:$4 sm:$0xff]  }
 0x21c   :  { %4938 = vmatprep.mubr.bf16.mxu1 %v8340_v26 }
 0x222   :  { %5518 = vmatmul.mubr.bf16.vlgmr.msra.gmra.mrb[60].mxu0 %v9780_v54  ;;  %v3857_v54 = vld [vmem:[%s11193_s0 + $0xf0] sm:$0xff] }
 0x223   :  { %4939 = vmatmul.mubr.bf16.gmra.mrb[112].mxu1 %v8342_v53  ;;  %5525 = vmatprep.mubr.bf16.mxu0 %v9791_v5  ;;  %v3858_v5 = vld [vmem:[%s11193_s0 + $0xf8] sm:$0x33] }
 0x224   :  { %4948 = vmatprep.mubr.bf16.mxu1 %v8343_v55  ;;  %v7096_v18 = vcombine.high %v3857_v54, %v3858_v5 }
 0x22a   :  { %5526 = vmatmul.mubr.bf16.gmra.mrb[64].mxu0 %v9833_v24  ;;  %v7095_v24 = vcombine.low %v3857_v54, %v3858_v5 }
 0x22b   :  { %4949 = vmatmul.mubr.bf16.gmra.mrb[116].mxu1 %v8345_v51  ;;  %5535 = vmatprep.mubr.bf16.mxu0 %v9843_v28  ;;  %v5284_v28 = vld [vmem:[%s11193_s0 + $0xf8] sm:$0x77] }
 0x22c   :  { %4958 = vmatprep.mubr.bf16.mxu1 %v8346_v35 }
 0x232   :  { %5536 = vmatmul.mubr.bf16.gmra.mrb[68].mxu0 %v9891_v16  ;;  %v7162_v16 = vcombine.high %v3857_v54, %v5284_v28 }
 0x233   :  { %4959 = vmatmul.mubr.bf16.gmra.mrb[120].mxu1 %v8348_v57  ;;  %5545 = vmatprep.mubr.bf16.mxu0 %v9900_v63  ;;  %v7161_v63 = vcombine.low %v3857_v54, %v5284_v28 }
 0x234   :  { %4968 = vmatprep.mubr.bf16.mxu1 %v7096_v18 }
 0x23a   :  { %5546 = vmatmul.mubr.bf16.gmra.mrb[72].mxu0 %v9949_v38 }
 0x23b   :  { %4969 = vmatmul.mubr.bf16.gmra.mrb[124].mxu1 %v7095_v24  ;;  %5555 = vmatprep.mubr.bf16.mxu0 %v9958_v19 }
 0x23c   :  { %5615 = vmatprep.mubr.bf16.mxu1 %v8324_v61 }
 0x242   :  { %5556 = vmatmul.mubr.bf16.gmra.mrb[76].mxu0 %v10007_v8 }
 0x243   :  { %5616 = vmatmul.mubr.bf16.vlgmr.msra.gmra.mrb[128].mxu1 %v8327_v34  ;;  %5565 = vmatprep.mubr.bf16.mxu0 %v10016_v56 }
 0x244   :  { %5625 = vmatprep.mubr.bf16.mxu1 %v8333_v27 }
 0x24a   :  { %5566 = vmatmul.mubr.bf16.gmra.mrb[80].mxu0 %v10065_v36 }
 0x24b   :  { %5626 = vmatmul.mubr.bf16.gmra.mrb[132].mxu1 %v8336_v30  ;;  %5575 = vmatprep.mubr.bf16.mxu0 %v10074_v52 }
 0x24c   :  { %5635 = vmatprep.mubr.bf16.mxu1 %v8340_v26 }
 0x252   :  { %5576 = vmatmul.mubr.bf16.gmra.mrb[84].mxu0 %v10101_v33 }
 0x253   :  { %5636 = vmatmul.mubr.bf16.gmra.mrb[136].mxu1 %v8342_v53  ;;  %5585 = vmatprep.mubr.bf16.mxu0 %v10109_v25 }
 0x254   :  { %5645 = vmatprep.mubr.bf16.mxu1 %v8343_v55 }
 0x25a   :  { %5586 = vmatmul.mubr.bf16.gmra.mrb[88].mxu0 %v10135_v49 }
 0x25b   :  { %5646 = vmatmul.mubr.bf16.gmra.mrb[140].mxu1 %v8345_v51  ;;  %5595 = vmatprep.mubr.bf16.mxu0 %v10143_v7 }
 0x25c   :  { %5655 = vmatprep.mubr.bf16.mxu1 %v8346_v35 }
 0x262   :  { %5596 = vmatmul.mubr.bf16.gmra.mrb[92].mxu0 %v10169_v13 }
 0x263   :  { %5656 = vmatmul.mubr.bf16.gmra.mrb[144].mxu1 %v8348_v57  ;;  %5605 = vmatprep.mubr.bf16.mxu0 %v10177_v59 }
 0x264   :  { %5665 = vmatprep.mubr.bf16.mxu1 %v7162_v16 }
 0x26a   :  { %5606 = vmatmul.mubr.bf16.gmra.mrb[96].mxu0 %v10200_v58 }
 0x26b   :  { %5666 = vmatmul.mubr.bf16.gmra.mrb[148].mxu1 %v7161_v63 }
 0x27d   :  { %v2169_v38 = vpop.f32.mrb[0].mxu0 }
 0x27e   :  { %v3767_v19 = vadd.f32 %v9603_v31, %v2169_v38  ;;  %v2171_v8 = vpop.f32.mrb[1].mxu0 }
 0x27f   :  { %v3768_v56 = vadd.f32 %v9606_v32, %v2171_v8  ;;  %v2173_v36 = vpop.f32.mrb[2].mxu0 }
 0x280   :  { %v3769_v52 = vadd.f32 %v9621_v44, %v2173_v36  ;;  %v2175_v33 = vpop.f32.mrb[3].mxu0 }
 0x281   :  { %v3770_v25 = vadd.f32 %v9624_v46, %v2175_v33 }
 0x285   :  { %v2179_v49 = vpop.f32.mrb[4].mxu0 }
 0x286   :  { %v10297_v7 = vadd.f32 %v9627_v47, %v2179_v49  ;;  %v2181_v13 = vpop.f32.mrb[5].mxu0 }
 0x287   :  { %v10300_v59 = vadd.f32 %v9630_v48, %v2181_v13  ;;  %v2183_v58 = vpop.f32.mrb[6].mxu0 }
 0x288   :  { %v10303_v31 = vadd.f32 %v9655_v62, %v2183_v58  ;;  %v2185_v61 = vpop.f32.mrb[7].mxu0 }
 0x289   :  { %v10306_v32 = vadd.f32 %v9658_v0, %v2185_v61 }
 0x28d   :  { %v2189_v44 = vpop.f32.mrb[8].mxu0 }
 0x28e   :  { %v10309_v34 = vadd.f32 %v9661_v1, %v2189_v44  ;;  %v2191_v46 = vpop.f32.mrb[9].mxu0 }
 0x28f   :  { %v10312_v47 = vadd.f32 %v9670_v3, %v2191_v46  ;;  %v2193_v27 = vpop.f32.mrb[10].mxu0 }
 0x290   :  { %v10315_v48 = vadd.f32 %v9698_v17, %v2193_v27  ;;  %v2195_v60 = vpop.f32.mrb[11].mxu0 }
 0x291   :  { %v10318_v62 = vadd.f32 %v9706_v20, %v2195_v60 }
 0x295   :  { %v2199_v15 = vpop.f32.mrb[12].mxu0 }
 0x296   :  { %v4822_v30 = vpop.f32.mrb[64].mxu1  ;;  %v10321_v0 = vadd.f32 %v9709_v21, %v2199_v15  ;;  %v2201_v26 = vpop.f32.mrb[13].mxu0 }
 0x297   :  { %v4823_v1 = vpop.f32.mrb[65].mxu1  ;;  %v10324_v53 = vadd.f32 %v9712_v22, %v2201_v26  ;;  %v2203_v3 = vpop.f32.mrb[14].mxu0 }
 0x298   :  { %v4824_v55 = vpop.f32.mrb[66].mxu1  ;;  %v10327_v51 = vadd.f32 %v9747_v39, %v2203_v3  ;;  %v2205_v17 = vpop.f32.mrb[15].mxu0 }
 0x299   :  { %v4826_v35 = vpop.f32.mrb[67].mxu1  ;;  %v10330_v20 = vadd.f32 %v9756_v42, %v2205_v17  ;;  %v5042_v21 = vrot.slane %v4824_v55, 4 }
 0x29a   :  { %v5045_v28 = vrot.slane %v4826_v35, 4 }
 0x29d   :  { %v2209_v54 = vpop.f32.mrb[16].mxu0 }
 0x29e   :  { %v4830_v5 = vpop.f32.mrb[68].mxu1  ;;  %v10333_v57 = vadd.f32 %v9759_v43, %v2209_v54  ;;  %v2211_v22 = vpop.f32.mrb[17].mxu0 }
 0x29f   :  { %v5043_v18 = vrot.slane %v4830_v5, 4  ;;  %v4832_v24 = vpop.f32.mrb[69].mxu1  ;;  %v10336_v16 = vadd.f32 %v9763_v45, %v2211_v22  ;;  %v2213_v63 = vpop.f32.mrb[18].mxu0 }
 0x2a0   :  { %v5046_v39 = vrot.slane %v4832_v24, 4  ;;  %v4834_v38 = vpop.f32.mrb[70].mxu1  ;;  %v10340_v8 = vadd.f32 %v9795_v6, %v2213_v63  ;;  %v2215_v33 = vpop.f32.mrb[19].mxu0 }
 0x2a1   :  { %v5044_v42 = vsel %vm5041_vm1, %v5042_v21, %v5043_v18  ;;  %v5048_v36 = vrot.slane %v4834_v38, 4  ;;  %v4836_v49 = vpop.f32.mrb[71].mxu1  ;;  %v10346_v58 = vadd.f32 %v9804_v9, %v2215_v33 }
 0x2a2   :  { %v10342_v43 = vadd.f32 %v5044_v42, %v3767_v19  ;;  %v5047_v13 = vsel %vm5041_vm1, %v5045_v28, %v5046_v39  ;;  %v5050_v45 = vrot.slane %v4836_v49, 4 }
 0x2a3   :  { %v10348_v61 = vadd.f32 %v5047_v13, %v3768_v56  ;;  %v5049_v44 = vsel %vm5041_vm1, %v5043_v18, %v5048_v36 }
 0x2a4   :  { %v10351_v46 = vadd.f32 %v5049_v44, %v3769_v52  ;;  %v5051_v6 = vsel %vm5041_vm1, %v5046_v39, %v5050_v45 }
 0x2a5   :  { %v10354_v27 = vadd.f32 %v5051_v6, %v3770_v25  ;;  %v2219_v60 = vpop.f32.mrb[20].mxu0 }
 0x2a6   :  { %v4840_v15 = vpop.f32.mrb[72].mxu1  ;;  %v10357_v19 = vadd.f32 %v9813_v11, %v2219_v60  ;;  %v2221_v26 = vpop.f32.mrb[21].mxu0 }
 0x2a7   :  { %v5052_v30 = vrot.slane %v4840_v15, 4  ;;  %v4842_v9 = vpop.f32.mrb[73].mxu1  ;;  %v10360_v1 = vadd.f32 %v9817_v12, %v2221_v26  ;;  %v2223_v3 = vpop.f32.mrb[22].mxu0 }
 0x2a8   :  { %v5054_v56 = vrot.slane %v4842_v9, 4  ;;  %v4844_v55 = vpop.f32.mrb[74].mxu1  ;;  %v10364_v17 = vadd.f32 %v9852_v2, %v2223_v3  ;;  %v2225_v35 = vpop.f32.mrb[23].mxu0 }
 0x2a9   :  { %v5053_v52 = vsel %vm5041_vm1, %v5048_v36, %v5052_v30  ;;  %v5056_v25 = vrot.slane %v4844_v55, 4  ;;  %v4846_v54 = vpop.f32.mrb[75].mxu1  ;;  %v10371_v21 = vadd.f32 %v9861_v37, %v2225_v35 }
 0x2aa   :  { %v10367_v11 = vadd.f32 %v5053_v52, %v10297_v7  ;;  %v5055_v5 = vsel %vm5041_vm1, %v5050_v45, %v5054_v56  ;;  %v5058_v12 = vrot.slane %v4846_v54, 4  ;;  %v11228_v45 = vld [vmem:[#allocation3_spill] sm:$0xff]  ;;  %v11230_v54 = vld [vmem:[#allocation5_spill] sm:$0xff] }
 0x2ab   :  { %v10374_v18 = vadd.f32 %v5055_v5, %v10300_v59  ;;  %v5057_v22 = vsel %vm5041_vm1, %v5052_v30, %v5056_v25  ;;  %v11227_v59 = vld [vmem:[#allocation2_spill] sm:$0xff]  ;;  %v11229_v30 = vld [vmem:[#allocation4_spill] sm:$0xff] }
 0x2ac   :  { %v10378_v2 = vadd.f32 %v5057_v22, %v10303_v31  ;;  %v5059_v24 = vsel %vm5041_vm1, %v5054_v56, %v5058_v12 }
 0x2ad   :  { %v10382_v28 = vadd.f32 %v5059_v24, %v10306_v32  ;;  %v2229_v7 = vpop.f32.mrb[24].mxu0 }
 0x2ae   :  { %v4850_v39 = vpop.f32.mrb[76].mxu1  ;;  %v10385_v63 = vadd.f32 %v9870_v40, %v2229_v7  ;;  %v2231_v38 = vpop.f32.mrb[25].mxu0 }
 0x2af   :  { %v5060_v37 = vrot.slane %v4850_v39, 4  ;;  %v4852_v42 = vpop.f32.mrb[77].mxu1  ;;  %v10388_v36 = vadd.f32 %v11227_v59, %v2231_v38  ;;  %v2233_v49 = vpop.f32.mrb[26].mxu0 }
 0x2b0   :  { %v5062_v33 = vrot.slane %v4852_v42, 4  ;;  %v4854_v31 = vpop.f32.mrb[78].mxu1  ;;  %v10392_v44 = vadd.f32 %v11228_v45, %v2233_v49  ;;  %v2235_v6 = vpop.f32.mrb[27].mxu0  ;;  %v11232_v42 = vld [vmem:[#allocation7_spill] sm:$0xff]  ;;  %v11233_v45 = vld [vmem:[#allocation8_spill] sm:$0xff] }
 0x2b1   :  { %v5061_v13 = vsel %vm5041_vm1, %v5056_v25, %v5060_v37  ;;  %v5064_v32 = vrot.slane %v4854_v31, 4  ;;  %v4856_v60 = vpop.f32.mrb[79].mxu1  ;;  %v10399_v26 = vadd.f32 %v11229_v30, %v2235_v6 }
 0x2b2   :  { %v10395_v40 = vadd.f32 %v5061_v13, %v10309_v34  ;;  %v5063_v15 = vsel %vm5041_vm1, %v5058_v12, %v5062_v33  ;;  %v5066_v9 = vrot.slane %v4856_v60, 4 }
 0x2b3   :  { %v10402_v56 = vadd.f32 %v5063_v15, %v10312_v47  ;;  %v5065_v3 = vsel %vm5041_vm1, %v5060_v37, %v5064_v32  ;;  %v11231_v47 = vld [vmem:[#allocation6_spill] sm:$0xff] }
 0x2b4   :  { %v10406_v55 = vadd.f32 %v5065_v3, %v10315_v48  ;;  %v5067_v52 = vsel %vm5041_vm1, %v5062_v33, %v5066_v9 }
 0x2b5   :  { %v10410_v25 = vadd.f32 %v5067_v52, %v10318_v62  ;;  %v2239_v34 = vpop.f32.mrb[28].mxu0 }
 0x2b6   :  { %v4860_v35 = vpop.f32.mrb[80].mxu1  ;;  %v10413_v5 = vadd.f32 %v11230_v54, %v2239_v34  ;;  %v2241_v22 = vpop.f32.mrb[29].mxu0 }
 0x2b7   :  { %v5068_v12 = vrot.slane %v4860_v35, 4  ;;  %v4862_v24 = vpop.f32.mrb[81].mxu1  ;;  %v10416_v7 = vadd.f32 %v11231_v47, %v2241_v22  ;;  %v2243_v37 = vpop.f32.mrb[30].mxu0 }
 0x2b8   :  { %v5070_v39 = vrot.slane %v4862_v24, 4  ;;  %v4864_v48 = vpop.f32.mrb[82].mxu1  ;;  %v10420_v59 = vadd.f32 %v11232_v42, %v2243_v37  ;;  %v2245_v33 = vpop.f32.mrb[31].mxu0 }
 0x2b9   :  { %v5069_v38 = vsel %vm5041_vm1, %v5064_v32, %v5068_v12  ;;  %v5072_v62 = vrot.slane %v4864_v48, 4  ;;  %v4866_v49 = vpop.f32.mrb[83].mxu1  ;;  %v10427_v6 = vadd.f32 %v11233_v45, %v2245_v33  ;;  %v11237_v45 = vld [vmem:[#allocation12_spill] sm:$0xff] }
 0x2ba   :  { %v10423_v31 = vadd.f32 %v5069_v38, %v10321_v0  ;;  %v5071_v13 = vsel %vm5041_vm1, %v5066_v9, %v5070_v39  ;;  %v5074_v60 = vrot.slane %v4866_v49, 4  ;;  %v11234_v9 = vld [vmem:[#allocation9_spill] sm:$0xff] }
 0x2bb   :  { %v10430_v15 = vadd.f32 %v5071_v13, %v10324_v53  ;;  %v5073_v32 = vsel %vm5041_vm1, %v5068_v12, %v5072_v62  ;;  %v11235_v53 = vld [vmem:[#allocation10_spill] sm:$0xff] }
 0x2bc   :  { %v10434_v30 = vadd.f32 %v5073_v32, %v10327_v51  ;;  %v5075_v3 = vsel %vm5041_vm1, %v5070_v39, %v5074_v60  ;;  %v11236_v39 = vld [vmem:[#allocation11_spill] sm:$0xff] }
 0x2bd   :  { %v10438_v52 = vadd.f32 %v5075_v3, %v10330_v20  ;;  %v2249_v0 = vpop.f32.mrb[32].mxu0 }
 0x2be   :  { %v4870_v34 = vpop.f32.mrb[84].mxu1  ;;  %v10441_v35 = vadd.f32 %v11234_v9, %v2249_v0  ;;  %v2251_v22 = vpop.f32.mrb[33].mxu0 }
 0x2bf   :  { %v5076_v54 = vrot.slane %v4870_v34, 4  ;;  %v4872_v24 = vpop.f32.mrb[85].mxu1  ;;  %v10444_v47 = vadd.f32 %v11235_v53, %v2251_v22  ;;  %v2253_v37 = vpop.f32.mrb[34].mxu0 }
 0x2c0   :  { %v5078_v12 = vrot.slane %v4872_v24, 4  ;;  %v4874_v51 = vpop.f32.mrb[86].mxu1  ;;  %v10448_v38 = vadd.f32 %v11236_v39, %v2253_v37  ;;  %v2255_v42 = vpop.f32.mrb[35].mxu0 }
 0x2c1   :  { %v5077_v48 = vsel %vm5041_vm1, %v5072_v62, %v5076_v54  ;;  %v5080_v20 = vrot.slane %v4874_v51, 4  ;;  %v4876_v33 = vpop.f32.mrb[87].mxu1  ;;  %v10455_v32 = vadd.f32 %v11237_v45, %v2255_v42 }
 0x2c2   :  { %v10451_v49 = vadd.f32 %v5077_v48, %v10333_v57  ;;  %v5079_v13 = vsel %vm5041_vm1, %v5074_v60, %v5078_v12  ;;  %v5082_v3 = vrot.slane %v4876_v33, 4  ;;  %v11238_v60 = vld [vmem:[#allocation13_spill] sm:$0xff] }
 0x2c3   :  { %v10458_v0 = vadd.f32 %v5079_v13, %v10336_v16  ;;  %v5081_v62 = vsel %vm5041_vm1, %v5076_v54, %v5080_v20  ;;  %v11239_v16 = vld [vmem:[#allocation14_spill] sm:$0xff] }
 0x2c4   :  { %v10462_v34 = vadd.f32 %v5081_v62, %v10340_v8  ;;  %v5083_v9 = vsel %vm5041_vm1, %v5078_v12, %v5082_v3 }
 0x2c5   :  { %v10466_v22 = vadd.f32 %v5083_v9, %v10346_v58  ;;  %v2259_v57 = vpop.f32.mrb[36].mxu0 }
 0x2c6   :  { %v4880_v24 = vpop.f32.mrb[88].mxu1  ;;  %v10469_v53 = vadd.f32 %v11238_v60, %v2259_v57  ;;  %v2261_v51 = vpop.f32.mrb[37].mxu0 }
 0x2c7   :  { %v5084_v37 = vrot.slane %v4880_v24, 4  ;;  %v4882_v48 = vpop.f32.mrb[89].mxu1  ;;  %v10472_v39 = vadd.f32 %v11239_v16, %v2261_v51  ;;  %v2263_v42 = vpop.f32.mrb[38].mxu0 }
 0x2c8   :  { %v5086_v54 = vrot.slane %v4882_v48, 4  ;;  %v4884_v8 = vpop.f32.mrb[90].mxu1  ;;  %v10476_v12 = vadd.f32 %v10078_v23, %v2263_v42  ;;  %v2265_v13 = vpop.f32.mrb[39].mxu0 }
 0x2c9   :  { %v5085_v33 = vsel %vm5041_vm1, %v5080_v20, %v5084_v37  ;;  %v5088_v58 = vrot.slane %v4884_v8, 4  ;;  %v4886_v45 = vpop.f32.mrb[91].mxu1  ;;  %v10483_v57 = vadd.f32 %v10083_v41, %v2265_v13 }
 0x2ca   :  { %v10479_v62 = vadd.f32 %v5085_v33, %v10357_v19  ;;  %v5087_v9 = vsel %vm5041_vm1, %v5082_v3, %v5086_v54  ;;  %v5090_v24 = vrot.slane %v4886_v45, 4  ;;  %v11244_v3 = vld [vmem:[#allocation15_spill] sm:$0xff] }
 0x2cb   :  { %v10486_v60 = vadd.f32 %v5087_v9, %v10360_v1  ;;  %v5089_v20 = vsel %vm5041_vm1, %v5084_v37, %v5088_v58  ;;  %v11245_v1 = vld [vmem:[#allocation16_spill] sm:$0xff] }
 0x2cc   :  { %11240 = vst [vmem:[#allocation2_spill] sm:$0xff] %v10479_v62  ;;  %v10490_v23 = vadd.f32 %v5089_v20, %v10364_v17  ;;  %v5091_v51 = vsel %vm5041_vm1, %v5086_v54, %v5090_v24  ;;  %v11246_v54 = vld [vmem:[#allocation17_spill] sm:$0xff] }
 0x2cd   :  { %11241 = vst [vmem:[#allocation3_spill] sm:$0xff] %v10486_v60  ;;  %v10494_v48 = vadd.f32 %v5091_v51, %v10371_v21  ;;  %v2269_v19 = vpop.f32.mrb[40].mxu0 }
 0x2ce   :  { %11242 = vst [vmem:[#allocation4_spill] sm:$0xff] %v10490_v23  ;;  %v4890_v16 = vpop.f32.mrb[92].mxu1  ;;  %v10497_v42 = vadd.f32 %v11244_v3, %v2269_v19  ;;  %v2271_v8 = vpop.f32.mrb[41].mxu0  ;;  %v11248_v3 = vld [vmem:[#allocation18_spill] sm:$0xff] }
 0x2cf   :  { %11243 = vst [vmem:[#allocation5_spill] sm:$0xff] %v10494_v48  ;;  %v5092_v41 = vrot.slane %v4890_v16, 4  ;;  %v4892_v33 = vpop.f32.mrb[93].mxu1  ;;  %v10500_v13 = vadd.f32 %v11245_v1, %v2271_v8  ;;  %v2273_v45 = vpop.f32.mrb[42].mxu0 }
 0x2d0   :  { %v5094_v37 = vrot.slane %v4892_v33, 4  ;;  %v4894_v17 = vpop.f32.mrb[94].mxu1  ;;  %v10504_v20 = vadd.f32 %v11246_v54, %v2273_v45  ;;  %v2275_v51 = vpop.f32.mrb[43].mxu0 }
 0x2d1   :  { %v5093_v9 = vsel %vm5041_vm1, %v5088_v58, %v5092_v41  ;;  %v5096_v21 = vrot.slane %v4894_v17, 4  ;;  %v4896_v48 = vpop.f32.mrb[95].mxu1  ;;  %v10511_v23 = vadd.f32 %v11248_v3, %v2275_v51 }
 0x2d2   :  { %v10507_v19 = vadd.f32 %v5093_v9, %v10385_v63  ;;  %v5095_v16 = vsel %vm5041_vm1, %v5090_v24, %v5094_v37  ;;  %v5098_v8 = vrot.slane %v4896_v48, 4  ;;  %v11252_v24 = vld [vmem:[#allocation19_spill] sm:$0xff] }
 0x2d3   :  { %v10514_v33 = vadd.f32 %v5095_v16, %v10388_v36  ;;  %v5097_v58 = vsel %vm5041_vm1, %v5092_v41, %v5096_v21  ;;  %v11253_v36 = vld [vmem:[#allocation20_spill] sm:$0xff] }
 0x2d4   :  { %11247 = vst [vmem:[#allocation6_spill] sm:$0xff] %v10507_v19  ;;  %v10518_v1 = vadd.f32 %v5097_v58, %v10392_v44  ;;  %v5099_v45 = vsel %vm5041_vm1, %v5094_v37, %v5098_v8  ;;  %v11254_v37 = vld [vmem:[#allocation21_spill] sm:$0xff] }
 0x2d5   :  { %11249 = vst [vmem:[#allocation7_spill] sm:$0xff] %v10514_v33  ;;  %v10522_v17 = vadd.f32 %v5099_v45, %v10399_v26  ;;  %v2279_v63 = vpop.f32.mrb[44].mxu0 }
 0x2d6   :  { %11250 = vst [vmem:[#allocation8_spill] sm:$0xff] %v10518_v1  ;;  %v4900_v9 = vpop.f32.mrb[96].mxu1  ;;  %v10525_v54 = vadd.f32 %v11252_v24, %v2279_v63  ;;  %v2281_v48 = vpop.f32.mrb[45].mxu0  ;;  %v11256_v24 = vld [vmem:[#allocation22_spill] sm:$0xff] }
 0x2d7   :  { %11251 = vst [vmem:[#allocation9_spill] sm:$0xff] %v10522_v17  ;;  %v5100_v51 = vrot.slane %v4900_v9, 4  ;;  %v4902_v3 = vpop.f32.mrb[97].mxu1  ;;  %v10528_v16 = vadd.f32 %v11253_v36, %v2281_v48  ;;  %v2283_v33 = vpop.f32.mrb[46].mxu0 }
 0x2d8   :  { %v5102_v41 = vrot.slane %v4902_v3, 4  ;;  %v4904_v44 = vpop.f32.mrb[98].mxu1  ;;  %v10532_v1 = vadd.f32 %v11254_v37, %v2283_v33  ;;  %v2285_v45 = vpop.f32.mrb[47].mxu0 }
 0x2d9   :  { %v5101_v58 = vsel %vm5041_vm1, %v5096_v21, %v5100_v51  ;;  %v5104_v26 = vrot.slane %v4904_v44, 4  ;;  %v4906_v17 = vpop.f32.mrb[99].mxu1  ;;  %v10539_v19 = vadd.f32 %v11256_v24, %v2285_v45 }
 0x2da   :  { %v10535_v63 = vadd.f32 %v5101_v58, %v10413_v5  ;;  %v5103_v9 = vsel %vm5041_vm1, %v5098_v8, %v5102_v41  ;;  %v5106_v48 = vrot.slane %v4906_v17, 4  ;;  %v11260_v8 = vld [vmem:[#allocation23_spill] sm:$0xff] }
 0x2db   :  { %v10542_v3 = vadd.f32 %v5103_v9, %v10416_v7  ;;  %v5105_v21 = vsel %vm5041_vm1, %v5100_v51, %v5104_v26  ;;  %v11261_v7 = vld [vmem:[#allocation24_spill] sm:$0xff] }
 0x2dc   :  { %11255 = vst [vmem:[#allocation10_spill] sm:$0xff] %v10535_v63  ;;  %v10546_v33 = vadd.f32 %v5105_v21, %v10420_v59  ;;  %v5107_v36 = vsel %vm5041_vm1, %v5102_v41, %v5106_v48  ;;  %v11262_v41 = vld [vmem:[#allocation25_spill] sm:$0xff] }
 0x2dd   :  { %11257 = vst [vmem:[#allocation11_spill] sm:$0xff] %v10542_v3  ;;  %v10550_v44 = vadd.f32 %v5107_v36, %v10427_v6  ;;  %v2289_v5 = vpop.f32.mrb[48].mxu0 }
 0x2de   :  { %11258 = vst [vmem:[#allocation12_spill] sm:$0xff] %v10546_v33  ;;  %v4910_v58 = vpop.f32.mrb[100].mxu1  ;;  %v10553_v37 = vadd.f32 %v11260_v8, %v2289_v5  ;;  %v2291_v17 = vpop.f32.mrb[49].mxu0  ;;  %v11264_v8 = vld [vmem:[#allocation26_spill] sm:$0xff] }
 0x2df   :  { %11259 = vst [vmem:[#allocation13_spill] sm:$0xff] %v10550_v44  ;;  %v5108_v45 = vrot.slane %v4910_v58, 4  ;;  %v4912_v24 = vpop.f32.mrb[101].mxu1  ;;  %v10556_v9 = vadd.f32 %v11261_v7, %v2291_v17  ;;  %v2293_v3 = vpop.f32.mrb[50].mxu0 }
 0x2e0   :  { %v5110_v51 = vrot.slane %v4912_v24, 4  ;;  %v4914_v59 = vpop.f32.mrb[102].mxu1  ;;  %v10560_v33 = vadd.f32 %v11262_v41, %v2293_v3  ;;  %v2295_v36 = vpop.f32.mrb[51].mxu0 }
 0x2e1   :  { %v5109_v21 = vsel %vm5041_vm1, %v5104_v26, %v5108_v45  ;;  %v5112_v6 = vrot.slane %v4914_v59, 4  ;;  %v4916_v44 = vpop.f32.mrb[103].mxu1  ;;  %v10567_v63 = vadd.f32 %v11264_v8, %v2295_v36 }
 0x2e2   :  { %v10563_v5 = vadd.f32 %v5109_v21, %v10441_v35  ;;  %v5111_v58 = vsel %vm5041_vm1, %v5106_v48, %v5110_v51  ;;  %v5114_v17 = vrot.slane %v4916_v44, 4  ;;  %v11268_v48 = vld [vmem:[#allocation27_spill] sm:$0xff] }
 0x2e3   :  { %v10570_v24 = vadd.f32 %v5111_v58, %v10444_v47  ;;  %v5113_v26 = vsel %vm5041_vm1, %v5108_v45, %v5112_v6  ;;  %v11269_v47 = vld [vmem:[#allocation28_spill] sm:$0xff] }
 0x2e4   :  { %11263 = vst [vmem:[#allocation14_spill] sm:$0xff] %v10563_v5  ;;  %v10574_v3 = vadd.f32 %v5113_v26, %v10448_v38  ;;  %v5115_v7 = vsel %vm5041_vm1, %v5110_v51, %v5114_v17 }
 0x2e5   :  { %11265 = vst [vmem:[#allocation15_spill] sm:$0xff] %v10570_v24  ;;  %v10578_v59 = vadd.f32 %v5115_v7, %v10455_v32  ;;  %v2299_v35 = vpop.f32.mrb[52].mxu0 }
 0x2e6   :  { %11266 = vst [vmem:[#allocation16_spill] sm:$0xff] %v10574_v3  ;;  %v4920_v21 = vpop.f32.mrb[104].mxu1  ;;  %v10581_v41 = vadd.f32 %v11268_v48, %v2299_v35  ;;  %v2301_v44 = vpop.f32.mrb[53].mxu0 }
 0x2e7   :  { %11267 = vst [vmem:[#allocation17_spill] sm:$0xff] %v10578_v59  ;;  %v5116_v36 = vrot.slane %v4920_v21, 4  ;;  %v4922_v8 = vpop.f32.mrb[105].mxu1  ;;  %v10584_v58 = vadd.f32 %v11269_v47, %v2301_v44  ;;  %v2303_v24 = vpop.f32.mrb[54].mxu0 }
 0x2e8   :  { %v5118_v45 = vrot.slane %v4922_v8, 4  ;;  %v4924_v38 = vpop.f32.mrb[106].mxu1  ;;  %v10588_v51 = vadd.f32 %v10209_v50, %v2303_v24  ;;  %v2305_v7 = vpop.f32.mrb[55].mxu0 }
 0x2e9   :  { %v5117_v26 = vsel %vm5041_vm1, %v5112_v6, %v5116_v36  ;;  %v5120_v32 = vrot.slane %v4924_v38, 4  ;;  %v4926_v59 = vpop.f32.mrb[107].mxu1  ;;  %v10595_v48 = vadd.f32 %v10212_v10, %v2305_v7 }
 0x2ea   :  { %v10591_v35 = vadd.f32 %v5117_v26, %v10469_v53  ;;  %v5119_v21 = vsel %vm5041_vm1, %v5114_v17, %v5118_v45  ;;  %v5122_v44 = vrot.slane %v4926_v59, 4 }
 0x2eb   :  { %v10598_v8 = vadd.f32 %v5119_v21, %v10472_v39  ;;  %v5121_v6 = vsel %vm5041_vm1, %v5116_v36, %v5120_v32  ;;  %v11272_v39 = vld [vmem:[#allocation29_spill] sm:$0xff] }
 0x2ec   :  { %11270 = vst [vmem:[#allocation18_spill] sm:$0xff] %v10591_v35  ;;  %v10602_v50 = vadd.f32 %v5121_v6, %v10476_v12  ;;  %v5123_v24 = vsel %vm5041_vm1, %v5118_v45, %v5122_v44  ;;  %v5983_v35 = vlaneseq }
 0x2ed   :  { %11271 = vst [vmem:[#allocation19_spill] sm:$0xff] %v10598_v8  ;;  %v10606_v47 = vadd.f32 %v5123_v24, %v10483_v57  ;;  %v2309_v53 = vpop.f32.mrb[56].mxu0 }
 0x2ee   :  { %v4930_v38 = vpop.f32.mrb[108].mxu1  ;;  %v10609_v17 = vadd.f32 %v10216_v29, %v2309_v53  ;;  %v2311_v59 = vpop.f32.mrb[57].mxu0 }
 0x2ef   :  { %v5124_v10 = vrot.slane %v4930_v38, 4  ;;  %v4932_v26 = vpop.f32.mrb[109].mxu1  ;;  %v10612_v7 = vadd.f32 %v11272_v39, %v2311_v59  ;;  %v2313_v21 = vpop.f32.mrb[58].mxu0 }
 0x2f0   :  { %v5126_v36 = vrot.slane %v4932_v26, 4  ;;  %v4934_v12 = vpop.f32.mrb[110].mxu1  ;;  %v10616_v45 = vadd.f32 %v10234_v4, %v2313_v21  ;;  %v2315_v24 = vpop.f32.mrb[59].mxu0 }
 0x2f1   :  { %v5125_v6 = vsel %vm5041_vm1, %v5120_v32, %v5124_v10  ;;  %v5128_v57 = vrot.slane %v4934_v12, 4  ;;  %v4936_v8 = vpop.f32.mrb[111].mxu1  ;;  %v10623_v38 = vadd.f32 %v10237_v14, %v2315_v24 }
 0x2f2   :  { %v10619_v29 = vadd.f32 %v5125_v6, %v10497_v42  ;;  %v5127_v53 = vsel %vm5041_vm1, %v5122_v44, %v5126_v36  ;;  %v5130_v59 = vrot.slane %v4936_v8, 4  ;;  %v5984_v42 = vshrl.u32 %v5983_v35, 7 }
 0x2f3   :  { %v10626_v26 = vadd.f32 %v5127_v53, %v10500_v13  ;;  %v5129_v32 = vsel %vm5041_vm1, %v5124_v10, %v5128_v57 }
 0x2f4   :  { %v10630_v4 = vadd.f32 %v5129_v32, %v10504_v20  ;;  %v5131_v39 = vsel %vm5041_vm1, %v5126_v36, %v5130_v59  ;;  %v5985_v32 = vsub.s32 0, %v5984_v42 }
 0x2f5   :  { %v10634_v21 = vadd.f32 %v5131_v39, %v10511_v23  ;;  %v5519_v44 = vpop.f32.mrb[60].mxu0  ;;  %v5989_v39 = vsub.s32 1, %v5984_v42 }
 0x2f6   :  { %v4940_v12 = vpop.f32.mrb[112].mxu1  ;;  %v5520_v24 = vpop.f32.mrb[61].mxu0 }
 0x2f7   :  { %11273 = vst [vmem:[#allocation20_spill] sm:$0xff] %v10634_v21  ;;  %v5132_v6 = vrot.slane %v4940_v12, 4  ;;  %v4942_v14 = vpop.f32.mrb[113].mxu1  ;;  %v5521_v13 = vpop.f32.mrb[62].mxu0 }
 0x2f8   :  { %v5134_v8 = vrot.slane %v4942_v14, 4  ;;  %v4944_v3 = vpop.f32.mrb[114].mxu1  ;;  %v5523_v20 = vpop.f32.mrb[63].mxu0  ;;  %v5739_v24 = vrot.slane %v5521_v13, 5 }
 0x2f9   :  { %v5133_v53 = vsel %vm5041_vm1, %v5128_v57, %v5132_v6  ;;  %v5136_v10 = vrot.slane %v4944_v3, 4  ;;  %v4946_v5 = vpop.f32.mrb[115].mxu1  ;;  %v5981_v57 = vld [vmem:[%s11195_s5] sm:$0x3] }
 0x2fa   :  { %v10638_v36 = vadd.f32 %v5133_v53, %v10525_v54  ;;  %v5135_v23 = vsel %vm5041_vm1, %v5130_v59, %v5134_v8  ;;  %v5138_v35 = vrot.slane %v4946_v5, 4  ;;  %v6053_v54 = vld [vmem:[%s11196_s6] sm:$0x3]  ;;  %v10658_v42 = vrot.slane %v5981_v57, %v5985_v32 }
 0x2fb   :  { %v10642_v12 = vadd.f32 %v5135_v23, %v10528_v16  ;;  %v5137_v44 = vsel %vm5041_vm1, %v5132_v6, %v5136_v10  ;;  %v10660_v6 = vrot.slane %v5981_v57, %v5989_v39  ;;  %v10662_v23 = vrot.slane %v6053_v54, %v5985_v32 }
 0x2fc   :  { %11274 = vst [vmem:[#allocation21_spill] sm:$0xff] %v10638_v36  ;;  %v10649_v3 = vadd.f32 %v5137_v44, %v10532_v1  ;;  %v5139_v14 = vsel %vm5041_vm1, %v5134_v8, %v5138_v35  ;;  %v10664_v36 = vrot.slane %v6053_v54, %v5989_v39 }
 0x2fd   :  { %11275 = vst [vmem:[#allocation22_spill] sm:$0xff] %v10642_v12  ;;  %v10656_v5 = vadd.f32 %v5139_v14, %v10539_v19  ;;  %v5527_v59 = vpop.f32.mrb[64].mxu0 }
 0x2fe   :  { %11276 = vst [vmem:[#allocation23_spill] sm:$0xff] %v10649_v3  ;;  %v4950_v16 = vpop.f32.mrb[116].mxu1  ;;  %v5740_v1 = vrot.slane %v5527_v59, 5  ;;  %v5529_v44 = vpop.f32.mrb[65].mxu0  ;;  %v5742_v3 = vrot.slane %v5523_v20, 5 }
 0x2ff   :  { %11277 = vst [vmem:[#allocation24_spill] sm:$0xff] %v10656_v5  ;;  %v5140_v53 = vrot.slane %v4950_v16, 4  ;;  %v4952_v8 = vpop.f32.mrb[117].mxu1  ;;  %v5743_v60 = vrot.slane %v5529_v44, 5  ;;  %v5531_v14 = vpop.f32.mrb[66].mxu0 }
 0x300   :  { %v5142_v12 = vrot.slane %v4952_v8, 4  ;;  %v4954_v19 = vpop.f32.mrb[118].mxu1  ;;  %v5741_v62 = vsel %vm5738_vm2, %v5739_v24, %v5740_v1  ;;  %v5745_v21 = vrot.slane %v5531_v14, 5  ;;  %v5533_v16 = vpop.f32.mrb[67].mxu0 }
 0x301   :  { %v5141_v5 = vsel %vm5041_vm1, %v5136_v10, %v5140_v53  ;;  %v5144_v57 = vrot.slane %v4954_v19, 4  ;;  %v4956_v13 = vpop.f32.mrb[119].mxu1  ;;  %v5921_v59 = vadd.f32 %v5741_v62, %v10342_v43  ;;  %v5744_v39 = vsel %vm5738_vm2, %v5742_v3, %v5743_v60 }
 0x302   :  { %v10669_v32 = vadd.f32 %v5141_v5, %v10553_v37  ;;  %v5143_v20 = vsel %vm5041_vm1, %v5138_v35, %v5142_v12  ;;  %v5922_v10 = vadd.f32 %v5744_v39, %v10348_v61  ;;  %v5746_v8 = vsel %vm5738_vm2, %v5740_v1, %v5745_v21 }
 0x303   :  { %v10675_v54 = vadd.f32 %v5143_v20, %v10556_v9  ;;  %v5145_v24 = vsel %vm5041_vm1, %v5140_v53, %v5144_v57  ;;  %v5993_v44 = vmul.f32 %v10658_v42, %v5921_v59  ;;  %v5923_v43 = vadd.f32 %v5746_v8, %v10351_v46 }
 0x304   :  { %v10682_v37 = vadd.f32 %v5145_v24, %v10560_v33  ;;  %v5146_v62 = vrot.slane %v4956_v13, 4  ;;  %v5994_v35 = vmul.f32 %v10660_v6, %v5922_v10  ;;  %v5747_v3 = vrot.slane %v5533_v16, 5 }
 0x305   :  { %v6065_v9 = vadd.f32 %v10662_v23, %v5993_v44  ;;  %v5995_v5 = vmul.f32 %v10658_v42, %v5923_v43  ;;  %v5537_v19 = vpop.f32.mrb[68].mxu0 }
 0x306   :  { %v5147_v61 = vsel %vm5041_vm1, %v5142_v12, %v5146_v62  ;;  %v4960_v53 = vpop.f32.mrb[120].mxu1  ;;  %v6066_v1 = vadd.f32 %v10664_v36, %v5994_v35  ;;  %v5748_v33 = vsel %vm5738_vm2, %v5743_v60, %v5747_v3  ;;  %v5539_v59 = vpop.f32.mrb[69].mxu0  ;;  %v5749_v10 = vrot.slane %v5537_v19, 5 }
 0x307   :  { %v10691_v14 = vadd.f32 %v5147_v61, %v10567_v63  ;;  %v5148_v46 = vrot.slane %v4960_v53, 4  ;;  %v4962_v13 = vpop.f32.mrb[121].mxu1  ;;  %v6125_v20 = vmax.f32 %v6065_v9, 0.0  ;;  %v6067_v16 = vadd.f32 %v10662_v23, %v5995_v5  ;;  %v5541_v12 = vpop.f32.mrb[70].mxu0 }
 0x308   :  { %v5924_v39 = vadd.f32 %v5748_v33, %v10354_v27  ;;  %v4964_v24 = vpop.f32.mrb[122].mxu1  ;;  %v6126_v8 = vmax.f32 %v6066_v1, 0.0  ;;  %v5150_v43 = vrot.slane %v4962_v13, 4  ;;  %v5751_v35 = vrot.slane %v5539_v59, 5  ;;  %v5543_v61 = vpop.f32.mrb[71].mxu0 }
 0x309   :  { %11278 = vst [vmem:[#allocation25_spill] sm:$0xff] %v10691_v14  ;;  %v5149_v44 = vsel %vm5041_vm1, %v5144_v57, %v5148_v46  ;;  %v4966_v63 = vpop.f32.mrb[123].mxu1  ;;  %v6127_v14 = vmax.f32 %v6067_v16, 0.0  ;;  %v5750_v9 = vsel %vm5738_vm2, %v5745_v21, %v5749_v10  ;;  %v5152_v59 = vrot.slane %v4964_v24, 4 }
 0x30a   :  { %v5996_v60 = vmul.f32 %v10660_v6, %v5924_v39  ;;  %v10699_v53 = vadd.f32 %v5149_v44, %v10581_v41  ;;  %v7225_v5 = vpack.c.bf16 %v6126_v8, %v6125_v20  ;;  %v5925_v27 = vadd.f32 %v5750_v9, %v10367_v11 }
 0x30b   :  { %v5151_v19 = vsel %vm5041_vm1, %v5146_v62, %v5150_v43  ;;  %v5752_v1 = vsel %vm5738_vm2, %v5747_v3, %v5751_v35  ;;  %v5753_v21 = vrot.slane %v5541_v12, 5  ;;  %v5154_v11 = vrot.slane %v4966_v63, 4 }
 0x30c   :  { %v6068_v57 = vadd.f32 %v10664_v36, %v5996_v60  ;;  %v10707_v33 = vadd.f32 %v5151_v19, %v10584_v58  ;;  %v5926_v13 = vadd.f32 %v5752_v1, %v10374_v18  ;;  %6367 = vst [vmem:[%s11197_s7] sm:$0xff] %v7225_v5  ;;  %v5997_v41 = vmul.f32 %v10658_v42, %v5925_v27 }
 0x30d   :  { %v5755_v20 = vrot.slane %v5543_v61, 5  ;;  %v5153_v16 = vsel %vm5041_vm1, %v5148_v46, %v5152_v59  ;;  %v5547_v58 = vpop.f32.mrb[72].mxu0  ;;  %v5754_v24 = vsel %vm5738_vm2, %v5749_v10, %v5753_v21  ;;  %v5155_v44 = vsel %vm5041_vm1, %v5150_v43, %v5154_v11 }
 0x30e   :  { %v6128_v62 = vmax.f32 %v6068_v57, 0.0  ;;  %v5998_v3 = vmul.f32 %v10660_v6, %v5926_v13  ;;  %v4970_v39 = vpop.f32.mrb[124].mxu1  ;;  %v6069_v8 = vadd.f32 %v10662_v23, %v5997_v41  ;;  %v10718_v18 = vadd.f32 %v5153_v16, %v10588_v51  ;;  %v5549_v12 = vpop.f32.mrb[73].mxu0 }
 0x30f   :  { %v4972_v60 = vpop.f32.mrb[125].mxu1  ;;  %v5927_v9 = vadd.f32 %v5754_v24, %v10378_v2  ;;  %v10725_v46 = vadd.f32 %v5155_v44, %v10595_v48  ;;  %v5551_v27 = vpop.f32.mrb[74].mxu0  ;;  %v5756_v51 = vsel %vm5738_vm2, %v5751_v35, %v5755_v20  ;;  %v5156_v1 = vrot.slane %v4970_v39, 4 }
 0x310   :  { %v7226_v63 = vpack.c.bf16 %v6128_v62, %v6127_v14  ;;  %v6070_v61 = vadd.f32 %v10664_v36, %v5998_v3  ;;  %v4974_v5 = vpop.f32.mrb[126].mxu1  ;;  %v6129_v19 = vmax.f32 %v6069_v8, 0.0  ;;  %v5757_v57 = vrot.slane %v5547_v58, 5  ;;  %v5553_v13 = vpop.f32.mrb[75].mxu0 }
 0x311   :  { %v4976_v10 = vpop.f32.mrb[127].mxu1  ;;  %v5999_v43 = vmul.f32 %v10658_v42, %v5927_v9  ;;  %v5928_v2 = vadd.f32 %v5756_v51, %v10382_v28  ;;  %v5158_v48 = vrot.slane %v4972_v60, 4  ;;  %v5157_v41 = vsel %vm5041_vm1, %v5152_v59, %v5156_v1 }
 0x312   :  { %6368 = vst [vmem:[%s11197_s7 + $0x8] sm:$0xff] %v7226_v63  ;;  %v6130_v14 = vmax.f32 %v6070_v61, 0.0  ;;  %v5758_v62 = vsel %vm5738_vm2, %v5753_v21, %v5757_v57  ;;  %v5759_v3 = vrot.slane %v5549_v12, 5  ;;  %v5160_v35 = vrot.slane %v4974_v5, 4 }
 0x313   :  { %v6071_v39 = vadd.f32 %v10662_v23, %v5999_v43  ;;  %v6000_v58 = vmul.f32 %v10660_v6, %v5928_v2  ;;  %v10738_v8 = vadd.f32 %v5157_v41, %v10609_v17  ;;  %v5929_v24 = vadd.f32 %v5758_v62, %v10395_v40 }
 0x314   :  { %v7227_v16 = vpack.c.bf16 %v6130_v14, %v6129_v19  ;;  %v5159_v44 = vsel %vm5041_vm1, %v5154_v11, %v5158_v48  ;;  %v5760_v28 = vsel %vm5738_vm2, %v5755_v20, %v5759_v3  ;;  %v5161_v59 = vsel %vm5041_vm1, %v5156_v1, %v5160_v35 }
 0x315   :  { %v6131_v21 = vmax.f32 %v6071_v39, 0.0  ;;  %v6072_v60 = vadd.f32 %v10664_v36, %v6000_v58  ;;  %v10749_v12 = vadd.f32 %v5159_v44, %v10612_v7  ;;  %v5930_v17 = vadd.f32 %v5760_v28, %v10402_v56  ;;  %v5557_v63 = vpop.f32.mrb[76].mxu0 }
 0x316   :  { %6369 = vst [vmem:[%s11197_s7 + $0x10] sm:$0xff] %v7227_v16  ;;  %v10752_v40 = vpop.f32.mrb[128].mxu1  ;;  %v6001_v11 = vmul.f32 %v10658_v42, %v5929_v24  ;;  %v10756_v20 = vadd.f32 %v5161_v59, %v10616_v45  ;;  %v5761_v61 = vrot.slane %v5551_v27, 5  ;;  %v5162_v9 = vrot.slane %v4976_v10, 4  ;;  %v5559_v5 = vpop.f32.mrb[77].mxu0 }
 0x317   :  { %v10758_v19 = vpop.f32.mrb[129].mxu1  ;;  %v6132_v51 = vmax.f32 %v6072_v60, 0.0  ;;  %v6002_v1 = vmul.f32 %v10660_v6, %v5930_v17  ;;  %v5763_v7 = vrot.slane %v5553_v13, 5  ;;  %v5765_v14 = vrot.slane %v5557_v63, 5  ;;  %v10761_v43 = vpop.f32.mrb[78].mxu0 }
 0x318   :  { %v10763_v56 = vpop.f32.mrb[130].mxu1  ;;  %v6073_v2 = vadd.f32 %v10662_v23, %v6001_v11  ;;  %v5762_v41 = vsel %vm5738_vm2, %v5757_v57, %v5761_v61  ;;  %v5163_v45 = vsel %vm5041_vm1, %v5158_v48, %v5162_v9  ;;  %v5813_v27 = vrot.slane %v10752_v40, 5  ;;  %v10769_v10 = vpop.f32.mrb[79].mxu0 }
 0x319   :  { %v10771_v62 = vpop.f32.mrb[131].mxu1  ;;  %v7228_v35 = vpack.c.bf16 %v6132_v51, %v6131_v21  ;;  %v6074_v13 = vadd.f32 %v10664_v36, %v6002_v1  ;;  %v5931_v16 = vadd.f32 %v5762_v41, %v10406_v55  ;;  %v10776_v39 = vadd.f32 %v5163_v45, %v10623_v38 }
 0x31a   :  { %v6133_v58 = vmax.f32 %v6073_v2, 0.0  ;;  %v5764_v24 = vsel %vm5738_vm2, %v5759_v3, %v5763_v7  ;;  %v5766_v57 = vsel %vm5738_vm2, %v5761_v61, %v5765_v14  ;;  %v5767_v48 = vrot.slane %v5559_v5, 5 }
 0x31b   :  { %6370 = vst [vmem:[%s11197_s7 + $0x18] sm:$0xff] %v7228_v35  ;;  %v6134_v44 = vmax.f32 %v6074_v13, 0.0  ;;  %v6003_v28 = vmul.f32 %v10658_v42, %v5931_v16  ;;  %v5932_v59 = vadd.f32 %v5764_v24, %v10410_v25  ;;  %v5933_v55 = vadd.f32 %v5766_v57, %v10423_v31 }
 0x31c   :  { %v5768_v38 = vsel %vm5738_vm2, %v5763_v7, %v5767_v48  ;;  %v11198_v21 = vrot.slane %v10758_v19, 5  ;;  %v5769_v3 = vrot.slane %v10761_v43, 5  ;;  %v5817_v60 = vrot.slane %v10763_v56, 5 }
 0x31d   :  { %v7229_v17 = vpack.c.bf16 %v6134_v44, %v6133_v58  ;;  %v6075_v63 = vadd.f32 %v10662_v23, %v6003_v28  ;;  %v6004_v11 = vmul.f32 %v10660_v6, %v5932_v59  ;;  %v6005_v61 = vmul.f32 %v10658_v42, %v5933_v55  ;;  %v10793_v9 = vpop.f32.mrb[80].mxu0 }
 0x31e   :  { %v10795_v25 = vpop.f32.mrb[132].mxu1  ;;  %v5934_v31 = vadd.f32 %v5768_v38, %v10430_v15  ;;  %v5770_v5 = vsel %vm5738_vm2, %v5765_v14, %v5769_v3  ;;  %v5818_v51 = vsel %vm5738_vm2, %v5813_v27, %v5817_v60  ;;  %v5771_v1 = vrot.slane %v10769_v10, 5  ;;  %v10803_v7 = vpop.f32.mrb[81].mxu0 }
 0x31f   :  { %v10805_v43 = vpop.f32.mrb[133].mxu1  ;;  %6371 = vst [vmem:[%s11197_s7 + $0x20] sm:$0xff] %v7229_v17  ;;  %v6135_v56 = vmax.f32 %v6075_v63, 0.0  ;;  %v6076_v2 = vadd.f32 %v10664_v36, %v6004_v11  ;;  %v6077_v15 = vadd.f32 %v10662_v23, %v6005_v61  ;;  %v5935_v14 = vadd.f32 %v5770_v5, %v10434_v30  ;;  %v10813_v41 = vpop.f32.mrb[82].mxu0 }
 0x320   :  { %v10815_v45 = vpop.f32.mrb[134].mxu1  ;;  %v6006_v10 = vmul.f32 %v10660_v6, %v5934_v31  ;;  %v5959_v35 = vadd.f32 %v5818_v51, %v10602_v50  ;;  %v5772_v13 = vsel %vm5738_vm2, %v5767_v48, %v5771_v1  ;;  %v5819_v16 = vrot.slane %v10771_v62, 5  ;;  %v10821_v58 = vpop.f32.mrb[83].mxu0 }
 0x321   :  { %v10823_v24 = vpop.f32.mrb[135].mxu1  ;;  %v6136_v57 = vmax.f32 %v6076_v2, 0.0  ;;  %v6137_v44 = vmax.f32 %v6077_v15, 0.0  ;;  %v6007_v30 = vmul.f32 %v10658_v42, %v5935_v14  ;;  %v5936_v28 = vadd.f32 %v5772_v13, %v10438_v52 }
 0x322   :  { %v6078_v59 = vadd.f32 %v10664_v36, %v6006_v10  ;;  %v6031_v55 = vmul.f32 %v10658_v42, %v5959_v35  ;;  %v5820_v50 = vsel %vm5738_vm2, %v11198_v21, %v5819_v16  ;;  %v5773_v62 = vrot.slane %v10793_v9, 5 }
 0x323   :  { %v7230_v48 = vpack.c.bf16 %v6136_v57, %v6135_v56  ;;  %v6079_v38 = vadd.f32 %v10662_v23, %v6007_v30  ;;  %v6008_v17 = vmul.f32 %v10660_v6, %v5936_v28  ;;  %v5960_v63 = vadd.f32 %v5820_v50, %v10606_v47 }
 0x324   :  { %v6138_v11 = vmax.f32 %v6078_v59, 0.0  ;;  %v6103_v52 = vadd.f32 %v10662_v23, %v6031_v55  ;;  %v5774_v61 = vsel %vm5738_vm2, %v5769_v3, %v5773_v62  ;;  %v5821_v31 = vrot.slane %v10795_v25, 5 }
 0x325   :  { %6372 = vst [vmem:[%s11197_s7 + $0x28] sm:$0xff] %v7230_v48  ;;  %v6139_v5 = vmax.f32 %v6079_v38, 0.0  ;;  %v6080_v9 = vadd.f32 %v10664_v36, %v6008_v17  ;;  %v6032_v51 = vmul.f32 %v10660_v6, %v5960_v63  ;;  %v5937_v56 = vadd.f32 %v5774_v61, %v10451_v49  ;;  %v10845_v2 = vpop.f32.mrb[84].mxu0 }
 0x326   :  { %v10847_v47 = vpop.f32.mrb[136].mxu1  ;;  %v7231_v15 = vpack.c.bf16 %v6138_v11, %v6137_v44  ;;  %v6163_v14 = vmax.f32 %v6103_v52, 0.0  ;;  %v5822_v3 = vsel %vm5738_vm2, %v5817_v60, %v5821_v31  ;;  %v5775_v25 = vrot.slane %v10803_v7, 5  ;;  %v10851_v10 = vpop.f32.mrb[85].mxu0 }
 0x327   :  { %v10853_v35 = vpop.f32.mrb[137].mxu1  ;;  %v6140_v13 = vmax.f32 %v6080_v9, 0.0  ;;  %v6104_v57 = vadd.f32 %v10664_v36, %v6032_v51  ;;  %v6009_v30 = vmul.f32 %v10658_v42, %v5937_v56  ;;  %v5961_v49 = vadd.f32 %v5822_v3, %v10619_v29  ;;  %v10858_v28 = vpop.f32.mrb[86].mxu0 }
 0x328   :  { %v10860_v59 = vpop.f32.mrb[138].mxu1  ;;  %6373 = vst [vmem:[%s11197_s7 + $0x30] sm:$0xff] %v7231_v15  ;;  %v5776_v60 = vsel %vm5738_vm2, %v5771_v1, %v5775_v25  ;;  %v5823_v7 = vrot.slane %v10805_v43, 5  ;;  %v5777_v44 = vrot.slane %v10813_v41, 5  ;;  %v5825_v55 = vrot.slane %v10815_v45, 5  ;;  %v10869_v50 = vpop.f32.mrb[87].mxu0 }
 0x329   :  { %v10871_v48 = vpop.f32.mrb[139].mxu1  ;;  %v7232_v29 = vpack.c.bf16 %v6140_v13, %v6139_v5  ;;  %v6164_v38 = vmax.f32 %v6104_v57, 0.0  ;;  %v6081_v17 = vadd.f32 %v10662_v23, %v6009_v30  ;;  %v6033_v63 = vmul.f32 %v10658_v42, %v5961_v49 }
 0x32a   :  { %v5938_v11 = vadd.f32 %v5776_v60, %v10458_v0  ;;  %v5824_v1 = vsel %vm5738_vm2, %v5819_v16, %v5823_v7  ;;  %v5778_v43 = vsel %vm5738_vm2, %v5773_v62, %v5777_v44  ;;  %v5826_v41 = vsel %vm5738_vm2, %v5821_v31, %v5825_v55 }
 0x32b   :  { %6374 = vst [vmem:[%s11197_s7 + $0x38] sm:$0xff] %v7232_v29  ;;  %v7244_v45 = vpack.c.bf16 %v6164_v38, %v6163_v14  ;;  %v6141_v52 = vmax.f32 %v6081_v17, 0.0  ;;  %v6105_v61 = vadd.f32 %v10662_v23, %v6033_v63  ;;  %v5962_v5 = vadd.f32 %v5824_v1, %v10626_v26  ;;  %v11279_v63 = vld [vmem:[#allocation20_spill] sm:$0xff] }
 0x32c   :  { %v6010_v9 = vmul.f32 %v10660_v6, %v5938_v11  ;;  %v5939_v0 = vadd.f32 %v5778_v43, %v10462_v34  ;;  %v5963_v16 = vadd.f32 %v5826_v41, %v10630_v4  ;;  %v5779_v62 = vrot.slane %v10821_v58, 5  ;;  %v11280_v41 = vld [vmem:[#allocation2_spill] sm:$0xff] }
 0x32d   :  { %6386 = vst [vmem:[%s11197_s7 + $0x98] sm:$0xff] %v7244_v45  ;;  %v6165_v31 = vmax.f32 %v6105_v61, 0.0  ;;  %v6034_v51 = vmul.f32 %v10660_v6, %v5962_v5  ;;  %v5827_v56 = vrot.slane %v10823_v24, 5  ;;  %v5781_v15 = vrot.slane %v10845_v2, 5  ;;  %v10894_v26 = vpop.f32.mrb[88].mxu0 }
 0x32e   :  { %v10896_v14 = vpop.f32.mrb[140].mxu1  ;;  %v6082_v34 = vadd.f32 %v10664_v36, %v6010_v9  ;;  %v6011_v4 = vmul.f32 %v10658_v42, %v5939_v0  ;;  %v6035_v58 = vmul.f32 %v10658_v42, %v5963_v16  ;;  %v5780_v3 = vsel %vm5738_vm2, %v5775_v25, %v5779_v62  ;;  %v10902_v13 = vpop.f32.mrb[89].mxu0 }
 0x32f   :  { %v10904_v57 = vpop.f32.mrb[141].mxu1  ;;  %v6106_v24 = vadd.f32 %v10664_v36, %v6034_v51  ;;  %v5940_v2 = vadd.f32 %v5780_v3, %v10466_v22  ;;  %v5828_v30 = vsel %vm5738_vm2, %v5823_v7, %v5827_v56  ;;  %v5782_v49 = vsel %vm5738_vm2, %v5777_v44, %v5781_v15  ;;  %v10910_v60 = vpop.f32.mrb[90].mxu0  ;;  %v11281_v3 = vld [vmem:[#allocation21_spill] sm:$0xff] }
 0x330   :  { %v10912_v29 = vpop.f32.mrb[142].mxu1  ;;  %v6142_v38 = vmax.f32 %v6082_v34, 0.0  ;;  %v6083_v17 = vadd.f32 %v10662_v23, %v6011_v4  ;;  %v6107_v25 = vadd.f32 %v10662_v23, %v6035_v58  ;;  %v5964_v11 = vadd.f32 %v5828_v30, %v11279_v63  ;;  %v10917_v1 = vpop.f32.mrb[91].mxu0 }
 0x331   :  { %v10919_v43 = vpop.f32.mrb[143].mxu1  ;;  %v6166_v22 = vmax.f32 %v6106_v24, 0.0  ;;  %v6012_v7 = vmul.f32 %v10660_v6, %v5940_v2  ;;  %v5941_v44 = vadd.f32 %v5782_v49, %v11280_v41  ;;  %v5829_v45 = vrot.slane %v10847_v47, 5 }
 0x332   :  { %v7233_v61 = vpack.c.bf16 %v6142_v38, %v6141_v52  ;;  %v6143_v5 = vmax.f32 %v6083_v17, 0.0  ;;  %v6167_v9 = vmax.f32 %v6107_v25, 0.0  ;;  %v6036_v0 = vmul.f32 %v10660_v6, %v5964_v11 }
 0x333   :  { %v7245_v16 = vpack.c.bf16 %v6166_v22, %v6165_v31  ;;  %v6084_v51 = vadd.f32 %v10664_v36, %v6012_v7  ;;  %v6013_v34 = vmul.f32 %v10658_v42, %v5941_v44  ;;  %v5830_v4 = vsel %vm5738_vm2, %v5825_v55, %v5829_v45 }
 0x334   :  { %6375 = vst [vmem:[%s11197_s7 + $0x40] sm:$0xff] %v7233_v61  ;;  %v6108_v58 = vadd.f32 %v10664_v36, %v6036_v0  ;;  %v5965_v47 = vadd.f32 %v5830_v4, %v11281_v3  ;;  %v5783_v52 = vrot.slane %v10851_v10, 5  ;;  %v5831_v24 = vrot.slane %v10853_v35, 5  ;;  %v11284_v3 = vld [vmem:[#allocation4_spill] sm:$0xff] }
 0x335   :  { %6387 = vst [vmem:[%s11197_s7 + $0xa0] sm:$0xff] %v7245_v16  ;;  %v6144_v31 = vmax.f32 %v6084_v51, 0.0  ;;  %v6085_v2 = vadd.f32 %v10662_v23, %v6013_v34  ;;  %v5785_v55 = vrot.slane %v10858_v28, 5  ;;  %v5833_v30 = vrot.slane %v10860_v59, 5  ;;  %v10941_v49 = vpop.f32.mrb[92].mxu0  ;;  %v11282_v28 = vld [vmem:[#allocation3_spill] sm:$0xff] }
 0x336   :  { %v10943_v38 = vpop.f32.mrb[144].mxu1  ;;  %v6168_v17 = vmax.f32 %v6108_v58, 0.0  ;;  %v6037_v10 = vmul.f32 %v10658_v42, %v5965_v47  ;;  %v5784_v35 = vsel %vm5738_vm2, %v5779_v62, %v5783_v52  ;;  %v5832_v25 = vsel %vm5738_vm2, %v5827_v56, %v5831_v24  ;;  %v10948_v63 = vpop.f32.mrb[93].mxu0  ;;  %v11283_v59 = vld [vmem:[#allocation22_spill] sm:$0xff]  ;;  %v11285_v47 = vld [vmem:[#allocation23_spill] sm:$0xff] }
 0x337   :  { %v10950_v11 = vpop.f32.mrb[145].mxu1  ;;  %v7234_v22 = vpack.c.bf16 %v6144_v31, %v6143_v5  ;;  %v6145_v7 = vmax.f32 %v6085_v2, 0.0  ;;  %v5942_v41 = vadd.f32 %v5784_v35, %v11282_v28  ;;  %v5966_v44 = vadd.f32 %v5832_v25, %v11283_v59  ;;  %v10954_v61 = vpop.f32.mrb[94].mxu0 }
 0x338   :  { %v10956_v0 = vpop.f32.mrb[146].mxu1  ;;  %v7246_v16 = vpack.c.bf16 %v6168_v17, %v6167_v9  ;;  %v6109_v51 = vadd.f32 %v10662_v23, %v6037_v10  ;;  %v5786_v62 = vsel %vm5738_vm2, %v5781_v15, %v5785_v55  ;;  %v5834_v56 = vsel %vm5738_vm2, %v5829_v45, %v5833_v30  ;;  %v10961_v34 = vpop.f32.mrb[95].mxu0 }
 0x339   :  { %v10963_v4 = vpop.f32.mrb[147].mxu1  ;;  %6376 = vst [vmem:[%s11197_s7 + $0x48] sm:$0xff] %v7234_v22  ;;  %v6014_v5 = vmul.f32 %v10660_v6, %v5942_v41  ;;  %v6038_v58 = vmul.f32 %v10660_v6, %v5966_v44  ;;  %v5943_v9 = vadd.f32 %v5786_v62, %v11284_v3  ;;  %v5967_v31 = vadd.f32 %v5834_v56, %v11285_v47  ;;  %v11286_v56 = vld [vmem:[#allocation5_spill] sm:$0xff]  ;;  %v11288_v3 = vld [vmem:[#allocation6_spill] sm:$0xff] }
 0x33a   :  { %6388 = vst [vmem:[%s11197_s7 + $0xa8] sm:$0xff] %v7246_v16  ;;  %v6169_v15 = vmax.f32 %v6109_v51, 0.0  ;;  %v5787_v45 = vrot.slane %v10869_v50, 5  ;;  %v5835_v2 = vrot.slane %v10871_v48, 5  ;;  %v5789_v17 = vrot.slane %v10894_v26, 5 }
 0x33b   :  { %v6086_v10 = vadd.f32 %v10664_v36, %v6014_v5  ;;  %v6110_v35 = vadd.f32 %v10664_v36, %v6038_v58  ;;  %v6015_v25 = vmul.f32 %v10658_v42, %v5943_v9  ;;  %v6039_v22 = vmul.f32 %v10658_v42, %v5967_v31  ;;  %v11287_v58 = vld [vmem:[#allocation24_spill] sm:$0xff] }
 0x33c   :  { %v5788_v28 = vsel %vm5738_vm2, %v5783_v52, %v5787_v45  ;;  %v5836_v41 = vsel %vm5738_vm2, %v5831_v24, %v5835_v2  ;;  %v5790_v59 = vsel %vm5738_vm2, %v5785_v55, %v5789_v17  ;;  %v5837_v50 = vrot.slane %v10896_v14, 5 }
 0x33d   :  { %v6146_v44 = vmax.f32 %v6086_v10, 0.0  ;;  %v6170_v48 = vmax.f32 %v6110_v35, 0.0  ;;  %v6087_v26 = vadd.f32 %v10662_v23, %v6015_v25  ;;  %v6111_v16 = vadd.f32 %v10662_v23, %v6039_v22  ;;  %v10988_v51 = vpop.f32.mrb[96].mxu0 }
 0x33e   :  { %v10990_v62 = vpop.f32.mrb[148].mxu1  ;;  %v5944_v5 = vadd.f32 %v5788_v28, %v11286_v56  ;;  %v5968_v52 = vadd.f32 %v5836_v41, %v11287_v58  ;;  %v5945_v24 = vadd.f32 %v5790_v59, %v11288_v3  ;;  %v5838_v55 = vsel %vm5738_vm2, %v5833_v30, %v5837_v50  ;;  %v10996_v9 = vpop.f32.mrb[97].mxu0 }
 0x33f   :  { %v10998_v14 = vpop.f32.mrb[149].mxu1  ;;  %v7235_v47 = vpack.c.bf16 %v6146_v44, %v6145_v7  ;;  %v7247_v31 = vpack.c.bf16 %v6170_v48, %v6169_v15  ;;  %v6147_v10 = vmax.f32 %v6087_v26, 0.0  ;;  %v6171_v35 = vmax.f32 %v6111_v16, 0.0  ;;  %v11000_v25 = vpop.f32.mrb[98].mxu0 }
 0x340   :  { %v11002_v22 = vpop.f32.mrb[150].mxu1  ;;  %v6016_v28 = vmul.f32 %v10660_v6, %v5944_v5  ;;  %v6040_v41 = vmul.f32 %v10660_v6, %v5968_v52  ;;  %v6017_v59 = vmul.f32 %v10658_v42, %v5945_v24  ;;  %v5969_v30 = vadd.f32 %v5838_v55, %v10669_v32  ;;  %v11008_v56 = vpop.f32.mrb[99].mxu0 }
 0x341   :  { %v11010_v58 = vpop.f32.mrb[151].mxu1  ;;  %6377 = vst [vmem:[%s11197_s7 + $0x50] sm:$0xff] %v7235_v47  ;;  %6389 = vst [vmem:[%s11197_s7 + $0xb0] sm:$0xff] %v7247_v31  ;;  %v5791_v7 = vrot.slane %v10902_v13, 5  ;;  %v5839_v15 = vrot.slane %v10904_v57, 5  ;;  %v5793_v44 = vrot.slane %v10910_v60, 5 }
 0x342   :  { %v5841_v32 = vrot.slane %v10912_v29, 5  ;;  %v6088_v48 = vadd.f32 %v10664_v36, %v6016_v28  ;;  %v6112_v26 = vadd.f32 %v10664_v36, %v6040_v41  ;;  %v6089_v16 = vadd.f32 %v10662_v23, %v6017_v59  ;;  %v11289_v47 = vld [vmem:[#allocation7_spill] sm:$0xff]  ;;  %v11290_v41 = vld [vmem:[#allocation8_spill] sm:$0xff] }
 0x343   :  { %v6041_v5 = vmul.f32 %v10658_v42, %v5969_v30  ;;  %v5792_v52 = vsel %vm5738_vm2, %v5787_v45, %v5791_v7  ;;  %v5840_v3 = vsel %vm5738_vm2, %v5835_v2, %v5839_v15  ;;  %v5794_v13 = vsel %vm5738_vm2, %v5789_v17, %v5793_v44 }
 0x344   :  { %v5842_v57 = vsel %vm5738_vm2, %v5837_v50, %v5841_v32  ;;  %v6148_v24 = vmax.f32 %v6088_v48, 0.0  ;;  %v6172_v60 = vmax.f32 %v6112_v26, 0.0  ;;  %v6149_v55 = vmax.f32 %v6089_v16, 0.0 }
 0x345   :  { %v6113_v29 = vadd.f32 %v10662_v23, %v6041_v5  ;;  %v5946_v31 = vadd.f32 %v5792_v52, %v11289_v47  ;;  %v5970_v28 = vadd.f32 %v5840_v3, %v10675_v54  ;;  %v5947_v59 = vadd.f32 %v5794_v13, %v11290_v41  ;;  %v11291_v13 = vld [vmem:[#allocation9_spill] sm:$0xff] }
 0x346   :  { %v5971_v30 = vadd.f32 %v5842_v57, %v10682_v37  ;;  %v7236_v45 = vpack.c.bf16 %v6148_v24, %v6147_v10  ;;  %v7248_v21 = vpack.c.bf16 %v6172_v60, %v6171_v35  ;;  %v5795_v17 = vrot.slane %v10917_v1, 5  ;;  %v11292_v47 = vld [vmem:[#allocation25_spill] sm:$0xff] }
 0x347   :  { %v6173_v2 = vmax.f32 %v6113_v29, 0.0  ;;  %v6018_v50 = vmul.f32 %v10660_v6, %v5946_v31  ;;  %v6042_v48 = vmul.f32 %v10660_v6, %v5970_v28  ;;  %v6019_v26 = vmul.f32 %v10658_v42, %v5947_v59  ;;  %v11293_v28 = vld [vmem:[#allocation10_spill] sm:$0xff] }
 0x348   :  { %v6043_v16 = vmul.f32 %v10658_v42, %v5971_v30  ;;  %6378 = vst [vmem:[%s11197_s7 + $0x58] sm:$0xff] %v7236_v45  ;;  %6390 = vst [vmem:[%s11197_s7 + $0xb8] sm:$0xff] %v7248_v21  ;;  %v5796_v54 = vsel %vm5738_vm2, %v5791_v7, %v5795_v17  ;;  %v5843_v37 = vrot.slane %v10919_v43, 5  ;;  %v5797_v1 = vrot.slane %v10941_v49, 5 }
 0x349   :  { %v5845_v10 = vrot.slane %v10943_v38, 5  ;;  %v6090_v35 = vadd.f32 %v10664_v36, %v6018_v50  ;;  %v6114_v5 = vadd.f32 %v10664_v36, %v6042_v48  ;;  %v6091_v52 = vadd.f32 %v10662_v23, %v6019_v26 }
 0x34a   :  { %v6115_v3 = vadd.f32 %v10662_v23, %v6043_v16  ;;  %v5948_v57 = vadd.f32 %v5796_v54, %v11291_v13  ;;  %v5844_v21 = vsel %vm5738_vm2, %v5839_v15, %v5843_v37  ;;  %v5798_v7 = vsel %vm5738_vm2, %v5793_v44, %v5797_v1 }
 0x34b   :  { %v5846_v43 = vsel %vm5738_vm2, %v5841_v32, %v5845_v10  ;;  %v6150_v24 = vmax.f32 %v6090_v35, 0.0  ;;  %v6174_v49 = vmax.f32 %v6114_v5, 0.0  ;;  %v6151_v60 = vmax.f32 %v6091_v52, 0.0  ;;  %v11294_v5 = vld [vmem:[#allocation11_spill] sm:$0xff] }
 0x34c   :  { %v6175_v38 = vmax.f32 %v6115_v3, 0.0  ;;  %v6020_v29 = vmul.f32 %v10660_v6, %v5948_v57  ;;  %v5972_v31 = vadd.f32 %v5844_v21, %v11292_v47  ;;  %v5949_v41 = vadd.f32 %v5798_v7, %v11293_v28 }
 0x34d   :  { %v5973_v59 = vadd.f32 %v5846_v43, %v10699_v53  ;;  %v7237_v30 = vpack.c.bf16 %v6150_v24, %v6149_v55  ;;  %v7249_v45 = vpack.c.bf16 %v6174_v49, %v6173_v2  ;;  %v5799_v15 = vrot.slane %v10948_v63, 5  ;;  %v11295_v43 = vld [vmem:[#allocation12_spill] sm:$0xff] }
 0x34e   :  { %v5847_v44 = vrot.slane %v10950_v11, 5  ;;  %v6092_v32 = vadd.f32 %v10664_v36, %v6020_v29  ;;  %v6044_v50 = vmul.f32 %v10660_v6, %v5972_v31  ;;  %v6021_v48 = vmul.f32 %v10658_v42, %v5949_v41 }
 0x34f   :  { %v6045_v26 = vmul.f32 %v10658_v42, %v5973_v59  ;;  %6379 = vst [vmem:[%s11197_s7 + $0x60] sm:$0xff] %v7237_v30  ;;  %6391 = vst [vmem:[%s11197_s7 + $0xc0] sm:$0xff] %v7249_v45  ;;  %v5800_v53 = vsel %vm5738_vm2, %v5795_v17, %v5799_v15  ;;  %v5801_v11 = vrot.slane %v10954_v61, 5  ;;  %v5849_v55 = vrot.slane %v10956_v0, 5  ;;  %v11296_v45 = vld [vmem:[#allocation13_spill] sm:$0xff] }
 0x350   :  { %v5848_v63 = vsel %vm5738_vm2, %v5843_v37, %v5847_v44  ;;  %v6152_v2 = vmax.f32 %v6092_v32, 0.0  ;;  %v6116_v16 = vadd.f32 %v10664_v36, %v6044_v50  ;;  %v6093_v54 = vadd.f32 %v10662_v23, %v6021_v48  ;;  %v11297_v48 = vld [vmem:[#allocation14_spill] sm:$0xff] }
 0x351   :  { %v6117_v35 = vadd.f32 %v10662_v23, %v6045_v26  ;;  %v5950_v52 = vadd.f32 %v5800_v53, %v11294_v5  ;;  %v5974_v3 = vadd.f32 %v5848_v63, %v10707_v33  ;;  %v5802_v13 = vsel %vm5738_vm2, %v5797_v1, %v5801_v11 }
 0x352   :  { %v5850_v17 = vsel %vm5738_vm2, %v5845_v10, %v5849_v55  ;;  %v7238_v37 = vpack.c.bf16 %v6152_v2, %v6151_v60  ;;  %v6176_v57 = vmax.f32 %v6116_v16, 0.0  ;;  %v6153_v61 = vmax.f32 %v6093_v54, 0.0 }
 0x353   :  { %v6177_v21 = vmax.f32 %v6117_v35, 0.0  ;;  %v6022_v0 = vmul.f32 %v10660_v6, %v5950_v52  ;;  %v6046_v7 = vmul.f32 %v10660_v6, %v5974_v3  ;;  %v5951_v24 = vadd.f32 %v5802_v13, %v11295_v43 }
 0x354   :  { %v5975_v49 = vadd.f32 %v5850_v17, %v10718_v18  ;;  %6380 = vst [vmem:[%s11197_s7 + $0x68] sm:$0xff] %v7238_v37  ;;  %v7250_v33 = vpack.c.bf16 %v6176_v57, %v6175_v38  ;;  %v5803_v1 = vrot.slane %v10961_v34, 5  ;;  %v5851_v10 = vrot.slane %v10963_v4, 5 }
 0x355   :  { %v5805_v60 = vrot.slane %v10988_v51, 5  ;;  %v6094_v29 = vadd.f32 %v10664_v36, %v6022_v0  ;;  %v6118_v47 = vadd.f32 %v10664_v36, %v6046_v7  ;;  %v6023_v31 = vmul.f32 %v10658_v42, %v5951_v24  ;;  %v11299_v7 = vld [vmem:[#allocation16_spill] sm:$0xff]  ;;  %v11300_v24 = vld [vmem:[#allocation18_spill] sm:$0xff] }
 0x356   :  { %v6047_v28 = vmul.f32 %v10658_v42, %v5975_v49  ;;  %6392 = vst [vmem:[%s11197_s7 + $0xc8] sm:$0xff] %v7250_v33  ;;  %v5804_v18 = vsel %vm5738_vm2, %v5799_v15, %v5803_v1  ;;  %v5852_v34 = vsel %vm5738_vm2, %v5847_v44, %v5851_v10  ;;  %v5853_v51 = vrot.slane %v10990_v62, 5 }
 0x357   :  { %v5806_v4 = vsel %vm5738_vm2, %v5801_v11, %v5805_v60  ;;  %v6154_v38 = vmax.f32 %v6094_v29, 0.0  ;;  %v6178_v41 = vmax.f32 %v6118_v47, 0.0  ;;  %v6095_v59 = vadd.f32 %v10662_v23, %v6023_v31 }
 0x358   :  { %v6119_v30 = vadd.f32 %v10662_v23, %v6047_v28  ;;  %v5952_v32 = vadd.f32 %v5804_v18, %v11296_v45  ;;  %v5976_v50 = vadd.f32 %v5852_v34, %v10725_v46  ;;  %v5953_v26 = vadd.f32 %v5806_v4, %v11297_v48 }
 0x359   :  { %v5854_v15 = vsel %vm5738_vm2, %v5849_v55, %v5853_v51  ;;  %v7239_v53 = vpack.c.bf16 %v6154_v38, %v6153_v61  ;;  %v7251_v44 = vpack.c.bf16 %v6178_v41, %v6177_v21  ;;  %v6155_v63 = vmax.f32 %v6095_v59, 0.0  ;;  %v11298_v21 = vld [vmem:[#allocation15_spill] sm:$0xff] }
 0x35a   :  { %v6024_v11 = vmul.f32 %v10660_v6, %v5952_v32  ;;  %v6048_v62 = vmul.f32 %v10660_v6, %v5976_v50  ;;  %v6025_v2 = vmul.f32 %v10658_v42, %v5953_v26  ;;  %v5977_v16 = vadd.f32 %v5854_v15, %v10738_v8  ;;  %v11302_v50 = vld [vmem:[#allocation17_spill] sm:$0xff]  ;;  %v11303_v26 = vld [vmem:[#allocation19_spill] sm:$0xff] }
 0x35b   :  { %6381 = vst [vmem:[%s11197_s7 + $0x70] sm:$0xff] %v7239_v53  ;;  %6393 = vst [vmem:[%s11197_s7 + $0xd0] sm:$0xff] %v7251_v44  ;;  %v6179_v46 = vmax.f32 %v6119_v30, 0.0  ;;  %v5807_v55 = vrot.slane %v10996_v9, 5  ;;  %v5855_v54 = vrot.slane %v10998_v14, 5  ;;  %v5809_v35 = vrot.slane %v11000_v25, 5 }
 0x35c   :  { %v6096_v5 = vadd.f32 %v10664_v36, %v6024_v11  ;;  %v6120_v52 = vadd.f32 %v10664_v36, %v6048_v62  ;;  %v6049_v8 = vmul.f32 %v10658_v42, %v5977_v16  ;;  %v5857_v3 = vrot.slane %v11002_v22, 5 }
 0x35d   :  { %v5808_v13 = vsel %vm5738_vm2, %v5803_v1, %v5807_v55  ;;  %v5856_v17 = vsel %vm5738_vm2, %v5851_v10, %v5855_v54  ;;  %v5810_v37 = vsel %vm5738_vm2, %v5805_v60, %v5809_v35  ;;  %v5814_v9 = vsel %vm5738_vm2, %v5809_v35, %v5813_v27 }
 0x35e   :  { %v6156_v14 = vmax.f32 %v6096_v5, 0.0  ;;  %v6180_v25 = vmax.f32 %v6120_v52, 0.0  ;;  %v6097_v57 = vadd.f32 %v10662_v23, %v6025_v2  ;;  %v6121_v61 = vadd.f32 %v10662_v23, %v6049_v8 }
 0x35f   :  { %v5954_v0 = vadd.f32 %v5808_v13, %v11298_v21  ;;  %v5978_v22 = vadd.f32 %v5856_v17, %v10749_v12  ;;  %v5955_v43 = vadd.f32 %v5810_v37, %v11299_v7  ;;  %v5957_v49 = vadd.f32 %v5814_v9, %v11300_v24 }
 0x360   :  { %v7240_v33 = vpack.c.bf16 %v6156_v14, %v6155_v63  ;;  %v7252_v1 = vpack.c.bf16 %v6180_v25, %v6179_v46  ;;  %v5858_v40 = vsel %vm5738_vm2, %v5853_v51, %v5857_v3  ;;  %v5811_v47 = vrot.slane %v11008_v56, 5 }
 0x361   :  { %v6026_v27 = vmul.f32 %v10660_v6, %v5954_v0  ;;  %v6050_v10 = vmul.f32 %v10660_v6, %v5978_v22  ;;  %v6027_v60 = vmul.f32 %v10658_v42, %v5955_v43  ;;  %v6029_v29 = vmul.f32 %v10658_v42, %v5957_v49 }
 0x362   :  { %6382 = vst [vmem:[%s11197_s7 + $0x78] sm:$0xff] %v7240_v33  ;;  %6394 = vst [vmem:[%s11197_s7 + $0xd8] sm:$0xff] %v7252_v1  ;;  %v5979_v12 = vadd.f32 %v5858_v40, %v10756_v20  ;;  %v5859_v31 = vrot.slane %v11010_v58, 5  ;;  %v6157_v28 = vmax.f32 %v6097_v57, 0.0  ;;  %v6181_v18 = vmax.f32 %v6121_v61, 0.0 }
 0x363   :  { %v6098_v34 = vadd.f32 %v10664_v36, %v6026_v27  ;;  %v6122_v4 = vadd.f32 %v10664_v36, %v6050_v10  ;;  %v5812_v38 = vsel %vm5738_vm2, %v5807_v55, %v5811_v47  ;;  %v11301_v41 = vrot.slane %v10758_v19, 5 }
 0x364   :  { %v6051_v51 = vmul.f32 %v10658_v42, %v5979_v12  ;;  %v5860_v20 = vsel %vm5738_vm2, %v5855_v54, %v5859_v31  ;;  %v6099_v58 = vadd.f32 %v10662_v23, %v6027_v60  ;;  %v6101_v45 = vadd.f32 %v10662_v23, %v6029_v29 }
 0x365   :  { %v5816_v59 = vsel %vm5738_vm2, %v5811_v47, %v11301_v41  ;;  %v6158_v30 = vmax.f32 %v6098_v34, 0.0  ;;  %v6182_v56 = vmax.f32 %v6122_v4, 0.0  ;;  %v5956_v48 = vadd.f32 %v5812_v38, %v11302_v50 }
 0x366   :  { %v6123_v32 = vadd.f32 %v10662_v23, %v6051_v51  ;;  %v5958_v42 = vadd.f32 %v5816_v59, %v11303_v26  ;;  %v5980_v15 = vadd.f32 %v5860_v20, %v10776_v39  ;;  %v6159_v23 = vmax.f32 %v6099_v58, 0.0 }
 0x367   :  { %v7241_v53 = vpack.c.bf16 %v6158_v30, %v6157_v28  ;;  %v7253_v19 = vpack.c.bf16 %v6182_v56, %v6181_v18  ;;  %v6028_v44 = vmul.f32 %v10660_v6, %v5956_v48  ;;  %v6161_v62 = vmax.f32 %v6101_v45, 0.0 }
 0x368   :  { %v6030_v63 = vmul.f32 %v10660_v6, %v5958_v42  ;;  %v6052_v11 = vmul.f32 %v10660_v6, %v5980_v15  ;;  %v6183_v2 = vmax.f32 %v6123_v32, 0.0 }
 0x369   :  { %6383 = vst [vmem:[%s11197_s7 + $0x80] sm:$0xff] %v7241_v53  ;;  %6395 = vst [vmem:[%s11197_s7 + $0xe0] sm:$0xff] %v7253_v19  ;;  %v6100_v39 = vadd.f32 %v10664_v36, %v6028_v44 }
 0x36a   :  { %v6102_v16 = vadd.f32 %v10664_v36, %v6030_v63  ;;  %v6124_v46 = vadd.f32 %v10664_v36, %v6052_v11 }
 0x36b   :  { %v6160_v55 = vmax.f32 %v6100_v39, 0.0 }
 0x36c   :  { %v6162_v54 = vmax.f32 %v6102_v16, 0.0  ;;  %v6184_v6 = vmax.f32 %v6124_v46, 0.0 }
 0x36d   :  { %v7242_v35 = vpack.c.bf16 %v6160_v55, %v6159_v23 }
 0x36e   :  { %v7243_v5 = vpack.c.bf16 %v6162_v54, %v6161_v62  ;;  %v7254_v52 = vpack.c.bf16 %v6184_v6, %v6183_v2 }
 0x36f   :  { %6384 = vst [vmem:[%s11197_s7 + $0x88] sm:$0xff] %v7242_v35 }
 0x370   :  { %6385 = vst [vmem:[%s11197_s7 + $0x90] sm:$0xff] %v7243_v5  ;;  %6396 = vst [vmem:[%s11197_s7 + $0xe8] sm:$0xff] %v7254_v52 }

</bundles_post_ra>
